<compile_context>
chip_gen: v7x
topology: tpu7x:2x2x1
jax: 0.10.0
libtpu: 0.0.40
codegen_flags: <defaults>
</compile_context>

<pallas_src>
import functools

import jax
import jax.numpy as jnp
from jax import lax
from jax.experimental import pallas as pl
from jax.experimental.pallas import tpu as pltpu


def _round_up(x, m):
    return ((x + m - 1) // m) * m


# ---------------------------------------------------------------------------
# Pallas kernel 1: tiled matmul + bias (input convolutions in im2col form).
# ---------------------------------------------------------------------------
def _matmul_bias_kernel(a_ref, w_ref, b_ref, o_ref):
    acc = jnp.dot(a_ref[...], w_ref[...], preferred_element_type=jnp.float32)
    o_ref[...] = (acc + b_ref[...]).astype(o_ref.dtype)


def matmul_bias(a, w_mat, bias, *, tile_m=1024, out_dtype=jnp.float32):
    """a: (M, K), w_mat: (K, N), bias: (N,) -> (M, N) = a @ w_mat + bias.

    bf16 operands feed the MXU (f32 accumulate).  Tiles are balanced over M and
    capped so a (tm, K) bf16 block stays ~<=2 MiB, which double-buffers safely
    inside the default scoped VMEM on v5e/v6e/v7x.
    """
    m, k = a.shape
    n = w_mat.shape[1]
    a = a.astype(jnp.bfloat16)
    w_mat = w_mat.astype(jnp.bfloat16)
    bias = bias.reshape(1, n).astype(jnp.float32)

    cap_rows = max(8, ((2 << 20) // max(1, 2 * k)) // 8 * 8)
    tm_target = max(8, min(tile_m, cap_rows))
    n_blocks = max(1, -(-m // tm_target))
    tm = _round_up(-(-m // n_blocks), 8)
    m_pad = _round_up(m, tm)
    if m_pad != m:
        a = jnp.pad(a, ((0, m_pad - m), (0, 0)))

    out = pl.pallas_call(
        _matmul_bias_kernel,
        out_shape=jax.ShapeDtypeStruct((m_pad, n), out_dtype),
        grid=(m_pad // tm,),
        in_specs=[
            pl.BlockSpec((tm, k), lambda i: (i, 0)),
            pl.BlockSpec((k, n), lambda i: (0, 0)),
            pl.BlockSpec((1, n), lambda i: (0, 0)),
        ],
        out_specs=pl.BlockSpec((tm, n), lambda i: (i, 0)),
        compiler_params=pltpu.CompilerParams(
            dimension_semantics=("parallel",)),
    )(a, w_mat, bias)
    return out[:m]


# ---------------------------------------------------------------------------
# Pallas kernel 2: fused per-layer GRU recurrence.
# Grid = (batch_shards, T); hidden state resident in a VMEM scratch across the
# time axis in a per-image zero-padded row layout.
# ---------------------------------------------------------------------------
def _gru_step_kernel(gi_ref, wh_ref, bh_ref, valid_ref, hseq_ref, hpad_ref, *,
                     hd, m_shard, kh, kw, pw, head):
    t = pl.program_id(1)

    @pl.when(t == 0)
    def _():
        # Initial hidden state is zeros (matches ConvGRUCell.init_hidden); also
        # establishes the zero halo of the padded layout.
        hpad_ref[...] = jnp.zeros_like(hpad_ref)

    kh2, kw2 = kh // 2, kw // 2

    # 'same' hidden conv as ONE fused bf16 MXU dot (f32 accumulate): gather the
    # kh*kw constant-shift windows of the zero-padded hidden state, concatenate
    # along channels (K = kh*kw*hd) and contract with the flattened conv_h
    # weights.  No masks: out-of-image taps read the zero halo.
    parts = []
    for di in range(kh):
        for dj in range(kw):
            shift = (di - kh2) * pw + (dj - kw2)
            parts.append(hpad_ref[pl.ds(head + shift, m_shard), :])
    h_cat = jnp.concatenate(parts, axis=-1).astype(jnp.bfloat16)
    a_h = jnp.dot(h_cat, wh_ref[...],
                  preferred_element_type=jnp.float32) + bh_ref[...]

    a_i = gi_ref[0].astype(jnp.float32)
    h_cur = hpad_ref[pl.ds(head, m_shard), :]

    r = jax.nn.sigmoid(a_i[:, :hd] + a_h[:, :hd])
    z = jax.nn.sigmoid(a_i[:, hd:2 * hd] + a_h[:, hd:2 * hd])
    n = jnp.tanh(a_i[:, 2 * hd:] + r * a_h[:, 2 * hd:])
    # h*z + n*(1-z) == n + z*(h - n); the validity column keeps halo rows of the
    # padded layout at exact zero so next step's taps read true zero padding.
    h_next = (n + z * (h_cur - n)) * valid_ref[...]

    hpad_ref[pl.ds(head, m_shard), :] = h_next
    hseq_ref[0] = h_next.astype(hseq_ref.dtype)


def gru_layer_recurrence(gi, w_hh_mat, b_hh, valid, *, hd, pw, kh, kw, n_shards):
    """gi: (T, M_pad, 3*hd) input-conv pre-activations in the padded row layout.
    w_hh_mat: (kh*kw*hd, 3*hd); b_hh: (3*hd,); valid: (M_pad, 1) 0/1 rows.
    Returns h_seq: (T, M_pad, hd) bf16 (padded layout)."""
    t_steps, m_total, n3 = gi.shape
    m_shard = m_total // n_shards
    head = _round_up((kh // 2) * pw + (kw // 2), 8)

    kernel = functools.partial(_gru_step_kernel, hd=hd, m_shard=m_shard,
                               kh=kh, kw=kw, pw=pw, head=head)

    return pl.pallas_call(
        kernel,
        out_shape=jax.ShapeDtypeStruct((t_steps, m_total, hd), jnp.bfloat16),
        grid=(n_shards, t_steps),
        in_specs=[
            pl.BlockSpec((1, m_shard, n3), lambda s, t: (t, s, 0)),
            pl.BlockSpec((kh * kw * hd, n3), lambda s, t: (0, 0)),
            pl.BlockSpec((1, n3), lambda s, t: (0, 0)),
            pl.BlockSpec((m_shard, 1), lambda s, t: (s, 0)),
        ],
        out_specs=pl.BlockSpec((1, m_shard, hd), lambda s, t: (t, s, 0)),
        scratch_shapes=[pltpu.VMEM((2 * head + m_shard, hd), jnp.float32)],
        compiler_params=pltpu.CompilerParams(
            dimension_semantics=("parallel", "arbitrary")),
    )(gi.astype(jnp.bfloat16), w_hh_mat.astype(jnp.bfloat16),
      b_hh.reshape(1, n3).astype(jnp.float32), valid.astype(jnp.float32))


# ---------------------------------------------------------------------------
# Host-side glue: im2col, padded-layout plumbing.
# ---------------------------------------------------------------------------
def _im2col(frames, kh, kw, sh, sw):
    """frames: (F, H, W, C) -> (F*oh*ow, kh*kw*C), columns ordered (di, dj, c)."""
    f, h, w, c = frames.shape
    oh = (h - kh) // sh + 1
    ow = (w - kw) // sw + 1
    cols = []
    for di in range(kh):
        for dj in range(kw):
            cols.append(frames[:, di:di + sh * (oh - 1) + 1:sh,
                               dj:dj + sw * (ow - 1) + 1:sw, :])
    a = jnp.stack(cols, axis=3).reshape(f * oh * ow, kh * kw * c)
    return a, oh, ow


def conv_gru_forward(x, params, *, hidden_dims, kernel_sizes, strides,
                     batch_first=True, return_all_layers=False):
    """Mirrors ConvGRU.forward (hidden_state=None path).

    x: (B, T, C, H, W) if batch_first else (T, B, C, H, W).
    Returns (layer_output_list, last_state_list): layer outputs (B, T, Hd, oh, ow)
    and last states (B, Hd, oh, ow), like the PyTorch module.
    """
    if not batch_first:
        x = jnp.transpose(x, (1, 0, 2, 3, 4))
    # time-major NHWC frames in bf16 (halves the im2col HBM copy; the input conv
    # is a bf16 MXU matmul anyway).
    cur = jnp.transpose(x, (1, 0, 3, 4, 2)).astype(jnp.bfloat16)

    layer_outputs, last_states = [], []
    for l, p in enumerate(params):
        hd = hidden_dims[l]
        kh, kw = kernel_sizes[l]
        sh, sw = strides[l]
        assert kh % 2 == 1 and kw % 2 == 1, "'same' conv_h assumes odd kernels"
        kh2, kw2 = kh // 2, kw // 2
        tt, bb, hin, win, cin = cur.shape

        # (1) input conv of all T*B frames: one im2col + one Pallas matmul (bf16).
        a_mat, oh, ow = _im2col(cur.reshape(tt * bb, hin, win, cin), kh, kw, sh, sw)
        w_xi_mat = jnp.transpose(p["w_xi"], (2, 3, 1, 0)).reshape(kh * kw * cin, 3 * hd)
        gi = matmul_bias(a_mat, w_xi_mat, p["b_xi"], out_dtype=jnp.bfloat16)

        # (2) per-image zero-padded row layout: each image gets a (kh2, kw2) halo
        # (rows rounded up to a multiple of 8), so every 'same'-conv tap is a
        # constant row shift and out-of-image taps read exact zeros.
        ph, pwid = oh + 2 * kh2, ow + 2 * kw2
        phw = _round_up(ph * pwid, 8)
        gi = gi.reshape(tt, bb, oh, ow, 3 * hd)
        gi = jnp.pad(gi, ((0, 0), (0, 0), (kh2, kh2), (kw2, kw2), (0, 0)))
        gi = gi.reshape(tt, bb, ph * pwid, 3 * hd)
        gi = jnp.pad(gi, ((0, 0), (0, 0), (0, phw - ph * pwid), (0, 0)))
        gi = gi.reshape(tt, bb * phw, 3 * hd)

        valid = jnp.zeros((bb, ph, pwid), jnp.float32)
        valid = valid.at[:, kh2:kh2 + oh, kw2:kw2 + ow].set(1.0)
        valid = valid.reshape(bb, ph * pwid)
        valid = jnp.pad(valid, ((0, 0), (0, phw - ph * pwid))).reshape(bb * phw, 1)

        # (3) fused time recurrence: one pallas_call per layer, hidden state
        # VMEM-resident; 2-way batch sharding keeps both v7x cores busy.
        n_shards = 2 if bb % 2 == 0 else 1
        w_hh_mat = jnp.transpose(p["w_hh"], (2, 3, 1, 0)).reshape(kh * kw * hd, 3 * hd)
        h_seq = gru_layer_recurrence(gi, w_hh_mat, p["b_hh"], valid,
                                     hd=hd, pw=pwid, kh=kh, kw=kw,
                                     n_shards=n_shards)

        # (4) strip the padding back off (host-side XLA reshapes/slices).
        h_seq = h_seq.reshape(tt, bb, phw, hd)[:, :, :ph * pwid, :]
        h_seq = h_seq.reshape(tt, bb, ph, pwid, hd)[:, :, kh2:kh2 + oh,
                                                    kw2:kw2 + ow, :]

        cur = h_seq                                               # bf16 NHWC frames
        layer_out = jnp.transpose(h_seq, (1, 0, 4, 2, 3)).astype(jnp.float32)
        layer_outputs.append(layer_out)
        last_states.append(layer_out[:, -1])

    if not return_all_layers:
        layer_outputs = layer_outputs[-1:]
        last_states = last_states[-1:]
    return layer_outputs, last_states
    # TODO(synk): passing an explicit initial hidden_state raises
    # NotImplementedError in the PyTorch module as well; only hidden_state=None
    # is implemented here.


# ---------------------------------------------------------------------------
# Pure-JAX (lax.conv) reference for correctness checking.
# ---------------------------------------------------------------------------
def conv_gru_reference(x, params, *, hidden_dims, kernel_sizes, strides,
                       batch_first=True, return_all_layers=False):
    if not batch_first:
        x = jnp.transpose(x, (1, 0, 2, 3, 4))
    b, t_steps = x.shape[0], x.shape[1]
    cur = x.astype(jnp.float32)
    outs, lasts = [], []
    dn = ("NCHW", "OIHW", "NCHW")
    for l, p in enumerate(params):
        hd = hidden_dims[l]
        kh, kw = kernel_sizes[l]
        sh, sw = strides[l]
        hin, win = cur.shape[3], cur.shape[4]
        oh = (hin - kh) // sh + 1
        ow = (win - kw) // sw + 1
        h = jnp.zeros((b, hd, oh, ow), jnp.float32)
        seq = []
        for t in range(t_steps):
            a_i = lax.conv_general_dilated(cur[:, t], p["w_xi"], (sh, sw), "VALID",
                                           dimension_numbers=dn)
            a_i = a_i + p["b_xi"][None, :, None, None]
            a_h = lax.conv_general_dilated(h, p["w_hh"], (1, 1), "SAME",
                                           dimension_numbers=dn)
            a_h = a_h + p["b_hh"][None, :, None, None]
            r = jax.nn.sigmoid(a_i[:, :hd] + a_h[:, :hd])
            z = jax.nn.sigmoid(a_i[:, hd:2 * hd] + a_h[:, hd:2 * hd])
            n = jnp.tanh(a_i[:, 2 * hd:] + r * a_h[:, 2 * hd:])
            h = h * z + n * (1.0 - z)
            seq.append(h)
        layer_out = jnp.stack(seq, axis=1)
        cur = layer_out
        outs.append(layer_out)
        lasts.append(h)
    if not return_all_layers:
        outs, lasts = outs[-1:], lasts[-1:]
    return outs, lasts


# ---------------------------------------------------------------------------
# Deterministic parameter init (matches nn.Conv2d default init distribution:
# U(-1/sqrt(fan_in), 1/sqrt(fan_in)) for both weight and bias).
# ---------------------------------------------------------------------------
def init_params(key, input_dim, hidden_dims, kernel_sizes):
    params = []
    for l, (hd, (kh, kw)) in enumerate(zip(hidden_dims, kernel_sizes)):
        cin = input_dim if l == 0 else hidden_dims[l - 1]
        key, k1, k2, k3, k4 = jax.random.split(key, 5)
        b_xi = 1.0 / float(cin * kh * kw) ** 0.5
        b_hh = 1.0 / float(hd * kh * kw) ** 0.5
        params.append({
            "w_xi": jax.random.uniform(k1, (3 * hd, cin, kh, kw), jnp.float32, -b_xi, b_xi),
            "b_xi": jax.random.uniform(k2, (3 * hd,), jnp.float32, -b_xi, b_xi),
            "w_hh": jax.random.uniform(k3, (3 * hd, hd, kh, kw), jnp.float32, -b_hh, b_hh),
            "b_hh": jax.random.uniform(k4, (3 * hd,), jnp.float32, -b_hh, b_hh),
        })
    return tuple(params)


if __name__ == "__main__":
    key = jax.random.PRNGKey(0)
    k_x, k_p = jax.random.split(key)

    # Small shapes: batch=2, seq=8, channels=4, spatial=16x16, hidden=32, 2 layers.
    B, T, C, H, W = 2, 8, 4, 16, 16
    hidden_dims = (32, 32)
    kernel_sizes = ((3, 3), (3, 3))
    strides = ((1, 1), (1, 1))

    x = jax.random.normal(k_x, (B, T, C, H, W), jnp.float32)
    params = init_params(k_p, C, hidden_dims, kernel_sizes)

    fwd = jax.jit(functools.partial(
        conv_gru_forward, hidden_dims=hidden_dims, kernel_sizes=kernel_sizes,
        strides=strides, batch_first=True))
    layer_outputs, last_states = fwd(x, params)
    layer_outputs = jax.block_until_ready(layer_outputs)
    last_states = jax.block_until_ready(last_states)

    out = layer_outputs[-1]
    h_last = last_states[-1]
    assert out.shape == (B, T, hidden_dims[-1], 12, 12), out.shape
    assert h_last.shape == (B, hidden_dims[-1], 12, 12), h_last.shape
    assert out.dtype == jnp.float32

    # Cross-check against the pure-JAX f32 reference.  Loose tolerance: the
    # Pallas path uses bf16 MXU operands (f32 accumulate / f32 hidden state) for
    # both the input and recurrent convolutions and streams gi / h_seq in bf16.
    ref_outs, ref_lasts = conv_gru_reference(
        x, params, hidden_dims=hidden_dims, kernel_sizes=kernel_sizes,
        strides=strides, batch_first=True)
    err = float(jnp.max(jnp.abs(out - ref_outs[-1])))
    assert err < 1e-1, f"max abs err vs reference: {err}"

    print("KERNEL_OK")
</pallas_src>

<mosaic_0001>
module attributes {stable_mosaic.version = 11 : i64} {
  func.func @_matmul_bias_kernel(%arg0: i32, %arg1: memref<784x36xbf16, #tpu.memory_space<vmem>>, %arg2: memref<36x96xbf16, #tpu.memory_space<vmem>>, %arg3: memref<1x96xf32, #tpu.memory_space<vmem>>, %arg4: memref<784x96xbf16, #tpu.memory_space<vmem>>) attributes {dimension_semantics = [#tpu.dimension_semantics<parallel>], iteration_bounds = array<i64: 4>, scalar_prefetch = 0 : i64, scratch_operands = 0 : i64, tpu.core_type = #tpu.core_type<tc>, window_params = [{transform_indices = @transform_0, window_bounds = array<i64: 784, 36>}, {pipeline_mode = #tpu.pipeline_mode<synchronous>, transform_indices = @transform_1, window_bounds = array<i64: 36, 96>}, {pipeline_mode = #tpu.pipeline_mode<synchronous>, transform_indices = @transform_2, window_bounds = array<i64: 1, 96>}, {transform_indices = @transform_3, window_bounds = array<i64: 784, 96>}]} {
    %c0 = arith.constant 0 : index
    %c0_0 = arith.constant 0 : index
    %0 = vector.load %arg1[%c0, %c0_0] : memref<784x36xbf16, #tpu.memory_space<vmem>>, vector<784x36xbf16>
    %c0_1 = arith.constant 0 : index
    %c0_2 = arith.constant 0 : index
    %1 = vector.load %arg2[%c0_1, %c0_2] : memref<36x96xbf16, #tpu.memory_space<vmem>>, vector<36x96xbf16>
    %cst = arith.constant dense<0.000000e+00> : vector<784x96xf32>
    %2 = tpu.matmul %0, %1, %cst {dimension_numbers = #tpu.dot_dimension_numbers<[1], [0], [0], [1], [0, 0, 1, 1], [], []>} : vector<784x36xbf16>, vector<36x96xbf16>, vector<784x96xf32> -> vector<784x96xf32>
    %c0_3 = arith.constant 0 : index
    %c0_4 = arith.constant 0 : index
    %3 = vector.load %arg3[%c0_3, %c0_4] : memref<1x96xf32, #tpu.memory_space<vmem>>, vector<1x96xf32>
    %4 = vector.broadcast %3 : vector<1x96xf32> to vector<784x96xf32>
    %5 = arith.addf %2, %4 : vector<784x96xf32>
    %6 = arith.truncf %5 : vector<784x96xf32> to vector<784x96xbf16>
    %c0_5 = arith.constant 0 : index
    %c0_6 = arith.constant 0 : index
    %7 = vector.load %arg4[%c0_5, %c0_6] : memref<784x96xbf16, #tpu.memory_space<vmem>>, vector<784x96xbf16>
    tpu.vector_store %arg4[%c0_5, %c0_6], %6 {strides = array<i32>} : memref<784x96xbf16, #tpu.memory_space<vmem>>, vector<784x96xbf16>,
    return
  }
  func.func @transform_0(%arg0: i32) -> (i32, i32) {
    %c0_i32 = arith.constant 0 : i32
    %c0_i32_0 = arith.constant 0 : i32
    return %arg0, %c0_i32 : i32, i32
  }
  func.func @transform_1(%arg0: i32) -> (i32, i32) {
    %c0_i32 = arith.constant 0 : i32
    %c0_i32_0 = arith.constant 0 : i32
    %c0_i32_1 = arith.constant 0 : i32
    return %c0_i32, %c0_i32_0 : i32, i32
  }
  func.func @transform_2(%arg0: i32) -> (i32, i32) {
    %c0_i32 = arith.constant 0 : i32
    %c0_i32_0 = arith.constant 0 : i32
    %c0_i32_1 = arith.constant 0 : i32
    return %c0_i32, %c0_i32_0 : i32, i32
  }
  func.func @transform_3(%arg0: i32) -> (i32, i32) {
    %c0_i32 = arith.constant 0 : i32
    %c0_i32_0 = arith.constant 0 : i32
    return %arg0, %c0_i32 : i32, i32
  }
}

module attributes {stable_mosaic.version = 11 : i64} {
  func.func @_gru_step_kernel(%arg0: i32, %arg1: i32, %arg2: memref<1x256x96xbf16, #tpu.memory_space<vmem>>, %arg3: memref<288x96xbf16, #tpu.memory_space<vmem>>, %arg4: memref<1x96xf32, #tpu.memory_space<vmem>>, %arg5: memref<256x1xf32, #tpu.memory_space<vmem>>, %arg6: memref<1x256x32xbf16, #tpu.memory_space<vmem>>, %arg7: memref<304x32xf32, #tpu.memory_space<vmem>>) attributes {dimension_semantics = [#tpu.dimension_semantics<parallel>, #tpu.dimension_semantics<arbitrary>], iteration_bounds = array<i64: 2, 8>, scalar_prefetch = 0 : i64, scratch_operands = 1 : i64, tpu.core_type = #tpu.core_type<tc>, window_params = [{transform_indices = @transform_0, window_bounds = array<i64: 1, 256, 96>}, {pipeline_mode = #tpu.pipeline_mode<synchronous>, transform_indices = @transform_1, window_bounds = array<i64: 288, 96>}, {pipeline_mode = #tpu.pipeline_mode<synchronous>, transform_indices = @transform_2, window_bounds = array<i64: 1, 96>}, {transform_indices = @transform_3, window_bounds = array<i64: 256, 1>}, {transform_indices = @transform_4, window_bounds = array<i64: 1, 256, 32>}]} {
    %c0_i32 = arith.constant 0 : i32
    %0 = arith.cmpi eq, %arg1, %c0_i32 : i32
    %1 = arith.extui %0 : i1 to i32
    %c0_i32_0 = arith.constant 0 : i32
    %2 = arith.cmpi ne, %1, %c0_i32_0 : i32
    scf.if %2 {
      %cst_27 = arith.constant 0.000000e+00 : f32
      %55 = vector.broadcast %cst_27 : f32 to vector<304x32xf32>
      %c0_28 = arith.constant 0 : index
      %c0_29 = arith.constant 0 : index
      %56 = vector.load %arg7[%c0_28, %c0_29] : memref<304x32xf32, #tpu.memory_space<vmem>>, vector<304x32xf32>
      tpu.vector_store %arg7[%c0_28, %c0_29], %55 {strides = array<i32>} : memref<304x32xf32, #tpu.memory_space<vmem>>, vector<304x32xf32>,
    } else {
    }
    %c7 = arith.constant 7 : index
    %c0 = arith.constant 0 : index
    %3 = vector.load %arg7[%c7, %c0] : memref<304x32xf32, #tpu.memory_space<vmem>>, vector<256x32xf32>
    %c8 = arith.constant 8 : index
    %c0_1 = arith.constant 0 : index
    %4 = vector.load %arg7[%c8, %c0_1] : memref<304x32xf32, #tpu.memory_space<vmem>>, vector<256x32xf32>
    %c9 = arith.constant 9 : index
    %c0_2 = arith.constant 0 : index
    %5 = vector.load %arg7[%c9, %c0_2] : memref<304x32xf32, #tpu.memory_space<vmem>>, vector<256x32xf32>
    %c23 = arith.constant 23 : index
    %c0_3 = arith.constant 0 : index
    %6 = vector.load %arg7[%c23, %c0_3] : memref<304x32xf32, #tpu.memory_space<vmem>>, vector<256x32xf32>
    %c24 = arith.constant 24 : index
    %c0_4 = arith.constant 0 : index
    %7 = vector.load %arg7[%c24, %c0_4] : memref<304x32xf32, #tpu.memory_space<vmem>>, vector<256x32xf32>
    %c25 = arith.constant 25 : index
    %c0_5 = arith.constant 0 : index
    %8 = vector.load %arg7[%c25, %c0_5] : memref<304x32xf32, #tpu.memory_space<vmem>>, vector<256x32xf32>
    %c39 = arith.constant 39 : index
    %c0_6 = arith.constant 0 : index
    %9 = vector.load %arg7[%c39, %c0_6] : memref<304x32xf32, #tpu.memory_space<vmem>>, vector<256x32xf32>
    %c40 = arith.constant 40 : index
    %c0_7 = arith.constant 0 : index
    %10 = vector.load %arg7[%c40, %c0_7] : memref<304x32xf32, #tpu.memory_space<vmem>>, vector<256x32xf32>
    %c41 = arith.constant 41 : index
    %c0_8 = arith.constant 0 : index
    %11 = vector.load %arg7[%c41, %c0_8] : memref<304x32xf32, #tpu.memory_space<vmem>>, vector<256x32xf32>
    %12 = tpu.concatenate %3, %4, %5, %6, %7, %8, %9, %10, %11 in 1 : vector<256x32xf32>, vector<256x32xf32>, vector<256x32xf32>, vector<256x32xf32>, vector<256x32xf32>, vector<256x32xf32>, vector<256x32xf32>, vector<256x32xf32>, vector<256x32xf32> -> vector<256x288xf32>
    %13 = arith.truncf %12 : vector<256x288xf32> to vector<256x288xbf16>
    %c0_9 = arith.constant 0 : index
    %c0_10 = arith.constant 0 : index
    %14 = vector.load %arg3[%c0_9, %c0_10] : memref<288x96xbf16, #tpu.memory_space<vmem>>, vector<288x96xbf16>
    %cst = arith.constant dense<0.000000e+00> : vector<256x96xf32>
    %15 = tpu.matmul %13, %14, %cst {dimension_numbers = #tpu.dot_dimension_numbers<[1], [0], [0], [1], [0, 0, 1, 1], [], []>} : vector<256x288xbf16>, vector<288x96xbf16>, vector<256x96xf32> -> vector<256x96xf32>
    %c0_11 = arith.constant 0 : index
    %c0_12 = arith.constant 0 : index
    %16 = vector.load %arg4[%c0_11, %c0_12] : memref<1x96xf32, #tpu.memory_space<vmem>>, vector<1x96xf32>
    %17 = vector.broadcast %16 : vector<1x96xf32> to vector<256x96xf32>
    %18 = arith.addf %15, %17 : vector<256x96xf32>
    %c0_13 = arith.constant 0 : index
    %c0_14 = arith.constant 0 : index
    %c0_15 = arith.constant 0 : index
    %19 = vector.load %arg2[%c0_13, %c0_14, %c0_15] : memref<1x256x96xbf16, #tpu.memory_space<vmem>>, vector<1x256x96xbf16>
    %20 = vector.shape_cast %19 : vector<1x256x96xbf16> to vector<256x96xbf16>
    %21 = arith.extf %20 : vector<256x96xbf16> to vector<256x96xf32>
    %c24_16 = arith.constant 24 : index
    %c0_17 = arith.constant 0 : index
    %22 = vector.load %arg7[%c24_16, %c0_17] : memref<304x32xf32, #tpu.memory_space<vmem>>, vector<256x32xf32>
    %23 = vector.extract_strided_slice %21 {offsets = [0, 0], sizes = [256, 32], strides = [1, 1]} : vector<256x96xf32> to vector<256x32xf32>
    %24 = vector.extract_strided_slice %18 {offsets = [0, 0], sizes = [256, 32], strides = [1, 1]} : vector<256x96xf32> to vector<256x32xf32>
    %25 = arith.addf %23, %24 : vector<256x32xf32>
    %26 = arith.negf %25 : vector<256x32xf32>
    %27 = math.exp %26 : vector<256x32xf32>
    %cst_18 = arith.constant 1.000000e+00 : f32
    %28 = vector.broadcast %cst_18 : f32 to vector<256x32xf32>
    %29 = arith.addf %28, %27 : vector<256x32xf32>
    %30 = arith.divf %28, %29 : vector<256x32xf32>
    %31 = vector.extract_strided_slice %21 {offsets = [0, 32], sizes = [256, 32], strides = [1, 1]} : vector<256x96xf32> to vector<256x32xf32>
    %32 = vector.extract_strided_slice %18 {offsets = [0, 32], sizes = [256, 32], strides = [1, 1]} : vector<256x96xf32> to vector<256x32xf32>
    %33 = arith.addf %31, %32 : vector<256x32xf32>
    %34 = arith.negf %33 : vector<256x32xf32>
    %35 = math.exp %34 : vector<256x32xf32>
    %cst_19 = arith.constant 1.000000e+00 : f32
    %36 = vector.broadcast %cst_19 : f32 to vector<256x32xf32>
    %37 = arith.addf %36, %35 : vector<256x32xf32>
    %38 = arith.divf %36, %37 : vector<256x32xf32>
    %39 = vector.extract_strided_slice %21 {offsets = [0, 64], sizes = [256, 32], strides = [1, 1]} : vector<256x96xf32> to vector<256x32xf32>
    %40 = vector.extract_strided_slice %18 {offsets = [0, 64], sizes = [256, 32], strides = [1, 1]} : vector<256x96xf32> to vector<256x32xf32>
    %41 = arith.mulf %30, %40 : vector<256x32xf32>
    %42 = arith.addf %39, %41 : vector<256x32xf32>
    %43 = math.tanh %42 : vector<256x32xf32>
    %44 = arith.subf %22, %43 : vector<256x32xf32>
    %45 = arith.mulf %38, %44 : vector<256x32xf32>
    %46 = arith.addf %43, %45 : vector<256x32xf32>
    %c0_20 = arith.constant 0 : index
    %c0_21 = arith.constant 0 : index
    %47 = vector.load %arg5[%c0_20, %c0_21] : memref<256x1xf32, #tpu.memory_space<vmem>>, vector<256x1xf32>
    %48 = vector.broadcast %47 : vector<256x1xf32> to vector<256x32xf32>
    %49 = arith.mulf %46, %48 : vector<256x32xf32>
    %c24_22 = arith.constant 24 : index
    %c0_23 = arith.constant 0 : index
    %50 = vector.load %arg7[%c24_22, %c0_23] : memref<304x32xf32, #tpu.memory_space<vmem>>, vector<256x32xf32>
    tpu.vector_store %arg7[%c24_22, %c0_23], %49 {strides = array<i32>} : memref<304x32xf32, #tpu.memory_space<vmem>>, vector<256x32xf32>,
    %51 = arith.truncf %49 : vector<256x32xf32> to vector<256x32xbf16>
    %c0_24 = arith.constant 0 : index
    %c0_25 = arith.constant 0 : index
    %c0_26 = arith.constant 0 : index
    %52 = vector.load %arg6[%c0_24, %c0_25, %c0_26] : memref<1x256x32xbf16, #tpu.memory_space<vmem>>, vector<1x256x32xbf16>
    %53 = vector.shape_cast %52 : vector<1x256x32xbf16> to vector<256x32xbf16>
    %54 = vector.shape_cast %51 : vector<256x32xbf16> to vector<1x256x32xbf16>
    tpu.vector_store %arg6[%c0_24, %c0_25, %c0_26], %54 {strides = array<i32>} : memref<1x256x32xbf16, #tpu.memory_space<vmem>>, vector<1x256x32xbf16>,
    return
  }
  func.func @transform_0(%arg0: i32, %arg1: i32) -> (i32, i32, i32) {
    %c0_i32 = arith.constant 0 : i32
    %c0_i32_0 = arith.constant 0 : i32
    return %arg1, %arg0, %c0_i32 : i32, i32, i32
  }
  func.func @transform_1(%arg0: i32, %arg1: i32) -> (i32, i32) {
    %c0_i32 = arith.constant 0 : i32
    %c0_i32_0 = arith.constant 0 : i32
    %c0_i32_1 = arith.constant 0 : i32
    return %c0_i32, %c0_i32_0 : i32, i32
  }
  func.func @transform_2(%arg0: i32, %arg1: i32) -> (i32, i32) {
    %c0_i32 = arith.constant 0 : i32
    %c0_i32_0 = arith.constant 0 : i32
    %c0_i32_1 = arith.constant 0 : i32
    return %c0_i32, %c0_i32_0 : i32, i32
  }
  func.func @transform_3(%arg0: i32, %arg1: i32) -> (i32, i32) {
    %c0_i32 = arith.constant 0 : i32
    %c0_i32_0 = arith.constant 0 : i32
    return %arg0, %c0_i32 : i32, i32
  }
  func.func @transform_4(%arg0: i32, %arg1: i32) -> (i32, i32, i32) {
    %c0_i32 = arith.constant 0 : i32
    %c0_i32_0 = arith.constant 0 : i32
    return %arg1, %arg0, %c0_i32 : i32, i32, i32
  }
}

module attributes {stable_mosaic.version = 11 : i64} {
  func.func @_matmul_bias_kernel(%arg0: i32, %arg1: memref<768x288xbf16, #tpu.memory_space<vmem>>, %arg2: memref<288x96xbf16, #tpu.memory_space<vmem>>, %arg3: memref<1x96xf32, #tpu.memory_space<vmem>>, %arg4: memref<768x96xbf16, #tpu.memory_space<vmem>>) attributes {dimension_semantics = [#tpu.dimension_semantics<parallel>], iteration_bounds = array<i64: 3>, scalar_prefetch = 0 : i64, scratch_operands = 0 : i64, tpu.core_type = #tpu.core_type<tc>, window_params = [{transform_indices = @transform_0, window_bounds = array<i64: 768, 288>}, {pipeline_mode = #tpu.pipeline_mode<synchronous>, transform_indices = @transform_1, window_bounds = array<i64: 288, 96>}, {pipeline_mode = #tpu.pipeline_mode<synchronous>, transform_indices = @transform_2, window_bounds = array<i64: 1, 96>}, {transform_indices = @transform_3, window_bounds = array<i64: 768, 96>}]} {
    %c0 = arith.constant 0 : index
    %c0_0 = arith.constant 0 : index
    %0 = vector.load %arg1[%c0, %c0_0] : memref<768x288xbf16, #tpu.memory_space<vmem>>, vector<768x288xbf16>
    %c0_1 = arith.constant 0 : index
    %c0_2 = arith.constant 0 : index
    %1 = vector.load %arg2[%c0_1, %c0_2] : memref<288x96xbf16, #tpu.memory_space<vmem>>, vector<288x96xbf16>
    %cst = arith.constant dense<0.000000e+00> : vector<768x96xf32>
    %2 = tpu.matmul %0, %1, %cst {dimension_numbers = #tpu.dot_dimension_numbers<[1], [0], [0], [1], [0, 0, 1, 1], [], []>} : vector<768x288xbf16>, vector<288x96xbf16>, vector<768x96xf32> -> vector<768x96xf32>
    %c0_3 = arith.constant 0 : index
    %c0_4 = arith.constant 0 : index
    %3 = vector.load %arg3[%c0_3, %c0_4] : memref<1x96xf32, #tpu.memory_space<vmem>>, vector<1x96xf32>
    %4 = vector.broadcast %3 : vector<1x96xf32> to vector<768x96xf32>
    %5 = arith.addf %2, %4 : vector<768x96xf32>
    %6 = arith.truncf %5 : vector<768x96xf32> to vector<768x96xbf16>
    %c0_5 = arith.constant 0 : index
    %c0_6 = arith.constant 0 : index
    %7 = vector.load %arg4[%c0_5, %c0_6] : memref<768x96xbf16, #tpu.memory_space<vmem>>, vector<768x96xbf16>
    tpu.vector_store %arg4[%c0_5, %c0_6], %6 {strides = array<i32>} : memref<768x96xbf16, #tpu.memory_space<vmem>>, vector<768x96xbf16>,
    return
  }
  func.func @transform_0(%arg0: i32) -> (i32, i32) {
    %c0_i32 = arith.constant 0 : i32
    %c0_i32_0 = arith.constant 0 : i32
    return %arg0, %c0_i32 : i32, i32
  }
  func.func @transform_1(%arg0: i32) -> (i32, i32) {
    %c0_i32 = arith.constant 0 : i32
    %c0_i32_0 = arith.constant 0 : i32
    %c0_i32_1 = arith.constant 0 : i32
    return %c0_i32, %c0_i32_0 : i32, i32
  }
  func.func @transform_2(%arg0: i32) -> (i32, i32) {
    %c0_i32 = arith.constant 0 : i32
    %c0_i32_0 = arith.constant 0 : i32
    %c0_i32_1 = arith.constant 0 : i32
    return %c0_i32, %c0_i32_0 : i32, i32
  }
  func.func @transform_3(%arg0: i32) -> (i32, i32) {
    %c0_i32 = arith.constant 0 : i32
    %c0_i32_0 = arith.constant 0 : i32
    return %arg0, %c0_i32 : i32, i32
  }
}

module attributes {stable_mosaic.version = 11 : i64} {
  func.func @_gru_step_kernel(%arg0: i32, %arg1: i32, %arg2: memref<1x200x96xbf16, #tpu.memory_space<vmem>>, %arg3: memref<288x96xbf16, #tpu.memory_space<vmem>>, %arg4: memref<1x96xf32, #tpu.memory_space<vmem>>, %arg5: memref<200x1xf32, #tpu.memory_space<vmem>>, %arg6: memref<1x200x32xbf16, #tpu.memory_space<vmem>>, %arg7: memref<232x32xf32, #tpu.memory_space<vmem>>) attributes {dimension_semantics = [#tpu.dimension_semantics<parallel>, #tpu.dimension_semantics<arbitrary>], iteration_bounds = array<i64: 2, 8>, scalar_prefetch = 0 : i64, scratch_operands = 1 : i64, tpu.core_type = #tpu.core_type<tc>, window_params = [{transform_indices = @transform_0, window_bounds = array<i64: 1, 200, 96>}, {pipeline_mode = #tpu.pipeline_mode<synchronous>, transform_indices = @transform_1, window_bounds = array<i64: 288, 96>}, {pipeline_mode = #tpu.pipeline_mode<synchronous>, transform_indices = @transform_2, window_bounds = array<i64: 1, 96>}, {transform_indices = @transform_3, window_bounds = array<i64: 200, 1>}, {transform_indices = @transform_4, window_bounds = array<i64: 1, 200, 32>}]} {
    %c0_i32 = arith.constant 0 : i32
    %0 = arith.cmpi eq, %arg1, %c0_i32 : i32
    %1 = arith.extui %0 : i1 to i32
    %c0_i32_0 = arith.constant 0 : i32
    %2 = arith.cmpi ne, %1, %c0_i32_0 : i32
    scf.if %2 {
      %cst_27 = arith.constant 0.000000e+00 : f32
      %55 = vector.broadcast %cst_27 : f32 to vector<232x32xf32>
      %c0_28 = arith.constant 0 : index
      %c0_29 = arith.constant 0 : index
      %56 = vector.load %arg7[%c0_28, %c0_29] : memref<232x32xf32, #tpu.memory_space<vmem>>, vector<232x32xf32>
      tpu.vector_store %arg7[%c0_28, %c0_29], %55 {strides = array<i32>} : memref<232x32xf32, #tpu.memory_space<vmem>>, vector<232x32xf32>,
    } else {
    }
    %c1 = arith.constant 1 : index
    %c0 = arith.constant 0 : index
    %3 = vector.load %arg7[%c1, %c0] : memref<232x32xf32, #tpu.memory_space<vmem>>, vector<200x32xf32>
    %c2 = arith.constant 2 : index
    %c0_1 = arith.constant 0 : index
    %4 = vector.load %arg7[%c2, %c0_1] : memref<232x32xf32, #tpu.memory_space<vmem>>, vector<200x32xf32>
    %c3 = arith.constant 3 : index
    %c0_2 = arith.constant 0 : index
    %5 = vector.load %arg7[%c3, %c0_2] : memref<232x32xf32, #tpu.memory_space<vmem>>, vector<200x32xf32>
    %c15 = arith.constant 15 : index
    %c0_3 = arith.constant 0 : index
    %6 = vector.load %arg7[%c15, %c0_3] : memref<232x32xf32, #tpu.memory_space<vmem>>, vector<200x32xf32>
    %c16 = arith.constant 16 : index
    %c0_4 = arith.constant 0 : index
    %7 = vector.load %arg7[%c16, %c0_4] : memref<232x32xf32, #tpu.memory_space<vmem>>, vector<200x32xf32>
    %c17 = arith.constant 17 : index
    %c0_5 = arith.constant 0 : index
    %8 = vector.load %arg7[%c17, %c0_5] : memref<232x32xf32, #tpu.memory_space<vmem>>, vector<200x32xf32>
    %c29 = arith.constant 29 : index
    %c0_6 = arith.constant 0 : index
    %9 = vector.load %arg7[%c29, %c0_6] : memref<232x32xf32, #tpu.memory_space<vmem>>, vector<200x32xf32>
    %c30 = arith.constant 30 : index
    %c0_7 = arith.constant 0 : index
    %10 = vector.load %arg7[%c30, %c0_7] : memref<232x32xf32, #tpu.memory_space<vmem>>, vector<200x32xf32>
    %c31 = arith.constant 31 : index
    %c0_8 = arith.constant 0 : index
    %11 = vector.load %arg7[%c31, %c0_8] : memref<232x32xf32, #tpu.memory_space<vmem>>, vector<200x32xf32>
    %12 = tpu.concatenate %3, %4, %5, %6, %7, %8, %9, %10, %11 in 1 : vector<200x32xf32>, vector<200x32xf32>, vector<200x32xf32>, vector<200x32xf32>, vector<200x32xf32>, vector<200x32xf32>, vector<200x32xf32>, vector<200x32xf32>, vector<200x32xf32> -> vector<200x288xf32>
    %13 = arith.truncf %12 : vector<200x288xf32> to vector<200x288xbf16>
    %c0_9 = arith.constant 0 : index
    %c0_10 = arith.constant 0 : index
    %14 = vector.load %arg3[%c0_9, %c0_10] : memref<288x96xbf16, #tpu.memory_space<vmem>>, vector<288x96xbf16>
    %cst = arith.constant dense<0.000000e+00> : vector<200x96xf32>
    %15 = tpu.matmul %13, %14, %cst {dimension_numbers = #tpu.dot_dimension_numbers<[1], [0], [0], [1], [0, 0, 1, 1], [], []>} : vector<200x288xbf16>, vector<288x96xbf16>, vector<200x96xf32> -> vector<200x96xf32>
    %c0_11 = arith.constant 0 : index
    %c0_12 = arith.constant 0 : index
    %16 = vector.load %arg4[%c0_11, %c0_12] : memref<1x96xf32, #tpu.memory_space<vmem>>, vector<1x96xf32>
    %17 = vector.broadcast %16 : vector<1x96xf32> to vector<200x96xf32>
    %18 = arith.addf %15, %17 : vector<200x96xf32>
    %c0_13 = arith.constant 0 : index
    %c0_14 = arith.constant 0 : index
    %c0_15 = arith.constant 0 : index
    %19 = vector.load %arg2[%c0_13, %c0_14, %c0_15] : memref<1x200x96xbf16, #tpu.memory_space<vmem>>, vector<1x200x96xbf16>
    %20 = vector.shape_cast %19 : vector<1x200x96xbf16> to vector<200x96xbf16>
    %21 = arith.extf %20 : vector<200x96xbf16> to vector<200x96xf32>
    %c16_16 = arith.constant 16 : index
    %c0_17 = arith.constant 0 : index
    %22 = vector.load %arg7[%c16_16, %c0_17] : memref<232x32xf32, #tpu.memory_space<vmem>>, vector<200x32xf32>
    %23 = vector.extract_strided_slice %21 {offsets = [0, 0], sizes = [200, 32], strides = [1, 1]} : vector<200x96xf32> to vector<200x32xf32>
    %24 = vector.extract_strided_slice %18 {offsets = [0, 0], sizes = [200, 32], strides = [1, 1]} : vector<200x96xf32> to vector<200x32xf32>
    %25 = arith.addf %23, %24 : vector<200x32xf32>
    %26 = arith.negf %25 : vector<200x32xf32>
    %27 = math.exp %26 : vector<200x32xf32>
    %cst_18 = arith.constant 1.000000e+00 : f32
    %28 = vector.broadcast %cst_18 : f32 to vector<200x32xf32>
    %29 = arith.addf %28, %27 : vector<200x32xf32>
    %30 = arith.divf %28, %29 : vector<200x32xf32>
    %31 = vector.extract_strided_slice %21 {offsets = [0, 32], sizes = [200, 32], strides = [1, 1]} : vector<200x96xf32> to vector<200x32xf32>
    %32 = vector.extract_strided_slice %18 {offsets = [0, 32], sizes = [200, 32], strides = [1, 1]} : vector<200x96xf32> to vector<200x32xf32>
    %33 = arith.addf %31, %32 : vector<200x32xf32>
    %34 = arith.negf %33 : vector<200x32xf32>
    %35 = math.exp %34 : vector<200x32xf32>
    %cst_19 = arith.constant 1.000000e+00 : f32
    %36 = vector.broadcast %cst_19 : f32 to vector<200x32xf32>
    %37 = arith.addf %36, %35 : vector<200x32xf32>
    %38 = arith.divf %36, %37 : vector<200x32xf32>
    %39 = vector.extract_strided_slice %21 {offsets = [0, 64], sizes = [200, 32], strides = [1, 1]} : vector<200x96xf32> to vector<200x32xf32>
    %40 = vector.extract_strided_slice %18 {offsets = [0, 64], sizes = [200, 32], strides = [1, 1]} : vector<200x96xf32> to vector<200x32xf32>
    %41 = arith.mulf %30, %40 : vector<200x32xf32>
    %42 = arith.addf %39, %41 : vector<200x32xf32>
    %43 = math.tanh %42 : vector<200x32xf32>
    %44 = arith.subf %22, %43 : vector<200x32xf32>
    %45 = arith.mulf %38, %44 : vector<200x32xf32>
    %46 = arith.addf %43, %45 : vector<200x32xf32>
    %c0_20 = arith.constant 0 : index
    %c0_21 = arith.constant 0 : index
    %47 = vector.load %arg5[%c0_20, %c0_21] : memref<200x1xf32, #tpu.memory_space<vmem>>, vector<200x1xf32>
    %48 = vector.broadcast %47 : vector<200x1xf32> to vector<200x32xf32>
    %49 = arith.mulf %46, %48 : vector<200x32xf32>
    %c16_22 = arith.constant 16 : index
    %c0_23 = arith.constant 0 : index
    %50 = vector.load %arg7[%c16_22, %c0_23] : memref<232x32xf32, #tpu.memory_space<vmem>>, vector<200x32xf32>
    tpu.vector_store %arg7[%c16_22, %c0_23], %49 {strides = array<i32>} : memref<232x32xf32, #tpu.memory_space<vmem>>, vector<200x32xf32>,
    %51 = arith.truncf %49 : vector<200x32xf32> to vector<200x32xbf16>
    %c0_24 = arith.constant 0 : index
    %c0_25 = arith.constant 0 : index
    %c0_26 = arith.constant 0 : index
    %52 = vector.load %arg6[%c0_24, %c0_25, %c0_26] : memref<1x200x32xbf16, #tpu.memory_space<vmem>>, vector<1x200x32xbf16>
    %53 = vector.shape_cast %52 : vector<1x200x32xbf16> to vector<200x32xbf16>
    %54 = vector.shape_cast %51 : vector<200x32xbf16> to vector<1x200x32xbf16>
    tpu.vector_store %arg6[%c0_24, %c0_25, %c0_26], %54 {strides = array<i32>} : memref<1x200x32xbf16, #tpu.memory_space<vmem>>, vector<1x200x32xbf16>,
    return
  }
  func.func @transform_0(%arg0: i32, %arg1: i32) -> (i32, i32, i32) {
    %c0_i32 = arith.constant 0 : i32
    %c0_i32_0 = arith.constant 0 : i32
    return %arg1, %arg0, %c0_i32 : i32, i32, i32
  }
  func.func @transform_1(%arg0: i32, %arg1: i32) -> (i32, i32) {
    %c0_i32 = arith.constant 0 : i32
    %c0_i32_0 = arith.constant 0 : i32
    %c0_i32_1 = arith.constant 0 : i32
    return %c0_i32, %c0_i32_0 : i32, i32
  }
  func.func @transform_2(%arg0: i32, %arg1: i32) -> (i32, i32) {
    %c0_i32 = arith.constant 0 : i32
    %c0_i32_0 = arith.constant 0 : i32
    %c0_i32_1 = arith.constant 0 : i32
    return %c0_i32, %c0_i32_0 : i32, i32
  }
  func.func @transform_3(%arg0: i32, %arg1: i32) -> (i32, i32) {
    %c0_i32 = arith.constant 0 : i32
    %c0_i32_0 = arith.constant 0 : i32
    return %arg0, %c0_i32 : i32, i32
  }
  func.func @transform_4(%arg0: i32, %arg1: i32) -> (i32, i32, i32) {
    %c0_i32 = arith.constant 0 : i32
    %c0_i32_0 = arith.constant 0 : i32
    return %arg1, %arg0, %c0_i32 : i32, i32, i32
  }
}

</mosaic_0001>

<bundles_post_ra>
// kernel: conv_gru_forward.4
= control target key start
LH: loop header
LB: loop body
LE: loop exit
PB: predicated region body
PF: predicated region fallthrough
CT: control target
= control target key end

     0   :  { %s2328_s12 = smov 0   ;;  %s2866_s0 = inlined_call_operand.vmem [shape: bf16[3136,36], index: 0, kind: input, shape index: {}]   ;;  %s2867_s1 = inlined_call_operand.vmem [shape: bf16[36,96], index: 1, kind: input, shape index: {}]   ;;  %s2868_s2 = inlined_call_operand.vmem [shape: f32[1,96], index: 2, kind: input, shape index: {}]   ;;  %s2869_s3 = inlined_call_operand.vmem [shape: bf16[3136,96], index: 3, kind: output, shape index: {}]  }
   0x1 LB: > { %s1669_s13 = sadd.s32 4294967295, %s2304_s12   ;;  %p1673_p0 = scmp.ge.s32.totalorder %s2304_s12, 1  ;;  %s2304_s12 = sphi %s2328_s12, %s13_s12  }
   0x2   : > { %p138_p1 = scmp.lt.s32.totalorder %s2304_s12, 5 }
   0x4   : > { %p139_p2 = pnand %p1673_p0, %p138_p1 }
   0x5   : > { %v2246_v0 = vld [vmem:[%s2867_s1] sm:$0xff] (!%p139_p2)   ;;  %v2306_v1 = vmov (!%p139_p2), 0.0   ;;  %v2247_v2 = vld [vmem:[%s2867_s1 + $0x8] sm:$0xff] (!%p139_p2)   ;;  %v2248_v3 = vld [vmem:[%s2867_s1 + $0x10] ss:$0 sps:$4 sm:$0x33] (!%p139_p2)  }
   0x6   : > { %142 = sbr.rel (%p139_p2) target bundleno = 429 (0x1ad), region = 32  ;;  %2028 = vmatprep.subr.bf16.mxu0 (!%p139_p2), %v2306_v1  ;;  %2230 = vmatprep.subr.bf16.mxu1 (!%p139_p2), %v2306_v1  ;;  %vm693_vm0 = vcmask (!%p139_p2), 1041408   ;;  %vm2307_vm1 = vmmov (!%p139_p2), 0   ;;  %vm545_vm2 = vcmask (!%p139_p2), 293888   ;;  %v2560_v54 = vld [vmem:[%s2868_s2] ss:$0 sm:$0xff] (!%p139_p2) }
   0x7   : > { %2029 = vmatpush3.bf16.msra.mxu0 (!%p139_p2), %v2246_v0  ;;  %2233 = vmatpush3.bf16.msra.mxu1 (!%p139_p2), %v2246_v0  ;;  %s162_s20 = smul.u32 (!%p139_p2), 98, %s1669_s13  ;;  %v695_v4 = vsel (!%p139_p2), %vm693_vm0, %v2248_v3, 0  ;;  %vm1514_vm3 = vcmask (!%p139_p2), 781312  }
   0x8   : > { %2030 = vmatprep.subr.bf16.mxu0 (!%p139_p2), %v2306_v1  ;;  %2231 = vmatprep.subr.bf16.mxu1 (!%p139_p2), %v2306_v1 }
   0x9   : > { %2034 = vmatprep.mubr.msk.bf16.mxu0 (!%p139_p2), %vm2307_vm1, %v2306_v1  ;;  %2134 = vmatprep.mubr.msk.bf16.mxu1 (!%p139_p2), %vm2307_vm1, %v2306_v1  ;;  %p163_p3 = scmp.lt.s32.totalorder (!%p139_p2), %s162_s20, 391 }
   0xb   : > { %2031 = vmatpush3.bf16.msra.mxu0 (!%p139_p2), %v2247_v2  ;;  %2234 = vmatpush3.bf16.msra.mxu1 (!%p139_p2), %v2247_v2 }
   0xc   : > { %2032 = vmatprep.subr.bf16.mxu0 (!%p139_p2), %v2306_v1  ;;  %2232 = vmatprep.subr.bf16.mxu1 (!%p139_p2), %v2306_v1 }
   0xd   : > { %s2871_s20 = smov (!%p163_p3, %s162_s20), 391 }
   0xe   : > { %s1674_s21 = sshll.u32 %s2871_s20, 2 }
   0xf   : > { %2033 = vmatpush3.bf16.msra.mxu0 %v695_v4  ;;  %s2363_s24 = scalar_lea.vmem %s2866_s0, %s1674_s21  ;;  %2235 = vmatpush3.bf16.msra.mxu1 %v695_v4  ;;  %s2568_s29 = scalar_lea.vmem %s2869_s3, %s1674_s21 }
  0x10   : > { %v2249_v5 = vld [vmem:[%s2363_s24] sm:$0xff]   ;;  %v2250_v6 = vld [vmem:[%s2363_s24 + $0xc8] sm:$0xff]   ;;  %v2252_v8 = vld [vmem:[%s2363_s24 + $0xd0] sm:$0xff]  }
  0x11   : > { %v2251_v7 = vld [vmem:[%s2363_s24 + $0x8] sm:$0xff]   ;;  %v2253_v9 = vld [vmem:[%s2363_s24 + $0x10] sm:$0xff]   ;;  %v2254_v10 = vld [vmem:[%s2363_s24 + $0xd8] sm:$0xff]  }
  0x12   : > { %2035 = vmatmul.mubr.msk.bf16.vlgmr.msra.gmra.mrb[0].mxu0 %vm545_vm2, %v2249_v5  ;;  %2135 = vmatmul.mubr.msk.bf16.vlgmr.msra.gmra.mrb[0].mxu1 %vm545_vm2, %v2250_v6  ;;  %v2255_v11 = vld [vmem:[%s2363_s24 + $0x18] sm:$0xff]   ;;  %v2256_v12 = vld [vmem:[%s2363_s24 + $0xe0] sm:$0xff]   ;;  %v2258_v14 = vld [vmem:[%s2363_s24 + $0xe8] sm:$0xff]  }
  0x13   : > { %2038 = vmatprep.mubr.msk.bf16.mxu0 %vm2307_vm1, %v2306_v1  ;;  %2138 = vmatprep.mubr.msk.bf16.mxu1 %vm2307_vm1, %v2306_v1  ;;  %v2257_v13 = vld [vmem:[%s2363_s24 + $0x20] sm:$0xff]   ;;  %v2259_v15 = vld [vmem:[%s2363_s24 + $0x28] sm:$0xff]   ;;  %v2260_v16 = vld [vmem:[%s2363_s24 + $0xf0] sm:$0xff]  }
  0x14   : > { %v2261_v17 = vld [vmem:[%s2363_s24 + $0x30] sm:$0xff]   ;;  %v2262_v18 = vld [vmem:[%s2363_s24 + $0xf8] sm:$0xff]   ;;  %v2264_v20 = vld [vmem:[%s2363_s24 + $0x100] sm:$0xff]  }
  0x15   : > { %v2263_v19 = vld [vmem:[%s2363_s24 + $0x38] sm:$0xff]   ;;  %v2265_v21 = vld [vmem:[%s2363_s24 + $0x40] sm:$0xff]   ;;  %v2266_v22 = vld [vmem:[%s2363_s24 + $0x108] sm:$0xff]  }
  0x16   : > { %v2267_v23 = vld [vmem:[%s2363_s24 + $0x48] sm:$0xff]   ;;  %v2268_v24 = vld [vmem:[%s2363_s24 + $0x110] sm:$0xff]   ;;  %v2270_v26 = vld [vmem:[%s2363_s24 + $0x118] sm:$0xff]  }
  0x17   : > { %v2269_v25 = vld [vmem:[%s2363_s24 + $0x50] sm:$0xff]   ;;  %v2271_v27 = vld [vmem:[%s2363_s24 + $0x58] sm:$0xff]   ;;  %v2272_v28 = vld [vmem:[%s2363_s24 + $0x120] sm:$0xff]  }
  0x18   : > { %v2273_v29 = vld [vmem:[%s2363_s24 + $0x60] sm:$0xff]   ;;  %v2274_v30 = vld [vmem:[%s2363_s24 + $0x128] sm:$0xff]   ;;  %v2276_v32 = vld [vmem:[%s2363_s24 + $0x130] sm:$0xff]  }
  0x19   : > { %v2275_v31 = vld [vmem:[%s2363_s24 + $0x68] sm:$0xff]   ;;  %v2277_v33 = vld [vmem:[%s2363_s24 + $0x70] sm:$0xff]   ;;  %v2278_v34 = vld [vmem:[%s2363_s24 + $0x138] sm:$0xff]  }
  0x1a   : > { %2039 = vmatmul.mubr.msk.bf16.gmra.mrb[4].mxu0 %vm545_vm2, %v2251_v7  ;;  %2139 = vmatmul.mubr.msk.bf16.gmra.mrb[4].mxu1 %vm545_vm2, %v2252_v8  ;;  %v2279_v35 = vld [vmem:[%s2363_s24 + $0x78] sm:$0xff]   ;;  %v2280_v36 = vld [vmem:[%s2363_s24 + $0x140] sm:$0xff]   ;;  %v2282_v38 = vld [vmem:[%s2363_s24 + $0x148] sm:$0xff]  }
  0x1b   : > { %2042 = vmatprep.mubr.msk.bf16.mxu0 %vm2307_vm1, %v2306_v1  ;;  %2142 = vmatprep.mubr.msk.bf16.mxu1 %vm2307_vm1, %v2306_v1  ;;  %v2281_v37 = vld [vmem:[%s2363_s24 + $0x80] sm:$0xff]   ;;  %v2283_v39 = vld [vmem:[%s2363_s24 + $0x88] sm:$0xff]   ;;  %v2284_v40 = vld [vmem:[%s2363_s24 + $0x150] sm:$0xff]  }
  0x1c   : > { %v2285_v41 = vld [vmem:[%s2363_s24 + $0x90] sm:$0xff]   ;;  %v2286_v42 = vld [vmem:[%s2363_s24 + $0x158] sm:$0xff]   ;;  %v2288_v44 = vld [vmem:[%s2363_s24 + $0x160] sm:$0xff]  }
  0x1d   : > { %v2287_v43 = vld [vmem:[%s2363_s24 + $0x98] sm:$0xff]   ;;  %v2289_v45 = vld [vmem:[%s2363_s24 + $0xa0] sm:$0xff]   ;;  %v2290_v46 = vld [vmem:[%s2363_s24 + $0x168] sm:$0xff]  }
  0x1e   : > { %v2291_v47 = vld [vmem:[%s2363_s24 + $0xa8] sm:$0xff]   ;;  %v2292_v48 = vld [vmem:[%s2363_s24 + $0x170] sm:$0xff]   ;;  %v2294_v50 = vld [vmem:[%s2363_s24 + $0x178] sm:$0xff]  }
  0x1f   : > { %v2293_v49 = vld [vmem:[%s2363_s24 + $0xb0] sm:$0xff]   ;;  %v2295_v51 = vld [vmem:[%s2363_s24 + $0xb8] sm:$0xff]   ;;  %v2296_v52 = vld [vmem:[%s2363_s24 + $0x180] sm:$0xff]  }
  0x20   : > { %v2297_v53 = vld [vmem:[%s2363_s24 + $0xc0] sm:$0xff]  }
  0x22   : > { %2043 = vmatmul.mubr.msk.bf16.gmra.mrb[8].mxu0 %vm545_vm2, %v2253_v9  ;;  %2143 = vmatmul.mubr.msk.bf16.gmra.mrb[8].mxu1 %vm545_vm2, %v2254_v10 }
  0x23   : > { %2046 = vmatprep.mubr.msk.bf16.mxu0 %vm2307_vm1, %v2306_v1  ;;  %2146 = vmatprep.mubr.msk.bf16.mxu1 %vm2307_vm1, %v2306_v1 }
  0x2a   : > { %2047 = vmatmul.mubr.msk.bf16.gmra.mrb[12].mxu0 %vm545_vm2, %v2255_v11  ;;  %2147 = vmatmul.mubr.msk.bf16.gmra.mrb[12].mxu1 %vm545_vm2, %v2256_v12 }
  0x2b   : > { %2050 = vmatprep.mubr.msk.bf16.mxu0 %vm2307_vm1, %v2306_v1  ;;  %2150 = vmatprep.mubr.msk.bf16.mxu1 %vm2307_vm1, %v2306_v1 }
  0x32   : > { %2051 = vmatmul.mubr.msk.bf16.gmra.mrb[16].mxu0 %vm545_vm2, %v2257_v13  ;;  %2151 = vmatmul.mubr.msk.bf16.gmra.mrb[16].mxu1 %vm545_vm2, %v2258_v14 }
  0x33   : > { %2054 = vmatprep.mubr.msk.bf16.mxu0 %vm2307_vm1, %v2306_v1  ;;  %2154 = vmatprep.mubr.msk.bf16.mxu1 %vm2307_vm1, %v2306_v1 }
  0x3a   : > { %2055 = vmatmul.mubr.msk.bf16.gmra.mrb[20].mxu0 %vm545_vm2, %v2259_v15  ;;  %2155 = vmatmul.mubr.msk.bf16.gmra.mrb[20].mxu1 %vm545_vm2, %v2260_v16 }
  0x3b   : > { %2058 = vmatprep.mubr.msk.bf16.mxu0 %vm2307_vm1, %v2306_v1  ;;  %2158 = vmatprep.mubr.msk.bf16.mxu1 %vm2307_vm1, %v2306_v1 }
  0x42   : > { %2059 = vmatmul.mubr.msk.bf16.gmra.mrb[24].mxu0 %vm545_vm2, %v2261_v17  ;;  %2159 = vmatmul.mubr.msk.bf16.gmra.mrb[24].mxu1 %vm545_vm2, %v2262_v18 }
  0x43   : > { %2062 = vmatprep.mubr.msk.bf16.mxu0 %vm2307_vm1, %v2306_v1  ;;  %2162 = vmatprep.mubr.msk.bf16.mxu1 %vm2307_vm1, %v2306_v1 }
  0x4a   : > { %2063 = vmatmul.mubr.msk.bf16.gmra.mrb[28].mxu0 %vm545_vm2, %v2263_v19  ;;  %2163 = vmatmul.mubr.msk.bf16.gmra.mrb[28].mxu1 %vm545_vm2, %v2264_v20 }
  0x4b   : > { %2066 = vmatprep.mubr.msk.bf16.mxu0 %vm2307_vm1, %v2306_v1  ;;  %2166 = vmatprep.mubr.msk.bf16.mxu1 %vm2307_vm1, %v2306_v1 }
  0x52   : > { %2067 = vmatmul.mubr.msk.bf16.gmra.mrb[32].mxu0 %vm545_vm2, %v2265_v21  ;;  %2167 = vmatmul.mubr.msk.bf16.gmra.mrb[32].mxu1 %vm545_vm2, %v2266_v22 }
  0x53   : > { %2070 = vmatprep.mubr.msk.bf16.mxu0 %vm2307_vm1, %v2306_v1  ;;  %2170 = vmatprep.mubr.msk.bf16.mxu1 %vm2307_vm1, %v2306_v1 }
  0x5a   : > { %2071 = vmatmul.mubr.msk.bf16.gmra.mrb[36].mxu0 %vm545_vm2, %v2267_v23  ;;  %2171 = vmatmul.mubr.msk.bf16.gmra.mrb[36].mxu1 %vm545_vm2, %v2268_v24 }
  0x5b   : > { %2074 = vmatprep.mubr.msk.bf16.mxu0 %vm2307_vm1, %v2306_v1  ;;  %2174 = vmatprep.mubr.msk.bf16.mxu1 %vm2307_vm1, %v2306_v1 }
  0x62   : > { %2075 = vmatmul.mubr.msk.bf16.gmra.mrb[40].mxu0 %vm545_vm2, %v2269_v25  ;;  %2175 = vmatmul.mubr.msk.bf16.gmra.mrb[40].mxu1 %vm545_vm2, %v2270_v26 }
  0x63   : > { %2078 = vmatprep.mubr.msk.bf16.mxu0 %vm2307_vm1, %v2306_v1  ;;  %2178 = vmatprep.mubr.msk.bf16.mxu1 %vm2307_vm1, %v2306_v1 }
  0x6a   : > { %2079 = vmatmul.mubr.msk.bf16.gmra.mrb[44].mxu0 %vm545_vm2, %v2271_v27  ;;  %2179 = vmatmul.mubr.msk.bf16.gmra.mrb[44].mxu1 %vm545_vm2, %v2272_v28 }
  0x6b   : > { %2082 = vmatprep.mubr.msk.bf16.mxu0 %vm2307_vm1, %v2306_v1  ;;  %2182 = vmatprep.mubr.msk.bf16.mxu1 %vm2307_vm1, %v2306_v1 }
  0x72   : > { %2083 = vmatmul.mubr.msk.bf16.gmra.mrb[48].mxu0 %vm545_vm2, %v2273_v29  ;;  %2183 = vmatmul.mubr.msk.bf16.gmra.mrb[48].mxu1 %vm545_vm2, %v2274_v30 }
  0x73   : > { %2086 = vmatprep.mubr.msk.bf16.mxu0 %vm2307_vm1, %v2306_v1  ;;  %2186 = vmatprep.mubr.msk.bf16.mxu1 %vm2307_vm1, %v2306_v1 }
  0x7a   : > { %2087 = vmatmul.mubr.msk.bf16.gmra.mrb[52].mxu0 %vm545_vm2, %v2275_v31  ;;  %2187 = vmatmul.mubr.msk.bf16.gmra.mrb[52].mxu1 %vm545_vm2, %v2276_v32 }
  0x7b   : > { %2090 = vmatprep.mubr.msk.bf16.mxu0 %vm2307_vm1, %v2306_v1  ;;  %2190 = vmatprep.mubr.msk.bf16.mxu1 %vm2307_vm1, %v2306_v1 }
  0x82   : > { %2091 = vmatmul.mubr.msk.bf16.gmra.mrb[56].mxu0 %vm545_vm2, %v2277_v33  ;;  %2191 = vmatmul.mubr.msk.bf16.gmra.mrb[56].mxu1 %vm545_vm2, %v2278_v34 }
  0x83   : > { %2094 = vmatprep.mubr.msk.bf16.mxu0 %vm2307_vm1, %v2306_v1  ;;  %2194 = vmatprep.mubr.msk.bf16.mxu1 %vm2307_vm1, %v2306_v1 }
  0x8a   : > { %2095 = vmatmul.mubr.msk.bf16.gmra.mrb[60].mxu0 %vm545_vm2, %v2279_v35  ;;  %2195 = vmatmul.mubr.msk.bf16.gmra.mrb[60].mxu1 %vm545_vm2, %v2280_v36 }
  0x8b   : > { %2098 = vmatprep.mubr.msk.bf16.mxu0 %vm2307_vm1, %v2306_v1  ;;  %2198 = vmatprep.mubr.msk.bf16.mxu1 %vm2307_vm1, %v2306_v1 }
  0x92   : > { %2099 = vmatmul.mubr.msk.bf16.gmra.mrb[64].mxu0 %vm545_vm2, %v2281_v37  ;;  %2199 = vmatmul.mubr.msk.bf16.gmra.mrb[64].mxu1 %vm545_vm2, %v2282_v38 }
  0x93   : > { %2102 = vmatprep.mubr.msk.bf16.mxu0 %vm2307_vm1, %v2306_v1  ;;  %2202 = vmatprep.mubr.msk.bf16.mxu1 %vm2307_vm1, %v2306_v1 }
  0x9a   : > { %2103 = vmatmul.mubr.msk.bf16.gmra.mrb[68].mxu0 %vm545_vm2, %v2283_v39  ;;  %2203 = vmatmul.mubr.msk.bf16.gmra.mrb[68].mxu1 %vm545_vm2, %v2284_v40 }
  0x9b   : > { %2106 = vmatprep.mubr.msk.bf16.mxu0 %vm2307_vm1, %v2306_v1  ;;  %2206 = vmatprep.mubr.msk.bf16.mxu1 %vm2307_vm1, %v2306_v1 }
  0xa2   : > { %2107 = vmatmul.mubr.msk.bf16.gmra.mrb[72].mxu0 %vm545_vm2, %v2285_v41  ;;  %2207 = vmatmul.mubr.msk.bf16.gmra.mrb[72].mxu1 %vm545_vm2, %v2286_v42 }
  0xa3   : > { %2110 = vmatprep.mubr.msk.bf16.mxu0 %vm2307_vm1, %v2306_v1  ;;  %2210 = vmatprep.mubr.msk.bf16.mxu1 %vm2307_vm1, %v2306_v1 }
  0xaa   : > { %2111 = vmatmul.mubr.msk.bf16.gmra.mrb[76].mxu0 %vm545_vm2, %v2287_v43  ;;  %2211 = vmatmul.mubr.msk.bf16.gmra.mrb[76].mxu1 %vm545_vm2, %v2288_v44 }
  0xab   : > { %2114 = vmatprep.mubr.msk.bf16.mxu0 %vm2307_vm1, %v2306_v1  ;;  %2214 = vmatprep.mubr.msk.bf16.mxu1 %vm2307_vm1, %v2306_v1 }
  0xb2   : > { %2115 = vmatmul.mubr.msk.bf16.gmra.mrb[80].mxu0 %vm545_vm2, %v2289_v45  ;;  %2215 = vmatmul.mubr.msk.bf16.gmra.mrb[80].mxu1 %vm545_vm2, %v2290_v46 }
  0xb3   : > { %2118 = vmatprep.mubr.msk.bf16.mxu0 %vm2307_vm1, %v2306_v1  ;;  %2218 = vmatprep.mubr.msk.bf16.mxu1 %vm2307_vm1, %v2306_v1 }
  0xba   : > { %2119 = vmatmul.mubr.msk.bf16.gmra.mrb[84].mxu0 %vm545_vm2, %v2291_v47  ;;  %2219 = vmatmul.mubr.msk.bf16.gmra.mrb[84].mxu1 %vm545_vm2, %v2292_v48 }
  0xbb   : > { %2122 = vmatprep.mubr.msk.bf16.mxu0 %vm2307_vm1, %v2306_v1  ;;  %2222 = vmatprep.mubr.msk.bf16.mxu1 %vm2307_vm1, %v2306_v1 }
  0xc2   : > { %2123 = vmatmul.mubr.msk.bf16.gmra.mrb[88].mxu0 %vm545_vm2, %v2293_v49  ;;  %2223 = vmatmul.mubr.msk.bf16.gmra.mrb[88].mxu1 %vm545_vm2, %v2294_v50 }
  0xc3   : > { %2126 = vmatprep.mubr.msk.bf16.mxu0 %vm2307_vm1, %v2306_v1  ;;  %2226 = vmatprep.mubr.msk.bf16.mxu1 %vm2307_vm1, %v2306_v1 }
  0xca   : > { %2127 = vmatmul.mubr.msk.bf16.gmra.mrb[92].mxu0 %vm545_vm2, %v2295_v51  ;;  %2227 = vmatmul.mubr.msk.bf16.gmra.mrb[92].mxu1 %vm545_vm2, %v2296_v52 }
  0xcb   : > { %2130 = vmatprep.mubr.msk.bf16.mxu0 %vm2307_vm1, %v2306_v1 }
  0xd2   : > { %2131 = vmatmul.mubr.msk.bf16.gmra.mrb[96].mxu0 %vm545_vm2, %v2297_v53 }
  0xe5   : > { %v731_v55 = vpop.f32.mrb[0].mxu0  ;;  %v931_v58 = vpop.f32.mrb[0].mxu1 }
  0xe6   : > { %v732_v56 = vadd.f32 %v2560_v54, %v731_v55  ;;  %v2036_v57 = vpop.f32.mrb[1].mxu0  ;;  %v932_v60 = vadd.f32 %v2560_v54, %v931_v58  ;;  %v2136_v61 = vpop.f32.mrb[1].mxu1 }
  0xe7   : > { %v734_v59 = vpop.f32.mrb[2].mxu0  ;;  %v934_v1 = vpop.f32.mrb[2].mxu1 }
  0xe8   : > { %v1878_v62 = vpack.c.bf16 %v732_v56, %v732_v56  ;;  %v735_v63 = vadd.f32 %v2560_v54, %v734_v59  ;;  %v2037_v0 = vpop.f32.mrb[3].mxu0  ;;  %v1928_v2 = vpack.c.bf16 %v932_v60, %v932_v60  ;;  %v935_v3 = vadd.f32 %v2560_v54, %v934_v1  ;;  %v2137_v4 = vpop.f32.mrb[3].mxu1 }
  0xea   : > { %1515 = vst.msk [vmem:[%s2568_s29] sm:$0xf] %vm1514_vm3, %v1878_v62  ;;  %v1879_v5 = vpack.c.bf16 %v735_v63, %v735_v63  ;;  %1565 = vst.msk [vmem:[%s2568_s29 + $0xc8] sm:$0xf] %vm1514_vm3, %v1928_v2  ;;  %v1929_v6 = vpack.c.bf16 %v935_v3, %v935_v3 }
  0xec   : > { %1516 = vst.msk [vmem:[%s2568_s29 + $0x4] sm:$0xf] %vm1514_vm3, %v1879_v5  ;;  %1566 = vst.msk [vmem:[%s2568_s29 + $0xcc] sm:$0xf] %vm1514_vm3, %v1929_v6 }
  0xed   : > { %v739_v7 = vpop.f32.mrb[4].mxu0  ;;  %v939_v10 = vpop.f32.mrb[4].mxu1 }
  0xee   : > { %v740_v8 = vadd.f32 %v2560_v54, %v739_v7  ;;  %v2040_v9 = vpop.f32.mrb[5].mxu0  ;;  %v940_v12 = vadd.f32 %v2560_v54, %v939_v10  ;;  %v2140_v13 = vpop.f32.mrb[5].mxu1 }
  0xef   : > { %v742_v11 = vpop.f32.mrb[6].mxu0  ;;  %v942_v17 = vpop.f32.mrb[6].mxu1 }
  0xf0   : > { %v1880_v14 = vpack.c.bf16 %v740_v8, %v740_v8  ;;  %v743_v15 = vadd.f32 %v2560_v54, %v742_v11  ;;  %v2041_v16 = vpop.f32.mrb[7].mxu0  ;;  %v1930_v18 = vpack.c.bf16 %v940_v12, %v940_v12  ;;  %v943_v19 = vadd.f32 %v2560_v54, %v942_v17  ;;  %v2141_v20 = vpop.f32.mrb[7].mxu1 }
  0xf2   : > { %1517 = vst.msk [vmem:[%s2568_s29 + $0x8] sm:$0xf] %vm1514_vm3, %v1880_v14  ;;  %v1881_v21 = vpack.c.bf16 %v743_v15, %v743_v15  ;;  %1567 = vst.msk [vmem:[%s2568_s29 + $0xd0] sm:$0xf] %vm1514_vm3, %v1930_v18  ;;  %v1931_v22 = vpack.c.bf16 %v943_v19, %v943_v19 }
  0xf4   : > { %1518 = vst.msk [vmem:[%s2568_s29 + $0xc] sm:$0xf] %vm1514_vm3, %v1881_v21  ;;  %1568 = vst.msk [vmem:[%s2568_s29 + $0xd4] sm:$0xf] %vm1514_vm3, %v1931_v22 }
  0xf5   : > { %v747_v23 = vpop.f32.mrb[8].mxu0  ;;  %v947_v26 = vpop.f32.mrb[8].mxu1 }
  0xf6   : > { %v748_v24 = vadd.f32 %v2560_v54, %v747_v23  ;;  %v2044_v25 = vpop.f32.mrb[9].mxu0  ;;  %v948_v28 = vadd.f32 %v2560_v54, %v947_v26  ;;  %v2144_v29 = vpop.f32.mrb[9].mxu1 }
  0xf7   : > { %v750_v27 = vpop.f32.mrb[10].mxu0  ;;  %v950_v33 = vpop.f32.mrb[10].mxu1 }
  0xf8   : > { %v1882_v30 = vpack.c.bf16 %v748_v24, %v748_v24  ;;  %v751_v31 = vadd.f32 %v2560_v54, %v750_v27  ;;  %v2045_v32 = vpop.f32.mrb[11].mxu0  ;;  %v1932_v34 = vpack.c.bf16 %v948_v28, %v948_v28  ;;  %v951_v35 = vadd.f32 %v2560_v54, %v950_v33  ;;  %v2145_v36 = vpop.f32.mrb[11].mxu1 }
  0xfa   : > { %1519 = vst.msk [vmem:[%s2568_s29 + $0x10] sm:$0xf] %vm1514_vm3, %v1882_v30  ;;  %v1883_v37 = vpack.c.bf16 %v751_v31, %v751_v31  ;;  %1569 = vst.msk [vmem:[%s2568_s29 + $0xd8] sm:$0xf] %vm1514_vm3, %v1932_v34  ;;  %v1933_v38 = vpack.c.bf16 %v951_v35, %v951_v35 }
  0xfc   : > { %1520 = vst.msk [vmem:[%s2568_s29 + $0x14] sm:$0xf] %vm1514_vm3, %v1883_v37  ;;  %1570 = vst.msk [vmem:[%s2568_s29 + $0xdc] sm:$0xf] %vm1514_vm3, %v1933_v38 }
  0xfd   : > { %v755_v39 = vpop.f32.mrb[12].mxu0  ;;  %v955_v42 = vpop.f32.mrb[12].mxu1 }
  0xfe   : > { %v756_v40 = vadd.f32 %v2560_v54, %v755_v39  ;;  %v2048_v41 = vpop.f32.mrb[13].mxu0  ;;  %v956_v44 = vadd.f32 %v2560_v54, %v955_v42  ;;  %v2148_v45 = vpop.f32.mrb[13].mxu1 }
  0xff   : > { %v758_v43 = vpop.f32.mrb[14].mxu0  ;;  %v958_v49 = vpop.f32.mrb[14].mxu1 }
 0x100   : > { %v1884_v46 = vpack.c.bf16 %v756_v40, %v756_v40  ;;  %v759_v47 = vadd.f32 %v2560_v54, %v758_v43  ;;  %v2049_v48 = vpop.f32.mrb[15].mxu0  ;;  %v1934_v50 = vpack.c.bf16 %v956_v44, %v956_v44  ;;  %v959_v51 = vadd.f32 %v2560_v54, %v958_v49  ;;  %v2149_v52 = vpop.f32.mrb[15].mxu1 }
 0x102   : > { %1521 = vst.msk [vmem:[%s2568_s29 + $0x18] sm:$0xf] %vm1514_vm3, %v1884_v46  ;;  %v1885_v53 = vpack.c.bf16 %v759_v47, %v759_v47  ;;  %1571 = vst.msk [vmem:[%s2568_s29 + $0xe0] sm:$0xf] %vm1514_vm3, %v1934_v50  ;;  %v1935_v55 = vpack.c.bf16 %v959_v51, %v959_v51 }
 0x104   : > { %1522 = vst.msk [vmem:[%s2568_s29 + $0x1c] sm:$0xf] %vm1514_vm3, %v1885_v53  ;;  %1572 = vst.msk [vmem:[%s2568_s29 + $0xe4] sm:$0xf] %vm1514_vm3, %v1935_v55 }
 0x105   : > { %v763_v56 = vpop.f32.mrb[16].mxu0  ;;  %v963_v59 = vpop.f32.mrb[16].mxu1 }
 0x106   : > { %v764_v57 = vadd.f32 %v2560_v54, %v763_v56  ;;  %v2052_v58 = vpop.f32.mrb[17].mxu0  ;;  %v964_v61 = vadd.f32 %v2560_v54, %v963_v59  ;;  %v2152_v62 = vpop.f32.mrb[17].mxu1 }
 0x107   : > { %v766_v60 = vpop.f32.mrb[18].mxu0  ;;  %v966_v2 = vpop.f32.mrb[18].mxu1 }
 0x108   : > { %v1886_v63 = vpack.c.bf16 %v764_v57, %v764_v57  ;;  %v767_v0 = vadd.f32 %v2560_v54, %v766_v60  ;;  %v2053_v1 = vpop.f32.mrb[19].mxu0  ;;  %v1936_v3 = vpack.c.bf16 %v964_v61, %v964_v61  ;;  %v967_v4 = vadd.f32 %v2560_v54, %v966_v2  ;;  %v2153_v5 = vpop.f32.mrb[19].mxu1 }
 0x10a   : > { %1523 = vst.msk [vmem:[%s2568_s29 + $0x20] sm:$0xf] %vm1514_vm3, %v1886_v63  ;;  %v1887_v6 = vpack.c.bf16 %v767_v0, %v767_v0  ;;  %1573 = vst.msk [vmem:[%s2568_s29 + $0xe8] sm:$0xf] %vm1514_vm3, %v1936_v3  ;;  %v1937_v7 = vpack.c.bf16 %v967_v4, %v967_v4 }
 0x10c   : > { %1524 = vst.msk [vmem:[%s2568_s29 + $0x24] sm:$0xf] %vm1514_vm3, %v1887_v6  ;;  %1574 = vst.msk [vmem:[%s2568_s29 + $0xec] sm:$0xf] %vm1514_vm3, %v1937_v7 }
 0x10d   : > { %v771_v8 = vpop.f32.mrb[20].mxu0  ;;  %v971_v11 = vpop.f32.mrb[20].mxu1 }
 0x10e   : > { %v772_v9 = vadd.f32 %v2560_v54, %v771_v8  ;;  %v2056_v10 = vpop.f32.mrb[21].mxu0  ;;  %v972_v13 = vadd.f32 %v2560_v54, %v971_v11  ;;  %v2156_v14 = vpop.f32.mrb[21].mxu1 }
 0x10f   : > { %v774_v12 = vpop.f32.mrb[22].mxu0  ;;  %v974_v18 = vpop.f32.mrb[22].mxu1 }
 0x110   : > { %v1888_v15 = vpack.c.bf16 %v772_v9, %v772_v9  ;;  %v775_v16 = vadd.f32 %v2560_v54, %v774_v12  ;;  %v2057_v17 = vpop.f32.mrb[23].mxu0  ;;  %v1938_v19 = vpack.c.bf16 %v972_v13, %v972_v13  ;;  %v975_v20 = vadd.f32 %v2560_v54, %v974_v18  ;;  %v2157_v21 = vpop.f32.mrb[23].mxu1 }
 0x112   : > { %1525 = vst.msk [vmem:[%s2568_s29 + $0x28] sm:$0xf] %vm1514_vm3, %v1888_v15  ;;  %v1889_v22 = vpack.c.bf16 %v775_v16, %v775_v16  ;;  %1575 = vst.msk [vmem:[%s2568_s29 + $0xf0] sm:$0xf] %vm1514_vm3, %v1938_v19  ;;  %v1939_v23 = vpack.c.bf16 %v975_v20, %v975_v20 }
 0x114   : > { %1526 = vst.msk [vmem:[%s2568_s29 + $0x2c] sm:$0xf] %vm1514_vm3, %v1889_v22  ;;  %1576 = vst.msk [vmem:[%s2568_s29 + $0xf4] sm:$0xf] %vm1514_vm3, %v1939_v23 }
 0x115   : > { %v779_v24 = vpop.f32.mrb[24].mxu0  ;;  %v979_v27 = vpop.f32.mrb[24].mxu1 }
 0x116   : > { %v780_v25 = vadd.f32 %v2560_v54, %v779_v24  ;;  %v2060_v26 = vpop.f32.mrb[25].mxu0  ;;  %v980_v29 = vadd.f32 %v2560_v54, %v979_v27  ;;  %v2160_v30 = vpop.f32.mrb[25].mxu1 }
 0x117   : > { %v782_v28 = vpop.f32.mrb[26].mxu0  ;;  %v982_v34 = vpop.f32.mrb[26].mxu1 }
 0x118   : > { %v1890_v31 = vpack.c.bf16 %v780_v25, %v780_v25  ;;  %v783_v32 = vadd.f32 %v2560_v54, %v782_v28  ;;  %v2061_v33 = vpop.f32.mrb[27].mxu0  ;;  %v1940_v35 = vpack.c.bf16 %v980_v29, %v980_v29  ;;  %v983_v36 = vadd.f32 %v2560_v54, %v982_v34  ;;  %v2161_v37 = vpop.f32.mrb[27].mxu1 }
 0x11a   : > { %1527 = vst.msk [vmem:[%s2568_s29 + $0x30] sm:$0xf] %vm1514_vm3, %v1890_v31  ;;  %v1891_v38 = vpack.c.bf16 %v783_v32, %v783_v32  ;;  %1577 = vst.msk [vmem:[%s2568_s29 + $0xf8] sm:$0xf] %vm1514_vm3, %v1940_v35  ;;  %v1941_v39 = vpack.c.bf16 %v983_v36, %v983_v36 }
 0x11c   : > { %1528 = vst.msk [vmem:[%s2568_s29 + $0x34] sm:$0xf] %vm1514_vm3, %v1891_v38  ;;  %1578 = vst.msk [vmem:[%s2568_s29 + $0xfc] sm:$0xf] %vm1514_vm3, %v1941_v39 }
 0x11d   : > { %v787_v40 = vpop.f32.mrb[28].mxu0  ;;  %v987_v43 = vpop.f32.mrb[28].mxu1 }
 0x11e   : > { %v788_v41 = vadd.f32 %v2560_v54, %v787_v40  ;;  %v2064_v42 = vpop.f32.mrb[29].mxu0  ;;  %v988_v45 = vadd.f32 %v2560_v54, %v987_v43  ;;  %v2164_v46 = vpop.f32.mrb[29].mxu1 }
 0x11f   : > { %v790_v44 = vpop.f32.mrb[30].mxu0  ;;  %v990_v50 = vpop.f32.mrb[30].mxu1 }
 0x120   : > { %v1892_v47 = vpack.c.bf16 %v788_v41, %v788_v41  ;;  %v791_v48 = vadd.f32 %v2560_v54, %v790_v44  ;;  %v2065_v49 = vpop.f32.mrb[31].mxu0  ;;  %v1942_v51 = vpack.c.bf16 %v988_v45, %v988_v45  ;;  %v991_v52 = vadd.f32 %v2560_v54, %v990_v50  ;;  %v2165_v53 = vpop.f32.mrb[31].mxu1 }
 0x122   : > { %1529 = vst.msk [vmem:[%s2568_s29 + $0x38] sm:$0xf] %vm1514_vm3, %v1892_v47  ;;  %v1893_v55 = vpack.c.bf16 %v791_v48, %v791_v48  ;;  %1579 = vst.msk [vmem:[%s2568_s29 + $0x100] sm:$0xf] %vm1514_vm3, %v1942_v51  ;;  %v1943_v56 = vpack.c.bf16 %v991_v52, %v991_v52 }
 0x124   : > { %1530 = vst.msk [vmem:[%s2568_s29 + $0x3c] sm:$0xf] %vm1514_vm3, %v1893_v55  ;;  %1580 = vst.msk [vmem:[%s2568_s29 + $0x104] sm:$0xf] %vm1514_vm3, %v1943_v56 }
 0x125   : > { %v795_v57 = vpop.f32.mrb[32].mxu0  ;;  %v995_v60 = vpop.f32.mrb[32].mxu1 }
 0x126   : > { %v796_v58 = vadd.f32 %v2560_v54, %v795_v57  ;;  %v2068_v59 = vpop.f32.mrb[33].mxu0  ;;  %v996_v62 = vadd.f32 %v2560_v54, %v995_v60  ;;  %v2168_v63 = vpop.f32.mrb[33].mxu1 }
 0x127   : > { %v798_v61 = vpop.f32.mrb[34].mxu0  ;;  %v998_v3 = vpop.f32.mrb[34].mxu1 }
 0x128   : > { %v1894_v0 = vpack.c.bf16 %v796_v58, %v796_v58  ;;  %v799_v1 = vadd.f32 %v2560_v54, %v798_v61  ;;  %v2069_v2 = vpop.f32.mrb[35].mxu0  ;;  %v1944_v4 = vpack.c.bf16 %v996_v62, %v996_v62  ;;  %v999_v5 = vadd.f32 %v2560_v54, %v998_v3  ;;  %v2169_v6 = vpop.f32.mrb[35].mxu1 }
 0x12a   : > { %1531 = vst.msk [vmem:[%s2568_s29 + $0x40] sm:$0xf] %vm1514_vm3, %v1894_v0  ;;  %v1895_v7 = vpack.c.bf16 %v799_v1, %v799_v1  ;;  %1581 = vst.msk [vmem:[%s2568_s29 + $0x108] sm:$0xf] %vm1514_vm3, %v1944_v4  ;;  %v1945_v8 = vpack.c.bf16 %v999_v5, %v999_v5 }
 0x12c   : > { %1532 = vst.msk [vmem:[%s2568_s29 + $0x44] sm:$0xf] %vm1514_vm3, %v1895_v7  ;;  %1582 = vst.msk [vmem:[%s2568_s29 + $0x10c] sm:$0xf] %vm1514_vm3, %v1945_v8 }
 0x12d   : > { %v803_v9 = vpop.f32.mrb[36].mxu0  ;;  %v1003_v12 = vpop.f32.mrb[36].mxu1 }
 0x12e   : > { %v804_v10 = vadd.f32 %v2560_v54, %v803_v9  ;;  %v2072_v11 = vpop.f32.mrb[37].mxu0  ;;  %v1004_v14 = vadd.f32 %v2560_v54, %v1003_v12  ;;  %v2172_v15 = vpop.f32.mrb[37].mxu1 }
 0x12f   : > { %v806_v13 = vpop.f32.mrb[38].mxu0  ;;  %v1006_v19 = vpop.f32.mrb[38].mxu1 }
 0x130   : > { %v1896_v16 = vpack.c.bf16 %v804_v10, %v804_v10  ;;  %v807_v17 = vadd.f32 %v2560_v54, %v806_v13  ;;  %v2073_v18 = vpop.f32.mrb[39].mxu0  ;;  %v1946_v20 = vpack.c.bf16 %v1004_v14, %v1004_v14  ;;  %v1007_v21 = vadd.f32 %v2560_v54, %v1006_v19  ;;  %v2173_v22 = vpop.f32.mrb[39].mxu1 }
 0x132   : > { %1533 = vst.msk [vmem:[%s2568_s29 + $0x48] sm:$0xf] %vm1514_vm3, %v1896_v16  ;;  %v1897_v23 = vpack.c.bf16 %v807_v17, %v807_v17  ;;  %1583 = vst.msk [vmem:[%s2568_s29 + $0x110] sm:$0xf] %vm1514_vm3, %v1946_v20  ;;  %v1947_v24 = vpack.c.bf16 %v1007_v21, %v1007_v21 }
 0x134   : > { %1534 = vst.msk [vmem:[%s2568_s29 + $0x4c] sm:$0xf] %vm1514_vm3, %v1897_v23  ;;  %1584 = vst.msk [vmem:[%s2568_s29 + $0x114] sm:$0xf] %vm1514_vm3, %v1947_v24 }
 0x135   : > { %v811_v25 = vpop.f32.mrb[40].mxu0  ;;  %v1011_v28 = vpop.f32.mrb[40].mxu1 }
 0x136   : > { %v812_v26 = vadd.f32 %v2560_v54, %v811_v25  ;;  %v2076_v27 = vpop.f32.mrb[41].mxu0  ;;  %v1012_v30 = vadd.f32 %v2560_v54, %v1011_v28  ;;  %v2176_v31 = vpop.f32.mrb[41].mxu1 }
 0x137   : > { %v814_v29 = vpop.f32.mrb[42].mxu0  ;;  %v1014_v35 = vpop.f32.mrb[42].mxu1 }
 0x138   : > { %v1898_v32 = vpack.c.bf16 %v812_v26, %v812_v26  ;;  %v815_v33 = vadd.f32 %v2560_v54, %v814_v29  ;;  %v2077_v34 = vpop.f32.mrb[43].mxu0  ;;  %v1948_v36 = vpack.c.bf16 %v1012_v30, %v1012_v30  ;;  %v1015_v37 = vadd.f32 %v2560_v54, %v1014_v35  ;;  %v2177_v38 = vpop.f32.mrb[43].mxu1 }
 0x13a   : > { %1535 = vst.msk [vmem:[%s2568_s29 + $0x50] sm:$0xf] %vm1514_vm3, %v1898_v32  ;;  %v1899_v39 = vpack.c.bf16 %v815_v33, %v815_v33  ;;  %1585 = vst.msk [vmem:[%s2568_s29 + $0x118] sm:$0xf] %vm1514_vm3, %v1948_v36  ;;  %v1949_v40 = vpack.c.bf16 %v1015_v37, %v1015_v37 }
 0x13c   : > { %1536 = vst.msk [vmem:[%s2568_s29 + $0x54] sm:$0xf] %vm1514_vm3, %v1899_v39  ;;  %1586 = vst.msk [vmem:[%s2568_s29 + $0x11c] sm:$0xf] %vm1514_vm3, %v1949_v40 }
 0x13d   : > { %v819_v41 = vpop.f32.mrb[44].mxu0  ;;  %v1019_v44 = vpop.f32.mrb[44].mxu1 }
 0x13e   : > { %v820_v42 = vadd.f32 %v2560_v54, %v819_v41  ;;  %v2080_v43 = vpop.f32.mrb[45].mxu0  ;;  %v1020_v46 = vadd.f32 %v2560_v54, %v1019_v44  ;;  %v2180_v47 = vpop.f32.mrb[45].mxu1 }
 0x13f   : > { %v822_v45 = vpop.f32.mrb[46].mxu0  ;;  %v1022_v51 = vpop.f32.mrb[46].mxu1 }
 0x140   : > { %v1900_v48 = vpack.c.bf16 %v820_v42, %v820_v42  ;;  %v823_v49 = vadd.f32 %v2560_v54, %v822_v45  ;;  %v2081_v50 = vpop.f32.mrb[47].mxu0  ;;  %v1950_v52 = vpack.c.bf16 %v1020_v46, %v1020_v46  ;;  %v1023_v53 = vadd.f32 %v2560_v54, %v1022_v51  ;;  %v2181_v55 = vpop.f32.mrb[47].mxu1 }
 0x142   : > { %1537 = vst.msk [vmem:[%s2568_s29 + $0x58] sm:$0xf] %vm1514_vm3, %v1900_v48  ;;  %v1901_v56 = vpack.c.bf16 %v823_v49, %v823_v49  ;;  %1587 = vst.msk [vmem:[%s2568_s29 + $0x120] sm:$0xf] %vm1514_vm3, %v1950_v52  ;;  %v1951_v57 = vpack.c.bf16 %v1023_v53, %v1023_v53 }
 0x144   : > { %1538 = vst.msk [vmem:[%s2568_s29 + $0x5c] sm:$0xf] %vm1514_vm3, %v1901_v56  ;;  %1588 = vst.msk [vmem:[%s2568_s29 + $0x124] sm:$0xf] %vm1514_vm3, %v1951_v57 }
 0x145   : > { %v827_v58 = vpop.f32.mrb[48].mxu0  ;;  %v1027_v61 = vpop.f32.mrb[48].mxu1 }
 0x146   : > { %v828_v59 = vadd.f32 %v2560_v54, %v827_v58  ;;  %v2084_v60 = vpop.f32.mrb[49].mxu0  ;;  %v1028_v63 = vadd.f32 %v2560_v54, %v1027_v61  ;;  %v2184_v0 = vpop.f32.mrb[49].mxu1 }
 0x147   : > { %v830_v62 = vpop.f32.mrb[50].mxu0  ;;  %v1030_v4 = vpop.f32.mrb[50].mxu1 }
 0x148   : > { %v1902_v1 = vpack.c.bf16 %v828_v59, %v828_v59  ;;  %v831_v2 = vadd.f32 %v2560_v54, %v830_v62  ;;  %v2085_v3 = vpop.f32.mrb[51].mxu0  ;;  %v1952_v5 = vpack.c.bf16 %v1028_v63, %v1028_v63  ;;  %v1031_v6 = vadd.f32 %v2560_v54, %v1030_v4  ;;  %v2185_v7 = vpop.f32.mrb[51].mxu1 }
 0x14a   : > { %1539 = vst.msk [vmem:[%s2568_s29 + $0x60] sm:$0xf] %vm1514_vm3, %v1902_v1  ;;  %v1903_v8 = vpack.c.bf16 %v831_v2, %v831_v2  ;;  %1589 = vst.msk [vmem:[%s2568_s29 + $0x128] sm:$0xf] %vm1514_vm3, %v1952_v5  ;;  %v1953_v9 = vpack.c.bf16 %v1031_v6, %v1031_v6 }
 0x14c   : > { %1540 = vst.msk [vmem:[%s2568_s29 + $0x64] sm:$0xf] %vm1514_vm3, %v1903_v8  ;;  %1590 = vst.msk [vmem:[%s2568_s29 + $0x12c] sm:$0xf] %vm1514_vm3, %v1953_v9 }
 0x14d   : > { %v835_v10 = vpop.f32.mrb[52].mxu0  ;;  %v1035_v13 = vpop.f32.mrb[52].mxu1 }
 0x14e   : > { %v836_v11 = vadd.f32 %v2560_v54, %v835_v10  ;;  %v2088_v12 = vpop.f32.mrb[53].mxu0  ;;  %v1036_v15 = vadd.f32 %v2560_v54, %v1035_v13  ;;  %v2188_v16 = vpop.f32.mrb[53].mxu1 }
 0x14f   : > { %v838_v14 = vpop.f32.mrb[54].mxu0  ;;  %v1038_v20 = vpop.f32.mrb[54].mxu1 }
 0x150   : > { %v1904_v17 = vpack.c.bf16 %v836_v11, %v836_v11  ;;  %v839_v18 = vadd.f32 %v2560_v54, %v838_v14  ;;  %v2089_v19 = vpop.f32.mrb[55].mxu0  ;;  %v1954_v21 = vpack.c.bf16 %v1036_v15, %v1036_v15  ;;  %v1039_v22 = vadd.f32 %v2560_v54, %v1038_v20  ;;  %v2189_v23 = vpop.f32.mrb[55].mxu1 }
 0x152   : > { %1541 = vst.msk [vmem:[%s2568_s29 + $0x68] sm:$0xf] %vm1514_vm3, %v1904_v17  ;;  %v1905_v24 = vpack.c.bf16 %v839_v18, %v839_v18  ;;  %1591 = vst.msk [vmem:[%s2568_s29 + $0x130] sm:$0xf] %vm1514_vm3, %v1954_v21  ;;  %v1955_v25 = vpack.c.bf16 %v1039_v22, %v1039_v22 }
 0x154   : > { %1542 = vst.msk [vmem:[%s2568_s29 + $0x6c] sm:$0xf] %vm1514_vm3, %v1905_v24  ;;  %1592 = vst.msk [vmem:[%s2568_s29 + $0x134] sm:$0xf] %vm1514_vm3, %v1955_v25 }
 0x155   : > { %v843_v26 = vpop.f32.mrb[56].mxu0  ;;  %v1043_v29 = vpop.f32.mrb[56].mxu1 }
 0x156   : > { %v844_v27 = vadd.f32 %v2560_v54, %v843_v26  ;;  %v2092_v28 = vpop.f32.mrb[57].mxu0  ;;  %v1044_v31 = vadd.f32 %v2560_v54, %v1043_v29  ;;  %v2192_v32 = vpop.f32.mrb[57].mxu1 }
 0x157   : > { %v846_v30 = vpop.f32.mrb[58].mxu0  ;;  %v1046_v36 = vpop.f32.mrb[58].mxu1 }
 0x158   : > { %v1906_v33 = vpack.c.bf16 %v844_v27, %v844_v27  ;;  %v847_v34 = vadd.f32 %v2560_v54, %v846_v30  ;;  %v2093_v35 = vpop.f32.mrb[59].mxu0  ;;  %v1956_v37 = vpack.c.bf16 %v1044_v31, %v1044_v31  ;;  %v1047_v38 = vadd.f32 %v2560_v54, %v1046_v36  ;;  %v2193_v39 = vpop.f32.mrb[59].mxu1 }
 0x15a   : > { %1543 = vst.msk [vmem:[%s2568_s29 + $0x70] sm:$0xf] %vm1514_vm3, %v1906_v33  ;;  %v1907_v40 = vpack.c.bf16 %v847_v34, %v847_v34  ;;  %1593 = vst.msk [vmem:[%s2568_s29 + $0x138] sm:$0xf] %vm1514_vm3, %v1956_v37  ;;  %v1957_v41 = vpack.c.bf16 %v1047_v38, %v1047_v38 }
 0x15c   : > { %1544 = vst.msk [vmem:[%s2568_s29 + $0x74] sm:$0xf] %vm1514_vm3, %v1907_v40  ;;  %1594 = vst.msk [vmem:[%s2568_s29 + $0x13c] sm:$0xf] %vm1514_vm3, %v1957_v41 }
 0x15d   : > { %v851_v42 = vpop.f32.mrb[60].mxu0  ;;  %v1051_v45 = vpop.f32.mrb[60].mxu1 }
 0x15e   : > { %v852_v43 = vadd.f32 %v2560_v54, %v851_v42  ;;  %v2096_v44 = vpop.f32.mrb[61].mxu0  ;;  %v1052_v47 = vadd.f32 %v2560_v54, %v1051_v45  ;;  %v2196_v48 = vpop.f32.mrb[61].mxu1 }
 0x15f   : > { %v854_v46 = vpop.f32.mrb[62].mxu0  ;;  %v1054_v52 = vpop.f32.mrb[62].mxu1 }
 0x160   : > { %v1908_v49 = vpack.c.bf16 %v852_v43, %v852_v43  ;;  %v855_v50 = vadd.f32 %v2560_v54, %v854_v46  ;;  %v2097_v51 = vpop.f32.mrb[63].mxu0  ;;  %v1958_v53 = vpack.c.bf16 %v1052_v47, %v1052_v47  ;;  %v1055_v55 = vadd.f32 %v2560_v54, %v1054_v52  ;;  %v2197_v56 = vpop.f32.mrb[63].mxu1 }
 0x162   : > { %1545 = vst.msk [vmem:[%s2568_s29 + $0x78] sm:$0xf] %vm1514_vm3, %v1908_v49  ;;  %v1909_v57 = vpack.c.bf16 %v855_v50, %v855_v50  ;;  %1595 = vst.msk [vmem:[%s2568_s29 + $0x140] sm:$0xf] %vm1514_vm3, %v1958_v53  ;;  %v1959_v58 = vpack.c.bf16 %v1055_v55, %v1055_v55 }
 0x164   : > { %1546 = vst.msk [vmem:[%s2568_s29 + $0x7c] sm:$0xf] %vm1514_vm3, %v1909_v57  ;;  %1596 = vst.msk [vmem:[%s2568_s29 + $0x144] sm:$0xf] %vm1514_vm3, %v1959_v58 }
 0x165   : > { %v859_v59 = vpop.f32.mrb[64].mxu0  ;;  %v1059_v62 = vpop.f32.mrb[64].mxu1 }
 0x166   : > { %v860_v60 = vadd.f32 %v2560_v54, %v859_v59  ;;  %v2100_v61 = vpop.f32.mrb[65].mxu0  ;;  %v1060_v0 = vadd.f32 %v2560_v54, %v1059_v62  ;;  %v2200_v1 = vpop.f32.mrb[65].mxu1 }
 0x167   : > { %v862_v63 = vpop.f32.mrb[66].mxu0  ;;  %v1062_v5 = vpop.f32.mrb[66].mxu1 }
 0x168   : > { %v1910_v2 = vpack.c.bf16 %v860_v60, %v860_v60  ;;  %v863_v3 = vadd.f32 %v2560_v54, %v862_v63  ;;  %v2101_v4 = vpop.f32.mrb[67].mxu0  ;;  %v1960_v6 = vpack.c.bf16 %v1060_v0, %v1060_v0  ;;  %v1063_v7 = vadd.f32 %v2560_v54, %v1062_v5  ;;  %v2201_v8 = vpop.f32.mrb[67].mxu1 }
 0x16a   : > { %1547 = vst.msk [vmem:[%s2568_s29 + $0x80] sm:$0xf] %vm1514_vm3, %v1910_v2  ;;  %v1911_v9 = vpack.c.bf16 %v863_v3, %v863_v3  ;;  %1597 = vst.msk [vmem:[%s2568_s29 + $0x148] sm:$0xf] %vm1514_vm3, %v1960_v6  ;;  %v1961_v10 = vpack.c.bf16 %v1063_v7, %v1063_v7 }
 0x16c   : > { %1548 = vst.msk [vmem:[%s2568_s29 + $0x84] sm:$0xf] %vm1514_vm3, %v1911_v9  ;;  %1598 = vst.msk [vmem:[%s2568_s29 + $0x14c] sm:$0xf] %vm1514_vm3, %v1961_v10 }
 0x16d   : > { %v867_v11 = vpop.f32.mrb[68].mxu0  ;;  %v1067_v14 = vpop.f32.mrb[68].mxu1 }
 0x16e   : > { %v868_v12 = vadd.f32 %v2560_v54, %v867_v11  ;;  %v2104_v13 = vpop.f32.mrb[69].mxu0  ;;  %v1068_v16 = vadd.f32 %v2560_v54, %v1067_v14  ;;  %v2204_v17 = vpop.f32.mrb[69].mxu1 }
 0x16f   : > { %v870_v15 = vpop.f32.mrb[70].mxu0  ;;  %v1070_v21 = vpop.f32.mrb[70].mxu1 }
 0x170   : > { %v1912_v18 = vpack.c.bf16 %v868_v12, %v868_v12  ;;  %v871_v19 = vadd.f32 %v2560_v54, %v870_v15  ;;  %v2105_v20 = vpop.f32.mrb[71].mxu0  ;;  %v1962_v22 = vpack.c.bf16 %v1068_v16, %v1068_v16  ;;  %v1071_v23 = vadd.f32 %v2560_v54, %v1070_v21  ;;  %v2205_v24 = vpop.f32.mrb[71].mxu1 }
 0x172   : > { %1549 = vst.msk [vmem:[%s2568_s29 + $0x88] sm:$0xf] %vm1514_vm3, %v1912_v18  ;;  %v1913_v25 = vpack.c.bf16 %v871_v19, %v871_v19  ;;  %1599 = vst.msk [vmem:[%s2568_s29 + $0x150] sm:$0xf] %vm1514_vm3, %v1962_v22  ;;  %v1963_v26 = vpack.c.bf16 %v1071_v23, %v1071_v23 }
 0x174   : > { %1550 = vst.msk [vmem:[%s2568_s29 + $0x8c] sm:$0xf] %vm1514_vm3, %v1913_v25  ;;  %1600 = vst.msk [vmem:[%s2568_s29 + $0x154] sm:$0xf] %vm1514_vm3, %v1963_v26 }
 0x175   : > { %v875_v27 = vpop.f32.mrb[72].mxu0  ;;  %v1075_v30 = vpop.f32.mrb[72].mxu1 }
 0x176   : > { %v876_v28 = vadd.f32 %v2560_v54, %v875_v27  ;;  %v2108_v29 = vpop.f32.mrb[73].mxu0  ;;  %v1076_v32 = vadd.f32 %v2560_v54, %v1075_v30  ;;  %v2208_v33 = vpop.f32.mrb[73].mxu1 }
 0x177   : > { %v878_v31 = vpop.f32.mrb[74].mxu0  ;;  %v1078_v37 = vpop.f32.mrb[74].mxu1 }
 0x178   : > { %v1914_v34 = vpack.c.bf16 %v876_v28, %v876_v28  ;;  %v879_v35 = vadd.f32 %v2560_v54, %v878_v31  ;;  %v2109_v36 = vpop.f32.mrb[75].mxu0  ;;  %v1964_v38 = vpack.c.bf16 %v1076_v32, %v1076_v32  ;;  %v1079_v39 = vadd.f32 %v2560_v54, %v1078_v37  ;;  %v2209_v40 = vpop.f32.mrb[75].mxu1 }
 0x17a   : > { %1551 = vst.msk [vmem:[%s2568_s29 + $0x90] sm:$0xf] %vm1514_vm3, %v1914_v34  ;;  %v1915_v41 = vpack.c.bf16 %v879_v35, %v879_v35  ;;  %1601 = vst.msk [vmem:[%s2568_s29 + $0x158] sm:$0xf] %vm1514_vm3, %v1964_v38  ;;  %v1965_v42 = vpack.c.bf16 %v1079_v39, %v1079_v39 }
 0x17c   : > { %1552 = vst.msk [vmem:[%s2568_s29 + $0x94] sm:$0xf] %vm1514_vm3, %v1915_v41  ;;  %1602 = vst.msk [vmem:[%s2568_s29 + $0x15c] sm:$0xf] %vm1514_vm3, %v1965_v42 }
 0x17d   : > { %v883_v43 = vpop.f32.mrb[76].mxu0  ;;  %v1083_v46 = vpop.f32.mrb[76].mxu1 }
 0x17e   : > { %v884_v44 = vadd.f32 %v2560_v54, %v883_v43  ;;  %v2112_v45 = vpop.f32.mrb[77].mxu0  ;;  %v1084_v48 = vadd.f32 %v2560_v54, %v1083_v46  ;;  %v2212_v49 = vpop.f32.mrb[77].mxu1 }
 0x17f   : > { %v886_v47 = vpop.f32.mrb[78].mxu0  ;;  %v1086_v53 = vpop.f32.mrb[78].mxu1 }
 0x180   : > { %v1916_v50 = vpack.c.bf16 %v884_v44, %v884_v44  ;;  %v887_v51 = vadd.f32 %v2560_v54, %v886_v47  ;;  %v2113_v52 = vpop.f32.mrb[79].mxu0  ;;  %v1966_v55 = vpack.c.bf16 %v1084_v48, %v1084_v48  ;;  %v1087_v56 = vadd.f32 %v2560_v54, %v1086_v53  ;;  %v2213_v57 = vpop.f32.mrb[79].mxu1 }
 0x182   : > { %1553 = vst.msk [vmem:[%s2568_s29 + $0x98] sm:$0xf] %vm1514_vm3, %v1916_v50  ;;  %v1917_v58 = vpack.c.bf16 %v887_v51, %v887_v51  ;;  %1603 = vst.msk [vmem:[%s2568_s29 + $0x160] sm:$0xf] %vm1514_vm3, %v1966_v55  ;;  %v1967_v59 = vpack.c.bf16 %v1087_v56, %v1087_v56 }
 0x184   : > { %1554 = vst.msk [vmem:[%s2568_s29 + $0x9c] sm:$0xf] %vm1514_vm3, %v1917_v58  ;;  %1604 = vst.msk [vmem:[%s2568_s29 + $0x164] sm:$0xf] %vm1514_vm3, %v1967_v59 }
 0x185   : > { %v891_v60 = vpop.f32.mrb[80].mxu0  ;;  %v1091_v63 = vpop.f32.mrb[80].mxu1 }
 0x186   : > { %v892_v61 = vadd.f32 %v2560_v54, %v891_v60  ;;  %v2116_v62 = vpop.f32.mrb[81].mxu0  ;;  %v1092_v1 = vadd.f32 %v2560_v54, %v1091_v63  ;;  %v2216_v2 = vpop.f32.mrb[81].mxu1 }
 0x187   : > { %v894_v0 = vpop.f32.mrb[82].mxu0  ;;  %v1094_v6 = vpop.f32.mrb[82].mxu1 }
 0x188   : > { %v1918_v3 = vpack.c.bf16 %v892_v61, %v892_v61  ;;  %v895_v4 = vadd.f32 %v2560_v54, %v894_v0  ;;  %v2117_v5 = vpop.f32.mrb[83].mxu0  ;;  %v1968_v7 = vpack.c.bf16 %v1092_v1, %v1092_v1  ;;  %v1095_v8 = vadd.f32 %v2560_v54, %v1094_v6  ;;  %v2217_v9 = vpop.f32.mrb[83].mxu1 }
 0x18a   : > { %1555 = vst.msk [vmem:[%s2568_s29 + $0xa0] sm:$0xf] %vm1514_vm3, %v1918_v3  ;;  %v1919_v10 = vpack.c.bf16 %v895_v4, %v895_v4  ;;  %1605 = vst.msk [vmem:[%s2568_s29 + $0x168] sm:$0xf] %vm1514_vm3, %v1968_v7  ;;  %v1969_v11 = vpack.c.bf16 %v1095_v8, %v1095_v8 }
 0x18c   : > { %1556 = vst.msk [vmem:[%s2568_s29 + $0xa4] sm:$0xf] %vm1514_vm3, %v1919_v10  ;;  %1606 = vst.msk [vmem:[%s2568_s29 + $0x16c] sm:$0xf] %vm1514_vm3, %v1969_v11 }
 0x18d   : > { %v899_v12 = vpop.f32.mrb[84].mxu0  ;;  %v1099_v15 = vpop.f32.mrb[84].mxu1 }
 0x18e   : > { %v900_v13 = vadd.f32 %v2560_v54, %v899_v12  ;;  %v2120_v14 = vpop.f32.mrb[85].mxu0  ;;  %v1100_v17 = vadd.f32 %v2560_v54, %v1099_v15  ;;  %v2220_v18 = vpop.f32.mrb[85].mxu1 }
 0x18f   : > { %v902_v16 = vpop.f32.mrb[86].mxu0  ;;  %v1102_v22 = vpop.f32.mrb[86].mxu1 }
 0x190   : > { %v1920_v19 = vpack.c.bf16 %v900_v13, %v900_v13  ;;  %v903_v20 = vadd.f32 %v2560_v54, %v902_v16  ;;  %v2121_v21 = vpop.f32.mrb[87].mxu0  ;;  %v1970_v23 = vpack.c.bf16 %v1100_v17, %v1100_v17  ;;  %v1103_v24 = vadd.f32 %v2560_v54, %v1102_v22  ;;  %v2221_v25 = vpop.f32.mrb[87].mxu1 }
 0x192   : > { %1557 = vst.msk [vmem:[%s2568_s29 + $0xa8] sm:$0xf] %vm1514_vm3, %v1920_v19  ;;  %v1921_v26 = vpack.c.bf16 %v903_v20, %v903_v20  ;;  %1607 = vst.msk [vmem:[%s2568_s29 + $0x170] sm:$0xf] %vm1514_vm3, %v1970_v23  ;;  %v1971_v27 = vpack.c.bf16 %v1103_v24, %v1103_v24 }
 0x194   : > { %1558 = vst.msk [vmem:[%s2568_s29 + $0xac] sm:$0xf] %vm1514_vm3, %v1921_v26  ;;  %1608 = vst.msk [vmem:[%s2568_s29 + $0x174] sm:$0xf] %vm1514_vm3, %v1971_v27 }
 0x195   : > { %v907_v28 = vpop.f32.mrb[88].mxu0  ;;  %v1107_v31 = vpop.f32.mrb[88].mxu1 }
 0x196   : > { %v908_v29 = vadd.f32 %v2560_v54, %v907_v28  ;;  %v2124_v30 = vpop.f32.mrb[89].mxu0  ;;  %v1108_v33 = vadd.f32 %v2560_v54, %v1107_v31  ;;  %v2224_v34 = vpop.f32.mrb[89].mxu1 }
 0x197   : > { %v910_v32 = vpop.f32.mrb[90].mxu0  ;;  %v1110_v38 = vpop.f32.mrb[90].mxu1 }
 0x198   : > { %v1922_v35 = vpack.c.bf16 %v908_v29, %v908_v29  ;;  %v911_v36 = vadd.f32 %v2560_v54, %v910_v32  ;;  %v2125_v37 = vpop.f32.mrb[91].mxu0  ;;  %v1972_v39 = vpack.c.bf16 %v1108_v33, %v1108_v33  ;;  %v1111_v40 = vadd.f32 %v2560_v54, %v1110_v38  ;;  %v2225_v41 = vpop.f32.mrb[91].mxu1 }
 0x19a   : > { %1559 = vst.msk [vmem:[%s2568_s29 + $0xb0] sm:$0xf] %vm1514_vm3, %v1922_v35  ;;  %v1923_v42 = vpack.c.bf16 %v911_v36, %v911_v36  ;;  %1609 = vst.msk [vmem:[%s2568_s29 + $0x178] sm:$0xf] %vm1514_vm3, %v1972_v39  ;;  %v1973_v43 = vpack.c.bf16 %v1111_v40, %v1111_v40 }
 0x19c   : > { %1560 = vst.msk [vmem:[%s2568_s29 + $0xb4] sm:$0xf] %vm1514_vm3, %v1923_v42  ;;  %1610 = vst.msk [vmem:[%s2568_s29 + $0x17c] sm:$0xf] %vm1514_vm3, %v1973_v43 }
 0x19d   : > { %v915_v44 = vpop.f32.mrb[92].mxu0  ;;  %v1115_v47 = vpop.f32.mrb[92].mxu1 }
 0x19e   : > { %v916_v45 = vadd.f32 %v2560_v54, %v915_v44  ;;  %v2128_v46 = vpop.f32.mrb[93].mxu0  ;;  %v1116_v49 = vadd.f32 %v2560_v54, %v1115_v47  ;;  %v2228_v50 = vpop.f32.mrb[93].mxu1 }
 0x19f   : > { %v918_v48 = vpop.f32.mrb[94].mxu0  ;;  %v1118_v55 = vpop.f32.mrb[94].mxu1 }
 0x1a0   : > { %v1924_v51 = vpack.c.bf16 %v916_v45, %v916_v45  ;;  %v919_v52 = vadd.f32 %v2560_v54, %v918_v48  ;;  %v2129_v53 = vpop.f32.mrb[95].mxu0  ;;  %v1974_v56 = vpack.c.bf16 %v1116_v49, %v1116_v49  ;;  %v1119_v57 = vadd.f32 %v2560_v54, %v1118_v55  ;;  %v2229_v58 = vpop.f32.mrb[95].mxu1 }
 0x1a2   : > { %1561 = vst.msk [vmem:[%s2568_s29 + $0xb8] sm:$0xf] %vm1514_vm3, %v1924_v51  ;;  %v1925_v59 = vpack.c.bf16 %v919_v52, %v919_v52  ;;  %1611 = vst.msk [vmem:[%s2568_s29 + $0x180] sm:$0xf] %vm1514_vm3, %v1974_v56  ;;  %v1975_v60 = vpack.c.bf16 %v1119_v57, %v1119_v57 }
 0x1a4   : > { %1562 = vst.msk [vmem:[%s2568_s29 + $0xbc] sm:$0xf] %vm1514_vm3, %v1925_v59  ;;  %1612 = vst.msk [vmem:[%s2568_s29 + $0x184] sm:$0xf] %vm1514_vm3, %v1975_v60 }
 0x1a5   : > { %v923_v61 = vpop.f32.mrb[96].mxu0 }
 0x1a6   : > { %v924_v62 = vadd.f32 %v2560_v54, %v923_v61  ;;  %v2132_v63 = vpop.f32.mrb[97].mxu0 }
 0x1a7   : > { %v926_v0 = vpop.f32.mrb[98].mxu0 }
 0x1a8   : > { %v1926_v1 = vpack.c.bf16 %v924_v62, %v924_v62  ;;  %v927_v2 = vadd.f32 %v2560_v54, %v926_v0  ;;  %v2133_v3 = vpop.f32.mrb[99].mxu0 }
 0x1aa   : > { %1563 = vst.msk [vmem:[%s2568_s29 + $0xc0] sm:$0xf] %vm1514_vm3, %v1926_v1  ;;  %v1927_v4 = vpack.c.bf16 %v927_v2, %v927_v2 }
 0x1ac   : > { %1564 = vst.msk [vmem:[%s2568_s29 + $0xc4] sm:$0xf] %vm1514_vm3, %v1927_v4 }
 0x1ad PF: > { %s13_s12 = sadd.s32 1, %s2304_s12  }
 0x1ae   : > { %p10_p4 = scmp.ge.s32.totalorder %s13_s12, 6  }
 0x1b0   :  { %12 = sbr.rel (!%p10_p4) target bundleno = 1 (0x1), region = 62 }

// kernel: conv_gru_forward.5
= control target key start
LH: loop header
LB: loop body
LE: loop exit
PB: predicated region body
PF: predicated region fallthrough
CT: control target
= control target key end

     0   :  { %s5001_s15 = smov 0   ;;  %s5003_s16 = smov 0   ;;  %s7108_s0 = inlined_call_operand.vmem [shape: bf16[8,512,96], index: 0, kind: input, shape index: {}]   ;;  %s7109_s1 = inlined_call_operand.vmem [shape: bf16[288,96], index: 1, kind: input, shape index: {}]   ;;  %s7110_s2 = inlined_call_operand.vmem [shape: f32[1,96], index: 2, kind: input, shape index: {}]   ;;  %s7111_s3 = inlined_call_operand.vmem [shape: f32[512,1], index: 3, kind: input, shape index: {}]   ;;  %s7112_s4 = inlined_call_operand.vmem [shape: bf16[8,512,32], index: 4, kind: output, shape index: {}]  }
   0x1   :  { %s5005_s17 = smov 0   ;;  %s5007_s18 = smov 0  }
   0x2   :  { %s5009_s19 = smov 0  }
   0x3 LB: > { %s23_s20 = sadd.s32 1, %s4961_s17  ;;  %s26_s21 = sadd.s32 1, %s4965_s18  ;;  %s4969_s19 = sphi %s5009_s19, %s14_s19   ;;  %s4965_s18 = sphi %s5007_s18, %s7385_s18   ;;  %s4961_s17 = sphi %s5005_s17, %s7384_s17   ;;  %s4957_s16 = sphi %s5003_s16, %s7383_s16   ;;  %s4953_s15 = sphi %s5001_s15, %s7382_s15  }
   0x4   : > { %p24_p0 = scmp.ge.s32.totalorder %s23_s20, 8  ;;  %p3690_p1 = scmp.ge.s32.totalorder %s4969_s19, 1 }
   0x5   : > { %p194_p2 = scmp.lt.s32.totalorder %s4969_s19, 17 }
   0x6   : > { %s7387_s20 = smov (%p24_p0, %s23_s20), 0  ;;  %s7389_s21 = smov (!%p24_p0, %s26_s21), %s4965_s18 }
   0x7   : > { %p195_p3 = pnand %p3690_p1, %p194_p2  ;;  %p28_p4 = scmp.ge.s32.totalorder %s7389_s21, 2 }
   0x9   : > { %s7391_s21 = smov (%p28_p4, %s7389_s21), 0  ;;  %198 = sbr.rel (%p195_p3) target bundleno = 1375 (0x55f), region = 36 }
  0x10   : > { %s3691_s22 = sshll.u32 %s4957_s16, 5  ;;  %p234_p5 = scmp.lt.s32.totalorder %s4953_s15, 7 }
  0x11   : > { %p236_p6 = scmp.lt.s32.totalorder %s3691_s22, 63  ;;  %p3699_p7 = scmp.ne.s32.totalorder %s4953_s15, 0 }
  0x12   : > { %s235_s23 = scalar_select %p234_p5, %s4953_s15, 7 }
  0x13   : > { %s7393_s22 = smov (!%p236_p6, %s3691_s22), 63  ;;  %263 = sbr.rel (%p3699_p7) target bundleno = 40 (0x28), region = 40 }
  0x14   : > { %s3692_s24 = sshll.u32 %s235_s23, 6  ;;  %s3695_s26 = sshll.u32 %s7393_s22, 3  ;;  %vm264_vm0 = vcmask (!%p3699_p7), 261120   ;;  %v4971_v0 = vmov (!%p3699_p7), 0.0  }
  0x15   : > { %s239_s25 = sadd.s32 %s3692_s24, %s7393_s22  ;;  %s5034_s30 = scalar_lea.vmem %s7111_s3, %s3695_s26  ;;  %265 = vst.msk [vmem:[#allocation2] sm:$0xff] (!%p3699_p7), %vm264_vm0, %v4971_v0  ;;  %266 = vst.msk [vmem:[#allocation2 + $0x8] sm:$0xff] (!%p3699_p7), %vm264_vm0, %v4971_v0 }
  0x16   : > { %s3693_s27 = sshll.u32 %s239_s25, 2  ;;  %267 = vst.msk [vmem:[#allocation2 + $0x10] sm:$0xff] (!%p3699_p7), %vm264_vm0, %v4971_v0  ;;  %268 = vst.msk [vmem:[#allocation2 + $0x18] sm:$0xff] (!%p3699_p7), %vm264_vm0, %v4971_v0 }
  0x17   : > { %s5039_s7 = scalar_lea.vmem %s7108_s0, %s3693_s27  ;;  %s5044_s10 = scalar_lea.vmem %s7112_s4, %s3693_s27  ;;  %269 = vst.msk [vmem:[#allocation2 + $0x20] sm:$0xff] (!%p3699_p7), %vm264_vm0, %v4971_v0  ;;  %270 = vst.msk [vmem:[#allocation2 + $0x28] sm:$0xff] (!%p3699_p7), %vm264_vm0, %v4971_v0 }
  0x18   : > { %271 = vst.msk [vmem:[#allocation2 + $0x30] sm:$0xff] (!%p3699_p7), %vm264_vm0, %v4971_v0  ;;  %272 = vst.msk [vmem:[#allocation2 + $0x38] sm:$0xff] (!%p3699_p7), %vm264_vm0, %v4971_v0 }
  0x19   : > { %273 = vst.msk [vmem:[#allocation2 + $0x40] sm:$0xff] (!%p3699_p7), %vm264_vm0, %v4971_v0  ;;  %274 = vst.msk [vmem:[#allocation2 + $0x48] sm:$0xff] (!%p3699_p7), %vm264_vm0, %v4971_v0 }
  0x1a   : > { %275 = vst.msk [vmem:[#allocation2 + $0x50] sm:$0xff] %vm264_vm0, %v4971_v0  ;;  %276 = vst.msk [vmem:[#allocation2 + $0x58] sm:$0xff] %vm264_vm0, %v4971_v0 }
  0x1b   : > { %277 = vst.msk [vmem:[#allocation2 + $0x60] sm:$0xff] %vm264_vm0, %v4971_v0  ;;  %278 = vst.msk [vmem:[#allocation2 + $0x68] sm:$0xff] %vm264_vm0, %v4971_v0 }
  0x1c   : > { %279 = vst.msk [vmem:[#allocation2 + $0x70] sm:$0xff] %vm264_vm0, %v4971_v0  ;;  %280 = vst.msk [vmem:[#allocation2 + $0x78] sm:$0xff] %vm264_vm0, %v4971_v0 }
  0x1d   : > { %281 = vst.msk [vmem:[#allocation2 + $0x80] sm:$0xff] %vm264_vm0, %v4971_v0  ;;  %282 = vst.msk [vmem:[#allocation2 + $0x88] sm:$0xff] %vm264_vm0, %v4971_v0 }
  0x1e   : > { %283 = vst.msk [vmem:[#allocation2 + $0x90] sm:$0xff] %vm264_vm0, %v4971_v0  ;;  %284 = vst.msk [vmem:[#allocation2 + $0x98] sm:$0xff] %vm264_vm0, %v4971_v0 }
  0x1f   : > { %285 = vst.msk [vmem:[#allocation2 + $0xa0] sm:$0xff] %vm264_vm0, %v4971_v0  ;;  %286 = vst.msk [vmem:[#allocation2 + $0xa8] sm:$0xff] %vm264_vm0, %v4971_v0 }
  0x20   : > { %287 = vst.msk [vmem:[#allocation2 + $0xb0] sm:$0xff] %vm264_vm0, %v4971_v0  ;;  %288 = vst.msk [vmem:[#allocation2 + $0xb8] sm:$0xff] %vm264_vm0, %v4971_v0 }
  0x21   : > { %289 = vst.msk [vmem:[#allocation2 + $0xc0] sm:$0xff] %vm264_vm0, %v4971_v0  ;;  %290 = vst.msk [vmem:[#allocation2 + $0xc8] sm:$0xff] %vm264_vm0, %v4971_v0 }
  0x22   : > { %291 = vst.msk [vmem:[#allocation2 + $0xd0] sm:$0xff] %vm264_vm0, %v4971_v0  ;;  %292 = vst.msk [vmem:[#allocation2 + $0xd8] sm:$0xff] %vm264_vm0, %v4971_v0 }
  0x23   : > { %293 = vst.msk [vmem:[#allocation2 + $0xe0] sm:$0xff] %vm264_vm0, %v4971_v0  ;;  %294 = vst.msk [vmem:[#allocation2 + $0xe8] sm:$0xff] %vm264_vm0, %v4971_v0 }
  0x24   : > { %295 = vst.msk [vmem:[#allocation2 + $0xf0] sm:$0xff] %vm264_vm0, %v4971_v0  ;;  %296 = vst.msk [vmem:[#allocation2 + $0xf8] sm:$0xff] %vm264_vm0, %v4971_v0 }
  0x25   : > { %297 = vst.msk [vmem:[#allocation2 + $0x100] sm:$0xff] %vm264_vm0, %v4971_v0  ;;  %298 = vst.msk [vmem:[#allocation2 + $0x108] sm:$0xff] %vm264_vm0, %v4971_v0 }
  0x26   : > { %299 = vst.msk [vmem:[#allocation2 + $0x110] sm:$0xff] %vm264_vm0, %v4971_v0  ;;  %300 = vst.msk [vmem:[#allocation2 + $0x118] sm:$0xff] %vm264_vm0, %v4971_v0 }
  0x27   : > { %301 = vst.msk [vmem:[#allocation2 + $0x120] sm:$0xff] %vm264_vm0, %v4971_v0  ;;  %302 = vst.msk [vmem:[#allocation2 + $0x128] sm:$0xff] %vm264_vm0, %v4971_v0 }
  0x28 PF: > { %s4972_s11 = smov 32   ;;  %v346_v14 = vld [vmem:[#allocation2 + $0x60] sm:$0xff]  ;;  %v349_v19 = vld [vmem:[#allocation2 + $0x78] sm:$0xff]  ;;  %v347_v21 = vld [vmem:[#allocation2 + $0x68] sm:$0xff]  ;;  %s4973_s12 = smov 64   ;;  %vm1091_vm1 = vcmask 261120  }
  0x29   : > { %v350_v20 = vld [vmem:[#allocation2 + $0x80] sm:$0xff]  ;;  %v348_v22 = vld [vmem:[#allocation2 + $0x70] sm:$0xff]  ;;  %v353_v25 = vld [vmem:[#allocation2 + $0x98] sm:$0xff]  ;;  %s4974_s13 = smov 96   ;;  %vm1124_vm2 = vcmask 523264   ;;  %vm1157_vm3 = vcmask 785408  }
  0x2a   : > { %v335_v3 = vld [vmem:[#allocation2 + $0x8] sm:$0xff]  ;;  %v5100_v23 = vpack.i.bf16 %v350_v20, %v349_v19  ;;  %v5104_v24 = vpack.i.bf16 %v348_v22, %v347_v21  ;;  %v354_v26 = vld [vmem:[#allocation2 + $0xa0] sm:$0xff]  ;;  %v352_v28 = vld [vmem:[#allocation2 + $0x90] sm:$0xff]  ;;  %vm3551_vm4 = vcmask 257024  }
  0x2b   : > { %v336_v5 = vld [vmem:[#allocation2 + $0x10] sm:$0xff]  ;;  %v337_v9 = vld [vmem:[#allocation2 + $0x18] sm:$0xff]  ;;  %v351_v27 = vld [vmem:[#allocation2 + $0x88] sm:$0xff]  ;;  %v5108_v29 = vpack.i.bf16 %v354_v26, %v353_v25 }
  0x2c   : > { %v339_v1 = vld [vmem:[#allocation2 + $0x28] sm:$0xff]  ;;  %v4139_v8 = vpack.i.bf16 %v336_v5, %v335_v3  ;;  %v338_v10 = vld [vmem:[#allocation2 + $0x20] sm:$0xff]  ;;  %v5112_v30 = vpack.i.bf16 %v352_v28, %v351_v27  ;;  %v357_v31 = vld [vmem:[#allocation2 + $0xb8] sm:$0xff] }
  0x2d   : > { %v340_v2 = vld [vmem:[#allocation2 + $0x30] sm:$0xff]  ;;  %v341_v6 = vld [vmem:[#allocation2 + $0x38] sm:$0xff]  ;;  %v4144_v12 = vpack.i.bf16 %v338_v10, %v337_v9  ;;  %v358_v32 = vld [vmem:[#allocation2 + $0xc0] sm:$0xff] }
  0x2e   : > { %v5084_v4 = vpack.i.bf16 %v340_v2, %v339_v1  ;;  %v342_v7 = vld [vmem:[#allocation2 + $0x40] sm:$0xff]  ;;  %4140 = vrot.lane.b32.xlu0 %v4139_v8, %s4972_s11  ;;  %v343_v15 = vld [vmem:[#allocation2 + $0x48] sm:$0xff]  ;;  %v356_v34 = vld [vmem:[#allocation2 + $0xb0] sm:$0xff]  ;;  %v5116_v35 = vpack.i.bf16 %v358_v32, %v357_v31 }
  0x2f   : > { %v5088_v11 = vpack.i.bf16 %v342_v7, %v341_v6  ;;  %v345_v13 = vld [vmem:[#allocation2 + $0x58] sm:$0xff]  ;;  %v344_v16 = vld [vmem:[#allocation2 + $0x50] sm:$0xff]  ;;  %v355_v33 = vld [vmem:[#allocation2 + $0xa8] sm:$0xff] }
  0x30   : > { %4150 = vrot.lane.b32.xlu1 %v5084_v4, %s4972_s11  ;;  %v5093_v17 = vpack.i.bf16 %v346_v14, %v345_v13  ;;  %v5096_v18 = vpack.i.bf16 %v344_v16, %v343_v15  ;;  %v5120_v36 = vpack.i.bf16 %v356_v34, %v355_v33  ;;  %v361_v37 = vld [vmem:[#allocation2 + $0xd8] sm:$0xff]  ;;  %v362_v38 = vld [vmem:[#allocation2 + $0xe0] sm:$0xff]  ;;  %v359_v39 = vld [vmem:[#allocation2 + $0xc8] sm:$0xff] }
  0x31   : > { %v360_v40 = vld [vmem:[#allocation2 + $0xd0] sm:$0xff]  ;;  %v5124_v41 = vpack.i.bf16 %v362_v38, %v361_v37  ;;  %v365_v43 = vld [vmem:[#allocation2 + $0xf8] sm:$0xff]  ;;  %v366_v44 = vld [vmem:[#allocation2 + $0x100] sm:$0xff] }
  0x32   : > { %4145 = vrot.lane.b32.xlu0 %v4144_v12, %s4972_s11  ;;  %v5128_v42 = vpack.i.bf16 %v360_v40, %v359_v39  ;;  %v363_v45 = vld [vmem:[#allocation2 + $0xe8] sm:$0xff]  ;;  %v364_v46 = vld [vmem:[#allocation2 + $0xf0] sm:$0xff]  ;;  %v5132_v47 = vpack.i.bf16 %v366_v44, %v365_v43  ;;  %v369_v49 = vld [vmem:[#allocation2 + $0x19] sm:$0xff] }
  0x33   : > { %v5136_v48 = vpack.i.bf16 %v364_v46, %v363_v45  ;;  %v370_v50 = vld [vmem:[#allocation2 + $0x21] sm:$0xff]  ;;  %v367_v51 = vld [vmem:[#allocation2 + $0x9] sm:$0xff]  ;;  %v368_v52 = vld [vmem:[#allocation2 + $0x11] sm:$0xff] }
  0x34   : > { %4155 = vrot.lane.b32.xlu1 %v5088_v11, %s4972_s11  ;;  %v5140_v53 = vpack.i.bf16 %v370_v50, %v369_v49  ;;  %v4219_v54 = vpack.i.bf16 %v368_v52, %v367_v51  ;;  %v5144_v55 = vld [vmem:[#allocation2 + $0x39] sm:$0xff]  ;;  %v5146_v56 = vld [vmem:[#allocation2 + $0x41] sm:$0xff]  ;;  %v5148_v57 = vld [vmem:[#allocation2 + $0x29] sm:$0xff] }
  0x35   : > { %7181 = vst [vmem:[#allocation3_spill] sm:$0xff] %v5144_v55  ;;  %7182 = vst [vmem:[#allocation4_spill] sm:$0xff] %v5146_v56  ;;  %v5150_v58 = vld [vmem:[#allocation2 + $0x31] sm:$0xff]  ;;  %v377_v59 = vld [vmem:[#allocation2 + $0x59] sm:$0xff]  ;;  %v5156_v61 = vpack.i.bf16 %v5146_v56, %v5144_v55 }
  0x36   : > { %4160 = vrot.lane.b32.xlu0 %v5096_v18, %s4972_s11  ;;  %7183 = vst [vmem:[#allocation5_spill] sm:$0xff] %v5148_v57  ;;  %7184 = vst [vmem:[#allocation6_spill] sm:$0xff] %v5150_v58  ;;  %v378_v60 = vld [vmem:[#allocation2 + $0x61] sm:$0xff]  ;;  %v375_v62 = vld [vmem:[#allocation2 + $0x49] sm:$0xff]  ;;  %v5161_v0 = vpack.i.bf16 %v5150_v58, %v5148_v57 }
  0x37   : > { %v376_v63 = vld [vmem:[#allocation2 + $0x51] sm:$0xff]  ;;  %v381_v1 = vld [vmem:[#allocation2 + $0x79] sm:$0xff]  ;;  %v382_v2 = vld [vmem:[#allocation2 + $0x81] sm:$0xff]  ;;  %v5165_v3 = vpack.i.bf16 %v378_v60, %v377_v59 }
  0x38   : > { %4165 = vrot.lane.b32.xlu1 %v5093_v17, %s4972_s11  ;;  %v379_v5 = vld [vmem:[#allocation2 + $0x69] sm:$0xff]  ;;  %v380_v6 = vld [vmem:[#allocation2 + $0x71] sm:$0xff]  ;;  %v5169_v7 = vpack.i.bf16 %v376_v63, %v375_v62  ;;  %v385_v8 = vld [vmem:[#allocation2 + $0x99] sm:$0xff]  ;;  %v5173_v10 = vpack.i.bf16 %v382_v2, %v381_v1 }
  0x39   : > { %v386_v9 = vld [vmem:[#allocation2 + $0xa1] sm:$0xff]  ;;  %v383_v12 = vld [vmem:[#allocation2 + $0x89] sm:$0xff]  ;;  %v384_v13 = vld [vmem:[#allocation2 + $0x91] sm:$0xff]  ;;  %v5177_v14 = vpack.i.bf16 %v380_v6, %v379_v5 }
  0x3a   : > { %4170 = vrot.lane.b32.xlu0 %v5104_v24, %s4972_s11  ;;  %v5181_v15 = vpack.i.bf16 %v386_v9, %v385_v8  ;;  %v5185_v16 = vpack.i.bf16 %v384_v13, %v383_v12  ;;  %v389_v19 = vld [vmem:[#allocation2 + $0xb9] sm:$0xff]  ;;  %v390_v20 = vld [vmem:[#allocation2 + $0xc1] sm:$0xff]  ;;  %v387_v21 = vld [vmem:[#allocation2 + $0xa9] sm:$0xff] }
  0x3b   : > { %v388_v22 = vld [vmem:[#allocation2 + $0xb1] sm:$0xff]  ;;  %v5189_v25 = vpack.i.bf16 %v390_v20, %v389_v19  ;;  %v393_v27 = vld [vmem:[#allocation2 + $0xd9] sm:$0xff]  ;;  %v394_v28 = vld [vmem:[#allocation2 + $0xe1] sm:$0xff] }
  0x3c   : > { %4175 = vrot.lane.b32.xlu1 %v5100_v23, %s4972_s11  ;;  %v5193_v26 = vpack.i.bf16 %v388_v22, %v387_v21  ;;  %v391_v31 = vld [vmem:[#allocation2 + $0xc9] sm:$0xff]  ;;  %v392_v32 = vld [vmem:[#allocation2 + $0xd1] sm:$0xff]  ;;  %v5197_v33 = vpack.i.bf16 %v394_v28, %v393_v27  ;;  %v397_v37 = vld [vmem:[#allocation2 + $0xf9] sm:$0xff] }
  0x3d   : > { %v5201_v34 = vpack.i.bf16 %v392_v32, %v391_v31  ;;  %v398_v38 = vld [vmem:[#allocation2 + $0x101] sm:$0xff]  ;;  %v395_v39 = vld [vmem:[#allocation2 + $0xe9] sm:$0xff]  ;;  %v396_v40 = vld [vmem:[#allocation2 + $0xf1] sm:$0xff] }
  0x3e   : > { %4180 = vrot.lane.b32.xlu0 %v5112_v30, %s4972_s11  ;;  %v5205_v43 = vpack.i.bf16 %v398_v38, %v397_v37  ;;  %v5209_v44 = vpack.i.bf16 %v396_v40, %v395_v39  ;;  %v5211_v45 = vld [vmem:[#allocation2 + $0x27] sm:$0xff]  ;;  %v5213_v46 = vld [vmem:[#allocation2 + $0x2f] sm:$0xff]  ;;  %v5215_v49 = vld [vmem:[#allocation2 + $0x17] sm:$0xff] }
  0x3f   : > { %v5217_v50 = vld [vmem:[#allocation2 + $0x1f] sm:$0xff]  ;;  %v5223_v51 = vpack.i.bf16 %v5213_v46, %v5211_v45  ;;  %v5231_v59 = vld [vmem:[#allocation2 + $0x4f] sm:$0xff]  ;;  %v5233_v60 = vld [vmem:[#allocation2 + $0x37] sm:$0xff] }
  0x40   : > { %4185 = vrot.lane.b32.xlu1 %v5108_v29, %s4972_s11  ;;  %v4299_v52 = vpack.i.bf16 %v5217_v50, %v5215_v49  ;;  %v5235_v62 = vld [vmem:[#allocation2 + $0x3f] sm:$0xff]  ;;  %v315_v2 = vld [vmem:[#allocation2 + $0x67] sm:$0xff]  ;;  %v316_v5 = vld [vmem:[#allocation2 + $0x6f] sm:$0xff] }
  0x41   : > { %v5246_v1 = vpack.i.bf16 %v5235_v62, %v5233_v60  ;;  %v5248_v6 = vld [vmem:[#allocation2 + $0x57] sm:$0xff]  ;;  %v5250_v8 = vld [vmem:[#allocation2 + $0x5f] sm:$0xff]  ;;  %v5254_v9 = vpack.i.bf16 %v316_v5, %v315_v2  ;;  %v319_v19 = vld [vmem:[#allocation2 + $0x87] sm:$0xff] }
  0x42   : > { %4190 = vrot.lane.b32.xlu0 %v5120_v36, %s4972_s11  ;;  %v4621_v12 = vld [vmem:[%s7109_s1 + $0x40] sm:$0xff]   ;;  %v5263_v13 = vpack.i.bf16 %v5250_v8, %v5248_v6  ;;  %v320_v20 = vld [vmem:[#allocation2 + $0x8f] sm:$0xff]  ;;  %v317_v21 = vld [vmem:[#allocation2 + $0x77] sm:$0xff] }
  0x43   : > { %v318_v22 = vld [vmem:[#allocation2 + $0x7f] sm:$0xff]  ;;  %3912 = vmatprep.subr.bf16.mxu0 %v4621_v12  ;;  %4078 = vmatprep.subr.bf16.mxu1 %v4621_v12  ;;  %v5270_v28 = vpack.i.bf16 %v320_v20, %v319_v19  ;;  %v4623_v31 = vld [vmem:[%s7109_s1 + $0x48] sm:$0xff]   ;;  %v321_v39 = vld [vmem:[#allocation2 + $0x97] sm:$0xff] }
  0x44   : > { %4195 = vrot.lane.b32.xlu1 %v5116_v35, %s4972_s11  ;;  %v4622_v27 = vld [vmem:[%s7109_s1] sm:$0xff]   ;;  %v5277_v32 = vpack.i.bf16 %v318_v22, %v317_v21  ;;  %v324_v38 = vld [vmem:[#allocation2 + $0xaf] sm:$0xff]  ;;  %v325_v21 = vld [vmem:[#allocation2 + $0xb7] sm:$0xff] }
  0x45   : > { %3913 = vmatpush3.bf16.msra.mxu0 %v4622_v27  ;;  %v323_v37 = vld [vmem:[#allocation2 + $0xa7] sm:$0xff]  ;;  %4086 = vmatpush3.bf16.msra.mxu1 %v4622_v27  ;;  %v322_v40 = vld [vmem:[#allocation2 + $0x9f] sm:$0xff]  ;;  %v4625_v5 = vld [vmem:[%s7109_s1 + $0x50] sm:$0xff]  }
  0x46   : > { %4200 = vrot.lane.b32.xlu0 %v5128_v42, %s4972_s11  ;;  %3914 = vmatprep.subr.bf16.mxu0 %v4623_v31  ;;  %v5284_v2 = vpack.i.bf16 %v324_v38, %v323_v37  ;;  %v5291_v12 = vpack.i.bf16 %v322_v40, %v321_v39  ;;  %v5293_v19 = vld [vmem:[#allocation2 + $0xc7] sm:$0xff]  ;;  %v5295_v20 = vld [vmem:[#allocation2 + $0xcf] sm:$0xff]  ;;  %v326_v22 = vld [vmem:[#allocation2 + $0xbf] sm:$0xff] }
  0x47   : > { %4079 = vmatprep.subr.bf16.mxu1 %v4623_v31  ;;  %7185 = vst [vmem:[#allocation7_spill] sm:$0xff] %v5293_v19  ;;  %7186 = vst [vmem:[#allocation8_spill] sm:$0xff] %v5295_v20  ;;  %v4626_v27 = vld [vmem:[%s7109_s1 + $0x10] sm:$0xff]   ;;  %v5304_v31 = vpack.i.bf16 %v5295_v20, %v5293_v19  ;;  %v4627_v37 = vld [vmem:[%s7109_s1 + $0x58] sm:$0xff]   ;;  %v5311_v38 = vpack.i.bf16 %v326_v22, %v325_v21 }
  0x48   : > { %4205 = vrot.lane.b32.xlu1 %v5124_v41, %s4972_s11  ;;  %v5313_v39 = vld [vmem:[#allocation2 + $0xe7] sm:$0xff]  ;;  %v5315_v40 = vld [vmem:[#allocation2 + $0xef] sm:$0xff]  ;;  %v4628_v58 = vld [vmem:[%s7109_s1 + $0x18] sm:$0xff]  }
  0x49   : > { %7187 = vst [vmem:[#allocation9_spill] sm:$0xff] %v5313_v39  ;;  %7188 = vst [vmem:[#allocation10_spill] sm:$0xff] %v5315_v40  ;;  %v4364_v21 = vpack.i.bf16 %v5315_v40, %v5313_v39  ;;  %v400_v57 = vld [vmem:[#allocation2 + $0x10f] sm:$0xff]  ;;  %v5337_v20 = vld [vmem:[#allocation2 + $0xf7] sm:$0xff] }
  0x4a   : > { %4210 = vrot.lane.b32.xlu0 %v5136_v48, %s4972_s11  ;;  %v5339_v19 = vld [vmem:[#allocation2 + $0xff] sm:$0xff]  ;;  %v2980_v56 = vld [vmem:[%s5034_s30 + $0x28] sm:$0xff] }
  0x4b   : > { %v4630_v40 = vld [vmem:[%s7109_s1 + $0x20] sm:$0xff]  }
  0x4c   : > { %4215 = vrot.lane.b32.xlu1 %v5132_v47, %s4972_s11  ;;  %v2979_v55 = vld [vmem:[%s5034_s30 + $0x20] sm:$0xff] }
  0x4e   : > { %4220 = vrot.lane.b32.xlu0 %v4219_v54, %s4973_s12  ;;  %v5229_v54 = vld [vmem:[#allocation2 + $0x47] sm:$0xff] }
  0x4f   : > { %v5241_v63 = vpack.i.bf16 %v5231_v59, %v5229_v54 }
  0x50   : > { %4225 = vrot.lane.b32.xlu1 %v5140_v53, %s4973_s12 }
  0x52   : > { %4230 = vrot.lane.b32.xlu0 %v5161_v0, %s4973_s12 }
  0x54   : > { %4235 = vrot.lane.b32.xlu1 %v5156_v61, %s4973_s12 }
  0x56   : > { %4240 = vrot.lane.b32.xlu0 %v5169_v7, %s4973_s12 }
  0x58   : > { %4245 = vrot.lane.b32.xlu1 %v5165_v3, %s4973_s12 }
  0x5a   : > { %4250 = vrot.lane.b32.xlu0 %v5177_v14, %s4973_s12 }
  0x5c   : > { %4255 = vrot.lane.b32.xlu1 %v5173_v10, %s4973_s12 }
  0x5e   : > { %4260 = vrot.lane.b32.xlu0 %v5185_v16, %s4973_s12 }
  0x60   : > { %4265 = vrot.lane.b32.xlu1 %v5181_v15, %s4973_s12 }
  0x62   : > { %4270 = vrot.lane.b32.xlu0 %v5193_v26, %s4973_s12 }
  0x64   : > { %4275 = vrot.lane.b32.xlu1 %v5189_v25, %s4973_s12 }
  0x66   : > { %4280 = vrot.lane.b32.xlu0 %v5201_v34, %s4973_s12 }
  0x68   : > { %4285 = vrot.lane.b32.xlu1 %v5197_v33, %s4973_s12 }
  0x6a   : > { %4290 = vrot.lane.b32.xlu0 %v5209_v44, %s4973_s12 }
  0x6c   : > { %4295 = vrot.lane.b32.xlu1 %v5205_v43, %s4973_s12 }
  0x6e   : > { %4300 = vrot.lane.b32.xlu0 %v4299_v52, %s4974_s13  ;;  %v4624_v52 = vld [vmem:[%s7109_s1 + $0x8] sm:$0xff]  }
  0x6f   : > { %3915 = vmatpush3.bf16.msra.mxu0 %v4624_v52  ;;  %4087 = vmatpush3.bf16.msra.mxu1 %v4624_v52  ;;  %v5317_v52 = vld [vmem:[#allocation2 + $0xd7] sm:$0xff] }
  0x70   : > { %4305 = vrot.lane.b32.xlu1 %v5223_v51, %s4974_s13  ;;  %3916 = vmatprep.subr.bf16.mxu0 %v4625_v5  ;;  %7189 = vst [vmem:[#allocation11_spill] sm:$0xff] %v5317_v52 }
  0x71   : > { %4080 = vmatprep.subr.bf16.mxu1 %v4625_v5  ;;  %v5319_v5 = vld [vmem:[#allocation2 + $0xdf] sm:$0xff] }
  0x72   : > { %4310 = vrot.lane.b32.xlu0 %v5246_v1, %s4974_s13  ;;  %7190 = vst [vmem:[#allocation12_spill] sm:$0xff] %v5319_v5  ;;  %v5332_v22 = vpack.i.bf16 %v5319_v5, %v5317_v52  ;;  %v4631_v5 = vld [vmem:[%s7109_s1 + $0x68] sm:$0xff]  }
  0x73   : > { %3917 = vmatpush3.bf16.msra.mxu0 %v4626_v27  ;;  %4088 = vmatpush3.bf16.msra.mxu1 %v4626_v27  ;;  %v399_v27 = vld [vmem:[#allocation2 + $0x107] sm:$0xff] }
  0x74   : > { %4315 = vrot.lane.b32.xlu1 %v5241_v63, %s4974_s13  ;;  %3918 = vmatprep.subr.bf16.mxu0 %v4627_v37  ;;  %v4374_v39 = vpack.i.bf16 %v400_v57, %v399_v27  ;;  %v4632_v52 = vld [vmem:[%s7109_s1 + $0x28] sm:$0xff]   ;;  %v4633_v57 = vld [vmem:[%s7109_s1 + $0x70] sm:$0xff]  }
  0x75   : > { %4081 = vmatprep.subr.bf16.mxu1 %v4627_v37  ;;  %v4629_v37 = vld [vmem:[%s7109_s1 + $0x60] sm:$0xff]  }
  0x76   : > { %4320 = vrot.lane.b32.xlu0 %v5263_v13, %s4974_s13 }
  0x77   : > { %3919 = vmatpush3.bf16.msra.mxu0 %v4628_v58  ;;  %4089 = vmatpush3.bf16.msra.mxu1 %v4628_v58  ;;  %v4369_v58 = vpack.i.bf16 %v5339_v19, %v5337_v20 }
  0x78   : > { %4325 = vrot.lane.b32.xlu1 %v5254_v9, %s4974_s13  ;;  %3920 = vmatprep.subr.bf16.mxu0 %v4629_v37 }
  0x79   : > { %4082 = vmatprep.subr.bf16.mxu1 %v4629_v37 }
  0x7a   : > { %4330 = vrot.lane.b32.xlu0 %v5277_v32, %s4974_s13 }
  0x7b   : > { %3921 = vmatpush3.bf16.msra.mxu0 %v4630_v40  ;;  %4090 = vmatpush3.bf16.msra.mxu1 %v4630_v40  ;;  %v4634_v40 = vld [vmem:[%s7109_s1 + $0x30] sm:$0xff]  }
  0x7c   : > { %4335 = vrot.lane.b32.xlu1 %v5270_v28, %s4974_s13  ;;  %3922 = vmatprep.subr.bf16.mxu0 %v4631_v5 }
  0x7d   : > { %4083 = vmatprep.subr.bf16.mxu1 %v4631_v5  ;;  %v4635_v5 = vld [vmem:[%s7109_s1 + $0x78] sm:$0xff]  }
  0x7e   : > { %4340 = vrot.lane.b32.xlu0 %v5291_v12, %s4974_s13 }
  0x7f   : > { %3923 = vmatpush3.bf16.msra.mxu0 %v4632_v52  ;;  %4091 = vmatpush3.bf16.msra.mxu1 %v4632_v52  ;;  %v4636_v52 = vld [vmem:[%s7109_s1 + $0x38] sm:$0xff]  }
  0x80   : > { %4345 = vrot.lane.b32.xlu1 %v5284_v2, %s4974_s13  ;;  %3924 = vmatprep.subr.bf16.mxu0 %v4633_v57 }
  0x81   : > { %4084 = vmatprep.subr.bf16.mxu1 %v4633_v57 }
  0x82   : > { %4350 = vrot.lane.b32.xlu0 %v5311_v38, %s4974_s13 }
  0x83   : > { %3925 = vmatpush3.bf16.msra.mxu0 %v4634_v40  ;;  %4092 = vmatpush3.bf16.msra.mxu1 %v4634_v40  ;;  %v406_v40 = vld [vmem:[#allocation2 + $0x11f] sm:$0xff] }
  0x84   : > { %4355 = vrot.lane.b32.xlu1 %v5304_v31, %s4974_s13  ;;  %3926 = vmatprep.subr.bf16.mxu0 %v4635_v5 }
  0x85   : > { %4085 = vmatprep.subr.bf16.mxu1 %v4635_v5 }
  0x86   : > { %4360 = vrot.lane.b32.xlu0 %v5332_v22, %s4974_s13 }
  0x87   : > { %3927 = vmatpush3.bf16.msra.mxu0 %v4636_v52  ;;  %4093 = vmatpush3.bf16.msra.mxu1 %v4636_v52 }
  0x88   : > { %4365 = vrot.lane.b32.xlu1 %v4364_v21, %s4974_s13 }
  0x8a   : > { %4370 = vrot.lane.b32.xlu0 %v4369_v58, %s4974_s13 }
  0x8c   : > { %4375 = vrot.lane.b32.xlu1 %v4374_v39, %s4974_s13 }
  0x8e   : > { %4380 = vrot.lane.b32.xlu0 %v5140_v53, %s4972_s11 }
  0x90   : > { %4385 = vrot.lane.b32.xlu1 %v5161_v0, %s4972_s11 }
  0x92   : > { %4390 = vrot.lane.b32.xlu0 %v5156_v61, %s4972_s11  ;;  %v5393_v61 = vld [vmem:[%s7109_s1 + $0x80] sm:$0xff]  }
  0x93   : > { %4042 = vmatprep.subr.bf16.mxu1 %v5393_v61 }
  0x94   : > { %4395 = vrot.lane.b32.xlu1 %v5169_v7, %s4972_s11 }
  0x96   : > { %4400 = vrot.lane.b32.xlu0 %v5165_v3, %s4972_s11 }
  0x98   : > { %4405 = vrot.lane.b32.xlu1 %v5177_v14, %s4972_s11 }
  0x9a   : > { %4410 = vrot.lane.b32.xlu0 %v5223_v51, %s4973_s12  ;;  %v5429_v51 = vld [vmem:[#allocation2 + $0x110] sm:$0xff] }
  0x9c   : > { %4415 = vrot.lane.b32.xlu1 %v5084_v4, %s4974_s13 }
  0x9e   : > { %4420 = vrot.lane.b32.xlu0 %v5197_v33, %s4972_s11 }
  0xa0   : > { %4425 = vrot.lane.b32.xlu1 %v4364_v21, %s4973_s12  ;;  %v5395_v0 = vpop.permute.xlu0 %4140  ;;  %v404_v21 = vld [vmem:[#allocation2 + $0x111] sm:$0xff] }
  0xa2   : > { %v5388_v53 = vpop.permute.xlu1 %4150  ;;  %4430 = vrot.lane.b32.xlu0 %v5136_v48, %s4974_s13 }
  0xa4   : > { %4435 = vrot.lane.b32.xlu1 %v5246_v1, %s4973_s12  ;;  %v5404_v3 = vpop.permute.xlu0 %4145 }
  0xa6   : > { %v5402_v4 = vpop.permute.xlu1 %4155  ;;  %4440 = vrot.lane.b32.xlu0 %v5088_v11, %s4974_s13 }
  0xa8   : > { %4445 = vrot.lane.b32.xlu1 %v5209_v44, %s4972_s11  ;;  %v5412_v14 = vpop.permute.xlu0 %4160  ;;  %v5427_v44 = vld [vmem:[#allocation2 + $0x108] sm:$0xff] }
  0xaa   : > { %v5410_v7 = vpop.permute.xlu1 %4165  ;;  %4450 = vrot.lane.b32.xlu0 %v4369_v58, %s4973_s12  ;;  %v407_v58 = vld [vmem:[#allocation2 + $0x118] sm:$0xff] }
  0xac   : > { %4455 = vrot.lane.b32.xlu1 %v5132_v47, %s4974_s13  ;;  %v5419_v33 = vpop.permute.xlu0 %4170  ;;  %v4479_v47 = vpack.i.bf16 %v5429_v51, %v5427_v44 }
  0xae   : > { %v5417_v48 = vpop.permute.xlu1 %4175  ;;  %4460 = vrot.lane.b32.xlu0 %v5241_v63, %s4973_s12 }
  0xaf   : > { %7191 = vst [vmem:[#allocation13_spill] sm:$0xff] %v5417_v48  ;;  %v7217_v48 = vld [vmem:[#allocation9_spill] sm:$0xff] }
  0xb0   : > { %4465 = vrot.lane.b32.xlu1 %v5096_v18, %s4974_s13  ;;  %v5431_v1 = vpop.permute.xlu0 %4180  ;;  %v403_v18 = vld [vmem:[#allocation2 + $0x109] sm:$0xff] }
  0xb1   : > { %7193 = vst [vmem:[#allocation15_spill] sm:$0xff] %v5431_v1  ;;  %v4494_v37 = vpack.i.bf16 %v404_v21, %v403_v18  ;;  %v4147_v1 = vunpack.i.l.bf16 %v5404_v3 }
  0xb2   : > { %v5425_v11 = vpop.permute.xlu1 %4185  ;;  %4470 = vrot.lane.b32.xlu0 %v5205_v43, %s4972_s11  ;;  %v405_v43 = vld [vmem:[#allocation2 + $0x117] sm:$0xff] }
  0xb3   : > { %7192 = vst [vmem:[#allocation14_spill] sm:$0xff] %v5425_v11  ;;  %v4142_v11 = vunpack.i.l.bf16 %v5395_v0 }
  0xb4   : > { %4475 = vrot.lane.b32.xlu1 %v4374_v39, %s4973_s12  ;;  %v5440_v63 = vpop.permute.xlu0 %4190  ;;  %v408_v39 = vld [vmem:[#allocation2 + $0x120] sm:$0xff] }
  0xb5   : > { %7195 = vst [vmem:[#allocation17_spill] sm:$0xff] %v5440_v63  ;;  %v4504_v52 = vpack.i.bf16 %v408_v39, %v407_v58 }
  0xb6   : > { %v5438_v27 = vpop.permute.xlu1 %4195  ;;  %4480 = vrot.lane.b32.xlu0 %v4479_v47, %s4974_s13 }
  0xb7   : > { %7194 = vst [vmem:[#allocation16_spill] sm:$0xff] %v5438_v27  ;;  %v4499_v27 = vpack.i.bf16 %v406_v40, %v405_v43  ;;  %v2976_v40 = vld [vmem:[%s5034_s30 + $0x8] sm:$0xff] }
  0xb8   : > { %4485 = vrot.lane.b32.xlu1 %v5263_v13, %s4973_s12  ;;  %v5447_v5 = vpop.permute.xlu0 %4200 }
  0xba   : > { %v5445_v57 = vpop.permute.xlu1 %4205  ;;  %4490 = vrot.lane.b32.xlu0 %v5093_v17, %s4974_s13 }
  0xbc   : > { %4495 = vrot.lane.b32.xlu1 %v4494_v37, %s4972_s11  ;;  %v5454_v13 = vpop.permute.xlu0 %4210 }
  0xbe   : > { %v5452_v63 = vpop.permute.xlu1 %4215  ;;  %4500 = vrot.lane.b32.xlu0 %v4499_v27, %s4973_s12 }
  0xc0   : > { %4505 = vrot.lane.b32.xlu1 %v4504_v52, %s4974_s13  ;;  %v5460_v18 = vpop.permute.xlu0 %4220  ;;  %v4975_v52 = vmov 0  }
  0xc1   : > { %4620 = vset.pattern.permute.xlu1 %v4975_v52  ;;  %4619 = vset.pattern.permute.xlu0 %v4975_v52 }
  0xc2   : > { %v5458_v47 = vpop.permute.xlu1 %4225  ;;  %4510 = vrot.lane.b32.xlu0 %v5254_v9, %s4973_s12 }
  0xc4   : > { %4515 = vrot.lane.b32.xlu1 %v5104_v24, %s4974_s13  ;;  %v5468_v21 = vpop.permute.xlu0 %4230 }
  0xc6   : > { %v5466_v17 = vpop.permute.xlu1 %4235  ;;  %4520 = vrot.lane.b32.xlu0 %v5277_v32, %s4973_s12 }
  0xc8   : > { %4525 = vrot.lane.b32.xlu1 %v5100_v23, %s4974_s13  ;;  %v5476_v37 = vpop.permute.xlu0 %4240 }
  0xca   : > { %v5474_v27 = vpop.permute.xlu1 %4245  ;;  %4530 = vrot.lane.b32.xlu0 %v5173_v10, %s4972_s11 }
  0xcc   : > { %4535 = vrot.lane.b32.xlu1 %v5270_v28, %s4973_s12  ;;  %v5484_v9 = vpop.permute.xlu0 %4250 }
  0xcd   : > { %7197 = vst [vmem:[#allocation19_spill] sm:$0xff] %v5484_v9  ;;  %v4162_v9 = vunpack.i.l.bf16 %v5412_v14 }
  0xce   : > { %v5482_v24 = vpop.permute.xlu1 %4255  ;;  %4540 = vrot.lane.b32.xlu0 %v5112_v30, %s4974_s13 }
  0xcf   : > { %7196 = vst [vmem:[#allocation18_spill] sm:$0xff] %v5482_v24  ;;  %v4168_v24 = vunpack.i.h.bf16 %v5410_v7 }
  0xd0   : > { %4545 = vrot.lane.b32.xlu1 %v5185_v16, %s4972_s11  ;;  %v5492_v32 = vpop.permute.xlu0 %4260 }
  0xd1   : > { %7199 = vst [vmem:[#allocation21_spill] sm:$0xff] %v5492_v32  ;;  %v4157_v32 = vunpack.i.l.bf16 %v5402_v4 }
  0xd2   : > { %v5490_v23 = vpop.permute.xlu1 %4265  ;;  %4550 = vrot.lane.b32.xlu0 %v5291_v12, %s4973_s12 }
  0xd3   : > { %7198 = vst [vmem:[#allocation20_spill] sm:$0xff] %v5490_v23  ;;  %v2978_v23 = vld [vmem:[%s5034_s30 + $0x18] sm:$0xff] }
  0xd4   : > { %4555 = vrot.lane.b32.xlu1 %v5108_v29, %s4974_s13  ;;  %v5500_v28 = vpop.permute.xlu0 %4270 }
  0xd5   : > { %7201 = vst [vmem:[#allocation23_spill] sm:$0xff] %v5500_v28  ;;  %v4152_v28 = vunpack.i.l.bf16 %v5388_v53 }
  0xd6   : > { %v5498_v10 = vpop.permute.xlu1 %4275  ;;  %4560 = vrot.lane.b32.xlu0 %v5181_v15, %s4972_s11 }
  0xd7   : > { %7200 = vst [vmem:[#allocation22_spill] sm:$0xff] %v5498_v10  ;;  %v4153_v10 = vunpack.i.h.bf16 %v5388_v53  ;;  %v4158_v53 = vunpack.i.h.bf16 %v5402_v4  ;;  %v5584_v52 = vsel %vm1091_vm1, %v5211_v45, %v4152_v28  ;;  %v4163_v4 = vunpack.i.h.bf16 %v5412_v14 }
  0xd8   : > { %4565 = vrot.lane.b32.xlu1 %v5284_v2, %s4973_s12  ;;  %v5508_v16 = vpop.permute.xlu0 %4280  ;;  %v4207_v45 = vunpack.i.l.bf16 %v5445_v57 }
  0xd9   : > { %v1099_v14 = vsel %vm1091_vm1, %v5235_v62, %v4158_v53  ;;  %v1101_v62 = vsel %vm1091_vm1, %v5231_v59, %v4163_v4  ;;  %v4212_v59 = vunpack.i.l.bf16 %v5454_v13  ;;  %v4227_v53 = vunpack.i.l.bf16 %v5458_v47  ;;  %v7214_v4 = vld [vmem:[#allocation8_spill] sm:$0xff] }
  0xda   : > { %v5506_v30 = vpop.permute.xlu1 %4285  ;;  %4570 = vrot.lane.b32.xlu0 %v5120_v36, %s4974_s13 }
  0xdc   : > { %4575 = vrot.lane.b32.xlu1 %v5193_v26, %s4972_s11  ;;  %v5516_v12 = vpop.permute.xlu0 %4290 }
  0xde   : > { %v5514_v29 = vpop.permute.xlu1 %4295  ;;  %4580 = vrot.lane.b32.xlu0 %v5311_v38, %s4973_s12 }
  0xe0   : > { %4585 = vrot.lane.b32.xlu1 %v5116_v35, %s4974_s13  ;;  %v5524_v2 = vpop.permute.xlu0 %4300 }
  0xe2   : > { %v5522_v15 = vpop.permute.xlu1 %4305  ;;  %4590 = vrot.lane.b32.xlu0 %v5189_v25, %s4972_s11 }
  0xe4   : > { %4595 = vrot.lane.b32.xlu1 %v5304_v31, %s4973_s12  ;;  %v5532_v26 = vpop.permute.xlu0 %4310 }
  0xe6   : > { %v5530_v36 = vpop.permute.xlu1 %4315  ;;  %4600 = vrot.lane.b32.xlu0 %v5128_v42, %s4974_s13 }
  0xe8   : > { %4605 = vrot.lane.b32.xlu1 %v5201_v34, %s4972_s11  ;;  %v5540_v38 = vpop.permute.xlu0 %4320 }
  0xea   : > { %v5538_v35 = vpop.permute.xlu1 %4325  ;;  %4610 = vrot.lane.b32.xlu0 %v5332_v22, %s4973_s12  ;;  %v2975_v22 = vld [vmem:[%s5034_s30] sm:$0xff] }
  0xeb   : > { %7202 = vst [vmem:[#allocation24_spill] sm:$0xff] %v5538_v35 }
  0xec   : > { %4615 = vrot.lane.b32.xlu1 %v5124_v41, %s4974_s13  ;;  %v5548_v31 = vpop.permute.xlu0 %4330 }
  0xed   : > { %7204 = vst [vmem:[#allocation26_spill] sm:$0xff] %v5548_v31  ;;  %v5588_v31 = vsel %vm1091_vm1, %v5213_v46, %v4153_v10  ;;  %v1098_v46 = vsel %vm1091_vm1, %v5233_v60, %v4157_v32  ;;  %v1094_v10 = vsel %vm1091_vm1, %v5215_v49, %v4147_v1  ;;  %v4203_v60 = vunpack.i.h.bf16 %v5447_v5  ;;  %v2981_v32 = vld [vmem:[%s5034_s30 + $0x30] sm:$0xff] }
  0xee   : > { %v5546_v25 = vpop.permute.xlu1 %4335  ;;  %3009 = vperm.xlu0 %4619, %v2975_v22   ;;  %v304_v22 = vld [vmem:[#allocation2 + $0xf] sm:$0xff]  ;;  %v1100_v49 = vsel %vm1091_vm1, %v5229_v54, %v4162_v9  ;;  %v4217_v1 = vunpack.i.l.bf16 %v5452_v63  ;;  %v4213_v54 = vunpack.i.h.bf16 %v5454_v13  ;;  %v4223_v13 = vunpack.i.h.bf16 %v5460_v18 }
  0xef   : > { %7203 = vst [vmem:[#allocation25_spill] sm:$0xff] %v5546_v25  ;;  %v4148_v25 = vunpack.i.h.bf16 %v5404_v3  ;;  %v5686_v35 = vsel %vm1124_vm2, %v1094_v10, %v4227_v53  ;;  %v2986_v53 = vld [vmem:[%s5034_s30 + $0x58] sm:$0xff] }
  0xf0   : > { %v5552_v34 = vpop.permute.xlu0 %4340  ;;  %3014 = vperm.xlu1 %4620, %v2976_v40   ;;  %v303_v40 = vld [vmem:[#allocation2 + $0x7] sm:$0xff] }
  0xf1   : > { %7206 = vst [vmem:[#allocation28_spill] sm:$0xff] %v5552_v34 }
  0xf2   : > { %v5550_v58 = vpop.permute.xlu1 %4345  ;;  %3024 = vperm.xlu0 %4619, %v2978_v23  }
  0xf3   : > { %7205 = vst [vmem:[#allocation27_spill] sm:$0xff] %v5550_v58 }
  0xf4   : > { %v5556_v39 = vpop.permute.xlu0 %4350 }
  0xf5   : > { %7208 = vst [vmem:[#allocation30_spill] sm:$0xff] %v5556_v39  ;;  %v4143_v39 = vunpack.i.h.bf16 %v5395_v0  ;;  %v4167_v0 = vunpack.i.l.bf16 %v5410_v7  ;;  %v1092_v7 = vsel %vm1091_vm1, %v303_v40, %v4142_v11  ;;  %v4202_v11 = vunpack.i.l.bf16 %v5447_v5 }
  0xf6   : > { %v5554_v42 = vpop.permute.xlu1 %4355  ;;  %v5617_v40 = vsel %vm1091_vm1, %v5250_v8, %v4168_v24  ;;  %3034 = vperm.xlu0 %4619, %v2980_v56   ;;  %v7211_v8 = vld [vmem:[#allocation11_spill] sm:$0xff] }
  0xf7   : > { %7207 = vst [vmem:[#allocation29_spill] sm:$0xff] %v5554_v42  ;;  %v2977_v42 = vld [vmem:[%s5034_s30 + $0x10] sm:$0xff]  ;;  %v1093_v23 = vsel %vm1091_vm1, %v304_v22, %v4143_v39  ;;  %v1095_v39 = vsel %vm1091_vm1, %v5217_v50, %v4148_v25  ;;  %7210 = vst [vmem:[#allocation32_spill] sm:$0xff] %v5617_v40  ;;  %v4218_v50 = vunpack.i.h.bf16 %v5452_v63  ;;  %v2982_v25 = vld [vmem:[%s5034_s30 + $0x38] sm:$0xff]  ;;  %v5632_v24 = vsel %vm1091_vm1, %v7211_v8, %v4207_v45 }
  0xf8   : > { %v5560_v41 = vpop.permute.xlu0 %4360  ;;  %3019 = vperm.xlu1 %4620, %v2977_v42   ;;  %v4208_v42 = vunpack.i.h.bf16 %v5445_v57  ;;  %v5613_v57 = vsel %vm1091_vm1, %v5248_v6, %v4167_v0  ;;  %v7213_v63 = vld [vmem:[#allocation7_spill] sm:$0xff]  ;;  %v4228_v22 = vunpack.i.h.bf16 %v5458_v47  ;;  %v4222_v0 = vunpack.i.l.bf16 %v5460_v18  ;;  %v2987_v8 = vld [vmem:[%s5034_s30 + $0x60] sm:$0xff] }
  0xf9   : > { %7209 = vst [vmem:[#allocation31_spill] sm:$0xff] %v5613_v57  ;;  %v5644_v9 = vsel %vm1091_vm1, %v7213_v63, %v4202_v11  ;;  %v4237_v45 = vunpack.i.l.bf16 %v5466_v17  ;;  %v5659_v11 = vsel %vm1091_vm1, %v5337_v20, %v4217_v1  ;;  %v5663_v47 = vsel %vm1091_vm1, %v5339_v19, %v4218_v50  ;;  %v2984_v57 = vld [vmem:[%s5034_s30 + $0x48] sm:$0xff] }
  0xfa   : > { %v5558_v43 = vpop.permute.xlu1 %4365  ;;  %3044 = vperm.xlu0 %4619, %v2982_v25   ;;  %v4232_v63 = vunpack.i.l.bf16 %v5468_v21  ;;  %v7218_v25 = vld [vmem:[#allocation10_spill] sm:$0xff]  ;;  %v4233_v1 = vunpack.i.h.bf16 %v5468_v21  ;;  %v4242_v19 = vunpack.i.l.bf16 %v5476_v37  ;;  %v1125_v40 = vsel %vm1124_vm2, %v1092_v7, %v4222_v0 }
  0xfb   : > { %v5677_v20 = vsel %vm1091_vm1, %v7218_v25, %v4213_v54  ;;  %v5695_v25 = vsel %vm1124_vm2, %v1098_v46, %v4237_v45  ;;  %v4302_v7 = vunpack.i.l.bf16 %v5524_v2 }
  0xfc   : > { %v5572_v34 = vpop.permute.xlu0 %4370  ;;  %3029 = vperm.xlu1 %4620, %v2979_v55   ;;  %v7212_v55 = vld [vmem:[#allocation12_spill] sm:$0xff] }
  0xfd   : > { %v5636_v56 = vsel %vm1091_vm1, %v7212_v55, %v4208_v42  ;;  %v5651_v42 = vsel %vm1091_vm1, %v7214_v4, %v4203_v60  ;;  %v4238_v60 = vunpack.i.h.bf16 %v5466_v17  ;;  %v2983_v4 = vld [vmem:[%s5034_s30 + $0x40] sm:$0xff]  ;;  %v4243_v17 = vunpack.i.h.bf16 %v5476_v37  ;;  %v2988_v55 = vld [vmem:[%s5034_s30 + $0x68] sm:$0xff] }
  0xfe   : > { %v5566_v58 = vpop.permute.xlu1 %4375  ;;  %3054 = vperm.xlu0 %4619, %v2984_v57   ;;  %v4303_v37 = vunpack.i.h.bf16 %v5524_v2  ;;  %v5710_v57 = vsel %vm1124_vm2, %v5588_v31, %v4233_v1  ;;  %v4287_v2 = vunpack.i.l.bf16 %v5506_v30  ;;  %v4832_v1 = vld [vmem:[#allocation2 + $0x20] sm:$0xff] }
 0x100   : > { %v5600_v28 = vpop.permute.xlu0 %4380  ;;  %3039 = vperm.xlu1 %4620, %v2981_v32   ;;  %v5673_v32 = vsel %vm1091_vm1, %v7217_v48, %v4212_v59  ;;  %v5689_v48 = vsel %vm1124_vm2, %v1095_v39, %v4228_v22  ;;  %v1126_v59 = vsel %vm1124_vm2, %v1093_v23, %v4223_v13  ;;  %v5701_v39 = vsel %vm1124_vm2, %v5584_v52, %v4232_v63 }
 0x101   : > { %v4383_v54 = vunpack.i.h.bf16 %v5600_v28  ;;  %v4382_v21 = vunpack.i.l.bf16 %v5600_v28  ;;  %v5704_v22 = vsel %vm1124_vm2, %v1099_v14, %v4238_v60  ;;  %v2985_v28 = vld [vmem:[%s5034_s30 + $0x50] sm:$0xff]  ;;  %v5713_v13 = vsel %vm1124_vm2, %v1100_v49, %v4242_v19 }
 0x102   : > { %v5592_v3 = vpop.permute.xlu1 %4385  ;;  %v5717_v14 = vsel %vm1124_vm2, %v1101_v62, %v4243_v17  ;;  %v4283_v60 = vunpack.i.h.bf16 %v5508_v16  ;;  %v4282_v63 = vunpack.i.l.bf16 %v5508_v16  ;;  %3064 = vperm.xlu0 %4619, %v2986_v53   ;;  %v1158_v62 = vsel %vm1157_vm3, %v1125_v40, %v4302_v7 }
 0x103   : > { %v1191_v49 = vsel %vm1091_vm1, %v4832_v1, %v4383_v54  ;;  %v1159_v17 = vsel %vm1157_vm3, %v1126_v59, %v4303_v37  ;;  %v4363_v16 = vunpack.i.h.bf16 %v5560_v41  ;;  %v4288_v53 = vunpack.i.h.bf16 %v5506_v30  ;;  %v4834_v1 = vld [vmem:[#allocation2 + $0xe0] sm:$0xff] }
 0x104   : > { %v5640_v5 = vpop.permute.xlu0 %4390  ;;  %3049 = vperm.xlu1 %4620, %v2983_v4   ;;  %v4831_v4 = vld [vmem:[#allocation2 + $0x18] sm:$0xff]  ;;  %v1286_v37 = vpack.c.bf16 %v1159_v17, %v1158_v62  ;;  %v1149_v7 = vsel %vm1124_vm2, %v5644_v9, %v4282_v63  ;;  %v4308_v62 = vunpack.i.h.bf16 %v5522_v15  ;;  %v1151_v63 = vsel %vm1124_vm2, %v5632_v24, %v4287_v2 }
 0x105   : > { %v1190_v31 = vsel %vm1091_vm1, %v4831_v4, %v4382_v21  ;;  %v4362_v21 = vunpack.i.l.bf16 %v5560_v41  ;;  %v4307_v41 = vunpack.i.l.bf16 %v5522_v15  ;;  %v4388_v17 = vunpack.i.h.bf16 %v5592_v3 }
 0x106   : > { %v5626_v6 = vpop.permute.xlu1 %4395  ;;  %3074 = vperm.xlu0 %4619, %v2988_v55  }
 0x107   : > { %v1160_v2 = vsel %vm1157_vm3, %v5686_v35, %v4307_v41 }
 0x108   : > { %v5681_v50 = vpop.permute.xlu0 %4400  ;;  %3059 = vperm.xlu1 %4620, %v2985_v28  }
 0x10a   : > { %v5667_v18 = vpop.permute.xlu1 %4405 }
 0x10c   : > { %v4411_v46 = vpop.permute.xlu0 %4410  ;;  %3069 = vperm.xlu1 %4620, %v2987_v8   ;;  %v1182_v8 = vsel %vm1157_vm3, %v1149_v7, %v4362_v21 }
 0x10d   : > { %v4413_v45 = vunpack.i.h.bf16 %v4411_v46  ;;  %v4412_v52 = vunpack.i.l.bf16 %v4411_v46 }
 0x10e   : > { %v4416_v10 = vpop.permute.xlu1 %4415 }
 0x10f   : > { %v4418_v23 = vunpack.i.h.bf16 %v4416_v10  ;;  %v4417_v0 = vunpack.i.l.bf16 %v4416_v10  ;;  %v1222_v10 = vsel %vm1124_vm2, %v1190_v31, %v4412_v52  ;;  %v1223_v46 = vsel %vm1124_vm2, %v1191_v49, %v4413_v45 }
 0x110   : > { %v4421_v4 = vpop.permute.xlu0 %4420 }
 0x111   : > { %v1254_v54 = vsel %vm1157_vm3, %v1222_v10, %v4417_v0  ;;  %v1255_v28 = vsel %vm1157_vm3, %v1223_v46, %v4418_v23  ;;  %v4423_v52 = vunpack.i.h.bf16 %v4421_v4  ;;  %v4422_v31 = vunpack.i.l.bf16 %v4421_v4  ;;  %v4833_v23 = vld [vmem:[#allocation2 + $0xd8] sm:$0xff] }
 0x112   : > { %v4426_v19 = vpop.permute.xlu1 %4425  ;;  %v1287_v45 = vpack.c.bf16 %v1255_v28, %v1254_v54  ;;  %v1150_v10 = vsel %vm1124_vm2, %v5651_v42, %v4283_v60  ;;  %v2990_v46 = vld [vmem:[%s5034_s30 + $0x78] sm:$0xff]  ;;  %v4387_v4 = vunpack.i.l.bf16 %v5592_v3  ;;  %v1152_v3 = vsel %vm1124_vm2, %v5636_v56, %v4288_v53  ;;  %v4638_v56 = vld [vmem:[%s7109_s1 + $0x88] sm:$0xff]  }
 0x113   : > { %v4428_v40 = vunpack.i.h.bf16 %v4426_v19  ;;  %v4427_v59 = vunpack.i.l.bf16 %v4426_v19  ;;  %v1214_v30 = vsel %vm1091_vm1, %v4833_v23, %v4422_v31  ;;  %v1215_v49 = vsel %vm1091_vm1, %v4834_v1, %v4423_v52  ;;  %v2989_v19 = vld [vmem:[%s5034_s30 + $0x70] sm:$0xff]  ;;  %3084 = vperm.xlu0 %4619, %v2990_v46   ;;  %v2991_v31 = vld [vmem:[%s5034_s30 + $0x80] sm:$0xff]  ;;  %v4836_v1 = vld [vmem:[#allocation2 + $0x28] sm:$0xff] }
 0x114   : > { %1565 = vmatprep.mubr.bf16.mxu0 %v1287_v45  ;;  %v4431_v9 = vpop.permute.xlu0 %4430  ;;  %v1183_v55 = vsel %vm1157_vm3, %v1150_v10, %v4363_v16  ;;  %3079 = vperm.xlu1 %4620, %v2989_v19   ;;  %v4367_v45 = vunpack.i.l.bf16 %v5558_v43  ;;  %v4835_v23 = vld [vmem:[#allocation2 + $0x30] sm:$0xff]  ;;  %v4293_v46 = vunpack.i.h.bf16 %v5516_v12 }
 0x115   : > { %1566 = vmatmul.mubr.bf16.vlgmr.msra.gmra.mrb[0].mxu0 %v1286_v37  ;;  %v4433_v54 = vunpack.i.h.bf16 %v4431_v9  ;;  %v4432_v42 = vunpack.i.l.bf16 %v4431_v9  ;;  %v1246_v15 = vsel %vm1124_vm2, %v1214_v30, %v4427_v59  ;;  %v1247_v52 = vsel %vm1124_vm2, %v1215_v49, %v4428_v40 }
 0x116   : > { %v4436_v0 = vpop.permute.xlu1 %4435  ;;  %v1322_v7 = vpack.c.bf16 %v1183_v55, %v1182_v8  ;;  %v1161_v40 = vsel %vm1157_vm3, %v5689_v48, %v4308_v62  ;;  %v1193_v30 = vsel %vm1091_vm1, %v4835_v23, %v4388_v17  ;;  %v1192_v49 = vsel %vm1091_vm1, %v4836_v1, %v4387_v4  ;;  %v2993_v17 = vld [vmem:[%s5034_s30 + $0x90] sm:$0xff] }
 0x117   : > { %v4438_v60 = vunpack.i.h.bf16 %v4436_v0  ;;  %v4437_v28 = vunpack.i.l.bf16 %v4436_v0  ;;  %v1278_v21 = vsel %vm1157_vm3, %v1246_v15, %v4432_v42  ;;  %v1279_v24 = vsel %vm1157_vm3, %v1247_v52, %v4433_v54  ;;  %v2992_v0 = vld [vmem:[%s5034_s30 + $0x88] sm:$0xff] }
 0x118   : > { %v4441_v37 = vpop.permute.xlu0 %4440  ;;  %v1323_v59 = vpack.c.bf16 %v1279_v24, %v1278_v21  ;;  %3089 = vperm.xlu1 %4620, %v2991_v31   ;;  %v4368_v62 = vunpack.i.h.bf16 %v5558_v43  ;;  %3094 = vperm.xlu0 %4619, %v2992_v0   ;;  %v1289_v15 = vpack.c.bf16 %v1161_v40, %v1160_v2  ;;  %v4312_v52 = vunpack.i.l.bf16 %v5532_v26 }
 0x119   : > { %v4443_v35 = vunpack.i.h.bf16 %v4441_v37  ;;  %v4442_v41 = vunpack.i.l.bf16 %v4441_v37  ;;  %v1224_v19 = vsel %vm1124_vm2, %v1192_v49, %v4437_v28  ;;  %v1225_v48 = vsel %vm1124_vm2, %v1193_v30, %v4438_v60  ;;  %v2994_v60 = vld [vmem:[%s5034_s30 + $0x98] sm:$0xff]  ;;  %v4837_v37 = vld [vmem:[#allocation2 + $0xf0] sm:$0xff] }
 0x11a   : > { %v4446_v16 = vpop.permute.xlu1 %4445  ;;  %1661 = vmatprep.mubr.bf16.mxu1 %v1323_v59  ;;  %v1184_v21 = vsel %vm1157_vm3, %v1151_v63, %v4367_v45  ;;  %v4393_v24 = vunpack.i.h.bf16 %v5640_v5  ;;  %v4392_v31 = vunpack.i.l.bf16 %v5640_v5  ;;  %v1185_v0 = vsel %vm1157_vm3, %v1152_v3, %v4368_v62  ;;  %v2995_v5 = vld [vmem:[%s5034_s30 + $0xa0] sm:$0xff]  ;;  %v4840_v62 = vld [vmem:[#allocation2 + $0x38] sm:$0xff] }
 0x11b   : > { %v4448_v53 = vunpack.i.h.bf16 %v4446_v16  ;;  %v4447_v10 = vunpack.i.l.bf16 %v4446_v16  ;;  %1662 = vmatmul.mubr.bf16.vlgmr.msra.gmra.mrb[0].mxu1 %v1322_v7  ;;  %v1256_v8 = vsel %vm1157_vm3, %v1224_v19, %v4442_v41  ;;  %v1257_v55 = vsel %vm1157_vm3, %v1225_v48, %v4443_v35  ;;  %v4838_v7 = vld [vmem:[#allocation2 + $0xe8] sm:$0xff]  ;;  %v4839_v48 = vld [vmem:[#allocation2 + $0x40] sm:$0xff] }
 0x11c   : > { %v4451_v42 = vpop.permute.xlu0 %4450  ;;  %v1290_v28 = vpack.c.bf16 %v1257_v55, %v1256_v8  ;;  %4043 = vmatpush3.bf16.msra.mxu1 %v5393_v61  ;;  %3099 = vperm.xlu1 %4620, %v2993_v17   ;;  %v4313_v61 = vunpack.i.h.bf16 %v5532_v26  ;;  %v2996_v41 = vld [vmem:[%s5034_s30 + $0xa8] sm:$0xff]  ;;  %v4292_v26 = vunpack.i.l.bf16 %v5516_v12  ;;  %v1195_v3 = vsel %vm1091_vm1, %v4839_v48, %v4393_v24 }
 0x11d   : > { %v4453_v16 = vunpack.i.h.bf16 %v4451_v42  ;;  %v4452_v43 = vunpack.i.l.bf16 %v4451_v42  ;;  %4044 = vmatprep.subr.bf16.mxu1 %v4638_v56  ;;  %v1217_v59 = vsel %vm1091_vm1, %v4837_v37, %v4448_v53  ;;  %v1216_v2 = vsel %vm1091_vm1, %v4838_v7, %v4447_v10  ;;  %3104 = vperm.xlu0 %4619, %v2994_v60  }
 0x11e   : > { %v4456_v9 = vpop.permute.xlu1 %4455  ;;  %1573 = vmatprep.mubr.bf16.mxu0 %v1290_v28  ;;  %v1325_v8 = vpack.c.bf16 %v1185_v0, %v1184_v21  ;;  %v1162_v55 = vsel %vm1157_vm3, %v5701_v39, %v4312_v52  ;;  %v1163_v42 = vsel %vm1157_vm3, %v5710_v57, %v4313_v61  ;;  %v2997_v28 = vld [vmem:[%s5034_s30 + $0xb0] sm:$0xff]  ;;  %v4372_v60 = vunpack.i.l.bf16 %v5572_v34 }
 0x11f   : > { %v4458_v4 = vunpack.i.h.bf16 %v4456_v9  ;;  %v4457_v54 = vunpack.i.l.bf16 %v4456_v9  ;;  %1574 = vmatmul.mubr.bf16.gmra.mrb[4].mxu0 %v1289_v15  ;;  %v1248_v63 = vsel %vm1124_vm2, %v1216_v2, %v4452_v43  ;;  %v1249_v45 = vsel %vm1124_vm2, %v1217_v59, %v4453_v16  ;;  %v2998_v43 = vld [vmem:[%s5034_s30 + $0xb8] sm:$0xff] }
 0x120   : > { %v4461_v1 = vpop.permute.xlu0 %4460  ;;  %4045 = vmatpush3.bf16.msra.mxu1 %v4638_v56  ;;  %v1194_v9 = vsel %vm1091_vm1, %v4840_v62, %v4392_v31  ;;  %3109 = vperm.xlu1 %4620, %v2995_v5   ;;  %v4297_v56 = vunpack.i.l.bf16 %v5514_v29  ;;  %v4373_v15 = vunpack.i.h.bf16 %v5572_v34  ;;  %v1153_v57 = vsel %vm1124_vm2, %v5673_v32, %v4292_v26  ;;  %v2999_v5 = vld [vmem:[%s5034_s30 + $0xc0] sm:$0xff]  ;;  %v3001_v62 = vld [vmem:[%s5034_s30 + $0xd0] sm:$0xff] }
 0x121   : > { %v1280_v49 = vsel %vm1157_vm3, %v1248_v63, %v4457_v54  ;;  %v1281_v35 = vsel %vm1157_vm3, %v1249_v45, %v4458_v4  ;;  %v4463_v53 = vunpack.i.h.bf16 %v4461_v1  ;;  %v4462_v10 = vunpack.i.l.bf16 %v4461_v1  ;;  %3114 = vperm.xlu0 %4619, %v2996_v41   ;;  %v4842_v45 = vld [vmem:[#allocation2 + $0xf8] sm:$0xff] }
 0x122   : > { %v4466_v40 = vpop.permute.xlu1 %4465  ;;  %v1326_v19 = vpack.c.bf16 %v1281_v35, %v1280_v49  ;;  %v1292_v7 = vpack.c.bf16 %v1163_v42, %v1162_v55  ;;  %v1154_v34 = vsel %vm1124_vm2, %v5677_v20, %v4293_v46  ;;  %v4318_v2 = vunpack.i.h.bf16 %v5530_v36 }
 0x123   : > { %v4468_v23 = vunpack.i.h.bf16 %v4466_v40  ;;  %v4467_v30 = vunpack.i.l.bf16 %v4466_v40  ;;  %v1226_v4 = vsel %vm1124_vm2, %v1194_v9, %v4462_v10  ;;  %v1227_v54 = vsel %vm1124_vm2, %v1195_v3, %v4463_v53  ;;  %v4841_v40 = vld [vmem:[#allocation2 + $0x100] sm:$0xff] }
 0x124   : > { %1669 = vmatprep.mubr.bf16.mxu1 %v1326_v19  ;;  %v4471_v39 = vpop.permute.xlu0 %4470  ;;  %3119 = vperm.xlu1 %4620, %v2997_v28   ;;  %v4317_v61 = vunpack.i.l.bf16 %v5530_v36  ;;  %v4298_v12 = vunpack.i.h.bf16 %v5514_v29  ;;  %v1186_v20 = vsel %vm1157_vm3, %v1153_v57, %v4372_v60  ;;  %v1187_v46 = vsel %vm1157_vm3, %v1154_v34, %v4373_v15  ;;  %v4844_v28 = vld [vmem:[#allocation2 + $0x48] sm:$0xff]  ;;  %v3003_v57 = vld [vmem:[%s5034_s30 + $0xe0] sm:$0xff] }
 0x125   : > { %1670 = vmatmul.mubr.bf16.gmra.mrb[4].mxu1 %v1325_v8  ;;  %v1258_v52 = vsel %vm1157_vm3, %v1226_v4, %v4467_v30  ;;  %v1259_v16 = vsel %vm1157_vm3, %v1227_v54, %v4468_v23  ;;  %v4473_v21 = vunpack.i.h.bf16 %v4471_v39  ;;  %v4472_v24 = vunpack.i.l.bf16 %v4471_v39  ;;  %3124 = vperm.xlu0 %4619, %v2998_v43   ;;  %v3000_v30 = vld [vmem:[%s5034_s30 + $0xc8] sm:$0xff]  ;;  %v3002_v4 = vld [vmem:[%s5034_s30 + $0xd8] sm:$0xff]  ;;  %v4843_v54 = vld [vmem:[#allocation2 + $0x50] sm:$0xff] }
 0x126   : > { %v4476_v17 = vpop.permute.xlu1 %4475  ;;  %v1293_v31 = vpack.c.bf16 %v1259_v16, %v1258_v52  ;;  %v1155_v36 = vsel %vm1124_vm2, %v5659_v11, %v4297_v56  ;;  %v4398_v1 = vunpack.i.h.bf16 %v5626_v6  ;;  %v4397_v49 = vunpack.i.l.bf16 %v5626_v6 }
 0x127   : > { %v4478_v37 = vunpack.i.h.bf16 %v4476_v17  ;;  %v4477_v59 = vunpack.i.l.bf16 %v4476_v17  ;;  %v1219_v63 = vsel %vm1091_vm1, %v4841_v40, %v4473_v21  ;;  %v1218_v32 = vsel %vm1091_vm1, %v4842_v45, %v4472_v24 }
 0x128   : > { %1581 = vmatprep.mubr.bf16.mxu0 %v1293_v31  ;;  %v4481_v23 = vpop.permute.xlu0 %4480  ;;  %3129 = vperm.xlu1 %4620, %v2999_v5   ;;  %v1164_v3 = vsel %vm1157_vm3, %v5695_v25, %v4317_v61  ;;  %v1165_v6 = vsel %vm1157_vm3, %v5704_v22, %v4318_v2  ;;  %v4378_v9 = vunpack.i.h.bf16 %v5566_v58  ;;  %v4377_v8 = vunpack.i.l.bf16 %v5566_v58  ;;  %v3004_v61 = vld [vmem:[%s5034_s30 + $0xe8] sm:$0xff] }
 0x129   : > { %1582 = vmatmul.mubr.bf16.gmra.mrb[8].mxu0 %v1292_v7  ;;  %v4483_v35 = vunpack.i.h.bf16 %v4481_v23  ;;  %v4482_v41 = vunpack.i.l.bf16 %v4481_v23  ;;  %v1250_v29 = vsel %vm1124_vm2, %v1218_v32, %v4477_v59  ;;  %v1251_v10 = vsel %vm1124_vm2, %v1219_v63, %v4478_v37  ;;  %3134 = vperm.xlu0 %4619, %v3000_v30   ;;  %v3005_v30 = vld [vmem:[%s5034_s30 + $0xf0] sm:$0xff] }
 0x12a   : > { %v4486_v0 = vpop.permute.xlu1 %4485  ;;  %v1328_v17 = vpack.c.bf16 %v1187_v46, %v1186_v20  ;;  %v1197_v42 = vsel %vm1091_vm1, %v4843_v54, %v4398_v1  ;;  %v1196_v15 = vsel %vm1091_vm1, %v4844_v28, %v4397_v49  ;;  %v4322_v16 = vunpack.i.l.bf16 %v5540_v38 }
 0x12b   : > { %v4488_v26 = vunpack.i.h.bf16 %v4486_v0  ;;  %v4487_v53 = vunpack.i.l.bf16 %v4486_v0  ;;  %v1282_v48 = vsel %vm1157_vm3, %v1250_v29, %v4482_v41  ;;  %v1283_v11 = vsel %vm1157_vm3, %v1251_v10, %v4483_v35  ;;  %v3006_v41 = vld [vmem:[%s5034_s30 + $0xf8] sm:$0xff] }
 0x12c   : > { %v4491_v55 = vpop.permute.xlu0 %4490  ;;  %v1329_v56 = vpack.c.bf16 %v1283_v11, %v1282_v48  ;;  %3139 = vperm.xlu1 %4620, %v3001_v62   ;;  %v1156_v31 = vsel %vm1124_vm2, %v5663_v47, %v4298_v12  ;;  %v1295_v2 = vpack.c.bf16 %v1165_v6, %v1164_v3  ;;  %v1188_v45 = vsel %vm1157_vm3, %v1155_v36, %v4377_v8  ;;  %v4845_v48 = vld [vmem:[#allocation2 + $0x60] sm:$0xff]  ;;  %v4846_v11 = vld [vmem:[#allocation2 + $0x58] sm:$0xff] }
 0x12d   : > { %v4493_v25 = vunpack.i.h.bf16 %v4491_v55  ;;  %v4492_v60 = vunpack.i.l.bf16 %v4491_v55  ;;  %v1228_v52 = vsel %vm1124_vm2, %v1196_v15, %v4487_v53  ;;  %v1229_v58 = vsel %vm1124_vm2, %v1197_v42, %v4488_v26  ;;  %3144 = vperm.xlu0 %4619, %v3002_v4  }
 0x12e   : > { %v4496_v19 = vpop.permute.xlu1 %4495  ;;  %1677 = vmatprep.mubr.bf16.mxu1 %v1329_v56  ;;  %v1189_v32 = vsel %vm1157_vm3, %v1156_v31, %v4378_v9  ;;  %v4403_v0 = vunpack.i.h.bf16 %v5681_v50  ;;  %v4402_v5 = vunpack.i.l.bf16 %v5681_v50  ;;  %v4323_v23 = vunpack.i.h.bf16 %v5540_v38 }
 0x12f   : > { %v4498_v22 = vunpack.i.h.bf16 %v4496_v19  ;;  %v4497_v39 = vunpack.i.l.bf16 %v4496_v19  ;;  %1678 = vmatmul.mubr.bf16.gmra.mrb[8].mxu1 %v1328_v17  ;;  %v1260_v21 = vsel %vm1157_vm3, %v1228_v52, %v4492_v60  ;;  %v1261_v24 = vsel %vm1157_vm3, %v1229_v58, %v4493_v25  ;;  %v7219_v60 = vld [vmem:[#allocation6_spill] sm:$0xff]  ;;  %v4847_v52 = vld [vmem:[#allocation2 + $0x70] sm:$0xff] }
 0x130   : > { %v4501_v37 = vpop.permute.xlu0 %4500  ;;  %v1296_v34 = vpack.c.bf16 %v1261_v24, %v1260_v21  ;;  %3149 = vperm.xlu1 %4620, %v3003_v57   ;;  %v1166_v50 = vsel %vm1157_vm3, %v5713_v13, %v4322_v16  ;;  %v1331_v29 = vpack.c.bf16 %v1189_v32, %v1188_v45  ;;  %v4408_v10 = vunpack.i.h.bf16 %v5667_v18  ;;  %v4848_v16 = vld [vmem:[#allocation2 + $0x68] sm:$0xff]  ;;  %v7222_v24 = vld [vmem:[#allocation24_spill] sm:$0xff] }
 0x131   : > { %v4503_v40 = vunpack.i.h.bf16 %v4501_v37  ;;  %v4502_v63 = vunpack.i.l.bf16 %v4501_v37  ;;  %v1221_v47 = vsel %vm1091_vm1, %v5429_v51, %v4498_v22  ;;  %v1220_v12 = vsel %vm1091_vm1, %v5427_v44, %v4497_v39  ;;  %3154 = vperm.xlu0 %4619, %v3004_v61   ;;  %v7220_v22 = vld [vmem:[#allocation5_spill] sm:$0xff] }
 0x132   : > { %v4506_v43 = vpop.permute.xlu1 %4505  ;;  %1589 = vmatprep.mubr.bf16.mxu0 %v1296_v34  ;;  %v4407_v19 = vunpack.i.l.bf16 %v5667_v18  ;;  %v1199_v13 = vsel %vm1091_vm1, %v4845_v48, %v4403_v0  ;;  %v1198_v3 = vsel %vm1091_vm1, %v4846_v11, %v4402_v5  ;;  %v4172_v6 = vunpack.i.l.bf16 %v5419_v33  ;;  %v4849_v0 = vld [vmem:[#allocation2 + $0x49] sm:$0xff]  ;;  %v4850_v5 = vld [vmem:[#allocation2 + $0x51] sm:$0xff] }
 0x133   : > { %v4508_v59 = vunpack.i.h.bf16 %v4506_v43  ;;  %v4507_v7 = vunpack.i.l.bf16 %v4506_v43  ;;  %1590 = vmatmul.mubr.bf16.gmra.mrb[12].mxu0 %v1295_v2  ;;  %v1252_v46 = vsel %vm1124_vm2, %v1220_v12, %v4502_v63  ;;  %v1253_v36 = vsel %vm1124_vm2, %v1221_v47, %v4503_v40  ;;  %v7223_v12 = vld [vmem:[#allocation13_spill] sm:$0xff] }
 0x134   : > { %v4511_v51 = vpop.permute.xlu0 %4510  ;;  %3159 = vperm.xlu1 %4620, %v3005_v30   ;;  %v1167_v55 = vsel %vm1157_vm3, %v5717_v14, %v4323_v23  ;;  %v4248_v42 = vunpack.i.h.bf16 %v5474_v27  ;;  %v7221_v39 = vpack.c.bf16 %v7219_v60, %v7220_v22  ;;  %v4247_v14 = vunpack.i.l.bf16 %v5474_v27  ;;  %v4853_v11 = vld [vmem:[#allocation2 + $0x67] sm:$0xff] }
 0x135   : > { %v1284_v44 = vsel %vm1157_vm3, %v1252_v46, %v4507_v7  ;;  %v1285_v35 = vsel %vm1157_vm3, %v1253_v36, %v4508_v59  ;;  %v4513_v38 = vunpack.i.h.bf16 %v4511_v51  ;;  %v4512_v26 = vunpack.i.l.bf16 %v4511_v51  ;;  %3164 = vperm.xlu0 %4619, %v3006_v41   ;;  %v7224_v46 = vld [vmem:[#allocation31_spill] sm:$0xff]  ;;  %v4851_v51 = vld [vmem:[#allocation2 + $0x80] sm:$0xff] }
 0x136   : > { %v4516_v20 = vpop.permute.xlu1 %4515  ;;  %v1332_v53 = vpack.c.bf16 %v1285_v35, %v1284_v44  ;;  %v1201_v58 = vsel %vm1091_vm1, %v4847_v52, %v4408_v10  ;;  %v1200_v43 = vsel %vm1091_vm1, %v4848_v16, %v4407_v19  ;;  %v1298_v21 = vpack.c.bf16 %v1167_v55, %v1166_v50  ;;  %v7225_v50 = vld [vmem:[#allocation32_spill] sm:$0xff]  ;;  %v4855_v55 = vld [vmem:[#allocation2 + $0x61] sm:$0xff] }
 0x137   : > { %v4518_v1 = vunpack.i.h.bf16 %v4516_v20  ;;  %v4517_v49 = vunpack.i.l.bf16 %v4516_v20  ;;  %v1230_v9 = vsel %vm1124_vm2, %v1198_v3, %v4512_v26  ;;  %v1231_v8 = vsel %vm1124_vm2, %v1199_v13, %v4513_v38  ;;  %v7226_v26 = vld [vmem:[#allocation4_spill] sm:$0xff] }
 0x138   : > { %1685 = vmatprep.mubr.bf16.mxu1 %v1332_v53  ;;  %v4521_v18 = vpop.permute.xlu0 %4520  ;;  %v4328_v31 = vunpack.i.h.bf16 %v7222_v24  ;;  %v4327_v57 = vunpack.i.l.bf16 %v7222_v24  ;;  %v1294_v47 = vpack.c.bf16 %v4850_v5, %v4849_v0  ;;  %v4177_v23 = vunpack.i.l.bf16 %v7223_v12  ;;  %v4858_v24 = vld [vmem:[#allocation2 + $0x6f] sm:$0xff] }
 0x139   : > { %1686 = vmatmul.mubr.bf16.gmra.mrb[12].mxu1 %v1331_v29  ;;  %v1262_v4 = vsel %vm1157_vm3, %v1230_v9, %v4517_v49  ;;  %v1263_v54 = vsel %vm1157_vm3, %v1231_v8, %v4518_v1  ;;  %v4523_v28 = vunpack.i.h.bf16 %v4521_v18  ;;  %v4522_v15 = vunpack.i.l.bf16 %v4521_v18  ;;  %v4852_v49 = vld [vmem:[#allocation2 + $0x78] sm:$0xff] }
 0x13a   : > { %v4526_v62 = vpop.permute.xlu1 %4525  ;;  %v1299_v25 = vpack.c.bf16 %v1263_v54, %v1262_v4  ;;  %4046 = vmatprep.mubr.msk.bf16.mxu1 %vm1091_vm1, %v7221_v39  ;;  %v4173_v20 = vunpack.i.h.bf16 %v5419_v33  ;;  %v1135_v36 = vsel %vm1124_vm2, %v7224_v46, %v4247_v14  ;;  %v1136_v30 = vsel %vm1124_vm2, %v7225_v50, %v4248_v42  ;;  %v7227_v33 = vld [vmem:[#allocation3_spill] sm:$0xff]  ;;  %v4854_v8 = vld [vmem:[#allocation2 + $0x59] sm:$0xff]  ;;  %v7230_v54 = vld [vmem:[#allocation26_spill] sm:$0xff] }
 0x13b   : > { %v4528_v56 = vunpack.i.h.bf16 %v4526_v62  ;;  %v4527_v17 = vunpack.i.l.bf16 %v4526_v62  ;;  %v1232_v37 = vsel %vm1124_vm2, %v1200_v43, %v4522_v15  ;;  %v1233_v59 = vsel %vm1124_vm2, %v1201_v58, %v4523_v28  ;;  %v4857_v14 = vld [vmem:[#allocation2 + $0x88] sm:$0xff]  ;;  %v4861_v50 = vld [vmem:[#allocation2 + $0x77] sm:$0xff] }
 0x13c   : > { %1597 = vmatprep.mubr.bf16.mxu0 %v1299_v25  ;;  %v4531_v2 = vpop.permute.xlu0 %4530  ;;  %v1168_v35 = vsel %vm1157_vm3, %v1135_v36, %v4327_v57  ;;  %v1169_v41 = vsel %vm1157_vm3, %v1136_v30, %v4328_v31  ;;  %v7228_v53 = vpack.c.bf16 %v7226_v26, %v7227_v33  ;;  %v1104_v3 = vsel %vm1091_vm1, %v4853_v11, %v4172_v6  ;;  %v4856_v25 = vld [vmem:[#allocation2 + $0x90] sm:$0xff]  ;;  %v4862_v26 = vld [vmem:[#allocation2 + $0x79] sm:$0xff]  ;;  %v4863_v33 = vld [vmem:[#allocation2 + $0x81] sm:$0xff] }
 0x13d   : > { %1598 = vmatmul.mubr.bf16.gmra.mrb[16].mxu0 %v1298_v21  ;;  %v1264_v27 = vsel %vm1157_vm3, %v1232_v37, %v4527_v17  ;;  %v1265_v34 = vsel %vm1157_vm3, %v1233_v59, %v4528_v56  ;;  %v4533_v45 = vunpack.i.h.bf16 %v4531_v2  ;;  %v4532_v32 = vunpack.i.l.bf16 %v4531_v2  ;;  %v7229_v56 = vld [vmem:[#allocation19_spill] sm:$0xff] }
 0x13e   : > { %v4536_v7 = vpop.permute.xlu1 %4535  ;;  %v1302_v63 = vpack.c.bf16 %v1265_v34, %v1264_v27  ;;  %v1297_v18 = vpack.c.bf16 %v4855_v55, %v4854_v8  ;;  %v4253_v17 = vunpack.i.h.bf16 %v7229_v56  ;;  %v4252_v4 = vunpack.i.l.bf16 %v7229_v56  ;;  %v4859_v59 = vld [vmem:[#allocation2 + $0x69] sm:$0xff] }
 0x13f   : > { %v4538_v61 = vunpack.i.h.bf16 %v4536_v7  ;;  %v4537_v40 = vunpack.i.l.bf16 %v4536_v7  ;;  %v1203_v1 = vsel %vm1091_vm1, %v4851_v51, %v4533_v45  ;;  %v1202_v44 = vsel %vm1091_vm1, %v4852_v49, %v4532_v32  ;;  %v4860_v7 = vld [vmem:[#allocation2 + $0x71] sm:$0xff] }
 0x140   : > { %1605 = vmatprep.mubr.bf16.mxu0 %v1302_v63  ;;  %v4541_v29 = vpop.permute.xlu0 %4540  ;;  %v4333_v42 = vunpack.i.h.bf16 %v7230_v54  ;;  %v1301_v28 = vpack.c.bf16 %v1169_v41, %v1168_v35  ;;  %v4332_v15 = vunpack.i.l.bf16 %v7230_v54  ;;  %v1105_v31 = vsel %vm1091_vm1, %v4858_v24, %v4173_v20  ;;  %v4867_v54 = vld [vmem:[#allocation2 + $0x89] sm:$0xff] }
 0x141   : > { %4047 = vmatmul.mubr.msk.bf16.vlgmr.msra.gmra.mrb[16].mxu1 %vm1091_vm1, %v7228_v53  ;;  %v1234_v48 = vsel %vm1124_vm2, %v1202_v44, %v4537_v40  ;;  %v1235_v13 = vsel %vm1124_vm2, %v1203_v1, %v4538_v61  ;;  %v4543_v62 = vunpack.i.h.bf16 %v4541_v29  ;;  %v4542_v9 = vunpack.i.l.bf16 %v4541_v29  ;;  %v7231_v44 = vld [vmem:[#allocation18_spill] sm:$0xff]  ;;  %v7232_v29 = vld [vmem:[#allocation25_spill] sm:$0xff] }
 0x142   : > { %v4546_v38 = vpop.permute.xlu1 %4545  ;;  %4050 = vmatprep.mubr.msk.bf16.mxu1 %vm1091_vm1, %v1294_v47  ;;  %v1300_v27 = vpack.c.bf16 %v4860_v7, %v4859_v59  ;;  %v4178_v34 = vunpack.i.h.bf16 %v7223_v12  ;;  %v1137_v2 = vsel %vm1124_vm2, %v1104_v3, %v4252_v4  ;;  %v1138_v61 = vsel %vm1124_vm2, %v1105_v31, %v4253_v17  ;;  %v4864_v12 = vld [vmem:[#allocation2 + $0xa0] sm:$0xff]  ;;  %v4870_v24 = vld [vmem:[#allocation2 + $0xa8] sm:$0xff] }
 0x143   : > { %v4548_v10 = vunpack.i.h.bf16 %v4546_v38  ;;  %v4547_v19 = vunpack.i.l.bf16 %v4546_v38  ;;  %v1266_v6 = vsel %vm1157_vm3, %v1234_v48, %v4542_v9  ;;  %v1267_v22 = vsel %vm1157_vm3, %v1235_v13, %v4543_v62  ;;  %v4865_v48 = vld [vmem:[#allocation2 + $0x98] sm:$0xff] }
 0x144   : > { %v1305_v58 = vpack.c.bf16 %v1267_v22, %v1266_v6  ;;  %v4551_v16 = vpop.permute.xlu0 %4550  ;;  %v1170_v40 = vsel %vm1157_vm3, %v1137_v2, %v4332_v15  ;;  %v1171_v63 = vsel %vm1157_vm3, %v1138_v61, %v4333_v42  ;;  %v1106_v30 = vsel %vm1091_vm1, %v4861_v50, %v4177_v23  ;;  %v4868_v42 = vld [vmem:[#allocation2 + $0x91] sm:$0xff]  ;;  %v4872_v50 = vld [vmem:[#allocation2 + $0x99] sm:$0xff] }
 0x145   : > { %v1205_v60 = vsel %vm1091_vm1, %v4856_v25, %v4548_v10  ;;  %1606 = vmatmul.mubr.bf16.gmra.mrb[20].mxu0 %v1301_v28  ;;  %v1204_v52 = vsel %vm1091_vm1, %v4857_v14, %v4547_v19  ;;  %v4553_v57 = vunpack.i.h.bf16 %v4551_v16  ;;  %v4552_v37 = vunpack.i.l.bf16 %v4551_v16 }
 0x146   : > { %v4556_v39 = vpop.permute.xlu1 %4555  ;;  %1613 = vmatprep.mubr.bf16.mxu0 %v1305_v58  ;;  %v4258_v35 = vunpack.i.h.bf16 %v7231_v44  ;;  %v4257_v41 = vunpack.i.l.bf16 %v7231_v44  ;;  %v1304_v38 = vpack.c.bf16 %v1171_v63, %v1170_v40  ;;  %v1303_v53 = vpack.c.bf16 %v4863_v33, %v4862_v26 }
 0x147   : > { %v4558_v43 = vunpack.i.h.bf16 %v4556_v39  ;;  %v4557_v21 = vunpack.i.l.bf16 %v4556_v39  ;;  %v1236_v45 = vsel %vm1124_vm2, %v1204_v52, %v4552_v37  ;;  %v1237_v32 = vsel %vm1124_vm2, %v1205_v60, %v4553_v57  ;;  %v7233_v52 = vld [vmem:[#allocation15_spill] sm:$0xff]  ;;  %v7234_v37 = vld [vmem:[#allocation21_spill] sm:$0xff] }
 0x148   : > { %v4561_v5 = vpop.permute.xlu0 %4560  ;;  %v4338_v10 = vunpack.i.h.bf16 %v7232_v29  ;;  %v4337_v19 = vunpack.i.l.bf16 %v7232_v29  ;;  %v1306_v28 = vpack.c.bf16 %v4868_v42, %v4867_v54  ;;  %v1139_v15 = vsel %vm1124_vm2, %v1106_v30, %v4257_v41  ;;  %v4873_v30 = vld [vmem:[#allocation2 + $0xa1] sm:$0xff]  ;;  %v4876_v41 = vld [vmem:[#allocation2 + $0xb1] sm:$0xff] }
 0x149   : > { %4051 = vmatmul.mubr.msk.bf16.gmra.mrb[20].mxu1 %vm1091_vm1, %v1297_v18  ;;  %v1268_v47 = vsel %vm1157_vm3, %v1236_v45, %v4557_v21  ;;  %v1269_v20 = vsel %vm1157_vm3, %v1237_v32, %v4558_v43  ;;  %v4563_v51 = vunpack.i.h.bf16 %v4561_v5  ;;  %v4562_v1 = vunpack.i.l.bf16 %v4561_v5  ;;  %v4866_v18 = vld [vmem:[#allocation2 + $0x7f] sm:$0xff]  ;;  %v4869_v43 = vld [vmem:[#allocation2 + $0xb0] sm:$0xff] }
 0x14a   : > { %v4566_v0 = vpop.permute.xlu1 %4565  ;;  %4054 = vmatprep.mubr.msk.bf16.mxu1 %vm1091_vm1, %v1300_v27  ;;  %v1308_v49 = vpack.c.bf16 %v1269_v20, %v1268_v47  ;;  %v1107_v56 = vsel %vm1091_vm1, %v4866_v18, %v4178_v34  ;;  %v1172_v60 = vsel %vm1157_vm3, %v1139_v15, %v4337_v19  ;;  %v4183_v58 = vunpack.i.h.bf16 %v7233_v52  ;;  %v7235_v45 = vld [vmem:[#allocation28_spill] sm:$0xff] }
 0x14b   : > { %v4568_v46 = vunpack.i.h.bf16 %v4566_v0  ;;  %v4567_v36 = vunpack.i.l.bf16 %v4566_v0  ;;  %v1207_v23 = vsel %vm1091_vm1, %v4864_v12, %v4563_v51  ;;  %v1206_v13 = vsel %vm1091_vm1, %v4865_v48, %v4562_v1 }
 0x14c   : > { %v4571_v3 = vpop.permute.xlu0 %4570  ;;  %v1140_v25 = vsel %vm1124_vm2, %v1107_v56, %v4258_v35  ;;  %v4182_v16 = vunpack.i.l.bf16 %v7233_v52  ;;  %v4263_v59 = vunpack.i.h.bf16 %v7234_v37  ;;  %v4262_v2 = vunpack.i.l.bf16 %v7234_v37  ;;  %v4875_v35 = vld [vmem:[#allocation2 + $0xa9] sm:$0xff] }
 0x14d   : > { %1614 = vmatmul.mubr.bf16.gmra.mrb[24].mxu0 %v1304_v38  ;;  %v1238_v8 = vsel %vm1124_vm2, %v1206_v13, %v4567_v36  ;;  %v1239_v55 = vsel %vm1124_vm2, %v1207_v23, %v4568_v46  ;;  %v4573_v17 = vunpack.i.h.bf16 %v4571_v3  ;;  %v4572_v4 = vunpack.i.l.bf16 %v4571_v3  ;;  %v4871_v46 = vld [vmem:[#allocation2 + $0x87] sm:$0xff] }
 0x14e   : > { %v4576_v11 = vpop.permute.xlu1 %4575  ;;  %1621 = vmatprep.mubr.bf16.mxu0 %v1308_v49  ;;  %v1173_v6 = vsel %vm1157_vm3, %v1140_v25, %v4338_v10  ;;  %v4343_v32 = vunpack.i.h.bf16 %v7235_v45  ;;  %v4342_v0 = vunpack.i.l.bf16 %v7235_v45  ;;  %v1108_v36 = vsel %vm1091_vm1, %v4871_v46, %v4182_v16  ;;  %v4874_v49 = vld [vmem:[#allocation2 + $0x8f] sm:$0xff]  ;;  %v4880_v16 = vld [vmem:[#allocation2 + $0xc1] sm:$0xff] }
 0x14f   : > { %v4578_v62 = vunpack.i.h.bf16 %v4576_v11  ;;  %v4577_v9 = vunpack.i.l.bf16 %v4576_v11  ;;  %v1270_v22 = vsel %vm1157_vm3, %v1238_v8, %v4572_v4  ;;  %v1271_v39 = vsel %vm1157_vm3, %v1239_v55, %v4573_v17  ;;  %v4877_v11 = vld [vmem:[#allocation2 + $0xc0] sm:$0xff]  ;;  %v7236_v55 = vld [vmem:[#allocation14_spill] sm:$0xff]  ;;  %v7237_v17 = vld [vmem:[#allocation20_spill] sm:$0xff] }
 0x150   : > { %v4581_v57 = vpop.permute.xlu0 %4580  ;;  %v1311_v7 = vpack.c.bf16 %v1271_v39, %v1270_v22  ;;  %v1307_v61 = vpack.c.bf16 %v1173_v6, %v1172_v60  ;;  %v1309_v51 = vpack.c.bf16 %v4873_v30, %v4872_v50  ;;  %v1109_v44 = vsel %vm1091_vm1, %v4874_v49, %v4183_v58  ;;  %v7238_v6 = vld [vmem:[#allocation27_spill] sm:$0xff]  ;;  %v4879_v58 = vld [vmem:[#allocation2 + $0xb9] sm:$0xff]  ;;  %v4886_v50 = vld [vmem:[#allocation2 + $0xc8] sm:$0xff] }
 0x151   : > { %4055 = vmatmul.mubr.msk.bf16.gmra.mrb[24].mxu1 %vm1091_vm1, %v1303_v53  ;;  %v1209_v21 = vsel %vm1091_vm1, %v4869_v43, %v4578_v62  ;;  %v1208_v31 = vsel %vm1091_vm1, %v4870_v24, %v4577_v9  ;;  %v4583_v27 = vunpack.i.h.bf16 %v4581_v57  ;;  %v4582_v34 = vunpack.i.l.bf16 %v4581_v57  ;;  %v4878_v62 = vld [vmem:[#allocation2 + $0xb8] sm:$0xff]  ;;  %v4885_v46 = vld [vmem:[#allocation2 + $0xd0] sm:$0xff] }
 0x152   : > { %v4586_v14 = vpop.permute.xlu1 %4585  ;;  %4058 = vmatprep.mubr.msk.bf16.mxu1 %vm1091_vm1, %v1306_v28  ;;  %v1312_v38 = vpack.c.bf16 %v4876_v41, %v4875_v35  ;;  %v1141_v53 = vsel %vm1124_vm2, %v1108_v36, %v4262_v2  ;;  %v1142_v29 = vsel %vm1124_vm2, %v1109_v44, %v4263_v59  ;;  %v4188_v18 = vunpack.i.h.bf16 %v7236_v55  ;;  %v4881_v57 = vld [vmem:[#allocation2 + $0x97] sm:$0xff]  ;;  %v4882_v59 = vld [vmem:[#allocation2 + $0x9f] sm:$0xff] }
 0x153   : > { %v4588_v40 = vunpack.i.h.bf16 %v4586_v14  ;;  %v4587_v63 = vunpack.i.l.bf16 %v4586_v14  ;;  %v1240_v5 = vsel %vm1124_vm2, %v1208_v31, %v4582_v34  ;;  %v1241_v47 = vsel %vm1124_vm2, %v1209_v21, %v4583_v27  ;;  %v4883_v27 = vld [vmem:[#allocation2 + $0xc9] sm:$0xff]  ;;  %v4884_v34 = vld [vmem:[#allocation2 + $0xd1] sm:$0xff] }
 0x154   : > { %v4591_v1 = vpop.permute.xlu0 %4590  ;;  %v1174_v12 = vsel %vm1157_vm3, %v1141_v53, %v4342_v0  ;;  %v1175_v23 = vsel %vm1157_vm3, %v1142_v29, %v4343_v32  ;;  %v4187_v56 = vunpack.i.l.bf16 %v7236_v55  ;;  %v4268_v4 = vunpack.i.h.bf16 %v7237_v17  ;;  %v7240_v44 = vld [vmem:[#allocation23_spill] sm:$0xff]  ;;  %v7241_v29 = vld [vmem:[#allocation30_spill] sm:$0xff] }
 0x155   : > { %1622 = vmatmul.mubr.bf16.gmra.mrb[28].mxu0 %v1307_v61  ;;  %v4593_v26 = vunpack.i.h.bf16 %v4591_v1  ;;  %v4592_v33 = vunpack.i.l.bf16 %v4591_v1  ;;  %v1272_v10 = vsel %vm1157_vm3, %v1240_v5, %v4587_v63  ;;  %v1273_v19 = vsel %vm1157_vm3, %v1241_v47, %v4588_v40  ;;  %v4891_v55 = vld [vmem:[#allocation2 + $0xe9] sm:$0xff] }
 0x156   : > { %v4596_v20 = vpop.permute.xlu1 %4595  ;;  %1629 = vmatprep.mubr.bf16.mxu0 %v1311_v7  ;;  %v1314_v54 = vpack.c.bf16 %v1273_v19, %v1272_v10  ;;  %v4267_v28 = vunpack.i.l.bf16 %v7237_v17  ;;  %v1310_v15 = vpack.c.bf16 %v1175_v23, %v1174_v12  ;;  %v4348_v22 = vunpack.i.h.bf16 %v7238_v6 }
 0x157   : > { %v4598_v48 = vunpack.i.h.bf16 %v4596_v20  ;;  %v4597_v13 = vunpack.i.l.bf16 %v4596_v20  ;;  %v1211_v3 = vsel %vm1091_vm1, %v4877_v11, %v4593_v26  ;;  %v1210_v9 = vsel %vm1091_vm1, %v4878_v62, %v4592_v33 }
 0x158   : > { %v4601_v8 = vpop.permute.xlu0 %4600  ;;  %v4347_v39 = vunpack.i.l.bf16 %v7238_v6  ;;  %v1315_v43 = vpack.c.bf16 %v4880_v16, %v4879_v58  ;;  %v1110_v37 = vsel %vm1091_vm1, %v4881_v57, %v4187_v56  ;;  %v1111_v7 = vsel %vm1091_vm1, %v4882_v59, %v4188_v18  ;;  %v4892_v18 = vld [vmem:[#allocation2 + $0xf1] sm:$0xff]  ;;  %v7244_v16 = vld [vmem:[#allocation29_spill] sm:$0xff] }
 0x159   : > { %4059 = vmatmul.mubr.msk.bf16.gmra.mrb[28].mxu1 %vm1091_vm1, %v1309_v51  ;;  %v4603_v25 = vunpack.i.h.bf16 %v4601_v8  ;;  %v4602_v60 = vunpack.i.l.bf16 %v4601_v8  ;;  %v1242_v14 = vsel %vm1124_vm2, %v1210_v9, %v4597_v13  ;;  %v1243_v52 = vsel %vm1124_vm2, %v1211_v3, %v4598_v48  ;;  %v7239_v51 = vld [vmem:[#allocation17_spill] sm:$0xff]  ;;  %v4890_v9 = vld [vmem:[#allocation2 + $0xaf] sm:$0xff] }
 0x15a   : > { %4062 = vmatprep.mubr.msk.bf16.mxu1 %vm1091_vm1, %v1312_v38  ;;  %v4606_v42 = vpop.permute.xlu1 %4605  ;;  %v1318_v2 = vpack.c.bf16 %v4884_v34, %v4883_v27  ;;  %v1143_v61 = vsel %vm1124_vm2, %v1110_v37, %v4267_v28  ;;  %v1144_v40 = vsel %vm1124_vm2, %v1111_v7, %v4268_v4  ;;  %v4193_v1 = vunpack.i.h.bf16 %v7239_v51  ;;  %v4887_v48 = vld [vmem:[#allocation2 + $0xd9] sm:$0xff]  ;;  %v4888_v13 = vld [vmem:[#allocation2 + $0xe1] sm:$0xff]  ;;  %v4897_v34 = vld [vmem:[#allocation2 + $0x109] sm:$0xff] }
 0x15b   : > { %v4608_v21 = vunpack.i.h.bf16 %v4606_v42  ;;  %v4607_v24 = vunpack.i.l.bf16 %v4606_v42  ;;  %v1274_v63 = vsel %vm1157_vm3, %v1242_v14, %v4602_v60  ;;  %v1275_v45 = vsel %vm1157_vm3, %v1243_v52, %v4603_v25  ;;  %v4889_v3 = vld [vmem:[#allocation2 + $0xa7] sm:$0xff]  ;;  %v7242_v25 = vld [vmem:[#allocation16_spill] sm:$0xff] }
 0x15c   : > { %v4611_v31 = vpop.permute.xlu0 %4610  ;;  %v1176_v32 = vsel %vm1157_vm3, %v1143_v61, %v4347_v39  ;;  %v1177_v0 = vsel %vm1157_vm3, %v1144_v40, %v4348_v22  ;;  %v4192_v49 = vunpack.i.l.bf16 %v7239_v51  ;;  %v4273_v35 = vunpack.i.h.bf16 %v7240_v44  ;;  %v7243_v39 = vld [vmem:[#allocation22_spill] sm:$0xff]  ;;  %v4895_v37 = vld [vmem:[#allocation2 + $0xb7] sm:$0xff]  ;;  %v4896_v7 = vld [vmem:[#allocation2 + $0xbf] sm:$0xff] }
 0x15d   : > { %1630 = vmatmul.mubr.bf16.gmra.mrb[32].mxu0 %v1310_v15  ;;  %v4613_v5 = vunpack.i.h.bf16 %v4611_v31  ;;  %v4612_v47 = vunpack.i.l.bf16 %v4611_v31  ;;  %v1213_v36 = vsel %vm1091_vm1, %v4885_v46, %v4608_v21  ;;  %v1212_v30 = vsel %vm1091_vm1, %v4886_v50, %v4607_v24  ;;  %v4893_v24 = vld [vmem:[#allocation2 + $0xf9] sm:$0xff]  ;;  %v4894_v31 = vld [vmem:[#allocation2 + $0x101] sm:$0xff] }
 0x15e   : > { %1637 = vmatprep.mubr.bf16.mxu0 %v1314_v54  ;;  %v4616_v20 = vpop.permute.xlu1 %4615  ;;  %v1317_v41 = vpack.c.bf16 %v1275_v45, %v1274_v63  ;;  %v4272_v38 = vunpack.i.l.bf16 %v7240_v44  ;;  %v1313_v26 = vpack.c.bf16 %v1177_v0, %v1176_v32  ;;  %v4353_v10 = vunpack.i.h.bf16 %v7241_v29  ;;  %v409_v0 = vld [vmem:[#allocation2 + $0x119] sm:$0xff] }
 0x15f   : > { %v4618_v33 = vunpack.i.h.bf16 %v4616_v20  ;;  %v4617_v53 = vunpack.i.l.bf16 %v4616_v20  ;;  %v4352_v19 = vunpack.i.l.bf16 %v7241_v29  ;;  %v1244_v12 = vsel %vm1124_vm2, %v1212_v30, %v4612_v47 }
 0x160   : > { %v1245_v23 = vsel %vm1124_vm2, %v1213_v36, %v4613_v5  ;;  %v1321_v11 = vpack.c.bf16 %v4888_v13, %v4887_v48  ;;  %v1112_v62 = vsel %vm1091_vm1, %v4889_v3, %v4192_v49  ;;  %v1113_v8 = vsel %vm1091_vm1, %v4890_v9, %v4193_v1  ;;  %v410_v5 = vld [vmem:[#allocation2 + $0x121] sm:$0xff] }
 0x161   : > { %4063 = vmatmul.mubr.msk.bf16.gmra.mrb[32].mxu1 %vm1091_vm1, %v1315_v43  ;;  %v1324_v56 = vpack.c.bf16 %v4892_v18, %v4891_v55  ;;  %v1145_v17 = vsel %vm1124_vm2, %v1112_v62, %v4272_v38  ;;  %v1146_v4 = vsel %vm1124_vm2, %v1113_v8, %v4273_v35  ;;  %v1276_v54 = vsel %vm1157_vm3, %v1244_v12, %v4617_v53 }
 0x162   : > { %4066 = vmatprep.mubr.msk.bf16.mxu1 %vm1091_vm1, %v1318_v2  ;;  %v1277_v42 = vsel %vm1157_vm3, %v1245_v23, %v4618_v33  ;;  %v1178_v28 = vsel %vm1157_vm3, %v1145_v17, %v4352_v19  ;;  %v1179_v15 = vsel %vm1157_vm3, %v1146_v4, %v4353_v10  ;;  %v4198_v60 = vunpack.i.h.bf16 %v7242_v25  ;;  %v4898_v2 = vld [vmem:[#allocation2 + $0x111] sm:$0xff] }
 0x163   : > { %v4197_v6 = vunpack.i.l.bf16 %v7242_v25  ;;  %v1320_v22 = vpack.c.bf16 %v1277_v42, %v1276_v54  ;;  %v4278_v14 = vunpack.i.h.bf16 %v7243_v39  ;;  %v4277_v52 = vunpack.i.l.bf16 %v7243_v39 }
 0x164   : > { %v1316_v58 = vpack.c.bf16 %v1179_v15, %v1178_v28  ;;  %v4358_v43 = vunpack.i.h.bf16 %v7244_v16  ;;  %v4357_v21 = vunpack.i.l.bf16 %v7244_v16  ;;  %v1327_v57 = vpack.c.bf16 %v4894_v31, %v4893_v24 }
 0x165   : > { %1638 = vmatmul.mubr.bf16.gmra.mrb[36].mxu0 %v1313_v26  ;;  %v1114_v59 = vsel %vm1091_vm1, %v4895_v37, %v4197_v6  ;;  %v1115_v27 = vsel %vm1091_vm1, %v4896_v7, %v4198_v60  ;;  %v1330_v61 = vpack.c.bf16 %v4898_v2, %v4897_v34  ;;  %v1333_v20 = vpack.c.bf16 %v410_v5, %v409_v0 }
 0x166   : > { %1645 = vmatprep.mubr.bf16.mxu0 %v1317_v41  ;;  %v1147_v40 = vsel %vm1124_vm2, %v1114_v59, %v4277_v52  ;;  %v1148_v63 = vsel %vm1124_vm2, %v1115_v27, %v4278_v14  ;;  %v6043_v59 = vld [vmem:[%s7110_s2] ss:$0 sm:$0xff] }
 0x167   : > { %v1180_v45 = vsel %vm1157_vm3, %v1147_v40, %v4357_v21  ;;  %v1181_v32 = vsel %vm1157_vm3, %v1148_v63, %v4358_v43 }
 0x168   : > { %v1319_v47 = vpack.c.bf16 %v1181_v32, %v1180_v45 }
 0x169   : > { %4067 = vmatmul.mubr.msk.bf16.gmra.mrb[36].mxu1 %vm1091_vm1, %v1321_v11 }
 0x16a   : > { %4070 = vmatprep.mubr.msk.bf16.mxu1 %vm1091_vm1, %v1324_v56 }
 0x16d   : > { %1646 = vmatmul.mubr.bf16.gmra.mrb[40].mxu0 %v1316_v58 }
 0x16e   : > { %1653 = vmatprep.mubr.bf16.mxu0 %v1320_v22 }
 0x171   : > { %4071 = vmatmul.mubr.msk.bf16.gmra.mrb[40].mxu1 %vm1091_vm1, %v1327_v57 }
 0x172   : > { %4074 = vmatprep.mubr.msk.bf16.mxu1 %vm1091_vm1, %v1330_v61 }
 0x175   : > { %1654 = vmatmul.mubr.bf16.gmra.mrb[44].mxu0 %v1319_v47 }
 0x179   : > { %4075 = vmatmul.mubr.msk.bf16.gmra.mrb[44].mxu1 %vm1091_vm1, %v1333_v20 }
 0x1e8   : > { %v3928_v46 = vpop.f32.mrb[0].mxu0 }
 0x1e9   : > { %v3929_v36 = vpop.f32.mrb[1].mxu0 }
 0x1ea   : > { %v3930_v50 = vadd.f32 %v3929_v36, %v3928_v46  ;;  %v3931_v30 = vpop.f32.mrb[2].mxu0 }
 0x1eb   : > { %v3932_v51 = vpop.f32.mrb[3].mxu0 }
 0x1ec   : > { %v3933_v1 = vadd.f32 %v3932_v51, %v3931_v30  ;;  %v1568_v63 = vadd.f32 %v3930_v50, %v6043_v59 }
 0x1ee   : > { %v4000_v49 = vpop.f32.mrb[0].mxu1  ;;  %v1571_v20 = vadd.f32 %v3933_v1, %v6043_v59 }
 0x1ef   : > { %v4001_v44 = vpop.f32.mrb[1].mxu1 }
 0x1f0   : > { %v6024_v35 = vadd.f32 %v4001_v44, %v4000_v49  ;;  %v4003_v41 = vpop.f32.mrb[2].mxu1 }
 0x1f1   : > { %v4004_v38 = vpop.f32.mrb[3].mxu1 }
 0x1f2   : > { %v6026_v26 = vadd.f32 %v4004_v38, %v4003_v41  ;;  %v3934_v33 = vpop.f32.mrb[4].mxu0 }
 0x1f3   : > { %v3935_v53 = vpop.f32.mrb[5].mxu0 }
 0x1f4   : > { %v3936_v29 = vadd.f32 %v3935_v53, %v3934_v33  ;;  %v3937_v10 = vpop.f32.mrb[6].mxu0 }
 0x1f5   : > { %v3938_v19 = vpop.f32.mrb[7].mxu0 }
 0x1f6   : > { %v3939_v12 = vadd.f32 %v3938_v19, %v3937_v10  ;;  %v1576_v2 = vadd.f32 %v3936_v29, %v6043_v59 }
 0x1f8   : > { %v4006_v23 = vpop.f32.mrb[4].mxu1  ;;  %v1579_v0 = vadd.f32 %v3939_v12, %v6043_v59 }
 0x1f9   : > { %v4007_v48 = vpop.f32.mrb[5].mxu1 }
 0x1fa   : > { %v6028_v13 = vadd.f32 %v4007_v48, %v4006_v23  ;;  %v4009_v11 = vpop.f32.mrb[6].mxu1 }
 0x1fb   : > { %v4010_v3 = vpop.f32.mrb[7].mxu1 }
 0x1fc   : > { %v6030_v62 = vadd.f32 %v4010_v3, %v4009_v11  ;;  %v3940_v9 = vpop.f32.mrb[8].mxu0 }
 0x1fd   : > { %v3941_v8 = vpop.f32.mrb[9].mxu0 }
 0x1fe   : > { %v3942_v55 = vadd.f32 %v3941_v8, %v3940_v9  ;;  %v3943_v18 = vpop.f32.mrb[10].mxu0 }
 0x1ff   : > { %v3944_v56 = vpop.f32.mrb[11].mxu0 }
 0x200   : > { %v3945_v17 = vadd.f32 %v3944_v56, %v3943_v18  ;;  %v1584_v53 = vadd.f32 %v3942_v55, %v6043_v59 }
 0x202   : > { %v4012_v4 = vpop.f32.mrb[8].mxu1  ;;  %v1587_v48 = vadd.f32 %v3945_v17, %v6043_v59 }
 0x203   : > { %v4013_v54 = vpop.f32.mrb[9].mxu1 }
 0x204   : > { %v6032_v42 = vadd.f32 %v4013_v54, %v4012_v4  ;;  %v4015_v28 = vpop.f32.mrb[10].mxu1 }
 0x205   : > { %v4016_v15 = vpop.f32.mrb[11].mxu1 }
 0x206   : > { %v6034_v25 = vadd.f32 %v4016_v15, %v4015_v28  ;;  %v3946_v60 = vpop.f32.mrb[12].mxu0 }
 0x207   : > { %v3947_v6 = vpop.f32.mrb[13].mxu0 }
 0x208   : > { %v3948_v22 = vadd.f32 %v3947_v6, %v3946_v60  ;;  %v3949_v39 = vpop.f32.mrb[14].mxu0 }
 0x209   : > { %v3950_v14 = vpop.f32.mrb[15].mxu0 }
 0x20a   : > { %v3951_v52 = vadd.f32 %v3950_v14, %v3949_v39  ;;  %v1592_v1 = vadd.f32 %v3948_v22, %v6043_v59 }
 0x20c   : > { %v4018_v58 = vpop.f32.mrb[12].mxu1  ;;  %v1595_v19 = vadd.f32 %v3951_v52, %v6043_v59 }
 0x20d   : > { %v4019_v16 = vpop.f32.mrb[13].mxu1 }
 0x20e   : > { %v6036_v43 = vadd.f32 %v4019_v16, %v4018_v58  ;;  %v4021_v21 = vpop.f32.mrb[14].mxu1 }
 0x20f   : > { %v4022_v24 = vpop.f32.mrb[15].mxu1 }
 0x210   : > { %v6038_v31 = vadd.f32 %v4022_v24, %v4021_v21  ;;  %v3952_v57 = vpop.f32.mrb[16].mxu0 }
 0x211   : > { %v3953_v37 = vpop.f32.mrb[17].mxu0 }
 0x212   : > { %v3954_v7 = vadd.f32 %v3953_v37, %v3952_v57  ;;  %v3955_v27 = vpop.f32.mrb[18].mxu0 }
 0x213   : > { %v3956_v34 = vpop.f32.mrb[19].mxu0 }
 0x214   : > { %v3957_v61 = vadd.f32 %v3956_v34, %v3955_v27  ;;  %v4048_v40 = vpop.f32.mrb[16].mxu1  ;;  %v1600_v15 = vadd.f32 %v3954_v7, %v6043_v59  ;;  %v6101_v27 = vpop.permute.xlu0 %3009 }
 0x215   : > { %v6047_v45 = vadd.f32 %v4048_v40, %v1576_v2  ;;  %v1728_v32 = vpop.f32.mrb[17].mxu1  ;;  %7245 = vst [vmem:[#allocation11_spill] sm:$0xff] %v6101_v27 }
 0x216   : > { %v6050_v5 = vadd.f32 %v1728_v32, %v1568_v63  ;;  %v4049_v47 = vpop.f32.mrb[18].mxu1  ;;  %v1603_v52 = vadd.f32 %v3957_v61, %v6043_v59  ;;  %v6107_v32 = vpop.permute.xlu1 %3014 }
 0x217   : > { %v6053_v46 = vadd.f32 %v4049_v47, %v1579_v0  ;;  %v1731_v36 = vpop.f32.mrb[19].mxu1  ;;  %2179 = vrot.lane.b32.xlu0 %v6047_v45, %s4973_s12  ;;  %7246 = vst [vmem:[#allocation12_spill] sm:$0xff] %v6107_v32 }
 0x218   : > { %v6057_v30 = vadd.f32 %v1731_v36, %v1571_v20  ;;  %v3958_v51 = vpop.f32.mrb[20].mxu0 }
 0x219   : > { %v3959_v50 = vpop.f32.mrb[21].mxu0  ;;  %2181 = vrot.lane.b32.xlu1 %v6053_v46, %s4973_s12 }
 0x21a   : > { %v3960_v49 = vadd.f32 %v3959_v50, %v3958_v51  ;;  %v3961_v44 = vpop.f32.mrb[22].mxu0 }
 0x21b   : > { %v3962_v41 = vpop.f32.mrb[23].mxu0  ;;  %2175 = vrot.lane.b32.xlu0 %v6050_v5, %s4973_s12 }
 0x21c   : > { %v3963_v38 = vadd.f32 %v3962_v41, %v3961_v44  ;;  %v4052_v33 = vpop.f32.mrb[20].mxu1  ;;  %v1608_v17 = vadd.f32 %v3960_v49, %v6043_v59  ;;  %v6119_v41 = vpop.permute.xlu0 %3024 }
 0x21d   : > { %v6065_v29 = vadd.f32 %v4052_v33, %v1592_v1  ;;  %v1744_v10 = vpop.f32.mrb[21].mxu1  ;;  %2177 = vrot.lane.b32.xlu1 %v6057_v30, %s4973_s12 }
 0x21e   : > { %v6070_v12 = vadd.f32 %v1744_v10, %v1584_v53  ;;  %v4053_v23 = vpop.f32.mrb[22].mxu1  ;;  %v1611_v22 = vadd.f32 %v3963_v38, %v6043_v59 }
 0x21f   : > { %v6073_v11 = vadd.f32 %v4053_v23, %v1595_v19  ;;  %v1747_v3 = vpop.f32.mrb[23].mxu1  ;;  %2187 = vrot.lane.b32.xlu0 %v6065_v29, %s4973_s12  ;;  %v6125_v19 = vpop.permute.xlu1 %3019 }
 0x220   : > { %v6077_v9 = vadd.f32 %v1747_v3, %v1587_v48  ;;  %v3964_v8 = vpop.f32.mrb[24].mxu0 }
 0x221   : > { %v3965_v55 = vpop.f32.mrb[25].mxu0  ;;  %2189 = vrot.lane.b32.xlu1 %v6073_v11, %s4973_s12 }
 0x222   : > { %v3966_v18 = vadd.f32 %v3965_v55, %v3964_v8  ;;  %v3967_v56 = vpop.f32.mrb[26].mxu0 }
 0x223   : > { %v3968_v4 = vpop.f32.mrb[27].mxu0  ;;  %2183 = vrot.lane.b32.xlu0 %v6070_v12, %s4973_s12 }
 0x224   : > { %v3969_v54 = vadd.f32 %v3968_v4, %v3967_v56  ;;  %v4056_v28 = vpop.f32.mrb[24].mxu1  ;;  %v1616_v63 = vadd.f32 %v3966_v18, %v6043_v59 }
 0x225   : > { %v6085_v60 = vadd.f32 %v4056_v28, %v1608_v17  ;;  %v1760_v6 = vpop.f32.mrb[25].mxu1  ;;  %2185 = vrot.lane.b32.xlu1 %v6077_v9, %s4973_s12  ;;  %v6135_v17 = vpop.permute.xlu0 %3034 }
 0x226   : > { %v6090_v39 = vadd.f32 %v1760_v6, %v1600_v15  ;;  %v4057_v14 = vpop.f32.mrb[26].mxu1  ;;  %v1619_v50 = vadd.f32 %v3969_v54, %v6043_v59  ;;  %7247 = vst [vmem:[#allocation7_spill] sm:$0xff] %v6135_v17  ;;  %v6143_v6 = vpop.permute.xlu1 %3029 }
 0x227   : > { %v6093_v58 = vadd.f32 %v4057_v14, %v1611_v22  ;;  %v1763_v16 = vpop.f32.mrb[27].mxu1  ;;  %2195 = vrot.lane.b32.xlu0 %v6085_v60, %s4973_s12  ;;  %7248 = vst [vmem:[#allocation8_spill] sm:$0xff] %v6143_v6 }
 0x228   : > { %v6097_v21 = vadd.f32 %v1763_v16, %v1603_v52  ;;  %v3970_v24 = vpop.f32.mrb[28].mxu0 }
 0x229   : > { %v3971_v57 = vpop.f32.mrb[29].mxu0  ;;  %2197 = vrot.lane.b32.xlu1 %v6093_v58, %s4973_s12 }
 0x22a   : > { %v3972_v37 = vadd.f32 %v3971_v57, %v3970_v24  ;;  %v3973_v7 = vpop.f32.mrb[30].mxu0 }
 0x22b   : > { %v3974_v34 = vpop.f32.mrb[31].mxu0  ;;  %2191 = vrot.lane.b32.xlu0 %v6090_v39, %s4973_s12 }
 0x22c   : > { %v3975_v2 = vadd.f32 %v3974_v34, %v3973_v7  ;;  %v1624_v61 = vadd.f32 %v3972_v37, %v6043_v59  ;;  %v4060_v40 = vpop.f32.mrb[28].mxu1  ;;  %v6147_v37 = vpop.permute.xlu0 %3044 }
 0x22d   : > { %v1776_v0 = vpop.f32.mrb[29].mxu1  ;;  %2193 = vrot.lane.b32.xlu1 %v6097_v21, %s4973_s12  ;;  %7249 = vst [vmem:[#allocation9_spill] sm:$0xff] %v6147_v37 }
 0x22e   : > { %v6111_v47 = vadd.f32 %v4060_v40, %v1624_v61  ;;  %v6113_v20 = vadd.f32 %v1776_v0, %v1616_v63  ;;  %v4061_v36 = vpop.f32.mrb[30].mxu1  ;;  %v1627_v51 = vadd.f32 %v3975_v2, %v6043_v59  ;;  %v6151_v40 = vpop.permute.xlu1 %3039 }
 0x22f   : > { %v1779_v49 = vpop.f32.mrb[31].mxu1  ;;  %7250 = vst [vmem:[#allocation10_spill] sm:$0xff] %v6151_v40 }
 0x230   : > { %v3976_v44 = vpop.f32.mrb[32].mxu0  ;;  %2199 = vrot.lane.b32.xlu0 %v6113_v20, %s4973_s12  ;;  %v6121_v1 = vadd.f32 %v4061_v36, %v1627_v51  ;;  %v6123_v38 = vadd.f32 %v1779_v49, %v1619_v50 }
 0x231   : > { %v3977_v33 = vpop.f32.mrb[33].mxu0 }
 0x232   : > { %v3978_v53 = vadd.f32 %v3977_v33, %v3976_v44  ;;  %v3979_v10 = vpop.f32.mrb[34].mxu0  ;;  %2201 = vrot.lane.b32.xlu1 %v6123_v38, %s4973_s12  ;;  %v6161_v33 = vpop.permute.xlu0 %3054 }
 0x233   : > { %v3980_v23 = vpop.f32.mrb[35].mxu0  ;;  %7251 = vst [vmem:[#allocation6_spill] sm:$0xff] %v6161_v33 }
 0x234   : > { %v3981_v48 = vadd.f32 %v3980_v23, %v3979_v10  ;;  %v4064_v3 = vpop.f32.mrb[32].mxu1  ;;  %2203 = vrot.lane.b32.xlu0 %v6111_v47, %s4973_s12  ;;  %v1632_v8 = vadd.f32 %v3978_v53, %v6043_v59  ;;  %v1672_v10 = vadd.f32 %v6028_v13, %v6043_v59 }
 0x235   : > { %v1792_v55 = vpop.f32.mrb[33].mxu1 }
 0x236   : > { %v6132_v18 = vadd.f32 %v1792_v55, %v1632_v8  ;;  %v4065_v56 = vpop.f32.mrb[34].mxu1  ;;  %v1635_v4 = vadd.f32 %v3981_v48, %v6043_v59  ;;  %2205 = vrot.lane.b32.xlu1 %v6121_v1, %s4973_s12  ;;  %v1664_v8 = vadd.f32 %v6024_v35, %v6043_v59  ;;  %v6168_v55 = vpop.permute.xlu1 %3049  ;;  %v1667_v35 = vadd.f32 %v6026_v26, %v6043_v59 }
 0x237   : > { %v1795_v54 = vpop.f32.mrb[35].mxu1  ;;  %7252 = vst [vmem:[#allocation5_spill] sm:$0xff] %v6168_v55 }
 0x238   : > { %v6139_v28 = vadd.f32 %v1795_v54, %v1635_v4  ;;  %v3982_v15 = vpop.f32.mrb[36].mxu0  ;;  %2207 = vrot.lane.b32.xlu0 %v6132_v18, %s4973_s12  ;;  %v1675_v54 = vadd.f32 %v6030_v62, %v6043_v59  ;;  %v6187_v62 = vpop.permute.xlu0 %3064 }
 0x239   : > { %v3983_v22 = vpop.f32.mrb[37].mxu0  ;;  %7253 = vst [vmem:[#allocation24_spill] sm:$0xff] %v6187_v62 }
 0x23a   : > { %v3985_v14 = vpop.f32.mrb[38].mxu0  ;;  %v3984_v52 = vadd.f32 %v3983_v22, %v3982_v15  ;;  %2209 = vrot.lane.b32.xlu1 %v6139_v28, %s4973_s12 }
 0x23b   : > { %v3986_v16 = vpop.f32.mrb[39].mxu0 }
 0x23c   : > { %v3987_v24 = vadd.f32 %v3986_v16, %v3985_v14  ;;  %v4068_v57 = vpop.f32.mrb[36].mxu1  ;;  %v1640_v7 = vadd.f32 %v3984_v52, %v6043_v59 }
 0x23d   : > { %v1808_v34 = vpop.f32.mrb[37].mxu1 }
 0x23e   : > { %v1643_v2 = vadd.f32 %v3987_v24, %v6043_v59  ;;  %v4069_v61 = vpop.f32.mrb[38].mxu1  ;;  %v6153_v63 = vadd.f32 %v4064_v3, %v1640_v7 }
 0x23f   : > { %v1811_v0 = vpop.f32.mrb[39].mxu1 }
 0x240   : > { %v6155_v36 = vadd.f32 %v4065_v56, %v1643_v2  ;;  %v3988_v51 = vpop.f32.mrb[40].mxu0  ;;  %2211 = vrot.lane.b32.xlu0 %v6153_v63, %s4973_s12 }
 0x241   : > { %v3989_v50 = vpop.f32.mrb[41].mxu0 }
 0x242   : > { %v3990_v49 = vadd.f32 %v3989_v50, %v3988_v51  ;;  %v3991_v44 = vpop.f32.mrb[42].mxu0  ;;  %2213 = vrot.lane.b32.xlu1 %v6155_v36, %s4973_s12  ;;  %v6193_v50 = vpop.permute.xlu1 %3059 }
 0x243   : > { %v3992_v53 = vpop.f32.mrb[43].mxu0  ;;  %7254 = vst [vmem:[#allocation13_spill] sm:$0xff] %v6193_v50 }
 0x244   : > { %v1648_v23 = vadd.f32 %v3990_v49, %v6043_v59  ;;  %v3993_v48 = vadd.f32 %v3992_v53, %v3991_v44  ;;  %v4072_v3 = vpop.f32.mrb[40].mxu1 }
 0x245   : > { %v6170_v56 = vadd.f32 %v4072_v3, %v1672_v10  ;;  %v1824_v4 = vpop.f32.mrb[41].mxu1  ;;  %v1680_v10 = vadd.f32 %v6032_v42, %v6043_v59  ;;  %v6213_v42 = vpop.permute.xlu0 %3074 }
 0x246   : > { %v6174_v15 = vadd.f32 %v1808_v34, %v1648_v23  ;;  %v1651_v22 = vadd.f32 %v3993_v48, %v6043_v59  ;;  %v6177_v13 = vadd.f32 %v1824_v4, %v1664_v8  ;;  %v4073_v14 = vpop.f32.mrb[42].mxu1  ;;  %v1691_v8 = vadd.f32 %v6038_v31, %v6043_v59  ;;  %7255 = vst [vmem:[#allocation31_spill] sm:$0xff] %v6213_v42 }
 0x247   : > { %v6179_v52 = vadd.f32 %v4073_v14, %v1675_v54  ;;  %v1827_v16 = vpop.f32.mrb[43].mxu1  ;;  %2227 = vrot.lane.b32.xlu0 %v6170_v56, %s4973_s12 }
 0x248   : > { %v6185_v24 = vadd.f32 %v1811_v0, %v1651_v22  ;;  %v3994_v7 = vpop.f32.mrb[44].mxu0  ;;  %v6189_v34 = vadd.f32 %v1827_v16, %v1667_v35  ;;  %v1688_v0 = vadd.f32 %v6036_v43, %v6043_v59  ;;  %v1683_v22 = vadd.f32 %v6034_v25, %v6043_v59 }
 0x249   : > { %v3995_v2 = vpop.f32.mrb[45].mxu0  ;;  %2229 = vrot.lane.b32.xlu1 %v6179_v52, %s4973_s12  ;;  %v6231_v25 = vpop.permute.xlu0 %3084 }
 0x24a   : > { %v3997_v51 = vpop.f32.mrb[46].mxu0  ;;  %v3996_v49 = vadd.f32 %v3995_v2, %v3994_v7  ;;  %v6225_v2 = vpop.permute.xlu1 %3069  ;;  %7257 = vst [vmem:[#allocation4_spill] sm:$0xff] %v6231_v25 }
 0x24b   : > { %v3998_v26 = vpop.f32.mrb[47].mxu0  ;;  %2223 = vrot.lane.b32.xlu0 %v6177_v13, %s4973_s12  ;;  %7256 = vst [vmem:[#allocation32_spill] sm:$0xff] %v6225_v2 }
 0x24c   : > { %v3999_v44 = vadd.f32 %v3998_v26, %v3997_v51  ;;  %v4076_v53 = vpop.f32.mrb[44].mxu1  ;;  %v1656_v23 = vadd.f32 %v3996_v49, %v6043_v59  ;;  %v6253_v49 = vld [vmem:[%s5039_s7] sm:$0xff]  }
 0x24d   : > { %v6202_v48 = vadd.f32 %v4076_v53, %v1688_v0  ;;  %v1840_v3 = vpop.f32.mrb[45].mxu1  ;;  %2225 = vrot.lane.b32.xlu1 %v6189_v34, %s4973_s12 }
 0x24e   : > { %v1659_v4 = vadd.f32 %v3999_v44, %v6043_v59  ;;  %v6209_v54 = vadd.f32 %v1840_v3, %v1680_v10  ;;  %v4077_v43 = vpop.f32.mrb[46].mxu1  ;;  %v6215_v14 = vadd.f32 %v4068_v57, %v1656_v23  ;;  %v6235_v59 = vpop.permute.xlu1 %3079  ;;  %v7144_v44 = vunpack.c.l.bf16 %v6253_v49 }
 0x24f   : > { %v6217_v35 = vadd.f32 %v4077_v43, %v1691_v8  ;;  %v1843_v16 = vpop.f32.mrb[47].mxu1  ;;  %2215 = vrot.lane.b32.xlu0 %v6174_v15, %s4973_s12  ;;  %7258 = vst [vmem:[#allocation3_spill] sm:$0xff] %v6235_v59  ;;  %v6241_v57 = vpop.permute.xlu0 %3094  ;;  %v7145_v8 = vunpack.c.h.bf16 %v6253_v49 }
 0x250   : > { %v6221_v31 = vadd.f32 %v4069_v61, %v1659_v4  ;;  %v6223_v7 = vadd.f32 %v1843_v16, %v1683_v22  ;;  %7259 = vst [vmem:[#allocation19_spill] sm:$0xff] %v6241_v57  ;;  %v6246_v61 = vld [vmem:[%s5039_s7 + $0x8] sm:$0xff]   ;;  %v1919_v3 = vadd.f32 %v7144_v44, %v6050_v5  ;;  %v6270_v4 = vld [vmem:[%s5039_s7 + $0x18] sm:$0xff]  }
 0x251   : > { %2217 = vrot.lane.b32.xlu1 %v6185_v24, %s4973_s12  ;;  %v7143_v26 = vunpack.c.l.bf16 %v6246_v61  ;;  %v7146_v23 = vunpack.c.h.bf16 %v6246_v61  ;;  %v1920_v5 = vadd.f32 %v7145_v8, %v6057_v30  ;;  %v7147_v44 = vunpack.c.l.bf16 %v6270_v4  ;;  %v6297_v8 = vld [vmem:[%s5039_s7 + $0x28] sm:$0xff]  }
 0x252   : > { %v6248_v51 = vpop.permute.xlu1 %3089  ;;  %v7287_v6 = vunpack.c.h.bf16 %v6246_v61  ;;  %v7290_v27 = vunpack.c.l.bf16 %v6270_v4 }
 0x253   : > { %2235 = vrot.lane.b32.xlu0 %v6202_v48, %s4973_s12  ;;  %7260 = vst [vmem:[#allocation26_spill] sm:$0xff] %v6248_v51  ;;  %v6256_v0 = vpop.permute.xlu0 %3104  ;;  %v1921_v10 = vadd.f32 %v7143_v26, %v6047_v45  ;;  %v1922_v16 = vadd.f32 %v7146_v23, %v6053_v46  ;;  %v3735_v26 = vmul.f32 -1.442695, %v1919_v3  ;;  %v3736_v46 = vmul.f32 -1.442695, %v1920_v5 }
 0x254   : > { %7261 = vst [vmem:[#allocation18_spill] sm:$0xff] %v6256_v0  ;;  %v6278_v0 = vld [vmem:[%s5039_s7 + $0x10] sm:$0xff]   ;;  %v1925_v3 = vadd.f32 %v7147_v44, %v6065_v29  ;;  %v7151_v29 = vunpack.c.l.bf16 %v6297_v8  ;;  %v6307_v44 = vld [vmem:[%s5039_s7 + $0x20] sm:$0xff]  }
 0x255   : > { %2237 = vrot.lane.b32.xlu1 %v6217_v35, %s4973_s12  ;;  %v3737_v22 = vmul.f32 -1.442695, %v1921_v10  ;;  %v3738_v10 = vmul.f32 -1.442695, %v1922_v16 }
 0x256   : > { %v6259_v53 = vpop.permute.xlu1 %3099  ;;  %v3741_v16 = vmul.f32 -1.442695, %v1925_v3  ;;  %v7153_v3 = vunpack.c.l.bf16 %v6307_v44 }
 0x257   : > { %2231 = vrot.lane.b32.xlu0 %v6209_v54, %s4973_s12  ;;  %7262 = vst [vmem:[#allocation25_spill] sm:$0xff] %v6259_v53  ;;  %v6272_v43 = vpop.permute.xlu0 %3114  ;;  %v7148_v53 = vunpack.c.l.bf16 %v6278_v0  ;;  %4639 = vpow2.f32 %v3737_v22 }
 0x258   : > { %7263 = vst [vmem:[#allocation15_spill] sm:$0xff] %v6272_v43  ;;  %v7149_v43 = vunpack.c.h.bf16 %v6270_v4  ;;  %4641 = vpow2.f32 %v3735_v26  ;;  %v7150_v26 = vunpack.c.h.bf16 %v6278_v0 }
 0x259   : > { %2233 = vrot.lane.b32.xlu1 %v6223_v7, %s4973_s12  ;;  %v1923_v30 = vadd.f32 %v7148_v53, %v6070_v12  ;;  %4643 = vpow2.f32 %v3738_v10 }
 0x25a   : > { %v6280_v45 = vpop.permute.xlu1 %3109  ;;  %v1926_v22 = vadd.f32 %v7149_v43, %v6073_v11  ;;  %4645 = vpow2.f32 %v3736_v46  ;;  %v1924_v10 = vadd.f32 %v7150_v26, %v6077_v9  ;;  %v1929_v46 = vadd.f32 %v7151_v29, %v6085_v60 }
 0x25b   : > { %2219 = vrot.lane.b32.xlu0 %v6215_v14, %s4973_s12  ;;  %7264 = vst [vmem:[#allocation21_spill] sm:$0xff] %v6280_v45  ;;  %v6288_v57 = vpop.permute.xlu0 %3124  ;;  %v3739_v5 = vmul.f32 -1.442695, %v1923_v30  ;;  %4647 = vpow2.f32 %v3741_v16  ;;  %v6322_v30 = vld [vmem:[%s5039_s7 + $0x30] sm:$0xff]   ;;  %v7154_v26 = vunpack.c.h.bf16 %v6307_v44 }
 0x25c   : > { %7265 = vst [vmem:[#allocation28_spill] sm:$0xff] %v6288_v57  ;;  %v3742_v53 = vmul.f32 -1.442695, %v1926_v22  ;;  %v7152_v57 = vunpack.c.h.bf16 %v6297_v8  ;;  %v3745_v29 = vmul.f32 -1.442695, %v1929_v46  ;;  %v7271_v46 = vunpack.c.l.bf16 %v6322_v30 }
 0x25d   : > { %2221 = vrot.lane.b32.xlu1 %v6221_v31, %s4973_s12  ;;  %4649 = vpow2.f32 %v3739_v5  ;;  %v1927_v5 = vadd.f32 %v7153_v3, %v6090_v39 }
 0x25e   : > { %v6299_v23 = vpop.permute.xlu1 %3119  ;;  %4651 = vpow2.f32 %v3742_v53  ;;  %v1930_v9 = vadd.f32 %v7152_v57, %v6093_v58  ;;  %v6340_v57 = vld [vmem:[%s5039_s7 + $0x38] sm:$0xff]  }
 0x25f   : > { %7266 = vst [vmem:[#allocation14_spill] sm:$0xff] %v6299_v23  ;;  %v6309_v12 = vpop.permute.xlu0 %3134  ;;  %v3740_v23 = vmul.f32 -1.442695, %v1924_v10  ;;  %v3743_v39 = vmul.f32 -1.442695, %v1927_v5 }
 0x260   : > { %7267 = vst [vmem:[#allocation20_spill] sm:$0xff] %v6309_v12  ;;  %v3746_v58 = vmul.f32 -1.442695, %v1930_v9  ;;  %v6348_v9 = vld [vmem:[%s5039_s7 + $0x40] sm:$0xff]  }
 0x261   : > { %v4640_v43 = vpop.eup %4639  ;;  %4653 = vpow2.f32 %v3740_v23  ;;  %v7156_v23 = vunpack.c.l.bf16 %v6340_v57 }
 0x262   : > { %v6315_v11 = vpop.permute.xlu1 %3129  ;;  %v4642_v22 = vpop.eup %4641  ;;  %v2049_v16 = vadd.f32 1.0, %v4640_v43  ;;  %v1928_v43 = vadd.f32 %v7154_v26, %v6097_v21 }
 0x263   : > { %7268 = vst [vmem:[#allocation27_spill] sm:$0xff] %v6315_v11  ;;  %v6329_v12 = vpop.permute.xlu0 %3144  ;;  %v4644_v60 = vpop.eup %4643  ;;  %v2047_v53 = vadd.f32 1.0, %v4642_v22  ;;  %v7155_v22 = vunpack.c.h.bf16 %v6322_v30 }
 0x264   : > { %7269 = vst [vmem:[#allocation17_spill] sm:$0xff] %v6329_v12  ;;  %v4646_v11 = vpop.eup %4645  ;;  %4655 = vrcp.f32 %v2049_v16  ;;  %v2050_v45 = vadd.f32 1.0, %v4644_v60  ;;  %v1931_v12 = vadd.f32 %v7271_v46, %v6113_v20  ;;  %v3744_v16 = vmul.f32 -1.442695, %v1928_v43 }
 0x265   : > { %4657 = vpow2.f32 %v3745_v29  ;;  %v2048_v3 = vadd.f32 1.0, %v4646_v11  ;;  %v4648_v21 = vpop.eup %4647  ;;  %v7157_v60 = vunpack.c.h.bf16 %v6340_v57  ;;  %v1932_v11 = vadd.f32 %v7155_v22, %v6123_v38 }
 0x266   : > { %v6334_v10 = vpop.permute.xlu1 %3139  ;;  %4659 = vrcp.f32 %v2047_v53  ;;  %v3747_v20 = vmul.f32 -1.442695, %v1931_v12  ;;  %v7158_v53 = vunpack.c.l.bf16 %v6348_v9  ;;  %v2053_v46 = vadd.f32 1.0, %v4648_v21 }
 0x267   : > { %7270 = vst [vmem:[#allocation23_spill] sm:$0xff] %v6334_v10  ;;  %v6350_v10 = vpop.permute.xlu0 %3154  ;;  %4661 = vpow2.f32 %v3746_v58  ;;  %v4650_v26 = vpop.eup %4649  ;;  %v1933_v58 = vadd.f32 %v7156_v23, %v6111_v47  ;;  %v3748_v22 = vmul.f32 -1.442695, %v1932_v11  ;;  %v7159_v21 = vunpack.c.h.bf16 %v6348_v9 }
 0x268   : > { %7272 = vst [vmem:[#allocation30_spill] sm:$0xff] %v6350_v10  ;;  %4663 = vrcp.f32 %v2050_v45  ;;  %v4652_v5 = vpop.eup %4651  ;;  %v2051_v43 = vadd.f32 1.0, %v4650_v26  ;;  %v1934_v45 = vadd.f32 %v7157_v60, %v6121_v1 }
 0x269   : > { %4665 = vpow2.f32 %v3743_v39  ;;  %v2054_v12 = vadd.f32 1.0, %v4652_v5  ;;  %v3749_v26 = vmul.f32 -1.442695, %v1933_v58 }
 0x26a   : > { %v6353_v29 = vpop.permute.xlu1 %3149  ;;  %4667 = vrcp.f32 %v2048_v3  ;;  %v1935_v3 = vadd.f32 %v7158_v53, %v6132_v18  ;;  %v3750_v1 = vmul.f32 -1.442695, %v1934_v45 }
 0x26b   : > { %7273 = vst [vmem:[#allocation16_spill] sm:$0xff] %v6353_v29  ;;  %4669 = vpow2.f32 %v3744_v16  ;;  %v6365_v39 = vpop.permute.xlu0 %3164  ;;  %v4654_v38 = vpop.eup %4653 }
 0x26c   : > { %4671 = vpow2.f32 %v3747_v20  ;;  %7274 = vst [vmem:[#allocation22_spill] sm:$0xff] %v6365_v39  ;;  %v6376_v20 = vld [vmem:[%s5039_s7 + $0x48] sm:$0xff]   ;;  %v2052_v11 = vadd.f32 1.0, %v4654_v38  ;;  %v3751_v18 = vmul.f32 -1.442695, %v1935_v3 }
 0x26d   : > { %4673 = vrcp.f32 %v2053_v46  ;;  %v1936_v46 = vadd.f32 %v7159_v21, %v6139_v28  ;;  %v7160_v45 = vunpack.c.l.bf16 %v6376_v20 }
 0x26e   : > { %v6371_v47 = vpop.eup %4655  ;;  %v6373_v16 = vpop.permute.xlu1 %3159  ;;  %4675 = vrcp.f32 %v2051_v43 }
 0x26f   : > { %7275 = vst [vmem:[#allocation29_spill] sm:$0xff] %v6373_v16  ;;  %v4658_v23 = vpop.eup %4657  ;;  %4677 = vrcp.f32 %v2054_v12 }
 0x270   : > { %v6378_v5 = vpop.eup %4659  ;;  %4679 = vpow2.f32 %v3748_v22  ;;  %v2057_v43 = vadd.f32 1.0, %v4658_v23  ;;  %v3752_v23 = vmul.f32 -1.442695, %v1936_v46 }
 0x271   : > { %v4662_v10 = vpop.eup %4661  ;;  %4681 = vpow2.f32 %v3749_v26 }
 0x272   : > { %v6384_v53 = vpop.eup %4663  ;;  %4683 = vpow2.f32 %v3750_v1  ;;  %v2058_v28 = vadd.f32 1.0, %v4662_v10  ;;  %v7276_v10 = vunpack.c.h.bf16 %v6376_v20 }
 0x273   : > { %v4666_v39 = vpop.eup %4665  ;;  %4685 = vrcp.f32 %v2052_v11 }
 0x274   : > { %v6390_v38 = vpop.eup %4667  ;;  %4687 = vpow2.f32 %v3751_v18  ;;  %v2055_v21 = vadd.f32 1.0, %v4666_v39  ;;  %v1938_v11 = vadd.f32 %v7276_v10, %v6155_v36 }
 0x275   : > { %v4670_v3 = vpop.eup %4669  ;;  %4689 = vrcp.f32 %v2057_v43 }
 0x276   : > { %v4672_v1 = vpop.eup %4671  ;;  %4691 = vrcp.f32 %v2058_v28  ;;  %v2056_v39 = vadd.f32 1.0, %v4670_v3  ;;  %v3754_v3 = vmul.f32 -1.442695, %v1938_v11 }
 0x277   : > { %v6405_v46 = vpop.eup %4673  ;;  %4693 = vpow2.f32 %v3752_v23 }
 0x278   : > { %4695 = vrcp.f32 %v2055_v21 }
 0x279   : > { %4697 = vrcp.f32 %v2056_v39 }
 0x289   : > { %v2180_v60 = vpop.permute.xlu0 %2179 }
 0x28a   : > { %v2273_v58 = vmul.f32 %v6371_v47, %v2180_v60 }
 0x28b   : > { %v2182_v29 = vpop.permute.xlu1 %2181 }
 0x28c   : > { %v2274_v22 = vmul.f32 %v6384_v53, %v2182_v29  ;;  %2339 = vrot.lane.b32.xlu0 %v2273_v58, %s4973_s12  ;;  %v1937_v29 = vadd.f32 %v7160_v45, %v6153_v63  ;;  %v6398_v58 = vld [vmem:[%s5039_s7 + $0x68] sm:$0xff]   ;;  %v2059_v63 = vadd.f32 1.0, %v4672_v1 }
 0x28d   : > { %v2176_v60 = vpop.permute.xlu0 %2175 }
 0x28e   : > { %v2271_v26 = vmul.f32 %v6378_v5, %v2176_v60  ;;  %2341 = vrot.lane.b32.xlu1 %v2274_v22, %s4973_s12  ;;  %v6407_v22 = vpop.eup %4675  ;;  %v7161_v60 = vunpack.c.l.bf16 %v6398_v58  ;;  %4699 = vrcp.f32 %v2059_v63 }
 0x28f   : > { %v2178_v12 = vpop.permute.xlu1 %2177  ;;  %v6412_v36 = vpop.eup %4677 }
 0x290   : > { %v2272_v18 = vmul.f32 %v6390_v38, %v2178_v12  ;;  %2335 = vrot.lane.b32.xlu0 %v2271_v26, %s4973_s12  ;;  %v3753_v12 = vmul.f32 -1.442695, %v1937_v29  ;;  %v6415_v26 = vld [vmem:[%s5039_s7 + $0x60] sm:$0xff]   ;;  %v4680_v28 = vpop.eup %4679  ;;  %v1945_v21 = vadd.f32 %v7161_v60, %v6170_v56  ;;  %v7277_v56 = vunpack.c.h.bf16 %v6398_v58 }
 0x291   : > { %v2188_v43 = vpop.permute.xlu0 %2187  ;;  %v4682_v1 = vpop.eup %4681  ;;  %v7278_v39 = vunpack.c.l.bf16 %v6415_v26  ;;  %v7279_v29 = vunpack.c.h.bf16 %v6415_v26 }
 0x292   : > { %v2277_v45 = vmul.f32 %v6405_v46, %v2188_v43  ;;  %2337 = vrot.lane.b32.xlu1 %v2272_v18, %s4973_s12  ;;  %v4684_v18 = vpop.eup %4683  ;;  %4701 = vpow2.f32 %v3753_v12  ;;  %v2061_v25 = vadd.f32 1.0, %v4682_v1  ;;  %v1946_v60 = vadd.f32 %v7277_v56, %v6179_v52 }
 0x293   : > { %v2190_v10 = vpop.permute.xlu1 %2189  ;;  %v6426_v16 = vpop.eup %4685  ;;  %4703 = vpow2.f32 %v3754_v3  ;;  %v2062_v12 = vadd.f32 1.0, %v4684_v18  ;;  %v3761_v59 = vmul.f32 -1.442695, %v1945_v21  ;;  %v1943_v1 = vadd.f32 %v7278_v39, %v6177_v13  ;;  %v6444_v3 = vld [vmem:[%s5039_s7 + $0x78] sm:$0xff]  }
 0x294   : > { %v2278_v23 = vmul.f32 %v6412_v36, %v2190_v10  ;;  %2347 = vrot.lane.b32.xlu0 %v2277_v45, %s4973_s12  ;;  %v2060_v10 = vadd.f32 1.0, %v4680_v28  ;;  %v6429_v45 = vld [vmem:[%s5039_s7 + $0x50] sm:$0xff]   ;;  %v4688_v51 = vpop.eup %4687  ;;  %v3762_v21 = vmul.f32 -1.442695, %v1946_v60  ;;  %v1944_v13 = vadd.f32 %v7279_v29, %v6189_v34 }
 0x295   : > { %v2184_v43 = vpop.permute.xlu0 %2183  ;;  %v3759_v60 = vmul.f32 -1.442695, %v1943_v1  ;;  %v7281_v29 = vunpack.c.h.bf16 %v6429_v45 }
 0x296   : > { %v2275_v11 = vmul.f32 %v6407_v22, %v2184_v43  ;;  %2349 = vrot.lane.b32.xlu1 %v2278_v23, %s4973_s12  ;;  %v6437_v23 = vpop.eup %4689  ;;  %4705 = vrcp.f32 %v2060_v10 }
 0x297   : > { %v2186_v63 = vpop.permute.xlu1 %2185  ;;  %v6448_v52 = vpop.eup %4691  ;;  %4707 = vrcp.f32 %v2061_v25 }
 0x298   : > { %v2276_v43 = vmul.f32 %v6426_v16, %v2186_v63  ;;  %2343 = vrot.lane.b32.xlu0 %v2275_v11, %s4973_s12  ;;  %v2063_v11 = vadd.f32 1.0, %v4688_v51  ;;  %v4694_v56 = vpop.eup %4693  ;;  %4709 = vrcp.f32 %v2062_v12  ;;  %v1940_v12 = vadd.f32 %v7281_v29, %v6185_v24 }
 0x299   : > { %v2196_v28 = vpop.permute.xlu0 %2195  ;;  %4711 = vpow2.f32 %v3761_v59  ;;  %v7162_v59 = vunpack.c.h.bf16 %v6444_v3  ;;  %v7282_v24 = vunpack.c.l.bf16 %v6444_v3 }
 0x29a   : > { %v2281_v42 = vmul.f32 %v6437_v23, %v2196_v28  ;;  %2345 = vrot.lane.b32.xlu1 %v2276_v43, %s4973_s12  ;;  %v6456_v43 = vpop.eup %4695  ;;  %v7280_v28 = vunpack.c.l.bf16 %v6429_v45  ;;  %4713 = vrcp.f32 %v2063_v11 }
 0x29b   : > { %v2198_v63 = vpop.permute.xlu1 %2197  ;;  %v6464_v34 = vpop.eup %4697  ;;  %4715 = vpow2.f32 %v3762_v21 }
 0x29c   : > { %v2282_v39 = vmul.f32 %v6448_v52, %v2198_v63  ;;  %2355 = vrot.lane.b32.xlu0 %v2281_v42, %s4973_s12  ;;  %v1939_v25 = vadd.f32 %v7280_v28, %v6174_v15  ;;  %v2064_v42 = vadd.f32 1.0, %v4694_v56  ;;  %v6470_v63 = vld [vmem:[%s5039_s7 + $0x70] sm:$0xff]   ;;  %v6472_v2 = vpop.eup %4699  ;;  %v3760_v15 = vmul.f32 -1.442695, %v1944_v13 }
 0x29d   : > { %v2192_v10 = vpop.permute.xlu0 %2191  ;;  %4717 = vpow2.f32 %v3759_v60  ;;  %v1949_v28 = vadd.f32 %v7282_v24, %v6202_v48  ;;  %v3756_v13 = vmul.f32 -1.442695, %v1940_v12  ;;  %v7163_v60 = vunpack.c.h.bf16 %v6470_v63 }
 0x29e   : > { %v2279_v18 = vmul.f32 %v6456_v43, %v2192_v10  ;;  %2357 = vrot.lane.b32.xlu1 %v2282_v39, %s4973_s12  ;;  %v4702_v39 = vpop.eup %4701  ;;  %v3755_v56 = vmul.f32 -1.442695, %v1939_v25  ;;  %v6478_v10 = vld [vmem:[%s5039_s7 + $0x58] sm:$0xff]   ;;  %4719 = vrcp.f32 %v2064_v42  ;;  %v1950_v25 = vadd.f32 %v7162_v59, %v6217_v35 }
 0x29f   : > { %v2194_v51 = vpop.permute.xlu1 %2193  ;;  %v4704_v11 = vpop.eup %4703  ;;  %4721 = vpow2.f32 %v3760_v15  ;;  %v3765_v12 = vmul.f32 -1.442695, %v1949_v28  ;;  %v7283_v15 = vunpack.c.l.bf16 %v6470_v63 }
 0x2a0   : > { %v2280_v1 = vmul.f32 %v6464_v34, %v2194_v51  ;;  %2351 = vrot.lane.b32.xlu0 %v2279_v18, %s4973_s12  ;;  %v2065_v18 = vadd.f32 1.0, %v4702_v39  ;;  %v6490_v33 = vpop.eup %4705  ;;  %v2066_v48 = vadd.f32 1.0, %v4704_v11  ;;  %4723 = vpow2.f32 %v3755_v56 }
 0x2a1   : > { %v6494_v42 = vpop.eup %4707  ;;  %4725 = vpow2.f32 %v3756_v13  ;;  %v3766_v24 = vmul.f32 -1.442695, %v1950_v25  ;;  %v1948_v56 = vadd.f32 %v7163_v60, %v6223_v7  ;;  %v7284_v13 = vunpack.c.l.bf16 %v6478_v10 }
 0x2a2   : > { %2353 = vrot.lane.b32.xlu1 %v2280_v1, %s4973_s12  ;;  %v2200_v21 = vpop.permute.xlu0 %2199  ;;  %v1947_v1 = vadd.f32 %v7283_v15, %v6209_v54  ;;  %4727 = vrcp.f32 %v2065_v18 }
 0x2a3   : > { %v2283_v51 = vmul.f32 %v6472_v2, %v2200_v21  ;;  %v6500_v21 = vpop.eup %4709  ;;  %4729 = vrcp.f32 %v2066_v48  ;;  %v1941_v18 = vadd.f32 %v7284_v13, %v6215_v14  ;;  %v7285_v48 = vunpack.c.h.bf16 %v6478_v10 }
 0x2a4   : > { %v2202_v29 = vpop.permute.xlu1 %2201  ;;  %v4712_v59 = vpop.eup %4711  ;;  %4731 = vpow2.f32 %v3765_v12  ;;  %v3763_v15 = vmul.f32 -1.442695, %v1947_v1 }
 0x2a5   : > { %2359 = vrot.lane.b32.xlu0 %v2283_v51, %s4973_s12  ;;  %v2284_v35 = vmul.f32 %v6490_v33, %v2202_v29  ;;  %v6508_v54 = vpop.eup %4713  ;;  %v2073_v51 = vadd.f32 1.0, %v4712_v59  ;;  %v1942_v60 = vadd.f32 %v7285_v48, %v6221_v31  ;;  %4733 = vpow2.f32 %v3766_v24 }
 0x2a6   : > { %v2204_v39 = vpop.permute.xlu0 %2203  ;;  %v4716_v29 = vpop.eup %4715  ;;  %4735 = vpow2.f32 %v3763_v15 }
 0x2a7   : > { %v2285_v11 = vmul.f32 %v6494_v42, %v2204_v39  ;;  %2361 = vrot.lane.b32.xlu1 %v2284_v35, %s4973_s12  ;;  %v4718_v35 = vpop.eup %4717  ;;  %v2074_v14 = vadd.f32 1.0, %v4716_v29  ;;  %4737 = vrcp.f32 %v2073_v51  ;;  %v3758_v62 = vmul.f32 -1.442695, %v1942_v60 }
 0x2a8   : > { %v2206_v28 = vpop.permute.xlu1 %2205  ;;  %v6520_v55 = vpop.eup %4719  ;;  %v2071_v13 = vadd.f32 1.0, %v4718_v35 }
 0x2a9   : > { %2363 = vrot.lane.b32.xlu0 %v2285_v11, %s4973_s12  ;;  %v2286_v25 = vmul.f32 %v6500_v21, %v2206_v28  ;;  %v3764_v11 = vmul.f32 -1.442695, %v1948_v56  ;;  %v4722_v1 = vpop.eup %4721  ;;  %v3757_v28 = vmul.f32 -1.442695, %v1941_v18 }
 0x2aa   : > { %v2208_v39 = vpop.permute.xlu0 %2207  ;;  %v2072_v24 = vadd.f32 1.0, %v4722_v1 }
 0x2ab   : > { %v2287_v7 = vmul.f32 %v6508_v54, %v2208_v39  ;;  %2365 = vrot.lane.b32.xlu1 %v2286_v25, %s4973_s12  ;;  %v4724_v39 = vpop.eup %4723  ;;  %4739 = vpow2.f32 %v3764_v11 }
 0x2ac   : > { %v2210_v12 = vpop.permute.xlu1 %2209  ;;  %v4726_v31 = vpop.eup %4725  ;;  %4741 = vrcp.f32 %v2074_v14  ;;  %v2067_v25 = vadd.f32 1.0, %v4724_v39 }
 0x2ad   : > { %2367 = vrot.lane.b32.xlu0 %v2287_v7, %s4973_s12  ;;  %v2288_v59 = vmul.f32 %v6520_v55, %v2210_v12  ;;  %v6525_v56 = vpop.eup %4727  ;;  %4743 = vpow2.f32 %v3757_v28  ;;  %v2068_v60 = vadd.f32 1.0, %v4726_v31 }
 0x2ae   : > { %v6527_v29 = vpop.eup %4729  ;;  %4745 = vrcp.f32 %v2071_v13 }
 0x2af   : > { %2369 = vrot.lane.b32.xlu1 %v2288_v59, %s4973_s12  ;;  %v4732_v15 = vpop.eup %4731  ;;  %4747 = vpow2.f32 %v3758_v62 }
 0x2b0   : > { %4749 = vrcp.f32 %v2072_v24  ;;  %v4734_v48 = vpop.eup %4733  ;;  %v2077_v11 = vadd.f32 1.0, %v4732_v15 }
 0x2b1   : > { %4751 = vrcp.f32 %v2067_v25  ;;  %v4736_v14 = vpop.eup %4735  ;;  %v2078_v1 = vadd.f32 1.0, %v4734_v48 }
 0x2b2   : > { %v2212_v18 = vpop.permute.xlu0 %2211  ;;  %v6533_v12 = vpop.eup %4737  ;;  %4753 = vrcp.f32 %v2068_v60  ;;  %v2075_v39 = vadd.f32 1.0, %v4736_v14 }
 0x2b3   : > { %v2289_v51 = vmul.f32 %v6525_v56, %v2212_v18  ;;  %4755 = vrcp.f32 %v2077_v11 }
 0x2b4   : > { %v2214_v7 = vpop.permute.xlu1 %2213  ;;  %4757 = vrcp.f32 %v2078_v1 }
 0x2b5   : > { %v2290_v35 = vmul.f32 %v6527_v29, %v2214_v7  ;;  %2371 = vrot.lane.b32.xlu0 %v2289_v51, %s4973_s12  ;;  %v4740_v28 = vpop.eup %4739  ;;  %4759 = vrcp.f32 %v2075_v39 }
 0x2b6   : > { %v6536_v13 = vpop.eup %4741  ;;  %v2076_v15 = vadd.f32 1.0, %v4740_v28 }
 0x2b7   : > { %2373 = vrot.lane.b32.xlu1 %v2290_v35, %s4973_s12  ;;  %v4744_v24 = vpop.eup %4743 }
 0x2b8   : > { %v6540_v18 = vpop.eup %4745  ;;  %v2069_v48 = vadd.f32 1.0, %v4744_v24  ;;  %4761 = vrcp.f32 %v2076_v15 }
 0x2b9   : > { %v2228_v62 = vpop.permute.xlu0 %2227  ;;  %v4748_v7 = vpop.eup %4747 }
 0x2ba   : > { %v2297_v59 = vmul.f32 %v6533_v12, %v2228_v62  ;;  %v6544_v35 = vpop.eup %4749  ;;  %4763 = vrcp.f32 %v2069_v48 }
 0x2bb   : > { %v2230_v31 = vpop.permute.xlu1 %2229  ;;  %v6548_v62 = vpop.eup %4751 }
 0x2bc   : > { %v2298_v25 = vmul.f32 %v6536_v13, %v2230_v31  ;;  %2387 = vrot.lane.b32.xlu0 %v2297_v59, %s4973_s12  ;;  %v2070_v59 = vadd.f32 1.0, %v4748_v7  ;;  %v6552_v31 = vpop.eup %4753 }
 0x2bd   : > { %v2224_v51 = vpop.permute.xlu0 %2223  ;;  %v6556_v24 = vpop.eup %4755 }
 0x2be   : > { %v2295_v60 = vmul.f32 %v6540_v18, %v2224_v51  ;;  %2389 = vrot.lane.b32.xlu1 %v2298_v25, %s4973_s12  ;;  %4765 = vrcp.f32 %v2070_v59  ;;  %v6560_v15 = vpop.eup %4757 }
 0x2bf   : > { %v2226_v11 = vpop.permute.xlu1 %2225  ;;  %v6564_v48 = vpop.eup %4759 }
 0x2c0   : > { %v2296_v14 = vmul.f32 %v6544_v35, %v2226_v11  ;;  %2383 = vrot.lane.b32.xlu0 %v2295_v60, %s4973_s12 }
 0x2c1   : > { %v2216_v1 = vpop.permute.xlu0 %2215 }
 0x2c2   : > { %v2291_v28 = vmul.f32 %v6548_v62, %v2216_v1  ;;  %2385 = vrot.lane.b32.xlu1 %v2296_v14, %s4973_s12  ;;  %v6568_v59 = vpop.eup %4761 }
 0x2c3   : > { %v2218_v25 = vpop.permute.xlu1 %2217 }
 0x2c4   : > { %v2292_v39 = vmul.f32 %v6552_v31, %v2218_v25  ;;  %2375 = vrot.lane.b32.xlu0 %v2291_v28, %s4973_s12 }
 0x2c5   : > { %v2236_v51 = vpop.permute.xlu0 %2235 }
 0x2c6   : > { %v2301_v7 = vmul.f32 %v6556_v24, %v2236_v51  ;;  %2377 = vrot.lane.b32.xlu1 %v2292_v39, %s4973_s12  ;;  %v6572_v39 = vpop.eup %4763 }
 0x2c7   : > { %v2238_v60 = vpop.permute.xlu1 %2237 }
 0x2c8   : > { %v2302_v11 = vmul.f32 %v6560_v15, %v2238_v60  ;;  %2395 = vrot.lane.b32.xlu0 %v2301_v7, %s4973_s12  ;;  %v6576_v7 = vpop.eup %4765 }
 0x2c9   : > { %v2232_v14 = vpop.permute.xlu0 %2231 }
 0x2ca   : > { %v2299_v1 = vmul.f32 %v6564_v48, %v2232_v14  ;;  %2397 = vrot.lane.b32.xlu1 %v2302_v11, %s4973_s12 }
 0x2cb   : > { %v2234_v28 = vpop.permute.xlu1 %2233 }
 0x2cc   : > { %v2300_v25 = vmul.f32 %v6568_v59, %v2234_v28  ;;  %2391 = vrot.lane.b32.xlu0 %v2299_v1, %s4973_s12  ;;  %v7286_v28 = vunpack.c.l.bf16 %v6246_v61  ;;  %v7291_v61 = vunpack.c.h.bf16 %v6270_v4 }
 0x2cd   : > { %v2220_v51 = vpop.permute.xlu0 %2219 }
 0x2ce   : > { %v2293_v60 = vmul.f32 %v6572_v39, %v2220_v51  ;;  %2393 = vrot.lane.b32.xlu1 %v2300_v25, %s4973_s12  ;;  %v7288_v25 = vunpack.c.l.bf16 %v6253_v49 }
 0x2cf   : > { %v2222_v50 = vpop.permute.xlu1 %2221 }
 0x2d0   : > { %v2294_v14 = vmul.f32 %v6576_v7, %v2222_v50  ;;  %2379 = vrot.lane.b32.xlu0 %v2293_v60, %s4973_s12  ;;  %v7289_v50 = vunpack.c.h.bf16 %v6253_v49 }
 0x2d2   : > { %2381 = vrot.lane.b32.xlu1 %v2294_v14, %s4973_s12 }
 0x2fe   : > { %v2340_v11 = vpop.permute.xlu0 %2339 }
 0x2ff   : > { %v2433_v1 = vadd.f32 %v7286_v28, %v2340_v11 }
 0x300   : > { %v2342_v17 = vpop.permute.xlu1 %2341 }
 0x301   : > { %4767 = vtanh.f32 %v2433_v1  ;;  %v2434_v51 = vadd.f32 %v7287_v6, %v2342_v17 }
 0x302   : > { %v2336_v37 = vpop.permute.xlu0 %2335 }
 0x303   : > { %4769 = vtanh.f32 %v2434_v51  ;;  %v2431_v40 = vadd.f32 %v7288_v25, %v2336_v37  ;;  %v7292_v37 = vunpack.c.l.bf16 %v6278_v0 }
 0x304   : > { %v2338_v32 = vpop.permute.xlu1 %2337 }
 0x305   : > { %4771 = vtanh.f32 %v2431_v40  ;;  %v2432_v60 = vadd.f32 %v7289_v50, %v2338_v32  ;;  %v7294_v50 = vunpack.c.l.bf16 %v6297_v8 }
 0x306   : > { %v2348_v14 = vpop.permute.xlu0 %2347 }
 0x307   : > { %4773 = vtanh.f32 %v2432_v60  ;;  %v2437_v11 = vadd.f32 %v7290_v27, %v2348_v14  ;;  %v7293_v27 = vunpack.c.h.bf16 %v6278_v0  ;;  %v7295_v0 = vunpack.c.h.bf16 %v6297_v8 }
 0x308   : > { %v2350_v28 = vpop.permute.xlu1 %2349  ;;  %v7297_v8 = vunpack.c.h.bf16 %v6307_v44 }
 0x309   : > { %4775 = vtanh.f32 %v2437_v11  ;;  %v2438_v17 = vadd.f32 %v7291_v61, %v2350_v28 }
 0x30a   : > { %v2344_v6 = vpop.permute.xlu0 %2343 }
 0x30b   : > { %v6593_v1 = vpop.eup %4767  ;;  %4777 = vtanh.f32 %v2438_v17  ;;  %v2435_v40 = vadd.f32 %v7292_v37, %v2344_v6  ;;  %v7296_v6 = vunpack.c.l.bf16 %v6307_v44 }
 0x30c   : > { %v2346_v51 = vpop.permute.xlu1 %2345  ;;  %2531 = vrot.lane.b32.xlu0 %v6593_v1, %s4973_s12 }
 0x30d   : > { %v6599_v32 = vpop.eup %4769  ;;  %4779 = vtanh.f32 %v2435_v40  ;;  %v2436_v49 = vadd.f32 %v7293_v27, %v2346_v51 }
 0x30e   : > { %2533 = vrot.lane.b32.xlu1 %v6599_v32, %s4973_s12  ;;  %v2356_v4 = vpop.permute.xlu0 %2355 }
 0x30f   : > { %v6605_v25 = vpop.eup %4771  ;;  %4781 = vtanh.f32 %v2436_v49  ;;  %v2441_v60 = vadd.f32 %v7294_v50, %v2356_v4  ;;  %v7298_v50 = vunpack.c.l.bf16 %v6322_v30 }
 0x310   : > { %v2358_v14 = vpop.permute.xlu1 %2357  ;;  %2527 = vrot.lane.b32.xlu0 %v6605_v25, %s4973_s12 }
 0x311   : > { %v6611_v11 = vpop.eup %4773  ;;  %4783 = vtanh.f32 %v2441_v60  ;;  %v2442_v28 = vadd.f32 %v7295_v0, %v2358_v14 }
 0x312   : > { %2529 = vrot.lane.b32.xlu1 %v6611_v11, %s4973_s12  ;;  %v2352_v61 = vpop.permute.xlu0 %2351 }
 0x313   : > { %v6617_v17 = vpop.eup %4775  ;;  %4785 = vtanh.f32 %v2442_v28  ;;  %v2439_v37 = vadd.f32 %v7296_v6, %v2352_v61  ;;  %v7299_v28 = vunpack.c.h.bf16 %v6322_v30  ;;  %v7301_v30 = vunpack.c.h.bf16 %v6340_v57 }
 0x314   : > { %v2354_v40 = vpop.permute.xlu1 %2353  ;;  %2539 = vrot.lane.b32.xlu0 %v6617_v17, %s4973_s12 }
 0x315   : > { %v6623_v51 = vpop.eup %4777  ;;  %4787 = vtanh.f32 %v2439_v37  ;;  %v2440_v27 = vadd.f32 %v7297_v8, %v2354_v40  ;;  %v7300_v37 = vunpack.c.l.bf16 %v6340_v57 }
 0x316   : > { %2541 = vrot.lane.b32.xlu1 %v6623_v51, %s4973_s12 }
 0x317   : > { %v6629_v49 = vpop.eup %4779  ;;  %4789 = vtanh.f32 %v2440_v27  ;;  %v2360_v4 = vpop.permute.xlu0 %2359 }
 0x318   : > { %v2443_v60 = vadd.f32 %v7298_v50, %v2360_v4  ;;  %2535 = vrot.lane.b32.xlu0 %v6629_v49, %s4973_s12 }
 0x319   : > { %v6635_v14 = vpop.eup %4781  ;;  %v2362_v0 = vpop.permute.xlu1 %2361 }
 0x31a   : > { %4791 = vtanh.f32 %v2443_v60  ;;  %2537 = vrot.lane.b32.xlu1 %v6635_v14, %s4973_s12  ;;  %v2444_v61 = vadd.f32 %v7299_v28, %v2362_v0  ;;  %v7302_v0 = vunpack.c.l.bf16 %v6348_v9 }
 0x31b   : > { %v6639_v44 = vpop.eup %4783  ;;  %v2364_v6 = vpop.permute.xlu0 %2363 }
 0x31c   : > { %v2445_v40 = vadd.f32 %v7300_v37, %v2364_v6  ;;  %2547 = vrot.lane.b32.xlu0 %v6639_v44, %s4973_s12  ;;  %4793 = vtanh.f32 %v2444_v61  ;;  %v7304_v37 = vunpack.c.h.bf16 %v6348_v9  ;;  %v7309_v9 = vunpack.c.h.bf16 %v6376_v20 }
 0x31d   : > { %v6647_v8 = vpop.eup %4785  ;;  %v2366_v27 = vpop.permute.xlu1 %2365 }
 0x31e   : > { %4795 = vtanh.f32 %v2445_v40  ;;  %2549 = vrot.lane.b32.xlu1 %v6647_v8, %s4973_s12  ;;  %v2446_v50 = vadd.f32 %v7301_v30, %v2366_v27 }
 0x31f   : > { %v6651_v4 = vpop.eup %4787  ;;  %v2368_v60 = vpop.permute.xlu0 %2367 }
 0x320   : > { %v2447_v28 = vadd.f32 %v7302_v0, %v2368_v60  ;;  %2543 = vrot.lane.b32.xlu0 %v6651_v4, %s4973_s12  ;;  %4797 = vtanh.f32 %v2446_v50  ;;  %v7308_v60 = vunpack.c.l.bf16 %v6376_v20 }
 0x321   : > { %v6659_v6 = vpop.eup %4789  ;;  %v2370_v61 = vpop.permute.xlu1 %2369 }
 0x322   : > { %7303 = vst [vmem:[#allocation33_spill] sm:$0xff] %v6659_v6  ;;  %4799 = vtanh.f32 %v2447_v28  ;;  %2545 = vrot.lane.b32.xlu1 %v6659_v6, %s4973_s12  ;;  %v2448_v40 = vadd.f32 %v7304_v37, %v2370_v61  ;;  %v7315_v6 = vunpack.c.h.bf16 %v6415_v26 }
 0x324   : > { %v6665_v57 = vpop.eup %4791  ;;  %4801 = vtanh.f32 %v2448_v40 }
 0x325   : > { %7305 = vst [vmem:[#allocation34_spill] sm:$0xff] %v6665_v57  ;;  %2551 = vrot.lane.b32.xlu0 %v6665_v57, %s4973_s12 }
 0x326   : > { %v6669_v27 = vpop.eup %4793 }
 0x327   : > { %7306 = vst [vmem:[#allocation35_spill] sm:$0xff] %v6669_v27  ;;  %2553 = vrot.lane.b32.xlu1 %v6669_v27, %s4973_s12  ;;  %v2372_v50 = vpop.permute.xlu0 %2371 }
 0x328   : > { %v6671_v30 = vpop.eup %4795  ;;  %v2449_v0 = vadd.f32 %v7308_v60, %v2372_v50 }
 0x329   : > { %7307 = vst [vmem:[#allocation36_spill] sm:$0xff] %v6671_v30  ;;  %v2374_v28 = vpop.permute.xlu1 %2373  ;;  %2555 = vrot.lane.b32.xlu0 %v6671_v30, %s4973_s12  ;;  %v7312_v30 = vunpack.c.l.bf16 %v6398_v58 }
 0x32a   : > { %v2450_v61 = vadd.f32 %v7309_v9, %v2374_v28  ;;  %v6681_v37 = vpop.eup %4797  ;;  %4803 = vtanh.f32 %v2449_v0  ;;  %v7313_v0 = vunpack.c.h.bf16 %v6398_v58  ;;  %v7316_v58 = vunpack.c.l.bf16 %v6429_v45 }
 0x32b   : > { %7310 = vst [vmem:[#allocation37_spill] sm:$0xff] %v6681_v37  ;;  %2557 = vrot.lane.b32.xlu1 %v6681_v37, %s4973_s12 }
 0x32c   : > { %v6683_v40 = vpop.eup %4799  ;;  %4805 = vtanh.f32 %v2450_v61  ;;  %v7314_v61 = vunpack.c.l.bf16 %v6415_v26 }
 0x32d   : > { %7311 = vst [vmem:[#allocation38_spill] sm:$0xff] %v6683_v40  ;;  %2559 = vrot.lane.b32.xlu0 %v6683_v40, %s4973_s12 }
 0x32e   : > { %v2388_v50 = vpop.permute.xlu0 %2387  ;;  %v6689_v60 = vpop.eup %4801 }
 0x32f   : > { %v2457_v27 = vadd.f32 %v7312_v30, %v2388_v50  ;;  %2561 = vrot.lane.b32.xlu1 %v6689_v60, %s4973_s12 }
 0x330   : > { %v2390_v20 = vpop.permute.xlu1 %2389 }
 0x331   : > { %4807 = vtanh.f32 %v2457_v27  ;;  %v2458_v28 = vadd.f32 %v7313_v0, %v2390_v20 }
 0x332   : > { %v2384_v9 = vpop.permute.xlu0 %2383 }
 0x333   : > { %4809 = vtanh.f32 %v2458_v28  ;;  %v2455_v37 = vadd.f32 %v7314_v61, %v2384_v9 }
 0x334   : > { %v2386_v40 = vpop.permute.xlu1 %2385  ;;  %v6699_v57 = vpop.eup %4803 }
 0x335   : > { %4811 = vtanh.f32 %v2455_v37  ;;  %v2456_v30 = vadd.f32 %v7315_v6, %v2386_v40  ;;  %2563 = vrot.lane.b32.xlu0 %v6699_v57, %s4973_s12  ;;  %v7317_v37 = vunpack.c.h.bf16 %v6429_v45  ;;  %v7318_v40 = vunpack.c.l.bf16 %v6444_v3 }
 0x336   : > { %v6703_v50 = vpop.eup %4805  ;;  %v2376_v27 = vpop.permute.xlu0 %2375 }
 0x337   : > { %4813 = vtanh.f32 %v2456_v30  ;;  %v2451_v20 = vadd.f32 %v7316_v58, %v2376_v27  ;;  %2565 = vrot.lane.b32.xlu1 %v6703_v50, %s4973_s12  ;;  %v7320_v27 = vunpack.c.h.bf16 %v6444_v3  ;;  %v7324_v3 = vunpack.c.h.bf16 %v6470_v63 }
 0x338   : > { %v2378_v0 = vpop.permute.xlu1 %2377 }
 0x339   : > { %4815 = vtanh.f32 %v2451_v20  ;;  %v2452_v28 = vadd.f32 %v7317_v37, %v2378_v0  ;;  %v7322_v0 = vunpack.c.l.bf16 %v6470_v63  ;;  %v7328_v63 = vunpack.c.h.bf16 %v6478_v10 }
 0x33a   : > { %v2396_v26 = vpop.permute.xlu0 %2395 }
 0x33b   : > { %v6713_v6 = vpop.eup %4807  ;;  %4817 = vtanh.f32 %v2452_v28  ;;  %v2461_v9 = vadd.f32 %v7318_v40, %v2396_v26 }
 0x33c   : > { %v2398_v61 = vpop.permute.xlu1 %2397  ;;  %2579 = vrot.lane.b32.xlu0 %v6713_v6, %s4973_s12 }
 0x33d   : > { %v6719_v30 = vpop.eup %4809  ;;  %4819 = vtanh.f32 %v2461_v9  ;;  %v2462_v58 = vadd.f32 %v7320_v27, %v2398_v61  ;;  %v7326_v27 = vunpack.c.l.bf16 %v6478_v10 }
 0x33e   : > { %7319 = vst [vmem:[#allocation39_spill] sm:$0xff] %v6719_v30  ;;  %2581 = vrot.lane.b32.xlu1 %v6719_v30, %s4973_s12  ;;  %v2392_v45 = vpop.permute.xlu0 %2391 }
 0x33f   : > { %v6725_v20 = vpop.eup %4811  ;;  %4821 = vtanh.f32 %v2462_v58  ;;  %v2459_v37 = vadd.f32 %v7322_v0, %v2392_v45 }
 0x340   : > { %7321 = vst [vmem:[#allocation40_spill] sm:$0xff] %v6725_v20  ;;  %v2394_v28 = vpop.permute.xlu1 %2393  ;;  %2575 = vrot.lane.b32.xlu0 %v6725_v20, %s4973_s12 }
 0x341   : > { %v6731_v26 = vpop.eup %4813  ;;  %4823 = vtanh.f32 %v2459_v37  ;;  %v2460_v40 = vadd.f32 %v7324_v3, %v2394_v28 }
 0x342   : > { %7323 = vst [vmem:[#allocation41_spill] sm:$0xff] %v6731_v26  ;;  %2577 = vrot.lane.b32.xlu1 %v6731_v26, %s4973_s12  ;;  %v2380_v9 = vpop.permute.xlu0 %2379 }
 0x343   : > { %v6737_v61 = vpop.eup %4815  ;;  %4825 = vtanh.f32 %v2460_v40  ;;  %v2453_v58 = vadd.f32 %v7326_v27, %v2380_v9 }
 0x344   : > { %7325 = vst [vmem:[#allocation42_spill] sm:$0xff] %v6737_v61  ;;  %v2382_v45 = vpop.permute.xlu1 %2381  ;;  %2567 = vrot.lane.b32.xlu0 %v6737_v61, %s4973_s12 }
 0x345   : > { %v6743_v0 = vpop.eup %4817  ;;  %4827 = vtanh.f32 %v2453_v58  ;;  %v2454_v37 = vadd.f32 %v7328_v63, %v2382_v45  ;;  %v4899_v45 = vld [vmem:[#allocation2 + $0x28] sm:$0xff] }
 0x346   : > { %7327 = vst [vmem:[#allocation43_spill] sm:$0xff] %v6743_v0  ;;  %2569 = vrot.lane.b32.xlu1 %v6743_v0, %s4973_s12 }
 0x347   : > { %v6749_v28 = vpop.eup %4819  ;;  %4829 = vtanh.f32 %v2454_v37 }
 0x348   : > { %7329 = vst [vmem:[#allocation44_spill] sm:$0xff] %v6749_v28  ;;  %2587 = vrot.lane.b32.xlu0 %v6749_v28, %s4973_s12 }
 0x349   : > { %v6753_v3 = vpop.eup %4821 }
 0x34a   : > { %7330 = vst [vmem:[#allocation45_spill] sm:$0xff] %v6753_v3  ;;  %2589 = vrot.lane.b32.xlu1 %v6753_v3, %s4973_s12 }
 0x34b   : > { %v6757_v40 = vpop.eup %4823 }
 0x34c   : > { %7331 = vst [vmem:[#allocation46_spill] sm:$0xff] %v6757_v40  ;;  %2583 = vrot.lane.b32.xlu0 %v6757_v40, %s4973_s12  ;;  %v4900_v40 = vld [vmem:[#allocation2 + $0x30] sm:$0xff] }
 0x34d   : > { %v6761_v10 = vpop.eup %4825 }
 0x34e   : > { %7332 = vst [vmem:[#allocation47_spill] sm:$0xff] %v6761_v10  ;;  %2585 = vrot.lane.b32.xlu1 %v6761_v10, %s4973_s12  ;;  %v4901_v10 = vld [vmem:[#allocation2 + $0x18] sm:$0xff] }
 0x34f   : > { %v6765_v9 = vpop.eup %4827 }
 0x350   : > { %7333 = vst [vmem:[#allocation48_spill] sm:$0xff] %v6765_v9  ;;  %2571 = vrot.lane.b32.xlu0 %v6765_v9, %s4973_s12  ;;  %v4902_v9 = vld [vmem:[#allocation2 + $0x20] sm:$0xff] }
 0x351   : > { %v6769_v27 = vpop.eup %4829 }
 0x352   : > { %7334 = vst [vmem:[#allocation49_spill] sm:$0xff] %v6769_v27  ;;  %2573 = vrot.lane.b32.xlu1 %v6769_v27, %s4973_s12  ;;  %v4903_v27 = vld [vmem:[#allocation2 + $0x48] sm:$0xff] }
 0x37e   : > { %v2532_v58 = vpop.permute.xlu0 %2531 }
 0x37f   : > { %v2625_v63 = vsub.f32 %v4899_v45, %v2532_v58  ;;  %v4904_v45 = vld [vmem:[#allocation2 + $0x50] sm:$0xff] }
 0x380   : > { %v2534_v37 = vpop.permute.xlu1 %2533 }
 0x381   : > { %v2626_v3 = vsub.f32 %v4900_v40, %v2534_v37  ;;  %2691 = vrot.lane.b32.xlu0 %v2625_v63, %s4972_s11  ;;  %v4905_v37 = vld [vmem:[#allocation2 + $0x38] sm:$0xff] }
 0x382   : > { %v2528_v28 = vpop.permute.xlu0 %2527 }
 0x383   : > { %v2623_v0 = vsub.f32 %v4901_v10, %v2528_v28  ;;  %2693 = vrot.lane.b32.xlu1 %v2626_v3, %s4972_s11  ;;  %v4906_v10 = vld [vmem:[#allocation2 + $0x40] sm:$0xff] }
 0x384   : > { %v2530_v61 = vpop.permute.xlu1 %2529 }
 0x385   : > { %v2624_v26 = vsub.f32 %v4902_v9, %v2530_v61  ;;  %2687 = vrot.lane.b32.xlu0 %v2623_v0, %s4972_s11  ;;  %v4907_v9 = vld [vmem:[#allocation2 + $0x68] sm:$0xff] }
 0x386   : > { %v2540_v20 = vpop.permute.xlu0 %2539 }
 0x387   : > { %v2629_v30 = vsub.f32 %v4903_v27, %v2540_v20  ;;  %2689 = vrot.lane.b32.xlu1 %v2624_v26, %s4972_s11  ;;  %v4908_v27 = vld [vmem:[#allocation2 + $0x70] sm:$0xff] }
 0x388   : > { %v2542_v58 = vpop.permute.xlu1 %2541 }
 0x389   : > { %v2630_v40 = vsub.f32 %v4904_v45, %v2542_v58  ;;  %2699 = vrot.lane.b32.xlu0 %v2629_v30, %s4972_s11  ;;  %v4909_v45 = vld [vmem:[#allocation2 + $0x58] sm:$0xff] }
 0x38a   : > { %v2536_v63 = vpop.permute.xlu0 %2535 }
 0x38b   : > { %v2627_v28 = vsub.f32 %v4905_v37, %v2536_v63  ;;  %2701 = vrot.lane.b32.xlu1 %v2630_v40, %s4972_s11  ;;  %v4910_v37 = vld [vmem:[#allocation2 + $0x60] sm:$0xff] }
 0x38c   : > { %v2538_v3 = vpop.permute.xlu1 %2537 }
 0x38d   : > { %v2628_v61 = vsub.f32 %v4906_v10, %v2538_v3  ;;  %2695 = vrot.lane.b32.xlu0 %v2627_v28, %s4972_s11  ;;  %v4911_v10 = vld [vmem:[#allocation2 + $0x78] sm:$0xff] }
 0x38e   : > { %v2548_v0 = vpop.permute.xlu0 %2547 }
 0x38f   : > { %v2633_v20 = vsub.f32 %v4907_v9, %v2548_v0  ;;  %2697 = vrot.lane.b32.xlu1 %v2628_v61, %s4972_s11  ;;  %v4912_v9 = vld [vmem:[#allocation2 + $0x80] sm:$0xff] }
 0x390   : > { %v2550_v26 = vpop.permute.xlu1 %2549 }
 0x391   : > { %v2634_v58 = vsub.f32 %v4908_v27, %v2550_v26  ;;  %2707 = vrot.lane.b32.xlu0 %v2633_v20, %s4972_s11  ;;  %v4913_v27 = vld [vmem:[#allocation2 + $0x88] sm:$0xff] }
 0x392   : > { %v2544_v30 = vpop.permute.xlu0 %2543 }
 0x393   : > { %v2631_v63 = vsub.f32 %v4909_v45, %v2544_v30  ;;  %2709 = vrot.lane.b32.xlu1 %v2634_v58, %s4972_s11  ;;  %v4914_v45 = vld [vmem:[#allocation2 + $0x90] sm:$0xff] }
 0x394   : > { %v2546_v40 = vpop.permute.xlu1 %2545 }
 0x395   : > { %v2632_v3 = vsub.f32 %v4910_v37, %v2546_v40  ;;  %2703 = vrot.lane.b32.xlu0 %v2631_v63, %s4972_s11  ;;  %v4915_v37 = vld [vmem:[#allocation2 + $0x98] sm:$0xff] }
 0x397   : > { %2705 = vrot.lane.b32.xlu1 %v2632_v3, %s4972_s11  ;;  %v2552_v28 = vpop.permute.xlu0 %2551 }
 0x398   : > { %v2635_v61 = vsub.f32 %v4911_v10, %v2552_v28  ;;  %v4916_v10 = vld [vmem:[#allocation2 + $0xa0] sm:$0xff] }
 0x399   : > { %v2554_v0 = vpop.permute.xlu1 %2553 }
 0x39a   : > { %2711 = vrot.lane.b32.xlu0 %v2635_v61, %s4972_s11  ;;  %v2636_v20 = vsub.f32 %v4912_v9, %v2554_v0  ;;  %v4917_v9 = vld [vmem:[#allocation2 + $0xa8] sm:$0xff] }
 0x39b   : > { %v2556_v26 = vpop.permute.xlu0 %2555 }
 0x39c   : > { %v2637_v30 = vsub.f32 %v4913_v27, %v2556_v26  ;;  %2713 = vrot.lane.b32.xlu1 %v2636_v20, %s4972_s11  ;;  %v4918_v27 = vld [vmem:[#allocation2 + $0xb0] sm:$0xff] }
 0x39d   : > { %v2558_v58 = vpop.permute.xlu1 %2557 }
 0x39e   : > { %2715 = vrot.lane.b32.xlu0 %v2637_v30, %s4972_s11  ;;  %v2638_v63 = vsub.f32 %v4914_v45, %v2558_v58  ;;  %v4919_v45 = vld [vmem:[#allocation2 + $0xe8] sm:$0xff] }
 0x39f   : > { %v2560_v40 = vpop.permute.xlu0 %2559 }
 0x3a0   : > { %v2639_v3 = vsub.f32 %v4915_v37, %v2560_v40  ;;  %2717 = vrot.lane.b32.xlu1 %v2638_v63, %s4972_s11  ;;  %v4920_v37 = vld [vmem:[#allocation2 + $0xf0] sm:$0xff] }
 0x3a1   : > { %v2562_v28 = vpop.permute.xlu1 %2561 }
 0x3a2   : > { %2719 = vrot.lane.b32.xlu0 %v2639_v3, %s4972_s11  ;;  %v2640_v61 = vsub.f32 %v4916_v10, %v2562_v28  ;;  %v4921_v10 = vld [vmem:[#allocation2 + $0xd8] sm:$0xff] }
 0x3a4   : > { %2721 = vrot.lane.b32.xlu1 %v2640_v61, %s4972_s11 }
 0x3a7   : > { %v2564_v0 = vpop.permute.xlu0 %2563 }
 0x3a8   : > { %v2641_v20 = vsub.f32 %v4917_v9, %v2564_v0  ;;  %v4922_v9 = vld [vmem:[#allocation2 + $0xe0] sm:$0xff] }
 0x3a9   : > { %v2566_v26 = vpop.permute.xlu1 %2565 }
 0x3aa   : > { %v2642_v30 = vsub.f32 %v4918_v27, %v2566_v26  ;;  %2723 = vrot.lane.b32.xlu0 %v2641_v20, %s4972_s11  ;;  %v4923_v27 = vld [vmem:[#allocation2 + $0xb8] sm:$0xff] }
 0x3ac   : > { %2725 = vrot.lane.b32.xlu1 %v2642_v30, %s4972_s11 }
 0x3ae   : > { %v2580_v58 = vpop.permute.xlu0 %2579 }
 0x3af   : > { %v2649_v63 = vsub.f32 %v4919_v45, %v2580_v58  ;;  %v4924_v45 = vld [vmem:[#allocation2 + $0xc0] sm:$0xff] }
 0x3b0   : > { %v2582_v40 = vpop.permute.xlu1 %2581 }
 0x3b1   : > { %v2650_v3 = vsub.f32 %v4920_v37, %v2582_v40  ;;  %2739 = vrot.lane.b32.xlu0 %v2649_v63, %s4972_s11  ;;  %v4925_v37 = vld [vmem:[#allocation2 + $0x108] sm:$0xff] }
 0x3b2   : > { %v2576_v28 = vpop.permute.xlu0 %2575 }
 0x3b3   : > { %v2647_v61 = vsub.f32 %v4921_v10, %v2576_v28  ;;  %2741 = vrot.lane.b32.xlu1 %v2650_v3, %s4972_s11  ;;  %v4926_v10 = vld [vmem:[#allocation2 + $0x110] sm:$0xff] }
 0x3b4   : > { %v2578_v0 = vpop.permute.xlu1 %2577 }
 0x3b5   : > { %v2648_v26 = vsub.f32 %v4922_v9, %v2578_v0  ;;  %2735 = vrot.lane.b32.xlu0 %v2647_v61, %s4972_s11  ;;  %v4927_v9 = vld [vmem:[#allocation2 + $0xf8] sm:$0xff] }
 0x3b6   : > { %v2568_v20 = vpop.permute.xlu0 %2567 }
 0x3b7   : > { %v2643_v30 = vsub.f32 %v4923_v27, %v2568_v20  ;;  %2737 = vrot.lane.b32.xlu1 %v2648_v26, %s4972_s11  ;;  %v4928_v27 = vld [vmem:[#allocation2 + $0x100] sm:$0xff] }
 0x3b8   : > { %v2570_v58 = vpop.permute.xlu1 %2569 }
 0x3b9   : > { %v2644_v40 = vsub.f32 %v4924_v45, %v2570_v58  ;;  %2727 = vrot.lane.b32.xlu0 %v2643_v30, %s4972_s11  ;;  %v4929_v45 = vld [vmem:[#allocation2 + $0xc8] sm:$0xff] }
 0x3ba   : > { %v2588_v63 = vpop.permute.xlu0 %2587 }
 0x3bb   : > { %v2653_v28 = vsub.f32 %v4925_v37, %v2588_v63  ;;  %2729 = vrot.lane.b32.xlu1 %v2644_v40, %s4972_s11  ;;  %v4930_v37 = vld [vmem:[#allocation2 + $0xd0] sm:$0xff] }
 0x3bc   : > { %v2590_v3 = vpop.permute.xlu1 %2589 }
 0x3bd   : > { %v2654_v0 = vsub.f32 %v4926_v10, %v2590_v3  ;;  %2747 = vrot.lane.b32.xlu0 %v2653_v28, %s4972_s11 }
 0x3be   : > { %v2584_v61 = vpop.permute.xlu0 %2583 }
 0x3bf   : > { %v2651_v20 = vsub.f32 %v4927_v9, %v2584_v61  ;;  %2749 = vrot.lane.b32.xlu1 %v2654_v0, %s4972_s11 }
 0x3c0   : > { %v2586_v26 = vpop.permute.xlu1 %2585 }
 0x3c1   : > { %v2652_v58 = vsub.f32 %v4928_v27, %v2586_v26  ;;  %2743 = vrot.lane.b32.xlu0 %v2651_v20, %s4972_s11 }
 0x3c2   : > { %v2572_v30 = vpop.permute.xlu0 %2571 }
 0x3c3   : > { %v2645_v63 = vsub.f32 %v4929_v45, %v2572_v30  ;;  %2745 = vrot.lane.b32.xlu1 %v2652_v58, %s4972_s11 }
 0x3c4   : > { %v2574_v40 = vpop.permute.xlu1 %2573 }
 0x3c5   : > { %v2646_v3 = vsub.f32 %v4930_v37, %v2574_v40  ;;  %2731 = vrot.lane.b32.xlu0 %v2645_v63, %s4972_s11 }
 0x3c7   : > { %2733 = vrot.lane.b32.xlu1 %v2646_v3, %s4972_s11 }
 0x3f3   : > { %v2692_v28 = vpop.permute.xlu0 %2691 }
 0x3f4   : > { %v2785_v10 = vmul.f32 %v6371_v47, %v2692_v28 }
 0x3f5   : > { %v2694_v0 = vpop.permute.xlu1 %2693 }
 0x3f6   : > { %v2786_v61 = vmul.f32 %v6384_v53, %v2694_v0  ;;  %2851 = vrot.lane.b32.xlu0 %v2785_v10, %s4972_s11 }
 0x3f7   : > { %v2688_v9 = vpop.permute.xlu0 %2687 }
 0x3f8   : > { %v2783_v20 = vmul.f32 %v6378_v5, %v2688_v9  ;;  %2853 = vrot.lane.b32.xlu1 %v2786_v61, %s4972_s11 }
 0x3f9   : > { %v2690_v26 = vpop.permute.xlu1 %2689 }
 0x3fa   : > { %v2784_v27 = vmul.f32 %v6390_v38, %v2690_v26  ;;  %2847 = vrot.lane.b32.xlu0 %v2783_v20, %s4972_s11 }
 0x3fb   : > { %v2700_v58 = vpop.permute.xlu0 %2699 }
 0x3fc   : > { %v2789_v30 = vmul.f32 %v6405_v46, %v2700_v58  ;;  %2849 = vrot.lane.b32.xlu1 %v2784_v27, %s4972_s11 }
 0x3fd   : > { %v2702_v47 = vpop.permute.xlu1 %2701 }
 0x3fe   : > { %v2790_v53 = vmul.f32 %v6412_v36, %v2702_v47  ;;  %2859 = vrot.lane.b32.xlu0 %v2789_v30, %s4972_s11 }
 0x3ff   : > { %v2696_v45 = vpop.permute.xlu0 %2695 }
 0x400   : > { %v2787_v5 = vmul.f32 %v6407_v22, %v2696_v45  ;;  %2861 = vrot.lane.b32.xlu1 %v2790_v53, %s4972_s11 }
 0x401   : > { %v2698_v63 = vpop.permute.xlu1 %2697 }
 0x402   : > { %v2788_v38 = vmul.f32 %v6426_v16, %v2698_v63  ;;  %2855 = vrot.lane.b32.xlu0 %v2787_v5, %s4972_s11 }
 0x403   : > { %v2708_v40 = vpop.permute.xlu0 %2707 }
 0x404   : > { %v2793_v46 = vmul.f32 %v6437_v23, %v2708_v40  ;;  %2857 = vrot.lane.b32.xlu1 %v2788_v38, %s4972_s11 }
 0x405   : > { %v2710_v37 = vpop.permute.xlu1 %2709 }
 0x406   : > { %v2794_v36 = vmul.f32 %v6448_v52, %v2710_v37  ;;  %2867 = vrot.lane.b32.xlu0 %v2793_v46, %s4972_s11 }
 0x407   : > { %v2704_v3 = vpop.permute.xlu0 %2703 }
 0x408   : > { %v2791_v22 = vmul.f32 %v6456_v43, %v2704_v3  ;;  %2869 = vrot.lane.b32.xlu1 %v2794_v36, %s4972_s11 }
 0x409   : > { %v2706_v28 = vpop.permute.xlu1 %2705 }
 0x40a   : > { %v2792_v16 = vmul.f32 %v6464_v34, %v2706_v28  ;;  %2863 = vrot.lane.b32.xlu0 %v2791_v22, %s4972_s11 }
 0x40c   : > { %2865 = vrot.lane.b32.xlu1 %v2792_v16, %s4972_s11  ;;  %v2712_v23 = vpop.permute.xlu0 %2711 }
 0x40d   : > { %v2795_v10 = vmul.f32 %v6472_v2, %v2712_v23 }
 0x40e   : > { %v2714_v0 = vpop.permute.xlu1 %2713 }
 0x40f   : > { %2871 = vrot.lane.b32.xlu0 %v2795_v10, %s4972_s11  ;;  %v2796_v52 = vmul.f32 %v6490_v33, %v2714_v0  ;;  %v7335_v0 = vld [vmem:[#allocation11_spill] sm:$0xff] }
 0x410   : > { %v2716_v61 = vpop.permute.xlu0 %2715 }
 0x411   : > { %v2797_v43 = vmul.f32 %v6494_v42, %v2716_v61  ;;  %2873 = vrot.lane.b32.xlu1 %v2796_v52, %s4972_s11 }
 0x412   : > { %v2718_v9 = vpop.permute.xlu1 %2717 }
 0x413   : > { %2875 = vrot.lane.b32.xlu0 %v2797_v43, %s4972_s11  ;;  %v2798_v34 = vmul.f32 %v6500_v21, %v2718_v9 }
 0x414   : > { %v2720_v20 = vpop.permute.xlu0 %2719 }
 0x415   : > { %v2799_v26 = vmul.f32 %v6508_v54, %v2720_v20  ;;  %2877 = vrot.lane.b32.xlu1 %v2798_v34, %s4972_s11 }
 0x416   : > { %v2722_v2 = vpop.permute.xlu1 %2721 }
 0x417   : > { %2879 = vrot.lane.b32.xlu0 %v2799_v26, %s4972_s11  ;;  %v2800_v33 = vmul.f32 %v6520_v55, %v2722_v2 }
 0x419   : > { %2881 = vrot.lane.b32.xlu1 %v2800_v33, %s4972_s11  ;;  %v7337_v33 = vld [vmem:[#allocation10_spill] sm:$0xff] }
 0x41c   : > { %v2724_v42 = vpop.permute.xlu0 %2723 }
 0x41d   : > { %v2801_v27 = vmul.f32 %v6525_v56, %v2724_v42 }
 0x41e   : > { %v2726_v58 = vpop.permute.xlu1 %2725 }
 0x41f   : > { %v2802_v30 = vmul.f32 %v6527_v29, %v2726_v58  ;;  %2883 = vrot.lane.b32.xlu0 %v2801_v27, %s4972_s11  ;;  %v7338_v58 = vld [vmem:[#allocation9_spill] sm:$0xff] }
 0x421   : > { %2885 = vrot.lane.b32.xlu1 %v2802_v30, %s4972_s11 }
 0x423   : > { %v2740_v21 = vpop.permute.xlu0 %2739 }
 0x424   : > { %v2809_v54 = vmul.f32 %v6533_v12, %v2740_v21 }
 0x425   : > { %v2742_v47 = vpop.permute.xlu1 %2741 }
 0x426   : > { %v2810_v53 = vmul.f32 %v6536_v13, %v2742_v47  ;;  %2899 = vrot.lane.b32.xlu0 %v2809_v54, %s4972_s11 }
 0x427   : > { %v2736_v55 = vpop.permute.xlu0 %2735 }
 0x428   : > { %v2807_v45 = vmul.f32 %v6540_v18, %v2736_v55  ;;  %2901 = vrot.lane.b32.xlu1 %v2810_v53, %s4972_s11 }
 0x429   : > { %v2738_v56 = vpop.permute.xlu1 %2737 }
 0x42a   : > { %v2808_v29 = vmul.f32 %v6544_v35, %v2738_v56  ;;  %2895 = vrot.lane.b32.xlu0 %v2807_v45, %s4972_s11 }
 0x42b   : > { %v2728_v5 = vpop.permute.xlu0 %2727 }
 0x42c   : > { %v2803_v63 = vmul.f32 %v6548_v62, %v2728_v5  ;;  %2897 = vrot.lane.b32.xlu1 %v2808_v29, %s4972_s11 }
 0x42d   : > { %v2730_v12 = vpop.permute.xlu1 %2729 }
 0x42e   : > { %v2804_v13 = vmul.f32 %v6552_v31, %v2730_v12  ;;  %2887 = vrot.lane.b32.xlu0 %v2803_v63, %s4972_s11 }
 0x42f   : > { %v2748_v38 = vpop.permute.xlu0 %2747 }
 0x430   : > { %v2813_v18 = vmul.f32 %v6556_v24, %v2748_v38  ;;  %2889 = vrot.lane.b32.xlu1 %v2804_v13, %s4972_s11  ;;  %v7341_v13 = vld [vmem:[#allocation13_spill] sm:$0xff] }
 0x431   : > { %v2750_v40 = vpop.permute.xlu1 %2749 }
 0x432   : > { %v2814_v35 = vmul.f32 %v6560_v15, %v2750_v40  ;;  %2907 = vrot.lane.b32.xlu0 %v2813_v18, %s4972_s11  ;;  %v7342_v40 = vld [vmem:[#allocation24_spill] sm:$0xff] }
 0x433   : > { %v2744_v46 = vpop.permute.xlu0 %2743 }
 0x434   : > { %v2811_v62 = vmul.f32 %v6564_v48, %v2744_v46  ;;  %2909 = vrot.lane.b32.xlu1 %v2814_v35, %s4972_s11  ;;  %v7343_v46 = vld [vmem:[#allocation33_spill] sm:$0xff] }
 0x435   : > { %v2746_v37 = vpop.permute.xlu1 %2745 }
 0x436   : > { %v2812_v31 = vmul.f32 %v6568_v59, %v2746_v37  ;;  %2903 = vrot.lane.b32.xlu0 %v2811_v62, %s4972_s11 }
 0x437   : > { %v2732_v36 = vpop.permute.xlu0 %2731 }
 0x438   : > { %v2805_v24 = vmul.f32 %v6572_v39, %v2732_v36  ;;  %2905 = vrot.lane.b32.xlu1 %v2812_v31, %s4972_s11 }
 0x439   : > { %v2734_v3 = vpop.permute.xlu1 %2733 }
 0x43a   : > { %v2806_v15 = vmul.f32 %v6576_v7, %v2734_v3  ;;  %2891 = vrot.lane.b32.xlu0 %v2805_v24, %s4972_s11 }
 0x43c   : > { %2893 = vrot.lane.b32.xlu1 %v2806_v15, %s4972_s11 }
 0x468   : > { %v2852_v48 = vpop.permute.xlu0 %2851 }
 0x469   : > { %v2945_v22 = vadd.f32 %v6593_v1, %v2852_v48  ;;  %v7336_v1 = vld [vmem:[#allocation12_spill] sm:$0xff]  ;;  %v7346_v48 = vld [vmem:[#allocation34_spill] sm:$0xff] }
 0x46a   : > { %v2854_v28 = vpop.permute.xlu1 %2853 }
 0x46b   : > { %v3169_v59 = vmul.f32 %v6125_v19, %v2945_v22  ;;  %v2946_v16 = vadd.f32 %v6599_v32, %v2854_v28 }
 0x46c   : > { %v2848_v23 = vpop.permute.xlu0 %2847 }
 0x46d   : > { %v3170_v39 = vmul.f32 %v6119_v41, %v2946_v16  ;;  %v2943_v10 = vadd.f32 %v6605_v25, %v2848_v23  ;;  %3235 = vrot.lane.b32.xlu1 %v3169_v59, %s4973_s12  ;;  %v3803_v32 = vpack.c.bf16 %v3169_v59, %v3169_v59  ;;  %v7347_v59 = vld [vmem:[#allocation35_spill] sm:$0xff]  ;;  %v7348_v23 = vld [vmem:[#allocation32_spill] sm:$0xff] }
 0x46e   : > { %v2850_v7 = vpop.permute.xlu1 %2849 }
 0x46f   : > { %v3167_v52 = vmul.f32 %v7335_v0, %v2943_v10  ;;  %v2944_v61 = vadd.f32 %v6611_v11, %v2850_v7  ;;  %3237 = vrot.lane.b32.xlu0 %v3170_v39, %s4973_s12  ;;  %v3804_v9 = vpack.c.bf16 %v3170_v39, %v3170_v39  ;;  %v7349_v7 = vld [vmem:[#allocation31_spill] sm:$0xff] }
 0x470   : > { %v2860_v19 = vpop.permute.xlu0 %2859 }
 0x471   : > { %v3168_v43 = vmul.f32 %v7336_v1, %v2944_v61  ;;  %3231 = vrot.lane.b32.xlu1 %v3167_v52, %s4973_s12  ;;  %v3801_v25 = vpack.c.bf16 %v3167_v52, %v3167_v52  ;;  %v2949_v34 = vadd.f32 %v6617_v17, %v2860_v19  ;;  %v7339_v17 = vld [vmem:[#allocation8_spill] sm:$0xff] }
 0x472   : > { %v2862_v41 = vpop.permute.xlu1 %2861  ;;  %v7350_v1 = vld [vmem:[#allocation36_spill] sm:$0xff] }
 0x473   : > { %3233 = vrot.lane.b32.xlu0 %v3168_v43, %s4973_s12  ;;  %v3802_v20 = vpack.c.bf16 %v3168_v43, %v3168_v43  ;;  %v2950_v26 = vadd.f32 %v6623_v51, %v2862_v41  ;;  %v3173_v42 = vmul.f32 %v7337_v33, %v2949_v34  ;;  %v7340_v51 = vld [vmem:[#allocation7_spill] sm:$0xff]  ;;  %v7354_v33 = vld [vmem:[#allocation38_spill] sm:$0xff] }
 0x474   : > { %v2856_v11 = vpop.permute.xlu0 %2855 }
 0x475   : > { %3459 = vrot.lane.b32.xlu1 %v3803_v32, %s4973_s12  ;;  %v2947_v27 = vadd.f32 %v6629_v49, %v2856_v11  ;;  %v3174_v30 = vmul.f32 %v7338_v58, %v2950_v26  ;;  %v3807_v55 = vpack.c.bf16 %v3173_v42, %v3173_v42  ;;  %v7351_v32 = vld [vmem:[#allocation37_spill] sm:$0xff]  ;;  %v7353_v11 = vld [vmem:[#allocation4_spill] sm:$0xff] }
 0x476   : > { %v2858_v2 = vpop.permute.xlu1 %2857 }
 0x477   : > { %3461 = vrot.lane.b32.xlu0 %v3804_v9, %s4973_s12  ;;  %v2948_v21 = vadd.f32 %v6635_v14, %v2858_v2  ;;  %v3171_v54 = vmul.f32 %v7339_v17, %v2947_v27  ;;  %v3808_v45 = vpack.c.bf16 %v3174_v30, %v3174_v30  ;;  %v7352_v9 = vld [vmem:[#allocation3_spill] sm:$0xff] }
 0x478   : > { %v2868_v53 = vpop.permute.xlu0 %2867 }
 0x479   : > { %3455 = vrot.lane.b32.xlu1 %v3801_v25, %s4973_s12  ;;  %v3172_v47 = vmul.f32 %v7340_v51, %v2948_v21  ;;  %v3805_v56 = vpack.c.bf16 %v3171_v54, %v3171_v54  ;;  %v2953_v14 = vadd.f32 %v6639_v44, %v2868_v53  ;;  %v7344_v44 = vld [vmem:[#allocation5_spill] sm:$0xff] }
 0x47a   : > { %v2870_v49 = vpop.permute.xlu1 %2869 }
 0x47b   : > { %3457 = vrot.lane.b32.xlu0 %v3802_v20, %s4973_s12  ;;  %v3806_v5 = vpack.c.bf16 %v3172_v47, %v3172_v47  ;;  %v2954_v63 = vadd.f32 %v6647_v8, %v2870_v49  ;;  %v3177_v38 = vmul.f32 %v7341_v13, %v2953_v14  ;;  %v7345_v8 = vld [vmem:[#allocation6_spill] sm:$0xff] }
 0x47c   : > { %v2864_v29 = vpop.permute.xlu0 %2863 }
 0x47d   : > { %3243 = vrot.lane.b32.xlu1 %v3173_v42, %s4973_s12  ;;  %v2951_v18 = vadd.f32 %v6651_v4, %v2864_v29  ;;  %v3178_v35 = vmul.f32 %v7342_v40, %v2954_v63  ;;  %v3811_v36 = vpack.c.bf16 %v3177_v38, %v3177_v38 }
 0x47e   : > { %v2866_v12 = vpop.permute.xlu1 %2865 }
 0x47f   : > { %3245 = vrot.lane.b32.xlu0 %v3174_v30, %s4973_s12  ;;  %v2952_v62 = vadd.f32 %v7343_v46, %v2866_v12  ;;  %v3175_v37 = vmul.f32 %v7344_v44, %v2951_v18  ;;  %v3812_v24 = vpack.c.bf16 %v3178_v35, %v3178_v35  ;;  %v7355_v30 = vld [vmem:[#allocation26_spill] sm:$0xff] }
 0x481   : > { %3239 = vrot.lane.b32.xlu1 %v3171_v54, %s4973_s12  ;;  %v3176_v31 = vmul.f32 %v7345_v8, %v2952_v62  ;;  %v2872_v4 = vpop.permute.xlu0 %2871  ;;  %v3809_v15 = vpack.c.bf16 %v3175_v37, %v3175_v37  ;;  %v7356_v54 = vld [vmem:[#allocation19_spill] sm:$0xff]  ;;  %v7361_v62 = vld [vmem:[#allocation40_spill] sm:$0xff] }
 0x482   : > { %v2955_v22 = vadd.f32 %v7346_v48, %v2872_v4 }
 0x483   : > { %3241 = vrot.lane.b32.xlu0 %v3172_v47, %s4973_s12  ;;  %v2874_v3 = vpop.permute.xlu1 %2873  ;;  %v3810_v28 = vpack.c.bf16 %v3176_v31, %v3176_v31 }
 0x484   : > { %v2956_v16 = vadd.f32 %v7347_v59, %v2874_v3  ;;  %v3179_v39 = vmul.f32 %v7348_v23, %v2955_v22 }
 0x485   : > { %3467 = vrot.lane.b32.xlu1 %v3807_v55, %s4973_s12  ;;  %v2876_v10 = vpop.permute.xlu0 %2875 }
 0x486   : > { %v3180_v0 = vmul.f32 %v7349_v7, %v2956_v16  ;;  %v3813_v61 = vpack.c.bf16 %v3179_v39, %v3179_v39  ;;  %v2957_v43 = vadd.f32 %v7350_v1, %v2876_v10  ;;  %v7366_v16 = vld [vmem:[#allocation42_spill] sm:$0xff]  ;;  %v7367_v10 = vld [vmem:[#allocation43_spill] sm:$0xff] }
 0x487   : > { %3469 = vrot.lane.b32.xlu0 %v3808_v45, %s4973_s12  ;;  %v2878_v52 = vpop.permute.xlu1 %2877 }
 0x488   : > { %v3814_v19 = vpack.c.bf16 %v3180_v0, %v3180_v0  ;;  %v2958_v41 = vadd.f32 %v7351_v32, %v2878_v52  ;;  %v3181_v25 = vmul.f32 %v7352_v9, %v2957_v43  ;;  %v7368_v52 = vld [vmem:[#allocation21_spill] sm:$0xff]  ;;  %v7369_v43 = vld [vmem:[#allocation15_spill] sm:$0xff] }
 0x489   : > { %3463 = vrot.lane.b32.xlu1 %v3805_v56, %s4973_s12  ;;  %v2880_v34 = vpop.permute.xlu0 %2879  ;;  %v7357_v56 = vld [vmem:[#allocation25_spill] sm:$0xff] }
 0x48a   : > { %v3182_v20 = vmul.f32 %v7353_v11, %v2958_v41  ;;  %v3815_v2 = vpack.c.bf16 %v3181_v25, %v3181_v25  ;;  %v2959_v42 = vadd.f32 %v7354_v33, %v2880_v34  ;;  %v7370_v41 = vld [vmem:[#allocation44_spill] sm:$0xff]  ;;  %v7371_v11 = vld [vmem:[#allocation45_spill] sm:$0xff] }
 0x48b   : > { %3465 = vrot.lane.b32.xlu0 %v3806_v5, %s4973_s12  ;;  %v2882_v26 = vpop.permute.xlu1 %2881  ;;  %v7358_v5 = vld [vmem:[#allocation18_spill] sm:$0xff] }
 0x48c   : > { %v3816_v27 = vpack.c.bf16 %v3182_v20, %v3182_v20  ;;  %v2960_v58 = vadd.f32 %v6689_v60, %v2882_v26  ;;  %v3183_v21 = vmul.f32 %v7355_v30, %v2959_v42  ;;  %v7373_v42 = vld [vmem:[#allocation46_spill] sm:$0xff] }
 0x48d   : > { %3251 = vrot.lane.b32.xlu1 %v3177_v38, %s4973_s12 }
 0x48e   : > { %v3184_v51 = vmul.f32 %v7356_v54, %v2960_v58  ;;  %v3817_v53 = vpack.c.bf16 %v3183_v21, %v3183_v21  ;;  %v7374_v58 = vld [vmem:[#allocation22_spill] sm:$0xff]  ;;  %v7376_v54 = vld [vmem:[#allocation16_spill] sm:$0xff] }
 0x48f   : > { %3253 = vrot.lane.b32.xlu0 %v3178_v35, %s4973_s12  ;;  %v7360_v35 = vld [vmem:[#allocation23_spill] sm:$0xff] }
 0x490   : > { %v3818_v49 = vpack.c.bf16 %v3184_v51, %v3184_v51 }
 0x491   : > { %3247 = vrot.lane.b32.xlu1 %v3175_v37, %s4973_s12  ;;  %v2884_v17 = vpop.permute.xlu0 %2883  ;;  %v7362_v37 = vld [vmem:[#allocation17_spill] sm:$0xff] }
 0x492   : > { %v2961_v55 = vadd.f32 %v6699_v57, %v2884_v17 }
 0x493   : > { %3249 = vrot.lane.b32.xlu0 %v3176_v31, %s4973_s12  ;;  %v2886_v47 = vpop.permute.xlu1 %2885  ;;  %v7363_v31 = vld [vmem:[#allocation41_spill] sm:$0xff] }
 0x494   : > { %v2962_v60 = vadd.f32 %v6703_v50, %v2886_v47  ;;  %v3185_v14 = vmul.f32 %v7357_v56, %v2961_v55  ;;  %v7359_v50 = vld [vmem:[#allocation39_spill] sm:$0xff] }
 0x495   : > { %3475 = vrot.lane.b32.xlu1 %v3811_v36, %s4973_s12 }
 0x496   : > { %v3186_v63 = vmul.f32 %v7358_v5, %v2962_v60  ;;  %v3819_v12 = vpack.c.bf16 %v3185_v14, %v3185_v14 }
 0x497   : > { %3477 = vrot.lane.b32.xlu0 %v3812_v24, %s4973_s12  ;;  %v7365_v24 = vld [vmem:[#allocation20_spill] sm:$0xff] }
 0x498   : > { %v2900_v45 = vpop.permute.xlu0 %2899  ;;  %v3820_v38 = vpack.c.bf16 %v3186_v63, %v3186_v63 }
 0x499   : > { %3471 = vrot.lane.b32.xlu1 %v3809_v15, %s4973_s12  ;;  %v2969_v57 = vadd.f32 %v6713_v6, %v2900_v45  ;;  %v7364_v6 = vld [vmem:[#allocation27_spill] sm:$0xff]  ;;  %v7378_v45 = vld [vmem:[#allocation48_spill] sm:$0xff] }
 0x49a   : > { %v2902_v29 = vpop.permute.xlu1 %2901 }
 0x49b   : > { %3473 = vrot.lane.b32.xlu0 %v3810_v28, %s4973_s12  ;;  %v2970_v18 = vadd.f32 %v7359_v50, %v2902_v29  ;;  %v3193_v46 = vmul.f32 %v7360_v35, %v2969_v57  ;;  %v7379_v29 = vld [vmem:[#allocation49_spill] sm:$0xff] }
 0x49c   : > { %v2896_v13 = vpop.permute.xlu0 %2895 }
 0x49d   : > { %3255 = vrot.lane.b32.xlu1 %v3179_v39, %s4973_s12  ;;  %v2967_v44 = vadd.f32 %v7361_v62, %v2896_v13  ;;  %v3194_v8 = vmul.f32 %v7362_v37, %v2970_v18  ;;  %v3827_v15 = vpack.c.bf16 %v3193_v46, %v3193_v46  ;;  %v7381_v13 = vld [vmem:[#allocation28_spill] sm:$0xff] }
 0x49e   : > { %v2898_v40 = vpop.permute.xlu1 %2897 }
 0x49f   : > { %3257 = vrot.lane.b32.xlu0 %v3180_v0, %s4973_s12  ;;  %v2968_v36 = vadd.f32 %v7363_v31, %v2898_v40  ;;  %v3191_v4 = vmul.f32 %v7364_v6, %v2967_v44  ;;  %v3828_v22 = vpack.c.bf16 %v3194_v8, %v3194_v8 }
 0x4a0   : > { %v2888_v48 = vpop.permute.xlu0 %2887 }
 0x4a1   : > { %3479 = vrot.lane.b32.xlu1 %v3813_v61, %s4973_s12  ;;  %v3192_v3 = vmul.f32 %v7365_v24, %v2968_v36  ;;  %v3825_v59 = vpack.c.bf16 %v3191_v4, %v3191_v4  ;;  %v2963_v23 = vadd.f32 %v7366_v16, %v2888_v48 }
 0x4a2   : > { %v2890_v28 = vpop.permute.xlu1 %2889 }
 0x4a3   : > { %3481 = vrot.lane.b32.xlu0 %v3814_v19, %s4973_s12  ;;  %v3826_v39 = vpack.c.bf16 %v3192_v3, %v3192_v3  ;;  %v2964_v7 = vadd.f32 %v7367_v10, %v2890_v28  ;;  %v3187_v61 = vmul.f32 %v7368_v52, %v2963_v23 }
 0x4a4   : > { %v2908_v0 = vpop.permute.xlu0 %2907 }
 0x4a5   : > { %3259 = vrot.lane.b32.xlu1 %v3181_v25, %s4973_s12  ;;  %v3188_v19 = vmul.f32 %v7369_v43, %v2964_v7  ;;  %v3821_v32 = vpack.c.bf16 %v3187_v61, %v3187_v61  ;;  %v2973_v9 = vadd.f32 %v7370_v41, %v2908_v0 }
 0x4a6   : > { %v2910_v1 = vpop.permute.xlu1 %2909 }
 0x4a7   : > { %3261 = vrot.lane.b32.xlu0 %v3182_v20, %s4973_s12  ;;  %v3822_v34 = vpack.c.bf16 %v3188_v19, %v3188_v19  ;;  %v2974_v20 = vadd.f32 %v7371_v11, %v2910_v1 }
 0x4a8   : > { %v2904_v25 = vpop.permute.xlu0 %2903 }
 0x4a9   : > { %3483 = vrot.lane.b32.xlu1 %v3815_v2, %s4973_s12  ;;  %v7372_v2 = vld [vmem:[#allocation29_spill] sm:$0xff]  ;;  %v3198_v30 = vmul.f32 %v7374_v58, %v2974_v20 }
 0x4aa   : > { %v2906_v26 = vpop.permute.xlu1 %2905  ;;  %v3197_v33 = vmul.f32 %v7372_v2, %v2973_v9 }
 0x4ab   : > { %3485 = vrot.lane.b32.xlu0 %v3816_v27, %s4973_s12  ;;  %v2971_v27 = vadd.f32 %v7373_v42, %v2904_v25  ;;  %v3832_v37 = vpack.c.bf16 %v3198_v30, %v3198_v30 }
 0x4ac   : > { %v2892_v47 = vpop.permute.xlu0 %2891  ;;  %v3831_v62 = vpack.c.bf16 %v3197_v33, %v3197_v33 }
 0x4ad   : > { %3263 = vrot.lane.b32.xlu1 %v3183_v21, %s4973_s12  ;;  %v7375_v21 = vld [vmem:[#allocation47_spill] sm:$0xff]  ;;  %v2965_v56 = vadd.f32 %v7378_v45, %v2892_v47 }
 0x4ae   : > { %v2972_v17 = vadd.f32 %v7375_v21, %v2906_v26 }
 0x4af   : > { %3265 = vrot.lane.b32.xlu0 %v3184_v51, %s4973_s12  ;;  %v3195_v51 = vmul.f32 %v7376_v54, %v2971_v27 }
 0x4b1   : > { %3487 = vrot.lane.b32.xlu1 %v3817_v53, %s4973_s12  ;;  %v7377_v53 = vld [vmem:[#allocation30_spill] sm:$0xff]  ;;  %v3829_v60 = vpack.c.bf16 %v3195_v51, %v3195_v51 }
 0x4b2   : > { %v3196_v55 = vmul.f32 %v7377_v53, %v2972_v17 }
 0x4b3   : > { %3489 = vrot.lane.b32.xlu0 %v3818_v49, %s4973_s12  ;;  %v2894_v49 = vpop.permute.xlu1 %2893 }
 0x4b4   : > { %v2966_v5 = vadd.f32 %v7379_v29, %v2894_v49 }
 0x4b5   : > { %3267 = vrot.lane.b32.xlu1 %v3185_v14, %s4973_s12  ;;  %v3830_v14 = vpack.c.bf16 %v3196_v55, %v3196_v55 }
 0x4b7   : > { %3269 = vrot.lane.b32.xlu0 %v3186_v63, %s4973_s12  ;;  %v7380_v63 = vld [vmem:[#allocation14_spill] sm:$0xff] }
 0x4b9   : > { %3491 = vrot.lane.b32.xlu1 %v3819_v12, %s4973_s12  ;;  %v3189_v12 = vmul.f32 %v7380_v63, %v2965_v56 }
 0x4bb   : > { %3493 = vrot.lane.b32.xlu0 %v3820_v38, %s4973_s12  ;;  %v3190_v38 = vmul.f32 %v7381_v13, %v2966_v5  ;;  %v3823_v18 = vpack.c.bf16 %v3189_v12, %v3189_v12 }
 0x4bd   : > { %3283 = vrot.lane.b32.xlu1 %v3193_v46, %s4973_s12  ;;  %v3824_v35 = vpack.c.bf16 %v3190_v38, %v3190_v38 }
 0x4bf   : > { %3285 = vrot.lane.b32.xlu0 %v3194_v8, %s4973_s12 }
 0x4c1   : > { %3279 = vrot.lane.b32.xlu1 %v3191_v4, %s4973_s12 }
 0x4c3   : > { %3281 = vrot.lane.b32.xlu0 %v3192_v3, %s4973_s12 }
 0x4c5   : > { %3507 = vrot.lane.b32.xlu1 %v3827_v15, %s4973_s12 }
 0x4c7   : > { %3509 = vrot.lane.b32.xlu0 %v3828_v22, %s4973_s12 }
 0x4c9   : > { %3503 = vrot.lane.b32.xlu1 %v3825_v59, %s4973_s12 }
 0x4cb   : > { %3505 = vrot.lane.b32.xlu0 %v3826_v39, %s4973_s12 }
 0x4cd   : > { %3271 = vrot.lane.b32.xlu1 %v3187_v61, %s4973_s12 }
 0x4cf   : > { %3273 = vrot.lane.b32.xlu0 %v3188_v19, %s4973_s12 }
 0x4d1   : > { %3495 = vrot.lane.b32.xlu1 %v3821_v32, %s4973_s12 }
 0x4d3   : > { %3497 = vrot.lane.b32.xlu0 %v3822_v34, %s4973_s12 }
 0x4d5   : > { %3291 = vrot.lane.b32.xlu1 %v3197_v33, %s4973_s12 }
 0x4d7   : > { %3293 = vrot.lane.b32.xlu0 %v3198_v30, %s4973_s12 }
 0x4d9   : > { %3287 = vrot.lane.b32.xlu1 %v3195_v51, %s4973_s12 }
 0x4db   : > { %3289 = vrot.lane.b32.xlu0 %v3196_v55, %s4973_s12 }
 0x4dd   : > { %3511 = vrot.lane.b32.xlu1 %v3829_v60, %s4973_s12 }
 0x4df   : > { %3513 = vrot.lane.b32.xlu0 %v3830_v14, %s4973_s12  ;;  %v3236_v57 = vpop.permute.xlu1 %3235 }
 0x4e0   : > { %3329 = vst.msk [vmem:[#allocation2 + $0x28] sm:$0xff] %vm1091_vm1, %v3236_v57 }
 0x4e1   : > { %3275 = vrot.lane.b32.xlu1 %v3189_v12, %s4973_s12  ;;  %v3238_v50 = vpop.permute.xlu0 %3237 }
 0x4e2   : > { %3330 = vst.msk [vmem:[#allocation2 + $0x30] sm:$0xff] %vm1091_vm1, %v3238_v50 }
 0x4e3   : > { %3277 = vrot.lane.b32.xlu0 %v3190_v38, %s4973_s12  ;;  %v3232_v40 = vpop.permute.xlu1 %3231 }
 0x4e4   : > { %3327 = vst.msk [vmem:[#allocation2 + $0x18] sm:$0xff] %vm1091_vm1, %v3232_v40 }
 0x4e5   : > { %3499 = vrot.lane.b32.xlu1 %v3823_v18, %s4973_s12  ;;  %v3234_v46 = vpop.permute.xlu0 %3233 }
 0x4e6   : > { %3328 = vst.msk [vmem:[#allocation2 + $0x20] sm:$0xff] %vm1091_vm1, %v3234_v46 }
 0x4e7   : > { %3501 = vrot.lane.b32.xlu0 %v3824_v35, %s4973_s12  ;;  %v3460_v44 = vpop.permute.xlu1 %3459 }
 0x4e8   : > { %3554 = vst.msk [vmem:[%s5044_s10 + $0x8] sm:$0xf] %vm3551_vm4, %v3460_v44 }
 0x4e9   : > { %3515 = vrot.lane.b32.xlu1 %v3831_v62, %s4973_s12  ;;  %v3462_v8 = vpop.permute.xlu0 %3461 }
 0x4ea   : > { %3555 = vst.msk [vmem:[%s5044_s10 + $0xc] sm:$0xf] %vm3551_vm4, %v3462_v8 }
 0x4eb   : > { %3517 = vrot.lane.b32.xlu0 %v3832_v37, %s4973_s12  ;;  %v3456_v31 = vpop.permute.xlu1 %3455 }
 0x4ec   : > { %3552 = vst.msk [vmem:[%s5044_s10] sm:$0xf] %vm3551_vm4, %v3456_v31 }
 0x4ed   : > { %v3458_v36 = vpop.permute.xlu0 %3457 }
 0x4ee   : > { %3553 = vst.msk [vmem:[%s5044_s10 + $0x4] sm:$0xf] %vm3551_vm4, %v3458_v36 }
 0x4ef   : > { %v3244_v6 = vpop.permute.xlu1 %3243 }
 0x4f0   : > { %3333 = vst.msk [vmem:[#allocation2 + $0x48] sm:$0xff] %vm1091_vm1, %v3244_v6 }
 0x4f1   : > { %v3246_v4 = vpop.permute.xlu0 %3245 }
 0x4f2   : > { %3334 = vst.msk [vmem:[#allocation2 + $0x50] sm:$0xff] %vm1091_vm1, %v3246_v4 }
 0x4f3   : > { %v3240_v24 = vpop.permute.xlu1 %3239 }
 0x4f4   : > { %3331 = vst.msk [vmem:[#allocation2 + $0x38] sm:$0xff] %vm1091_vm1, %v3240_v24 }
 0x4f5   : > { %v3242_v3 = vpop.permute.xlu0 %3241 }
 0x4f6   : > { %3332 = vst.msk [vmem:[#allocation2 + $0x40] sm:$0xff] %vm1091_vm1, %v3242_v3 }
 0x4f7   : > { %v3468_v15 = vpop.permute.xlu1 %3467 }
 0x4f8   : > { %3558 = vst.msk [vmem:[%s5044_s10 + $0x18] sm:$0xf] %vm3551_vm4, %v3468_v15 }
 0x4f9   : > { %v3470_v48 = vpop.permute.xlu0 %3469 }
 0x4fa   : > { %3559 = vst.msk [vmem:[%s5044_s10 + $0x1c] sm:$0xf] %vm3551_vm4, %v3470_v48 }
 0x4fb   : > { %v3464_v22 = vpop.permute.xlu1 %3463 }
 0x4fc   : > { %3556 = vst.msk [vmem:[%s5044_s10 + $0x10] sm:$0xf] %vm3551_vm4, %v3464_v22 }
 0x4fd   : > { %v3466_v28 = vpop.permute.xlu0 %3465 }
 0x4fe   : > { %3557 = vst.msk [vmem:[%s5044_s10 + $0x14] sm:$0xf] %vm3551_vm4, %v3466_v28 }
 0x4ff   : > { %v3252_v59 = vpop.permute.xlu1 %3251 }
 0x500   : > { %3337 = vst.msk [vmem:[#allocation2 + $0x68] sm:$0xff] %vm1091_vm1, %v3252_v59 }
 0x501   : > { %v3254_v16 = vpop.permute.xlu0 %3253 }
 0x502   : > { %3338 = vst.msk [vmem:[#allocation2 + $0x70] sm:$0xff] %vm1091_vm1, %v3254_v16 }
 0x503   : > { %v3248_v23 = vpop.permute.xlu1 %3247 }
 0x504   : > { %3335 = vst.msk [vmem:[#allocation2 + $0x58] sm:$0xff] %vm1091_vm1, %v3248_v23 }
 0x505   : > { %v3250_v39 = vpop.permute.xlu0 %3249 }
 0x506   : > { %3336 = vst.msk [vmem:[#allocation2 + $0x60] sm:$0xff] %vm1091_vm1, %v3250_v39 }
 0x507   : > { %v3476_v10 = vpop.permute.xlu1 %3475 }
 0x508   : > { %3562 = vst.msk [vmem:[%s5044_s10 + $0x28] sm:$0xf] %vm3551_vm4, %v3476_v10 }
 0x509   : > { %v3478_v7 = vpop.permute.xlu0 %3477 }
 0x50a   : > { %3563 = vst.msk [vmem:[%s5044_s10 + $0x2c] sm:$0xf] %vm3551_vm4, %v3478_v7 }
 0x50b   : > { %v3472_v0 = vpop.permute.xlu1 %3471 }
 0x50c   : > { %3560 = vst.msk [vmem:[%s5044_s10 + $0x20] sm:$0xf] %vm3551_vm4, %v3472_v0 }
 0x50d   : > { %v3474_v52 = vpop.permute.xlu0 %3473 }
 0x50e   : > { %3561 = vst.msk [vmem:[%s5044_s10 + $0x24] sm:$0xf] %vm3551_vm4, %v3474_v52 }
 0x50f   : > { %v3256_v61 = vpop.permute.xlu1 %3255 }
 0x510   : > { %3339 = vst.msk [vmem:[#allocation2 + $0x78] sm:$0xff] %vm1091_vm1, %v3256_v61 }
 0x511   : > { %v3258_v1 = vpop.permute.xlu0 %3257 }
 0x512   : > { %3340 = vst.msk [vmem:[#allocation2 + $0x80] sm:$0xff] %vm1091_vm1, %v3258_v1 }
 0x513   : > { %v3480_v43 = vpop.permute.xlu1 %3479 }
 0x514   : > { %3564 = vst.msk [vmem:[%s5044_s10 + $0x30] sm:$0xf] %vm3551_vm4, %v3480_v43 }
 0x515   : > { %v3482_v19 = vpop.permute.xlu0 %3481 }
 0x516   : > { %3565 = vst.msk [vmem:[%s5044_s10 + $0x34] sm:$0xf] %vm3551_vm4, %v3482_v19 }
 0x517   : > { %v3260_v32 = vpop.permute.xlu1 %3259 }
 0x518   : > { %3341 = vst.msk [vmem:[#allocation2 + $0x88] sm:$0xff] %vm1091_vm1, %v3260_v32 }
 0x519   : > { %v3262_v41 = vpop.permute.xlu0 %3261 }
 0x51a   : > { %3342 = vst.msk [vmem:[#allocation2 + $0x90] sm:$0xff] %vm1091_vm1, %v3262_v41 }
 0x51b   : > { %v3484_v9 = vpop.permute.xlu1 %3483 }
 0x51c   : > { %3566 = vst.msk [vmem:[%s5044_s10 + $0x38] sm:$0xf] %vm3551_vm4, %v3484_v9 }
 0x51d   : > { %v3486_v25 = vpop.permute.xlu0 %3485 }
 0x51e   : > { %3567 = vst.msk [vmem:[%s5044_s10 + $0x3c] sm:$0xf] %vm3551_vm4, %v3486_v25 }
 0x51f   : > { %v3264_v34 = vpop.permute.xlu1 %3263 }
 0x520   : > { %3343 = vst.msk [vmem:[#allocation2 + $0x98] sm:$0xff] %vm1091_vm1, %v3264_v34 }
 0x521   : > { %v3266_v11 = vpop.permute.xlu0 %3265 }
 0x522   : > { %3344 = vst.msk [vmem:[#allocation2 + $0xa0] sm:$0xff] %vm1091_vm1, %v3266_v11 }
 0x523   : > { %v3488_v20 = vpop.permute.xlu1 %3487 }
 0x524   : > { %3568 = vst.msk [vmem:[%s5044_s10 + $0x40] sm:$0xf] %vm3551_vm4, %v3488_v20 }
 0x525   : > { %v3490_v26 = vpop.permute.xlu0 %3489 }
 0x526   : > { %3569 = vst.msk [vmem:[%s5044_s10 + $0x44] sm:$0xf] %vm3551_vm4, %v3490_v26 }
 0x527   : > { %v3268_v2 = vpop.permute.xlu1 %3267 }
 0x528   : > { %3345 = vst.msk [vmem:[#allocation2 + $0xa8] sm:$0xff] %vm1091_vm1, %v3268_v2 }
 0x529   : > { %v3270_v33 = vpop.permute.xlu0 %3269 }
 0x52a   : > { %3346 = vst.msk [vmem:[#allocation2 + $0xb0] sm:$0xff] %vm1091_vm1, %v3270_v33 }
 0x52b   : > { %v3492_v42 = vpop.permute.xlu1 %3491 }
 0x52c   : > { %3570 = vst.msk [vmem:[%s5044_s10 + $0x48] sm:$0xf] %vm3551_vm4, %v3492_v42 }
 0x52d   : > { %v3494_v27 = vpop.permute.xlu0 %3493 }
 0x52e   : > { %3571 = vst.msk [vmem:[%s5044_s10 + $0x4c] sm:$0xf] %vm3551_vm4, %v3494_v27 }
 0x52f   : > { %v3284_v58 = vpop.permute.xlu1 %3283 }
 0x530   : > { %3353 = vst.msk [vmem:[#allocation2 + $0xe8] sm:$0xff] %vm1091_vm1, %v3284_v58 }
 0x531   : > { %v3286_v30 = vpop.permute.xlu0 %3285 }
 0x532   : > { %3354 = vst.msk [vmem:[#allocation2 + $0xf0] sm:$0xff] %vm1091_vm1, %v3286_v30 }
 0x533   : > { %v3280_v21 = vpop.permute.xlu1 %3279 }
 0x534   : > { %3351 = vst.msk [vmem:[#allocation2 + $0xd8] sm:$0xff] %vm1091_vm1, %v3280_v21 }
 0x535   : > { %v3282_v17 = vpop.permute.xlu0 %3281 }
 0x536   : > { %3352 = vst.msk [vmem:[#allocation2 + $0xe0] sm:$0xff] %vm1091_vm1, %v3282_v17 }
 0x537   : > { %v3508_v54 = vpop.permute.xlu1 %3507 }
 0x538   : > { %3578 = vst.msk [vmem:[%s5044_s10 + $0x68] sm:$0xf] %vm3551_vm4, %v3508_v54 }
 0x539   : > { %v3510_v51 = vpop.permute.xlu0 %3509 }
 0x53a   : > { %3579 = vst.msk [vmem:[%s5044_s10 + $0x6c] sm:$0xf] %vm3551_vm4, %v3510_v51 }
 0x53b   : > { %v3504_v47 = vpop.permute.xlu1 %3503 }
 0x53c   : > { %3576 = vst.msk [vmem:[%s5044_s10 + $0x60] sm:$0xf] %vm3551_vm4, %v3504_v47 }
 0x53d   : > { %v3506_v53 = vpop.permute.xlu0 %3505 }
 0x53e   : > { %3577 = vst.msk [vmem:[%s5044_s10 + $0x64] sm:$0xf] %vm3551_vm4, %v3506_v53 }
 0x53f   : > { %v3272_v55 = vpop.permute.xlu1 %3271 }
 0x540   : > { %3347 = vst.msk [vmem:[#allocation2 + $0xb8] sm:$0xff] %vm1091_vm1, %v3272_v55 }
 0x541   : > { %v3274_v49 = vpop.permute.xlu0 %3273 }
 0x542   : > { %3348 = vst.msk [vmem:[#allocation2 + $0xc0] sm:$0xff] %vm1091_vm1, %v3274_v49 }
 0x543   : > { %v3496_v60 = vpop.permute.xlu1 %3495 }
 0x544   : > { %3572 = vst.msk [vmem:[%s5044_s10 + $0x50] sm:$0xf] %vm3551_vm4, %v3496_v60 }
 0x545   : > { %v3498_v45 = vpop.permute.xlu0 %3497 }
 0x546   : > { %3573 = vst.msk [vmem:[%s5044_s10 + $0x54] sm:$0xf] %vm3551_vm4, %v3498_v45 }
 0x547   : > { %v3292_v56 = vpop.permute.xlu1 %3291 }
 0x548   : > { %3357 = vst.msk [vmem:[#allocation2 + $0x108] sm:$0xff] %vm1091_vm1, %v3292_v56 }
 0x549   : > { %v3294_v14 = vpop.permute.xlu0 %3293 }
 0x54a   : > { %3358 = vst.msk [vmem:[#allocation2 + $0x110] sm:$0xff] %vm1091_vm1, %v3294_v14 }
 0x54b   : > { %v3288_v29 = vpop.permute.xlu1 %3287 }
 0x54c   : > { %3355 = vst.msk [vmem:[#allocation2 + $0xf8] sm:$0xff] %vm1091_vm1, %v3288_v29 }
 0x54d   : > { %v3290_v5 = vpop.permute.xlu0 %3289 }
 0x54e   : > { %3356 = vst.msk [vmem:[#allocation2 + $0x100] sm:$0xff] %vm1091_vm1, %v3290_v5 }
 0x54f   : > { %v3512_v63 = vpop.permute.xlu1 %3511 }
 0x550   : > { %3580 = vst.msk [vmem:[%s5044_s10 + $0x70] sm:$0xf] %vm3551_vm4, %v3512_v63 }
 0x551   : > { %v3514_v12 = vpop.permute.xlu0 %3513 }
 0x552   : > { %3581 = vst.msk [vmem:[%s5044_s10 + $0x74] sm:$0xf] %vm3551_vm4, %v3514_v12 }
 0x553   : > { %v3276_v57 = vpop.permute.xlu1 %3275 }
 0x554   : > { %3349 = vst.msk [vmem:[#allocation2 + $0xc8] sm:$0xff] %vm1091_vm1, %v3276_v57 }
 0x555   : > { %v3278_v13 = vpop.permute.xlu0 %3277 }
 0x556   : > { %3350 = vst.msk [vmem:[#allocation2 + $0xd0] sm:$0xff] %vm1091_vm1, %v3278_v13 }
 0x557   : > { %v3500_v38 = vpop.permute.xlu1 %3499 }
 0x558   : > { %3574 = vst.msk [vmem:[%s5044_s10 + $0x58] sm:$0xf] %vm3551_vm4, %v3500_v38 }
 0x559   : > { %v3502_v50 = vpop.permute.xlu0 %3501 }
 0x55a   : > { %3575 = vst.msk [vmem:[%s5044_s10 + $0x5c] sm:$0xf] %vm3551_vm4, %v3502_v50 }
 0x55b   : > { %v3516_v18 = vpop.permute.xlu1 %3515 }
 0x55c   : > { %3582 = vst.msk [vmem:[%s5044_s10 + $0x78] sm:$0xf] %vm3551_vm4, %v3516_v18 }
 0x55d   : > { %v3518_v40 = vpop.permute.xlu0 %3517 }
 0x55e   : > { %3583 = vst.msk [vmem:[%s5044_s10 + $0x7c] sm:$0xf] %vm3551_vm4, %v3518_v40 }
 0x55f PF: > { %s14_s19 = sadd.s32 1, %s4969_s19   ;;  %s7382_s15 = smov %s4961_s17 }
 0x560   : > { %p11_p8 = scmp.ge.s32.totalorder %s14_s19, 18   ;;  %s7383_s16 = smov %s4965_s18 }
 0x561   : > { %s7384_s17 = smov %s7387_s20  ;;  %s7385_s18 = smov %s7391_s21 }
 0x562   :  { %13 = sbr.rel (!%p11_p8) target bundleno = 3 (0x3), region = 73 }

// kernel: conv_gru_forward.6
= control target key start
LH: loop header
LB: loop body
LE: loop exit
PB: predicated region body
PF: predicated region fallthrough
CT: control target
= control target key end

     0   :  { %s3601_s12 = smov 0   ;;  %s4405_s0 = inlined_call_operand.vmem [shape: bf16[2304,288], index: 0, kind: input, shape index: {}]   ;;  %s4406_s1 = inlined_call_operand.vmem [shape: bf16[288,96], index: 1, kind: input, shape index: {}]   ;;  %s4407_s2 = inlined_call_operand.vmem [shape: f32[1,96], index: 2, kind: input, shape index: {}]   ;;  %s4408_s3 = inlined_call_operand.vmem [shape: bf16[2304,96], index: 3, kind: output, shape index: {}]  }
   0x1 LB: > { %s2757_s13 = sadd.s32 4294967295, %s3578_s12   ;;  %p2761_p0 = scmp.ge.s32.totalorder %s3578_s12, 1  ;;  %s3578_s12 = sphi %s3601_s12, %s13_s12  }
   0x2   : > { %p139_p1 = scmp.lt.s32.totalorder %s3578_s12, 4 }
   0x4   : > { %p140_p2 = pnand %p2761_p0, %p139_p1 }
   0x5   : > { %v3361_v0 = vld [vmem:[%s4406_s1] sm:$0xff] (!%p140_p2)   ;;  %v3580_v1 = vmov (!%p140_p2), 0   ;;  %s164_s16 = smul.u32 (!%p140_p2), 96, %s2757_s13  ;;  %v3362_v2 = vld [vmem:[%s4406_s1 + $0x8] sm:$0xff] (!%p140_p2)   ;;  %v3363_v3 = vld [vmem:[%s4406_s1 + $0x10] sm:$0xff] (!%p140_p2)   ;;  %vm1241_vm0 = vcmask (!%p140_p2), 261120  }
   0x6   : > { %143 = sbr.rel (%p140_p2) target bundleno = 571 (0x23b), region = 32  ;;  %1386 = vmatprep.subr.bf16.mxu0 (!%p140_p2), %v3580_v1  ;;  %3319 = vmatprep.subr.bf16.mxu1 (!%p140_p2), %v3580_v1  ;;  %v3364_v4 = vld [vmem:[%s4406_s1 + $0x18] sm:$0xff] (!%p140_p2)   ;;  %v3365_v5 = vld [vmem:[%s4406_s1 + $0x20] sm:$0xff] (!%p140_p2)   ;;  %v3366_v7 = vld [vmem:[%s4406_s1 + $0x28] sm:$0xff] (!%p140_p2)   ;;  %vm2604_vm1 = vcmask (!%p140_p2), 781312  }
   0x7   : > { %1387 = vmatpush1.bf16.msra.mxu0 (!%p140_p2), %v3361_v0  ;;  %3335 = vmatpush1.bf16.msra.mxu1 (!%p140_p2), %v3361_v0  ;;  %p165_p3 = scmp.lt.s32.totalorder (!%p140_p2), %s164_s16, 287  ;;  %v3367_v9 = vld [vmem:[%s4406_s1 + $0x30] sm:$0xff] (!%p140_p2)   ;;  %v3368_v10 = vld [vmem:[%s4406_s1 + $0x38] sm:$0xff] (!%p140_p2)   ;;  %v3369_v11 = vld [vmem:[%s4406_s1 + $0x40] sm:$0xff] (!%p140_p2)  }
   0x8   : > { %1388 = vmatprep.subr.bf16.mxu0 (!%p140_p2), %v3580_v1  ;;  %3320 = vmatprep.subr.bf16.mxu1 (!%p140_p2), %v3580_v1  ;;  %v3370_v12 = vld [vmem:[%s4406_s1 + $0x48] sm:$0xff] (!%p140_p2)   ;;  %v3371_v13 = vld [vmem:[%s4406_s1 + $0x50] sm:$0xff] (!%p140_p2)   ;;  %v3372_v14 = vld [vmem:[%s4406_s1 + $0x58] sm:$0xff] (!%p140_p2)  }
   0x9   : > { %v3373_v15 = vld [vmem:[%s4406_s1 + $0x60] sm:$0xff] (!%p140_p2)   ;;  %v3374_v16 = vld [vmem:[%s4406_s1 + $0x68] sm:$0xff] (!%p140_p2)   ;;  %v3375_v17 = vld [vmem:[%s4406_s1 + $0x70] sm:$0xff] (!%p140_p2)  }
   0xa   : > { %v3376_v18 = vld [vmem:[%s4406_s1 + $0x78] sm:$0xff] (!%p140_p2)   ;;  %v3383_v20 = vld [vmem:[%s4406_s1 + $0x80] sm:$0xff] (!%p140_p2)   ;;  %v3420_v24 = vld [vmem:[%s4406_s1 + $0x88] sm:$0xff] (!%p140_p2)  }
   0xb   : > { %1389 = vmatpush1.bf16.msra.mxu0 (!%p140_p2), %v3362_v2  ;;  %3336 = vmatpush1.bf16.msra.mxu1 (!%p140_p2), %v3362_v2 }
   0xc   : > { %1390 = vmatprep.subr.bf16.mxu0 (!%p140_p2), %v3580_v1  ;;  %3321 = vmatprep.subr.bf16.mxu1 (!%p140_p2), %v3580_v1 }
   0xd   : > { %s4410_s16 = smov (!%p165_p3, %s164_s16), 287 }
   0xe   : > { %s3351_s23 = smul.u32 12, %s4410_s16  ;;  %s2763_s5 = sshll.u32 %s4410_s16, 2 }
   0xf   : > { %1391 = vmatpush1.bf16.msra.mxu0 %v3363_v3  ;;  %3337 = vmatpush1.bf16.msra.mxu1 %v3363_v3  ;;  %s4010_s8 = scalar_lea.vmem %s4408_s3, %s2763_s5 }
  0x10   : > { %1392 = vmatprep.subr.bf16.mxu0 %v3580_v1  ;;  %3322 = vmatprep.subr.bf16.mxu1 %v3580_v1  ;;  %s3638_s28 = scalar_lea.vmem %s4405_s0, %s3351_s23 }
  0x11   : > { %v3379_v6 = vld [vmem:[%s3638_s28 + $0x4] ss:$12 sps:$4 sm:$0xff]   ;;  %v3377_v19 = vld [vmem:[%s3638_s28] ss:$12 sps:$4 sm:$0xff]   ;;  %v3384_v22 = vld [vmem:[%s3638_s28 + $0x1c] ss:$12 sps:$4 sm:$0xff]  }
  0x12   : > { %v3382_v8 = vld [vmem:[%s3638_s28 + $0x364] ss:$12 sps:$4 sm:$0xff]   ;;  %1418 = vmatprep.mubr.bf16.mxu0 %v3379_v6  ;;  %v3380_v21 = vld [vmem:[%s3638_s28 + $0x360] ss:$12 sps:$4 sm:$0xff]   ;;  %v3386_v23 = vld [vmem:[%s3638_s28 + $0x37c] ss:$12 sps:$4 sm:$0xff]  }
  0x13   : > { %1393 = vmatpush1.bf16.msra.mxu0 %v3364_v4  ;;  %3338 = vmatpush1.bf16.msra.mxu1 %v3364_v4  ;;  %v3388_v25 = vld [vmem:[%s3638_s28 + $0x18] ss:$12 sps:$4 sm:$0xff]   ;;  %v3390_v27 = vld [vmem:[%s3638_s28 + $0x34] ss:$12 sps:$4 sm:$0xff]   ;;  %v3394_v29 = vld [vmem:[%s3638_s28 + $0x30] ss:$12 sps:$4 sm:$0xff]  }
  0x14   : > { %1394 = vmatprep.subr.bf16.mxu0 %v3580_v1  ;;  %3323 = vmatprep.subr.bf16.mxu1 %v3580_v1  ;;  %v3389_v26 = vld [vmem:[%s3638_s28 + $0x378] ss:$12 sps:$4 sm:$0xff]   ;;  %v3392_v28 = vld [vmem:[%s3638_s28 + $0x394] ss:$12 sps:$4 sm:$0xff]   ;;  %v3395_v30 = vld [vmem:[%s3638_s28 + $0x390] ss:$12 sps:$4 sm:$0xff]  }
  0x15   : > { %1706 = vmatprep.mubr.bf16.mxu1 %v3382_v8  ;;  %v3396_v31 = vld [vmem:[%s3638_s28 + $0x4c] ss:$12 sps:$4 sm:$0xff]   ;;  %v3400_v33 = vld [vmem:[%s3638_s28 + $0x48] ss:$12 sps:$4 sm:$0xff]   ;;  %v3402_v35 = vld [vmem:[%s3638_s28 + $0x64] ss:$12 sps:$4 sm:$0xff]  }
  0x16   : > { %v3398_v32 = vld [vmem:[%s3638_s28 + $0x3ac] ss:$12 sps:$4 sm:$0xff]   ;;  %v3401_v34 = vld [vmem:[%s3638_s28 + $0x3a8] ss:$12 sps:$4 sm:$0xff]   ;;  %v3404_v36 = vld [vmem:[%s3638_s28 + $0x3c4] ss:$12 sps:$4 sm:$0xff]  }
  0x17   : > { %1395 = vmatpush1.bf16.msra.mxu0 %v3365_v5  ;;  %3339 = vmatpush1.bf16.msra.mxu1 %v3365_v5  ;;  %v3406_v37 = vld [vmem:[%s3638_s28 + $0x60] ss:$12 sps:$4 sm:$0xff]   ;;  %v3408_v39 = vld [vmem:[%s3638_s28 + $0x7c] ss:$12 sps:$4 sm:$0xff]   ;;  %v3412_v41 = vld [vmem:[%s3638_s28 + $0x78] ss:$12 sps:$4 sm:$0xff]  }
  0x18   : > { %1396 = vmatprep.subr.bf16.mxu0 %v3580_v1  ;;  %3324 = vmatprep.subr.bf16.mxu1 %v3580_v1  ;;  %v3407_v38 = vld [vmem:[%s3638_s28 + $0x3c0] ss:$12 sps:$4 sm:$0xff]   ;;  %v3410_v40 = vld [vmem:[%s3638_s28 + $0x3dc] ss:$12 sps:$4 sm:$0xff]   ;;  %v3413_v42 = vld [vmem:[%s3638_s28 + $0x3d8] ss:$12 sps:$4 sm:$0xff]  }
  0x19   : > { %v3414_v43 = vld [vmem:[%s3638_s28 + $0x94] ss:$12 sps:$4 sm:$0xff]   ;;  %v3418_v45 = vld [vmem:[%s3638_s28 + $0x90] ss:$12 sps:$4 sm:$0xff]   ;;  %v3421_v47 = vld [vmem:[%s3638_s28 + $0xac] ss:$12 sps:$4 sm:$0xff]  }
  0x1a   : > { %v3416_v44 = vld [vmem:[%s3638_s28 + $0x3f4] ss:$12 sps:$4 sm:$0xff]   ;;  %v3419_v46 = vld [vmem:[%s3638_s28 + $0x3f0] ss:$12 sps:$4 sm:$0xff]   ;;  %v3423_v48 = vld [vmem:[%s3638_s28 + $0x40c] ss:$12 sps:$4 sm:$0xff]  }
  0x1b   : > { %1397 = vmatpush1.bf16.msra.mxu0 %v3366_v7  ;;  %3340 = vmatpush1.bf16.msra.mxu1 %v3366_v7  ;;  %v3425_v49 = vld [vmem:[%s3638_s28 + $0xa8] ss:$12 sps:$4 sm:$0xff]   ;;  %v3427_v51 = vld [vmem:[%s3638_s28 + $0xc4] ss:$12 sps:$4 sm:$0xff]   ;;  %v3431_v53 = vld [vmem:[%s3638_s28 + $0xc0] ss:$12 sps:$4 sm:$0xff]  }
  0x1c   : > { %1398 = vmatprep.subr.bf16.mxu0 %v3580_v1  ;;  %3325 = vmatprep.subr.bf16.mxu1 %v3580_v1  ;;  %v3426_v50 = vld [vmem:[%s3638_s28 + $0x408] ss:$12 sps:$4 sm:$0xff]   ;;  %v3429_v52 = vld [vmem:[%s3638_s28 + $0x424] ss:$12 sps:$4 sm:$0xff]   ;;  %v3432_v54 = vld [vmem:[%s3638_s28 + $0x420] ss:$12 sps:$4 sm:$0xff]  }
  0x1d   : > { %v3433_v55 = vld [vmem:[%s3638_s28 + $0xdc] ss:$12 sps:$4 sm:$0xff]   ;;  %v3437_v57 = vld [vmem:[%s3638_s28 + $0xd8] ss:$12 sps:$4 sm:$0xff]   ;;  %v3439_v59 = vld [vmem:[%s3638_s28 + $0xf4] ss:$12 sps:$4 sm:$0xff]  }
  0x1e   : > { %v3435_v56 = vld [vmem:[%s3638_s28 + $0x43c] ss:$12 sps:$4 sm:$0xff]   ;;  %v3438_v58 = vld [vmem:[%s3638_s28 + $0x438] ss:$12 sps:$4 sm:$0xff]   ;;  %v3441_v60 = vld [vmem:[%s3638_s28 + $0x454] ss:$12 sps:$4 sm:$0xff]  }
  0x1f   : > { %1399 = vmatpush1.bf16.msra.mxu0 %v3367_v9  ;;  %3341 = vmatpush1.bf16.msra.mxu1 %v3367_v9  ;;  %v3443_v61 = vld [vmem:[%s3638_s28 + $0xf0] ss:$12 sps:$4 sm:$0xff]   ;;  %v3445_v63 = vld [vmem:[%s3638_s28 + $0x10c] ss:$12 sps:$4 sm:$0xff]   ;;  %v3450_v2 = vld [vmem:[%s3638_s28 + $0x468] ss:$12 sps:$4 sm:$0xff]  }
  0x20   : > { %1400 = vmatprep.subr.bf16.mxu0 %v3580_v1  ;;  %3326 = vmatprep.subr.bf16.mxu1 %v3580_v1  ;;  %v3444_v62 = vld [vmem:[%s3638_s28 + $0x450] ss:$12 sps:$4 sm:$0xff]   ;;  %v3447_v0 = vld [vmem:[%s3638_s28 + $0x46c] ss:$12 sps:$4 sm:$0xff]   ;;  %v3453_v4 = vld [vmem:[%s3638_s28 + $0x8] ss:$12 sps:$4 sm:$0xff]  }
  0x21   : > { %v3451_v3 = vld [vmem:[%s3638_s28 + $0x124] ss:$12 sps:$4 sm:$0xff]   ;;  %v3454_v5 = vld [vmem:[%s3638_s28 + $0x120] ss:$12 sps:$4 sm:$0xff]   ;;  %v3456_v7 = vld [vmem:[%s3638_s28 + $0x13c] ss:$12 sps:$4 sm:$0xff]  }
  0x22   : > { %v3455_v6 = vld [vmem:[%s3638_s28 + $0x20] ss:$12 sps:$4 sm:$0xff]   ;;  %v3458_v8 = vld [vmem:[%s3638_s28 + $0x38] ss:$12 sps:$4 sm:$0xff]  }
  0x23   : > { %1401 = vmatpush1.bf16.msra.mxu0 %v3368_v10  ;;  %3342 = vmatpush1.bf16.msra.mxu1 %v3368_v10  ;;  %v3459_v9 = vld [vmem:[%s3638_s28 + $0x138] ss:$12 sps:$4 sm:$0xff]   ;;  %v3460_v10 = vld [vmem:[%s3638_s28 + $0x50] ss:$12 sps:$4 sm:$0xff]  }
  0x24   : > { %1402 = vmatprep.subr.bf16.mxu0 %v3580_v1  ;;  %3327 = vmatprep.subr.bf16.mxu1 %v3580_v1 }
  0x27   : > { %1403 = vmatpush1.bf16.msra.mxu0 %v3369_v11  ;;  %3343 = vmatpush1.bf16.msra.mxu1 %v3369_v11  ;;  %v3461_v11 = vld [vmem:[%s3638_s28 + $0x154] ss:$12 sps:$4 sm:$0xff]  }
  0x28   : > { %1404 = vmatprep.subr.bf16.mxu0 %v3580_v1  ;;  %3328 = vmatprep.subr.bf16.mxu1 %v3580_v1 }
  0x2b   : > { %1405 = vmatpush1.bf16.msra.mxu0 %v3370_v12  ;;  %3344 = vmatpush1.bf16.msra.mxu1 %v3370_v12  ;;  %v3463_v12 = vld [vmem:[%s3638_s28 + $0x68] ss:$12 sps:$4 sm:$0xff]  }
  0x2c   : > { %1406 = vmatprep.subr.bf16.mxu0 %v3580_v1  ;;  %3329 = vmatprep.subr.bf16.mxu1 %v3580_v1 }
  0x2f   : > { %1407 = vmatpush1.bf16.msra.mxu0 %v3371_v13  ;;  %3345 = vmatpush1.bf16.msra.mxu1 %v3371_v13  ;;  %v3464_v13 = vld [vmem:[%s3638_s28 + $0x150] ss:$12 sps:$4 sm:$0xff]  }
  0x30   : > { %1408 = vmatprep.subr.bf16.mxu0 %v3580_v1  ;;  %3330 = vmatprep.subr.bf16.mxu1 %v3580_v1 }
  0x33   : > { %1409 = vmatpush1.bf16.msra.mxu0 %v3372_v14  ;;  %3346 = vmatpush1.bf16.msra.mxu1 %v3372_v14  ;;  %v3465_v14 = vld [vmem:[%s3638_s28 + $0x80] ss:$12 sps:$4 sm:$0xff]  }
  0x34   : > { %1410 = vmatprep.subr.bf16.mxu0 %v3580_v1  ;;  %3331 = vmatprep.subr.bf16.mxu1 %v3580_v1 }
  0x37   : > { %1411 = vmatpush1.bf16.msra.mxu0 %v3373_v15  ;;  %3347 = vmatpush1.bf16.msra.mxu1 %v3373_v15  ;;  %v3466_v15 = vld [vmem:[%s3638_s28 + $0x16c] ss:$12 sps:$4 sm:$0xff]  }
  0x38   : > { %1412 = vmatprep.subr.bf16.mxu0 %v3580_v1  ;;  %3332 = vmatprep.subr.bf16.mxu1 %v3580_v1 }
  0x3b   : > { %1413 = vmatpush1.bf16.msra.mxu0 %v3374_v16  ;;  %3348 = vmatpush1.bf16.msra.mxu1 %v3374_v16  ;;  %v3468_v16 = vld [vmem:[%s3638_s28 + $0x98] ss:$12 sps:$4 sm:$0xff]  }
  0x3c   : > { %1414 = vmatprep.subr.bf16.mxu0 %v3580_v1  ;;  %3333 = vmatprep.subr.bf16.mxu1 %v3580_v1 }
  0x3f   : > { %1415 = vmatpush1.bf16.msra.mxu0 %v3375_v17  ;;  %3349 = vmatpush1.bf16.msra.mxu1 %v3375_v17  ;;  %v3469_v17 = vld [vmem:[%s3638_s28 + $0x168] ss:$12 sps:$4 sm:$0xff]  }
  0x40   : > { %1416 = vmatprep.subr.bf16.mxu0 %v3580_v1  ;;  %3334 = vmatprep.subr.bf16.mxu1 %v3580_v1  ;;  %v3449_v1 = vld [vmem:[%s3638_s28 + $0x108] ss:$12 sps:$4 sm:$0xff]  }
  0x43   : > { %1417 = vmatpush1.bf16.msra.mxu0 %v3376_v18  ;;  %3350 = vmatpush1.bf16.msra.mxu1 %v3376_v18  ;;  %v3470_v18 = vld [vmem:[%s3638_s28 + $0xb0] ss:$12 sps:$4 sm:$0xff]  }
  0x44   : > { %3219 = vmatprep.subr.bf16.mxu1 %v3383_v20 }
  0x46   : > { %1419 = vmatmul.mubr.bf16.vlgmr.msra.gmra.mrb[0].mxu0 %v3377_v19  ;;  %1707 = vmatmul.mubr.bf16.vlgmr.msra.gmra.mrb[0].mxu1 %v3380_v21  ;;  %v3471_v19 = vld [vmem:[%s3638_s28 + $0x184] ss:$12 sps:$4 sm:$0xff]   ;;  %v3474_v21 = vld [vmem:[%s3638_s28 + $0x180] ss:$12 sps:$4 sm:$0xff]  }
  0x47   : > { %3220 = vmatpush3.bf16.msra.mxu1 %v3383_v20  ;;  %1426 = vmatprep.mubr.bf16.mxu0 %v3384_v22  ;;  %v3473_v20 = vld [vmem:[%s3638_s28 + $0xc8] ss:$12 sps:$4 sm:$0xff]   ;;  %v3475_v22 = vld [vmem:[%s3638_s28 + $0xe0] ss:$12 sps:$4 sm:$0xff]  }
  0x48   : > { %1714 = vmatprep.mubr.bf16.mxu1 %v3386_v23  ;;  %3221 = vmatprep.subr.bf16.mxu1 %v3420_v24  ;;  %v3476_v23 = vld [vmem:[%s3638_s28 + $0x19c] ss:$12 sps:$4 sm:$0xff]  }
  0x4b   : > { %3222 = vmatpush3.bf16.msra.mxu1 %v3420_v24  ;;  %v3478_v24 = vld [vmem:[%s3638_s28 + $0xf8] ss:$12 sps:$4 sm:$0xff]  }
  0x4e   : > { %1427 = vmatmul.mubr.bf16.gmra.mrb[4].mxu0 %v3388_v25  ;;  %1715 = vmatmul.mubr.bf16.gmra.mrb[4].mxu1 %v3389_v26  ;;  %v3479_v25 = vld [vmem:[%s3638_s28 + $0x198] ss:$12 sps:$4 sm:$0xff]   ;;  %v3480_v26 = vld [vmem:[%s3638_s28 + $0x110] ss:$12 sps:$4 sm:$0xff]  }
  0x4f   : > { %1434 = vmatprep.mubr.bf16.mxu0 %v3390_v27  ;;  %1722 = vmatprep.mubr.bf16.mxu1 %v3392_v28  ;;  %v3481_v27 = vld [vmem:[%s3638_s28 + $0x1b4] ss:$12 sps:$4 sm:$0xff]  }
  0x50   : > { %v3483_v28 = vld [vmem:[%s3638_s28 + $0x128] ss:$12 sps:$4 sm:$0xff]  }
  0x56   : > { %1435 = vmatmul.mubr.bf16.gmra.mrb[8].mxu0 %v3394_v29  ;;  %1723 = vmatmul.mubr.bf16.gmra.mrb[8].mxu1 %v3395_v30  ;;  %v3484_v29 = vld [vmem:[%s3638_s28 + $0x1b0] ss:$12 sps:$4 sm:$0xff]   ;;  %v3485_v30 = vld [vmem:[%s3638_s28 + $0x140] ss:$12 sps:$4 sm:$0xff]  }
  0x57   : > { %1442 = vmatprep.mubr.bf16.mxu0 %v3396_v31  ;;  %1730 = vmatprep.mubr.bf16.mxu1 %v3398_v32  ;;  %v3486_v31 = vld [vmem:[%s3638_s28 + $0x1cc] ss:$12 sps:$4 sm:$0xff]  }
  0x58   : > { %v3488_v32 = vld [vmem:[%s3638_s28 + $0x158] ss:$12 sps:$4 sm:$0xff]  }
  0x5e   : > { %1443 = vmatmul.mubr.bf16.gmra.mrb[12].mxu0 %v3400_v33  ;;  %1731 = vmatmul.mubr.bf16.gmra.mrb[12].mxu1 %v3401_v34  ;;  %v3489_v33 = vld [vmem:[%s3638_s28 + $0x1c8] ss:$12 sps:$4 sm:$0xff]   ;;  %v3490_v34 = vld [vmem:[%s3638_s28 + $0x170] ss:$12 sps:$4 sm:$0xff]  }
  0x5f   : > { %1450 = vmatprep.mubr.bf16.mxu0 %v3402_v35  ;;  %1738 = vmatprep.mubr.bf16.mxu1 %v3404_v36  ;;  %v3491_v35 = vld [vmem:[%s3638_s28 + $0x1e4] ss:$12 sps:$4 sm:$0xff]   ;;  %v3493_v36 = vld [vmem:[%s3638_s28 + $0x188] ss:$12 sps:$4 sm:$0xff]  }
  0x66   : > { %1451 = vmatmul.mubr.bf16.gmra.mrb[16].mxu0 %v3406_v37  ;;  %1739 = vmatmul.mubr.bf16.gmra.mrb[16].mxu1 %v3407_v38  ;;  %v3494_v37 = vld [vmem:[%s3638_s28 + $0x1e0] ss:$12 sps:$4 sm:$0xff]  }
  0x67   : > { %1458 = vmatprep.mubr.bf16.mxu0 %v3408_v39  ;;  %1746 = vmatprep.mubr.bf16.mxu1 %v3410_v40  ;;  %v3495_v38 = vld [vmem:[%s3638_s28 + $0x1a0] ss:$12 sps:$4 sm:$0xff]   ;;  %v3496_v39 = vld [vmem:[%s3638_s28 + $0x1fc] ss:$12 sps:$4 sm:$0xff]   ;;  %v3498_v40 = vld [vmem:[%s3638_s28 + $0x1b8] ss:$12 sps:$4 sm:$0xff]  }
  0x6e   : > { %1459 = vmatmul.mubr.bf16.gmra.mrb[20].mxu0 %v3412_v41  ;;  %1747 = vmatmul.mubr.bf16.gmra.mrb[20].mxu1 %v3413_v42  ;;  %v3499_v41 = vld [vmem:[%s3638_s28 + $0x1f8] ss:$12 sps:$4 sm:$0xff]   ;;  %v3500_v42 = vld [vmem:[%s3638_s28 + $0x1d0] ss:$12 sps:$4 sm:$0xff]  }
  0x6f   : > { %1466 = vmatprep.mubr.bf16.mxu0 %v3414_v43  ;;  %1754 = vmatprep.mubr.bf16.mxu1 %v3416_v44  ;;  %v3501_v43 = vld [vmem:[%s3638_s28 + $0x214] ss:$12 sps:$4 sm:$0xff]  }
  0x70   : > { %v3503_v44 = vld [vmem:[%s3638_s28 + $0x1e8] ss:$12 sps:$4 sm:$0xff]  }
  0x76   : > { %1467 = vmatmul.mubr.bf16.gmra.mrb[24].mxu0 %v3418_v45  ;;  %1755 = vmatmul.mubr.bf16.gmra.mrb[24].mxu1 %v3419_v46  ;;  %v3504_v45 = vld [vmem:[%s3638_s28 + $0x210] ss:$12 sps:$4 sm:$0xff]   ;;  %v3505_v46 = vld [vmem:[%s3638_s28 + $0x200] ss:$12 sps:$4 sm:$0xff]  }
  0x77   : > { %1474 = vmatprep.mubr.bf16.mxu0 %v3421_v47  ;;  %1762 = vmatprep.mubr.bf16.mxu1 %v3423_v48  ;;  %v3506_v47 = vld [vmem:[%s3638_s28 + $0x22c] ss:$12 sps:$4 sm:$0xff]  }
  0x78   : > { %v3508_v48 = vld [vmem:[%s3638_s28 + $0x218] ss:$12 sps:$4 sm:$0xff]  }
  0x7e   : > { %1475 = vmatmul.mubr.bf16.gmra.mrb[28].mxu0 %v3425_v49  ;;  %1763 = vmatmul.mubr.bf16.gmra.mrb[28].mxu1 %v3426_v50  ;;  %v3509_v49 = vld [vmem:[%s3638_s28 + $0x228] ss:$12 sps:$4 sm:$0xff]   ;;  %v3510_v50 = vld [vmem:[%s3638_s28 + $0x230] ss:$12 sps:$4 sm:$0xff]  }
  0x7f   : > { %1482 = vmatprep.mubr.bf16.mxu0 %v3427_v51  ;;  %1770 = vmatprep.mubr.bf16.mxu1 %v3429_v52  ;;  %v3511_v51 = vld [vmem:[%s3638_s28 + $0x244] ss:$12 sps:$4 sm:$0xff]   ;;  %v3513_v52 = vld [vmem:[%s3638_s28 + $0x248] ss:$12 sps:$4 sm:$0xff]  }
  0x86   : > { %1483 = vmatmul.mubr.bf16.gmra.mrb[32].mxu0 %v3431_v53  ;;  %1771 = vmatmul.mubr.bf16.gmra.mrb[32].mxu1 %v3432_v54  ;;  %v3514_v53 = vld [vmem:[%s3638_s28 + $0x240] ss:$12 sps:$4 sm:$0xff]  }
  0x87   : > { %1490 = vmatprep.mubr.bf16.mxu0 %v3433_v55  ;;  %1778 = vmatprep.mubr.bf16.mxu1 %v3435_v56  ;;  %v3515_v54 = vld [vmem:[%s3638_s28 + $0x260] ss:$12 sps:$4 sm:$0xff]   ;;  %v3516_v55 = vld [vmem:[%s3638_s28 + $0x25c] ss:$12 sps:$4 sm:$0xff]   ;;  %v3518_v56 = vld [vmem:[%s3638_s28 + $0x278] ss:$12 sps:$4 sm:$0xff]  }
  0x8e   : > { %1491 = vmatmul.mubr.bf16.gmra.mrb[36].mxu0 %v3437_v57  ;;  %1779 = vmatmul.mubr.bf16.gmra.mrb[36].mxu1 %v3438_v58  ;;  %v3519_v57 = vld [vmem:[%s3638_s28 + $0x258] ss:$12 sps:$4 sm:$0xff]   ;;  %v3520_v58 = vld [vmem:[%s3638_s28 + $0x290] ss:$12 sps:$4 sm:$0xff]  }
  0x8f   : > { %1498 = vmatprep.mubr.bf16.mxu0 %v3439_v59  ;;  %1786 = vmatprep.mubr.bf16.mxu1 %v3441_v60  ;;  %v3521_v59 = vld [vmem:[%s3638_s28 + $0x274] ss:$12 sps:$4 sm:$0xff]  }
  0x90   : > { %v3523_v60 = vld [vmem:[%s3638_s28 + $0x2a8] ss:$12 sps:$4 sm:$0xff]  }
  0x96   : > { %1499 = vmatmul.mubr.bf16.gmra.mrb[40].mxu0 %v3443_v61  ;;  %1787 = vmatmul.mubr.bf16.gmra.mrb[40].mxu1 %v3444_v62  ;;  %v3524_v61 = vld [vmem:[%s3638_s28 + $0x270] ss:$12 sps:$4 sm:$0xff]   ;;  %v3525_v62 = vld [vmem:[%s3638_s28 + $0x2c0] ss:$12 sps:$4 sm:$0xff]  }
  0x97   : > { %1506 = vmatprep.mubr.bf16.mxu0 %v3445_v63  ;;  %1794 = vmatprep.mubr.bf16.mxu1 %v3447_v0  ;;  %v3526_v63 = vld [vmem:[%s3638_s28 + $0x28c] ss:$12 sps:$4 sm:$0xff]  }
  0x98   : > { %v3528_v0 = vld [vmem:[%s3638_s28 + $0x2d8] ss:$12 sps:$4 sm:$0xff]  }
  0x9e   : > { %1507 = vmatmul.mubr.bf16.gmra.mrb[44].mxu0 %v3449_v1  ;;  %1795 = vmatmul.mubr.bf16.gmra.mrb[44].mxu1 %v3450_v2 }
  0x9f   : > { %1514 = vmatprep.mubr.bf16.mxu0 %v3451_v3  ;;  %3223 = vmatprep.mubr.msk.bf16.mxu1 %vm1241_vm0, %v3453_v4 }
  0xa6   : > { %1515 = vmatmul.mubr.bf16.gmra.mrb[48].mxu0 %v3454_v5  ;;  %3224 = vmatmul.mubr.msk.bf16.vlgmr.msra.gmra.mrb[48].mxu1 %vm1241_vm0, %v3455_v6  ;;  %v3529_v5 = vld [vmem:[%s3638_s28 + $0x288] ss:$12 sps:$4 sm:$0xff]   ;;  %v3530_v6 = vld [vmem:[%s3638_s28 + $0x2f0] ss:$12 sps:$4 sm:$0xff]  }
  0xa7   : > { %1522 = vmatprep.mubr.bf16.mxu0 %v3456_v7  ;;  %3227 = vmatprep.mubr.msk.bf16.mxu1 %vm1241_vm0, %v3458_v8 }
  0xae   : > { %1523 = vmatmul.mubr.bf16.gmra.mrb[52].mxu0 %v3459_v9  ;;  %3228 = vmatmul.mubr.msk.bf16.gmra.mrb[52].mxu1 %vm1241_vm0, %v3460_v10  ;;  %v3531_v9 = vld [vmem:[%s3638_s28 + $0x2a4] ss:$12 sps:$4 sm:$0xff]   ;;  %v3533_v10 = vld [vmem:[%s3638_s28 + $0x308] ss:$12 sps:$4 sm:$0xff]  }
  0xaf   : > { %1530 = vmatprep.mubr.bf16.mxu0 %v3461_v11  ;;  %3231 = vmatprep.mubr.msk.bf16.mxu1 %vm1241_vm0, %v3463_v12 }
  0xb6   : > { %1531 = vmatmul.mubr.bf16.gmra.mrb[56].mxu0 %v3464_v13  ;;  %3232 = vmatmul.mubr.msk.bf16.gmra.mrb[56].mxu1 %vm1241_vm0, %v3465_v14 }
  0xb7   : > { %1538 = vmatprep.mubr.bf16.mxu0 %v3466_v15  ;;  %3235 = vmatprep.mubr.msk.bf16.mxu1 %vm1241_vm0, %v3468_v16 }
  0xbe   : > { %1539 = vmatmul.mubr.bf16.gmra.mrb[60].mxu0 %v3469_v17  ;;  %3236 = vmatmul.mubr.msk.bf16.gmra.mrb[60].mxu1 %vm1241_vm0, %v3470_v18  ;;  %v3534_v17 = vld [vmem:[%s3638_s28 + $0x2a0] ss:$12 sps:$4 sm:$0xff]  }
  0xbf   : > { %1546 = vmatprep.mubr.bf16.mxu0 %v3471_v19  ;;  %3239 = vmatprep.mubr.msk.bf16.mxu1 %vm1241_vm0, %v3473_v20  ;;  %v3535_v18 = vld [vmem:[%s3638_s28 + $0x320] ss:$12 sps:$4 sm:$0xff]  }
  0xc6   : > { %1547 = vmatmul.mubr.bf16.gmra.mrb[64].mxu0 %v3474_v21  ;;  %3240 = vmatmul.mubr.msk.bf16.gmra.mrb[64].mxu1 %vm1241_vm0, %v3475_v22  ;;  %v3536_v21 = vld [vmem:[%s3638_s28 + $0x2bc] ss:$12 sps:$4 sm:$0xff]   ;;  %v3538_v22 = vld [vmem:[%s3638_s28 + $0x338] ss:$12 sps:$4 sm:$0xff]  }
  0xc7   : > { %1554 = vmatprep.mubr.bf16.mxu0 %v3476_v23  ;;  %3243 = vmatprep.mubr.msk.bf16.mxu1 %vm1241_vm0, %v3478_v24 }
  0xce   : > { %1555 = vmatmul.mubr.bf16.gmra.mrb[68].mxu0 %v3479_v25  ;;  %3244 = vmatmul.mubr.msk.bf16.gmra.mrb[68].mxu1 %vm1241_vm0, %v3480_v26 }
  0xcf   : > { %1562 = vmatprep.mubr.bf16.mxu0 %v3481_v27  ;;  %3247 = vmatprep.mubr.msk.bf16.mxu1 %vm1241_vm0, %v3483_v28 }
  0xd6   : > { %1563 = vmatmul.mubr.bf16.gmra.mrb[72].mxu0 %v3484_v29  ;;  %3248 = vmatmul.mubr.msk.bf16.gmra.mrb[72].mxu1 %vm1241_vm0, %v3485_v30  ;;  %v3539_v29 = vld [vmem:[%s3638_s28 + $0x2b8] ss:$12 sps:$4 sm:$0xff]   ;;  %v3540_v30 = vld [vmem:[%s3638_s28 + $0x350] ss:$12 sps:$4 sm:$0xff]  }
  0xd7   : > { %1570 = vmatprep.mubr.bf16.mxu0 %v3486_v31  ;;  %3251 = vmatprep.mubr.msk.bf16.mxu1 %vm1241_vm0, %v3488_v32 }
  0xde   : > { %1571 = vmatmul.mubr.bf16.gmra.mrb[76].mxu0 %v3489_v33  ;;  %3252 = vmatmul.mubr.msk.bf16.gmra.mrb[76].mxu1 %vm1241_vm0, %v3490_v34  ;;  %v3541_v33 = vld [vmem:[%s3638_s28 + $0x2d4] ss:$12 sps:$4 sm:$0xff]  }
  0xdf   : > { %1578 = vmatprep.mubr.bf16.mxu0 %v3491_v35  ;;  %3255 = vmatprep.mubr.msk.bf16.mxu1 %vm1241_vm0, %v3493_v36  ;;  %v3543_v34 = vld [vmem:[%s3638_s28 + $0x368] ss:$12 sps:$4 sm:$0xff]  }
  0xe6   : > { %1579 = vmatmul.mubr.bf16.gmra.mrb[80].mxu0 %v3494_v37  ;;  %3256 = vmatmul.mubr.msk.bf16.gmra.mrb[80].mxu1 %vm1241_vm0, %v3495_v38 }
  0xe7   : > { %1586 = vmatprep.mubr.bf16.mxu0 %v3496_v39  ;;  %3259 = vmatprep.mubr.msk.bf16.mxu1 %vm1241_vm0, %v3498_v40 }
  0xee   : > { %1587 = vmatmul.mubr.bf16.gmra.mrb[84].mxu0 %v3499_v41  ;;  %3260 = vmatmul.mubr.msk.bf16.gmra.mrb[84].mxu1 %vm1241_vm0, %v3500_v42  ;;  %v3544_v41 = vld [vmem:[%s3638_s28 + $0x2d0] ss:$12 sps:$4 sm:$0xff]   ;;  %v3545_v42 = vld [vmem:[%s3638_s28 + $0x380] ss:$12 sps:$4 sm:$0xff]  }
  0xef   : > { %1594 = vmatprep.mubr.bf16.mxu0 %v3501_v43  ;;  %3263 = vmatprep.mubr.msk.bf16.mxu1 %vm1241_vm0, %v3503_v44 }
  0xf6   : > { %1595 = vmatmul.mubr.bf16.gmra.mrb[88].mxu0 %v3504_v45  ;;  %3264 = vmatmul.mubr.msk.bf16.gmra.mrb[88].mxu1 %vm1241_vm0, %v3505_v46  ;;  %v3546_v45 = vld [vmem:[%s3638_s28 + $0x2ec] ss:$12 sps:$4 sm:$0xff]  }
  0xf7   : > { %1602 = vmatprep.mubr.bf16.mxu0 %v3506_v47  ;;  %3267 = vmatprep.mubr.msk.bf16.mxu1 %vm1241_vm0, %v3508_v48  ;;  %v3548_v46 = vld [vmem:[%s3638_s28 + $0x398] ss:$12 sps:$4 sm:$0xff]  }
  0xfe   : > { %1603 = vmatmul.mubr.bf16.gmra.mrb[92].mxu0 %v3509_v49  ;;  %3268 = vmatmul.mubr.msk.bf16.gmra.mrb[92].mxu1 %vm1241_vm0, %v3510_v50 }
  0xff   : > { %1610 = vmatprep.mubr.bf16.mxu0 %v3511_v51  ;;  %3271 = vmatprep.mubr.msk.bf16.mxu1 %vm1241_vm0, %v3513_v52 }
 0x106   : > { %1611 = vmatmul.mubr.bf16.gmra.mrb[96].mxu0 %v3514_v53  ;;  %3272 = vmatmul.mubr.msk.bf16.gmra.mrb[96].mxu1 %vm1241_vm0, %v3515_v54  ;;  %v3549_v53 = vld [vmem:[%s3638_s28 + $0x2e8] ss:$12 sps:$4 sm:$0xff]   ;;  %v3550_v54 = vld [vmem:[%s3638_s28 + $0x3b0] ss:$12 sps:$4 sm:$0xff]  }
 0x107   : > { %1618 = vmatprep.mubr.bf16.mxu0 %v3516_v55  ;;  %3275 = vmatprep.mubr.msk.bf16.mxu1 %vm1241_vm0, %v3518_v56 }
 0x10e   : > { %1619 = vmatmul.mubr.bf16.gmra.mrb[100].mxu0 %v3519_v57  ;;  %3276 = vmatmul.mubr.msk.bf16.gmra.mrb[100].mxu1 %vm1241_vm0, %v3520_v58  ;;  %v3551_v57 = vld [vmem:[%s3638_s28 + $0x304] ss:$12 sps:$4 sm:$0xff]   ;;  %v3553_v58 = vld [vmem:[%s3638_s28 + $0x3c8] ss:$12 sps:$4 sm:$0xff]  }
 0x10f   : > { %1626 = vmatprep.mubr.bf16.mxu0 %v3521_v59  ;;  %3279 = vmatprep.mubr.msk.bf16.mxu1 %vm1241_vm0, %v3523_v60 }
 0x116   : > { %1627 = vmatmul.mubr.bf16.gmra.mrb[104].mxu0 %v3524_v61  ;;  %3280 = vmatmul.mubr.msk.bf16.gmra.mrb[104].mxu1 %vm1241_vm0, %v3525_v62 }
 0x117   : > { %1634 = vmatprep.mubr.bf16.mxu0 %v3526_v63  ;;  %3283 = vmatprep.mubr.msk.bf16.mxu1 %vm1241_vm0, %v3528_v0 }
 0x119   : > { %v3844_v1 = vpop.f32.mrb[0].mxu0  ;;  %v3846_v2 = vpop.f32.mrb[0].mxu1 }
 0x11a   : > { %v1422_v3 = vpop.f32.mrb[1].mxu0  ;;  %v1710_v4 = vpop.f32.mrb[1].mxu1 }
 0x11b   : > { %v3850_v7 = vpop.f32.mrb[2].mxu0  ;;  %v3852_v8 = vpop.f32.mrb[2].mxu1  ;;  %v3554_v3 = vld [vmem:[%s3638_s28 + $0x300] ss:$12 sps:$4 sm:$0xff]  }
 0x11c   : > { %v1425_v11 = vpop.f32.mrb[3].mxu0  ;;  %v1713_v12 = vpop.f32.mrb[3].mxu1  ;;  %v3555_v4 = vld [vmem:[%s3638_s28 + $0x3e0] ss:$12 sps:$4 sm:$0xff]  }
 0x11e   : > { %1635 = vmatmul.mubr.bf16.gmra.mrb[108].mxu0 %v3529_v5  ;;  %3284 = vmatmul.mubr.msk.bf16.gmra.mrb[108].mxu1 %vm1241_vm0, %v3530_v6 }
 0x11f   : > { %1642 = vmatprep.mubr.bf16.mxu0 %v3531_v9  ;;  %3287 = vmatprep.mubr.msk.bf16.mxu1 %vm1241_vm0, %v3533_v10  ;;  %v3556_v9 = vld [vmem:[%s3638_s28 + $0x31c] ss:$12 sps:$4 sm:$0xff]   ;;  %v3558_v10 = vld [vmem:[%s3638_s28 + $0x3f8] ss:$12 sps:$4 sm:$0xff]  }
 0x121   : > { %v3858_v13 = vpop.f32.mrb[4].mxu0  ;;  %v3860_v14 = vpop.f32.mrb[4].mxu1 }
 0x122   : > { %v1430_v15 = vpop.f32.mrb[5].mxu0  ;;  %v1718_v16 = vpop.f32.mrb[5].mxu1 }
 0x123   : > { %v3864_v19 = vpop.f32.mrb[6].mxu0  ;;  %v3866_v20 = vpop.f32.mrb[6].mxu1 }
 0x124   : > { %v1433_v23 = vpop.f32.mrb[7].mxu0  ;;  %v1721_v24 = vpop.f32.mrb[7].mxu1 }
 0x126   : > { %1643 = vmatmul.mubr.bf16.gmra.mrb[112].mxu0 %v3534_v17  ;;  %3288 = vmatmul.mubr.msk.bf16.gmra.mrb[112].mxu1 %vm1241_vm0, %v3535_v18 }
 0x127   : > { %1650 = vmatprep.mubr.bf16.mxu0 %v3536_v21  ;;  %3291 = vmatprep.mubr.msk.bf16.mxu1 %vm1241_vm0, %v3538_v22  ;;  %v3559_v21 = vld [vmem:[%s3638_s28 + $0x318] ss:$12 sps:$4 sm:$0xff]   ;;  %v3560_v22 = vld [vmem:[%s3638_s28 + $0x410] ss:$12 sps:$4 sm:$0xff]  }
 0x129   : > { %v3872_v25 = vpop.f32.mrb[8].mxu0  ;;  %v3874_v26 = vpop.f32.mrb[8].mxu1 }
 0x12a   : > { %v1438_v27 = vpop.f32.mrb[9].mxu0  ;;  %v1726_v28 = vpop.f32.mrb[9].mxu1 }
 0x12b   : > { %v3878_v31 = vpop.f32.mrb[10].mxu0  ;;  %v3880_v32 = vpop.f32.mrb[10].mxu1  ;;  %v3561_v27 = vld [vmem:[%s3638_s28 + $0x334] ss:$12 sps:$4 sm:$0xff]  }
 0x12c   : > { %v1441_v35 = vpop.f32.mrb[11].mxu0  ;;  %v1729_v36 = vpop.f32.mrb[11].mxu1  ;;  %v3563_v28 = vld [vmem:[%s3638_s28 + $0x428] ss:$12 sps:$4 sm:$0xff]  }
 0x12e   : > { %1651 = vmatmul.mubr.bf16.gmra.mrb[116].mxu0 %v3539_v29  ;;  %3292 = vmatmul.mubr.msk.bf16.gmra.mrb[116].mxu1 %vm1241_vm0, %v3540_v30 }
 0x12f   : > { %1658 = vmatprep.mubr.bf16.mxu0 %v3541_v33  ;;  %3295 = vmatprep.mubr.msk.bf16.mxu1 %vm1241_vm0, %v3543_v34 }
 0x131   : > { %v3886_v37 = vpop.f32.mrb[12].mxu0  ;;  %v3888_v38 = vpop.f32.mrb[12].mxu1 }
 0x132   : > { %v1446_v39 = vpop.f32.mrb[13].mxu0  ;;  %v1734_v40 = vpop.f32.mrb[13].mxu1 }
 0x133   : > { %v3892_v43 = vpop.f32.mrb[14].mxu0  ;;  %v3894_v44 = vpop.f32.mrb[14].mxu1  ;;  %v3564_v39 = vld [vmem:[%s3638_s28 + $0x330] ss:$12 sps:$4 sm:$0xff]   ;;  %v3565_v40 = vld [vmem:[%s3638_s28 + $0x440] ss:$12 sps:$4 sm:$0xff]  }
 0x134   : > { %v1449_v47 = vpop.f32.mrb[15].mxu0  ;;  %v1737_v48 = vpop.f32.mrb[15].mxu1 }
 0x136   : > { %1659 = vmatmul.mubr.bf16.gmra.mrb[120].mxu0 %v3544_v41  ;;  %3296 = vmatmul.mubr.msk.bf16.gmra.mrb[120].mxu1 %vm1241_vm0, %v3545_v42 }
 0x137   : > { %1666 = vmatprep.mubr.bf16.mxu0 %v3546_v45  ;;  %3299 = vmatprep.mubr.msk.bf16.mxu1 %vm1241_vm0, %v3548_v46  ;;  %v3566_v45 = vld [vmem:[%s3638_s28 + $0x34c] ss:$12 sps:$4 sm:$0xff]  }
 0x138   : > { %v3568_v46 = vld [vmem:[%s3638_s28 + $0x458] ss:$12 sps:$4 sm:$0xff]  }
 0x139   : > { %v3900_v49 = vpop.f32.mrb[16].mxu0  ;;  %v3902_v50 = vpop.f32.mrb[16].mxu1 }
 0x13a   : > { %v1454_v51 = vpop.f32.mrb[17].mxu0  ;;  %v1742_v52 = vpop.f32.mrb[17].mxu1 }
 0x13b   : > { %v3906_v55 = vpop.f32.mrb[18].mxu0  ;;  %v3908_v56 = vpop.f32.mrb[18].mxu1 }
 0x13c   : > { %v1457_v59 = vpop.f32.mrb[19].mxu0  ;;  %v1745_v60 = vpop.f32.mrb[19].mxu1 }
 0x13e   : > { %1667 = vmatmul.mubr.bf16.gmra.mrb[124].mxu0 %v3549_v53  ;;  %3300 = vmatmul.mubr.msk.bf16.gmra.mrb[124].mxu1 %vm1241_vm0, %v3550_v54 }
 0x13f   : > { %1674 = vmatprep.mubr.bf16.mxu0 %v3551_v57  ;;  %3303 = vmatprep.mubr.msk.bf16.mxu1 %vm1241_vm0, %v3553_v58  ;;  %v3569_v57 = vld [vmem:[%s3638_s28 + $0x348] ss:$12 sps:$4 sm:$0xff]   ;;  %v3570_v58 = vld [vmem:[%s3638_s28 + $0x470] ss:$12 sps:$4 sm:$0xff]  }
 0x141   : > { %v3914_v61 = vpop.f32.mrb[20].mxu0  ;;  %v3916_v62 = vpop.f32.mrb[20].mxu1 }
 0x142   : > { %v1462_v63 = vpop.f32.mrb[21].mxu0  ;;  %v1750_v0 = vpop.f32.mrb[21].mxu1 }
 0x143   : > { %v3920_v5 = vpop.f32.mrb[22].mxu0  ;;  %v3922_v6 = vpop.f32.mrb[22].mxu1 }
 0x144   : > { %v1465_v11 = vpop.f32.mrb[23].mxu0  ;;  %v1753_v12 = vpop.f32.mrb[23].mxu1 }
 0x146   : > { %1675 = vmatmul.mubr.bf16.gmra.mrb[128].mxu0 %v3554_v3  ;;  %3304 = vmatmul.mubr.msk.bf16.gmra.mrb[128].mxu1 %vm1241_vm0, %v3555_v4 }
 0x147   : > { %1682 = vmatprep.mubr.bf16.mxu0 %v3556_v9  ;;  %3307 = vmatprep.mubr.msk.bf16.mxu1 %vm1241_vm0, %v3558_v10 }
 0x149   : > { %v3928_v15 = vpop.f32.mrb[24].mxu0  ;;  %v3930_v16 = vpop.f32.mrb[24].mxu1 }
 0x14a   : > { %v1470_v17 = vpop.f32.mrb[25].mxu0  ;;  %v1758_v18 = vpop.f32.mrb[25].mxu1 }
 0x14b   : > { %v3934_v23 = vpop.f32.mrb[26].mxu0  ;;  %v3936_v24 = vpop.f32.mrb[26].mxu1 }
 0x14c   : > { %v1473_v29 = vpop.f32.mrb[27].mxu0  ;;  %v1761_v30 = vpop.f32.mrb[27].mxu1 }
 0x14e   : > { %1683 = vmatmul.mubr.bf16.gmra.mrb[132].mxu0 %v3559_v21  ;;  %3308 = vmatmul.mubr.msk.bf16.gmra.mrb[132].mxu1 %vm1241_vm0, %v3560_v22 }
 0x14f   : > { %1690 = vmatprep.mubr.bf16.mxu0 %v3561_v27  ;;  %3311 = vmatprep.mubr.msk.bf16.mxu1 %vm1241_vm0, %v3563_v28 }
 0x151   : > { %v3942_v33 = vpop.f32.mrb[28].mxu0  ;;  %v3944_v34 = vpop.f32.mrb[28].mxu1 }
 0x152   : > { %v1478_v35 = vpop.f32.mrb[29].mxu0  ;;  %v1766_v36 = vpop.f32.mrb[29].mxu1 }
 0x153   : > { %v3948_v41 = vpop.f32.mrb[30].mxu0  ;;  %v3950_v42 = vpop.f32.mrb[30].mxu1 }
 0x154   : > { %v1481_v47 = vpop.f32.mrb[31].mxu0  ;;  %v1769_v48 = vpop.f32.mrb[31].mxu1 }
 0x156   : > { %1691 = vmatmul.mubr.bf16.gmra.mrb[136].mxu0 %v3564_v39  ;;  %3312 = vmatmul.mubr.msk.bf16.gmra.mrb[136].mxu1 %vm1241_vm0, %v3565_v40 }
 0x157   : > { %1698 = vmatprep.mubr.bf16.mxu0 %v3566_v45  ;;  %3315 = vmatprep.mubr.msk.bf16.mxu1 %vm1241_vm0, %v3568_v46 }
 0x159   : > { %v3956_v51 = vpop.f32.mrb[32].mxu0  ;;  %v3958_v52 = vpop.f32.mrb[32].mxu1 }
 0x15a   : > { %v1486_v53 = vpop.f32.mrb[33].mxu0  ;;  %v1774_v54 = vpop.f32.mrb[33].mxu1 }
 0x15b   : > { %v3962_v59 = vpop.f32.mrb[34].mxu0  ;;  %v3964_v60 = vpop.f32.mrb[34].mxu1 }
 0x15c   : > { %v1489_v63 = vpop.f32.mrb[35].mxu0  ;;  %v1777_v0 = vpop.f32.mrb[35].mxu1 }
 0x15e   : > { %1699 = vmatmul.mubr.bf16.gmra.mrb[140].mxu0 %v3569_v57  ;;  %3316 = vmatmul.mubr.msk.bf16.gmra.mrb[140].mxu1 %vm1241_vm0, %v3570_v58  ;;  %v3994_v57 = vld [vmem:[%s4407_s2] ss:$0 sm:$0xff] }
 0x15f   : > { %v1429_v58 = vadd.f32 %v3994_v57, %v3858_v13  ;;  %v1421_v63 = vadd.f32 %v3994_v57, %v3844_v1 }
 0x161   : > { %v3967_v3 = vpop.f32.mrb[36].mxu0  ;;  %v3969_v4 = vpop.f32.mrb[36].mxu1 }
 0x162   : > { %v1494_v9 = vpop.f32.mrb[37].mxu0  ;;  %v1782_v10 = vpop.f32.mrb[37].mxu1 }
 0x163   : > { %v3971_v11 = vpop.f32.mrb[38].mxu0  ;;  %v3973_v12 = vpop.f32.mrb[38].mxu1  ;;  %v1432_v10 = vadd.f32 %v3994_v57, %v3864_v19 }
 0x164   : > { %v1497_v17 = vpop.f32.mrb[39].mxu0  ;;  %v1785_v18 = vpop.f32.mrb[39].mxu1 }
 0x169   : > { %v3975_v21 = vpop.f32.mrb[40].mxu0  ;;  %v3977_v22 = vpop.f32.mrb[40].mxu1 }
 0x16a   : > { %v1502_v27 = vpop.f32.mrb[41].mxu0  ;;  %v1790_v28 = vpop.f32.mrb[41].mxu1 }
 0x16b   : > { %v3979_v29 = vpop.f32.mrb[42].mxu0  ;;  %v3981_v30 = vpop.f32.mrb[42].mxu1  ;;  %v1424_v28 = vadd.f32 %v3994_v57, %v3850_v7 }
 0x16c   : > { %v1505_v35 = vpop.f32.mrb[43].mxu0  ;;  %v1793_v36 = vpop.f32.mrb[43].mxu1 }
 0x171   : > { %v3983_v39 = vpop.f32.mrb[44].mxu0  ;;  %v3985_v40 = vpop.f32.mrb[44].mxu1 }
 0x172   : > { %v1510_v45 = vpop.f32.mrb[45].mxu0  ;;  %v1798_v46 = vpop.f32.mrb[45].mxu1 }
 0x173   : > { %v3987_v47 = vpop.f32.mrb[46].mxu0  ;;  %v3989_v48 = vpop.f32.mrb[46].mxu1 }
 0x174   : > { %v1513_v53 = vpop.f32.mrb[47].mxu0  ;;  %v1801_v54 = vpop.f32.mrb[47].mxu1 }
 0x179   : > { %v4001_v0 = vpop.f32.mrb[48].mxu0  ;;  %v3225_v9 = vpop.f32.mrb[48].mxu1 }
 0x17a   : > { %v1846_v17 = vadd.f32 %v3225_v9, %v1429_v58  ;;  %v1518_v18 = vpop.f32.mrb[49].mxu0  ;;  %v1837_v27 = vpop.f32.mrb[49].mxu1  ;;  %v1445_v9 = vadd.f32 %v3994_v57, %v3886_v37  ;;  %v1440_v37 = vadd.f32 %v3994_v57, %v3878_v31  ;;  %v1461_v31 = vadd.f32 %v3994_v57, %v3914_v61 }
 0x17b   : > { %v1838_v1 = vadd.f32 %v1837_v27, %v1421_v63  ;;  %v4012_v13 = vpop.f32.mrb[50].mxu0  ;;  %v3226_v19 = vpop.f32.mrb[50].mxu1  ;;  %v1437_v63 = vadd.f32 %v3994_v57, %v3872_v25  ;;  %v1448_v18 = vadd.f32 %v3994_v57, %v3892_v43  ;;  %v1456_v61 = vadd.f32 %v3994_v57, %v3906_v55 }
 0x17c   : > { %v3075_v35 = vpack.c.bf16 %v1846_v17, %v1846_v17  ;;  %v1849_v36 = vadd.f32 %v3226_v19, %v1432_v10  ;;  %v1521_v45 = vpop.f32.mrb[51].mxu0  ;;  %v1840_v46 = vpop.f32.mrb[51].mxu1  ;;  %v1477_v55 = vadd.f32 %v3994_v57, %v3942_v33  ;;  %v1472_v33 = vadd.f32 %v3994_v57, %v3934_v23 }
 0x17d   : > { %v3073_v53 = vpack.c.bf16 %v1838_v1, %v1838_v1  ;;  %v1841_v7 = vadd.f32 %v1840_v46, %v1424_v28  ;;  %v1493_v23 = vadd.f32 %v3994_v57, %v3967_v3  ;;  %v1488_v3 = vadd.f32 %v3994_v57, %v3962_v59 }
 0x17e   : > { %2607 = vst.msk [vmem:[%s4010_s8 + $0x8] sm:$0xf] %vm2604_vm1, %v3075_v35  ;;  %v3076_v54 = vpack.c.bf16 %v1849_v36, %v1849_v36  ;;  %v1509_v59 = vadd.f32 %v3994_v57, %v3983_v39  ;;  %v1504_v39 = vadd.f32 %v3994_v57, %v3979_v29 }
 0x17f   : > { %2605 = vst.msk [vmem:[%s4010_s8] sm:$0xf] %vm2604_vm1, %v3073_v53  ;;  %v3074_v58 = vpack.c.bf16 %v1841_v7, %v1841_v7 }
 0x180   : > { %2608 = vst.msk [vmem:[%s4010_s8 + $0xc] sm:$0xf] %vm2604_vm1, %v3076_v54 }
 0x181   : > { %2606 = vst.msk [vmem:[%s4010_s8 + $0x4] sm:$0xf] %vm2604_vm1, %v3074_v58  ;;  %v4026_v10 = vpop.f32.mrb[52].mxu0  ;;  %v3229_v17 = vpop.f32.mrb[52].mxu1 }
 0x182   : > { %v1862_v27 = vadd.f32 %v3229_v17, %v1445_v9  ;;  %v1526_v28 = vpop.f32.mrb[53].mxu0  ;;  %v1853_v1 = vpop.f32.mrb[53].mxu1  ;;  %v1453_v9 = vadd.f32 %v3994_v57, %v3900_v49  ;;  %v1525_v29 = vadd.f32 %v3994_v57, %v4026_v10  ;;  %v1520_v10 = vadd.f32 %v3994_v57, %v4012_v13 }
 0x183   : > { %v1854_v19 = vadd.f32 %v1853_v1, %v1437_v63  ;;  %v4032_v25 = vpop.f32.mrb[54].mxu0  ;;  %v3230_v35 = vpop.f32.mrb[54].mxu1 }
 0x184   : > { %v3079_v36 = vpack.c.bf16 %v1862_v27, %v1862_v27  ;;  %v1865_v45 = vadd.f32 %v3230_v35, %v1448_v18  ;;  %v1529_v46 = vpop.f32.mrb[55].mxu0  ;;  %v1856_v53 = vpop.f32.mrb[55].mxu1  ;;  %v1464_v18 = vadd.f32 %v3994_v57, %v3920_v5 }
 0x185   : > { %v3077_v7 = vpack.c.bf16 %v1854_v19, %v1854_v19  ;;  %v1857_v54 = vadd.f32 %v1856_v53, %v1440_v37 }
 0x186   : > { %2611 = vst.msk [vmem:[%s4010_s8 + $0x18] sm:$0xf] %vm2604_vm1, %v3079_v36  ;;  %v3080_v43 = vpack.c.bf16 %v1865_v45, %v1865_v45 }
 0x187   : > { %2609 = vst.msk [vmem:[%s4010_s8 + $0x10] sm:$0xf] %vm2604_vm1, %v3077_v7  ;;  %v3078_v58 = vpack.c.bf16 %v1857_v54, %v1857_v54 }
 0x188   : > { %2612 = vst.msk [vmem:[%s4010_s8 + $0x1c] sm:$0xf] %vm2604_vm1, %v3080_v43  ;;  %v1469_v43 = vadd.f32 %v3994_v57, %v3928_v15 }
 0x189   : > { %2610 = vst.msk [vmem:[%s4010_s8 + $0x14] sm:$0xf] %vm2604_vm1, %v3078_v58  ;;  %v4046_v63 = vpop.f32.mrb[56].mxu0  ;;  %v3233_v17 = vpop.f32.mrb[56].mxu1 }
 0x18a   : > { %v1878_v27 = vadd.f32 %v3233_v17, %v1461_v31  ;;  %v1534_v28 = vpop.f32.mrb[57].mxu0  ;;  %v1869_v1 = vpop.f32.mrb[57].mxu1 }
 0x18b   : > { %v1870_v37 = vadd.f32 %v1869_v1, %v1453_v9  ;;  %v4052_v49 = vpop.f32.mrb[58].mxu0  ;;  %v3234_v19 = vpop.f32.mrb[58].mxu1  ;;  %v1480_v9 = vadd.f32 %v3994_v57, %v3948_v41 }
 0x18c   : > { %v3083_v35 = vpack.c.bf16 %v1878_v27, %v1878_v27  ;;  %v1881_v36 = vadd.f32 %v3234_v19, %v1464_v18  ;;  %v1537_v45 = vpop.f32.mrb[59].mxu0  ;;  %v1872_v46 = vpop.f32.mrb[59].mxu1 }
 0x18d   : > { %v3081_v53 = vpack.c.bf16 %v1870_v37, %v1870_v37  ;;  %v1873_v7 = vadd.f32 %v1872_v46, %v1456_v61 }
 0x18e   : > { %2615 = vst.msk [vmem:[%s4010_s8 + $0x28] sm:$0xf] %vm2604_vm1, %v3083_v35  ;;  %v3084_v5 = vpack.c.bf16 %v1881_v36, %v1881_v36 }
 0x18f   : > { %2613 = vst.msk [vmem:[%s4010_s8 + $0x20] sm:$0xf] %vm2604_vm1, %v3081_v53  ;;  %v3082_v54 = vpack.c.bf16 %v1873_v7, %v1873_v7  ;;  %v1485_v53 = vadd.f32 %v3994_v57, %v3956_v51 }
 0x190   : > { %2616 = vst.msk [vmem:[%s4010_s8 + $0x2c] sm:$0xf] %vm2604_vm1, %v3084_v5 }
 0x191   : > { %2614 = vst.msk [vmem:[%s4010_s8 + $0x24] sm:$0xf] %vm2604_vm1, %v3082_v54  ;;  %v4066_v58 = vpop.f32.mrb[60].mxu0  ;;  %v3237_v31 = vpop.f32.mrb[60].mxu1  ;;  %v1496_v54 = vadd.f32 %v3994_v57, %v3971_v11 }
 0x192   : > { %v1894_v17 = vadd.f32 %v3237_v31, %v1477_v55  ;;  %v1542_v18 = vpop.f32.mrb[61].mxu0  ;;  %v1885_v27 = vpop.f32.mrb[61].mxu1  ;;  %v1541_v13 = vadd.f32 %v3994_v57, %v4066_v58  ;;  %v1536_v58 = vadd.f32 %v3994_v57, %v4052_v49 }
 0x193   : > { %v1886_v28 = vadd.f32 %v1885_v27, %v1469_v43  ;;  %v4072_v15 = vpop.f32.mrb[62].mxu0  ;;  %v3238_v1 = vpop.f32.mrb[62].mxu1 }
 0x194   : > { %v3087_v61 = vpack.c.bf16 %v1894_v17, %v1894_v17  ;;  %v1897_v37 = vadd.f32 %v3238_v1, %v1480_v9  ;;  %v1545_v19 = vpop.f32.mrb[63].mxu0  ;;  %v1888_v35 = vpop.f32.mrb[63].mxu1 }
 0x195   : > { %v3085_v36 = vpack.c.bf16 %v1886_v28, %v1886_v28  ;;  %v1889_v45 = vadd.f32 %v1888_v35, %v1472_v33  ;;  %v1501_v19 = vadd.f32 %v3994_v57, %v3975_v21 }
 0x196   : > { %2619 = vst.msk [vmem:[%s4010_s8 + $0x38] sm:$0xf] %vm2604_vm1, %v3087_v61  ;;  %v3088_v41 = vpack.c.bf16 %v1897_v37, %v1897_v37 }
 0x197   : > { %2617 = vst.msk [vmem:[%s4010_s8 + $0x30] sm:$0xf] %vm2604_vm1, %v3085_v36  ;;  %v3086_v46 = vpack.c.bf16 %v1889_v45, %v1889_v45  ;;  %v1512_v45 = vadd.f32 %v3994_v57, %v3987_v47 }
 0x198   : > { %2620 = vst.msk [vmem:[%s4010_s8 + $0x3c] sm:$0xf] %vm2604_vm1, %v3088_v41 }
 0x199   : > { %2618 = vst.msk [vmem:[%s4010_s8 + $0x34] sm:$0xf] %vm2604_vm1, %v3086_v46  ;;  %v4086_v7 = vpop.f32.mrb[64].mxu0  ;;  %v3241_v5 = vpop.f32.mrb[64].mxu1 }
 0x19a   : > { %v1910_v55 = vadd.f32 %v3241_v5, %v1493_v23  ;;  %v1550_v43 = vpop.f32.mrb[65].mxu0  ;;  %v1901_v31 = vpop.f32.mrb[65].mxu1  ;;  %v1549_v49 = vadd.f32 %v3994_v57, %v4086_v7 }
 0x19b   : > { %v1902_v9 = vadd.f32 %v1901_v31, %v1485_v53  ;;  %v4092_v51 = vpop.f32.mrb[66].mxu0  ;;  %v3242_v17 = vpop.f32.mrb[66].mxu1 }
 0x19c   : > { %v3091_v18 = vpack.c.bf16 %v1910_v55, %v1910_v55  ;;  %v1913_v27 = vadd.f32 %v3242_v17, %v1496_v54  ;;  %v1553_v33 = vpop.f32.mrb[67].mxu0  ;;  %v1904_v28 = vpop.f32.mrb[67].mxu1 }
 0x19d   : > { %v3089_v1 = vpack.c.bf16 %v1902_v9, %v1902_v9  ;;  %v1905_v61 = vadd.f32 %v1904_v28, %v1488_v3  ;;  %v1528_v28 = vadd.f32 %v3994_v57, %v4032_v25 }
 0x19e   : > { %2623 = vst.msk [vmem:[%s4010_s8 + $0x48] sm:$0xf] %vm2604_vm1, %v3091_v18  ;;  %v3092_v11 = vpack.c.bf16 %v1913_v27, %v1913_v27  ;;  %v1517_v18 = vadd.f32 %v3994_v57, %v4001_v0 }
 0x19f   : > { %2621 = vst.msk [vmem:[%s4010_s8 + $0x40] sm:$0xf] %vm2604_vm1, %v3089_v1  ;;  %v3090_v37 = vpack.c.bf16 %v1905_v61, %v1905_v61 }
 0x1a0   : > { %2624 = vst.msk [vmem:[%s4010_s8 + $0x4c] sm:$0xf] %vm2604_vm1, %v3092_v11 }
 0x1a1   : > { %2622 = vst.msk [vmem:[%s4010_s8 + $0x44] sm:$0xf] %vm2604_vm1, %v3090_v37  ;;  %v4106_v35 = vpop.f32.mrb[68].mxu0  ;;  %v3245_v36 = vpop.f32.mrb[68].mxu1 }
 0x1a2   : > { %v1926_v41 = vadd.f32 %v3245_v36, %v1509_v59  ;;  %v1558_v46 = vpop.f32.mrb[69].mxu0  ;;  %v1917_v23 = vpop.f32.mrb[69].mxu1 }
 0x1a3   : > { %v1918_v53 = vadd.f32 %v1917_v23, %v1501_v19  ;;  %v4112_v21 = vpop.f32.mrb[70].mxu0  ;;  %v3246_v5 = vpop.f32.mrb[70].mxu1 }
 0x1a4   : > { %v3095_v54 = vpack.c.bf16 %v1926_v41, %v1926_v41  ;;  %v1929_v55 = vadd.f32 %v3246_v5, %v1512_v45  ;;  %v1561_v43 = vpop.f32.mrb[71].mxu0  ;;  %v1920_v31 = vpop.f32.mrb[71].mxu1 }
 0x1a5   : > { %v3093_v3 = vpack.c.bf16 %v1918_v53, %v1918_v53  ;;  %v1921_v9 = vadd.f32 %v1920_v31, %v1504_v39  ;;  %v1533_v53 = vadd.f32 %v3994_v57, %v4046_v63 }
 0x1a6   : > { %2627 = vst.msk [vmem:[%s4010_s8 + $0x58] sm:$0xf] %vm2604_vm1, %v3095_v54  ;;  %v3096_v47 = vpack.c.bf16 %v1929_v55, %v1929_v55  ;;  %v1544_v55 = vadd.f32 %v3994_v57, %v4072_v15 }
 0x1a7   : > { %2625 = vst.msk [vmem:[%s4010_s8 + $0x50] sm:$0xf] %vm2604_vm1, %v3093_v3  ;;  %v3094_v17 = vpack.c.bf16 %v1921_v9, %v1921_v9 }
 0x1a8   : > { %2628 = vst.msk [vmem:[%s4010_s8 + $0x5c] sm:$0xf] %vm2604_vm1, %v3096_v47 }
 0x1a9   : > { %2626 = vst.msk [vmem:[%s4010_s8 + $0x54] sm:$0xf] %vm2604_vm1, %v3094_v17  ;;  %v4126_v27 = vpop.f32.mrb[72].mxu0  ;;  %v3249_v33 = vpop.f32.mrb[72].mxu1 }
 0x1aa   : > { %v1942_v1 = vadd.f32 %v3249_v33, %v1525_v29  ;;  %v1566_v61 = vpop.f32.mrb[73].mxu0  ;;  %v1933_v11 = vpop.f32.mrb[73].mxu1 }
 0x1ab   : > { %v1934_v37 = vadd.f32 %v1933_v11, %v1517_v18  ;;  %v4132_v0 = vpop.f32.mrb[74].mxu0  ;;  %v3250_v59 = vpop.f32.mrb[74].mxu1  ;;  %v1557_v11 = vadd.f32 %v3994_v57, %v4106_v35  ;;  %v1552_v35 = vadd.f32 %v3994_v57, %v4092_v51  ;;  %v1565_v51 = vadd.f32 %v3994_v57, %v4126_v27 }
 0x1ac   : > { %v3099_v19 = vpack.c.bf16 %v1942_v1, %v1942_v1  ;;  %v1945_v36 = vadd.f32 %v3250_v59, %v1528_v28  ;;  %v1569_v45 = vpop.f32.mrb[75].mxu0  ;;  %v1936_v41 = vpop.f32.mrb[75].mxu1  ;;  %v1560_v59 = vadd.f32 %v3994_v57, %v4112_v21 }
 0x1ad   : > { %v3097_v46 = vpack.c.bf16 %v1934_v37, %v1934_v37  ;;  %v1937_v23 = vadd.f32 %v1936_v41, %v1520_v10 }
 0x1ae   : > { %2631 = vst.msk [vmem:[%s4010_s8 + $0x68] sm:$0xf] %vm2604_vm1, %v3099_v19  ;;  %v3100_v25 = vpack.c.bf16 %v1945_v36, %v1945_v36 }
 0x1af   : > { %2629 = vst.msk [vmem:[%s4010_s8 + $0x60] sm:$0xf] %vm2604_vm1, %v3097_v46  ;;  %v3098_v39 = vpack.c.bf16 %v1937_v23, %v1937_v23 }
 0x1b0   : > { %2632 = vst.msk [vmem:[%s4010_s8 + $0x6c] sm:$0xf] %vm2604_vm1, %v3100_v25 }
 0x1b1   : > { %2630 = vst.msk [vmem:[%s4010_s8 + $0x64] sm:$0xf] %vm2604_vm1, %v3098_v39  ;;  %v1572_v5 = vpop.f32.mrb[76].mxu0  ;;  %v3253_v54 = vpop.f32.mrb[76].mxu1 }
 0x1b2   : > { %v1958_v43 = vadd.f32 %v3253_v54, %v1541_v13  ;;  %v1574_v31 = vpop.f32.mrb[77].mxu0  ;;  %v1949_v3 = vpop.f32.mrb[77].mxu1 }
 0x1b3   : > { %v1950_v9 = vadd.f32 %v1949_v3, %v1533_v53  ;;  %v1575_v47 = vpop.f32.mrb[78].mxu0  ;;  %v3254_v63 = vpop.f32.mrb[78].mxu1 }
 0x1b4   : > { %v3103_v17 = vpack.c.bf16 %v1958_v43, %v1958_v43  ;;  %v1961_v29 = vadd.f32 %v3254_v63, %v1544_v55  ;;  %v1577_v18 = vpop.f32.mrb[79].mxu0  ;;  %v1952_v33 = vpop.f32.mrb[79].mxu1  ;;  %v1573_v43 = vadd.f32 %v3994_v57, %v1572_v5  ;;  %v1568_v5 = vadd.f32 %v3994_v57, %v4132_v0 }
 0x1b5   : > { %v3101_v28 = vpack.c.bf16 %v1950_v9, %v1950_v9  ;;  %v1953_v1 = vadd.f32 %v1952_v33, %v1536_v58  ;;  %v1576_v58 = vadd.f32 %v3994_v57, %v1575_v47 }
 0x1b6   : > { %2635 = vst.msk [vmem:[%s4010_s8 + $0x78] sm:$0xf] %vm2604_vm1, %v3103_v17  ;;  %v3104_v15 = vpack.c.bf16 %v1961_v29, %v1961_v29 }
 0x1b7   : > { %2633 = vst.msk [vmem:[%s4010_s8 + $0x70] sm:$0xf] %vm2604_vm1, %v3101_v28  ;;  %v3102_v61 = vpack.c.bf16 %v1953_v1, %v1953_v1 }
 0x1b8   : > { %2636 = vst.msk [vmem:[%s4010_s8 + $0x7c] sm:$0xf] %vm2604_vm1, %v3104_v15 }
 0x1b9   : > { %2634 = vst.msk [vmem:[%s4010_s8 + $0x74] sm:$0xf] %vm2604_vm1, %v3102_v61  ;;  %v1580_v10 = vpop.f32.mrb[80].mxu0  ;;  %v3257_v37 = vpop.f32.mrb[80].mxu1 }
 0x1ba   : > { %v1974_v19 = vadd.f32 %v3257_v37, %v1557_v11  ;;  %v1582_v36 = vpop.f32.mrb[81].mxu0  ;;  %v1965_v45 = vpop.f32.mrb[81].mxu1  ;;  %v1581_v0 = vadd.f32 %v3994_v57, %v1580_v10 }
 0x1bb   : > { %v1966_v41 = vadd.f32 %v1965_v45, %v1549_v49  ;;  %v1583_v46 = vpop.f32.mrb[82].mxu0  ;;  %v3258_v7 = vpop.f32.mrb[82].mxu1 }
 0x1bc   : > { %v3107_v23 = vpack.c.bf16 %v1974_v19, %v1974_v19  ;;  %v1977_v25 = vadd.f32 %v3258_v7, %v1560_v59  ;;  %v1585_v39 = vpop.f32.mrb[83].mxu0  ;;  %v1968_v13 = vpop.f32.mrb[83].mxu1  ;;  %v1584_v7 = vadd.f32 %v3994_v57, %v1583_v46 }
 0x1bd   : > { %v3105_v53 = vpack.c.bf16 %v1966_v41, %v1966_v41  ;;  %v1969_v54 = vadd.f32 %v1968_v13, %v1552_v35 }
 0x1be   : > { %2639 = vst.msk [vmem:[%s4010_s8 + $0x88] sm:$0xf] %vm2604_vm1, %v3107_v23  ;;  %v3108_v21 = vpack.c.bf16 %v1977_v25, %v1977_v25 }
 0x1bf   : > { %2637 = vst.msk [vmem:[%s4010_s8 + $0x80] sm:$0xf] %vm2604_vm1, %v3105_v53  ;;  %v3106_v55 = vpack.c.bf16 %v1969_v54, %v1969_v54 }
 0x1c0   : > { %2640 = vst.msk [vmem:[%s4010_s8 + $0x8c] sm:$0xf] %vm2604_vm1, %v3108_v21 }
 0x1c1   : > { %2638 = vst.msk [vmem:[%s4010_s8 + $0x84] sm:$0xf] %vm2604_vm1, %v3106_v55  ;;  %v1588_v31 = vpop.f32.mrb[84].mxu0  ;;  %v3261_v3 = vpop.f32.mrb[84].mxu1 }
 0x1c2   : > { %v1990_v9 = vadd.f32 %v3261_v3, %v1573_v43  ;;  %v1590_v63 = vpop.f32.mrb[85].mxu0  ;;  %v1981_v17 = vpop.f32.mrb[85].mxu1  ;;  %v1589_v37 = vadd.f32 %v3994_v57, %v1588_v31 }
 0x1c3   : > { %v1982_v29 = vadd.f32 %v1981_v17, %v1565_v51  ;;  %v1591_v18 = vpop.f32.mrb[86].mxu0  ;;  %v3262_v33 = vpop.f32.mrb[86].mxu1 }
 0x1c4   : > { %v3111_v27 = vpack.c.bf16 %v1990_v9, %v1990_v9  ;;  %v1993_v28 = vadd.f32 %v3262_v33, %v1576_v58  ;;  %v1593_v1 = vpop.f32.mrb[87].mxu0  ;;  %v1984_v15 = vpop.f32.mrb[87].mxu1  ;;  %v1592_v36 = vadd.f32 %v3994_v57, %v1591_v18 }
 0x1c5   : > { %v3109_v61 = vpack.c.bf16 %v1982_v29, %v1982_v29  ;;  %v1985_v11 = vadd.f32 %v1984_v15, %v1568_v5 }
 0x1c6   : > { %2643 = vst.msk [vmem:[%s4010_s8 + $0x98] sm:$0xf] %vm2604_vm1, %v3111_v27  ;;  %v3112_v47 = vpack.c.bf16 %v1993_v28, %v1993_v28 }
 0x1c7   : > { %2641 = vst.msk [vmem:[%s4010_s8 + $0x90] sm:$0xf] %vm2604_vm1, %v3109_v61  ;;  %v3110_v49 = vpack.c.bf16 %v1985_v11, %v1985_v11 }
 0x1c8   : > { %2644 = vst.msk [vmem:[%s4010_s8 + $0x9c] sm:$0xf] %vm2604_vm1, %v3112_v47 }
 0x1c9   : > { %2642 = vst.msk [vmem:[%s4010_s8 + $0x94] sm:$0xf] %vm2604_vm1, %v3110_v49  ;;  %v1596_v59 = vpop.f32.mrb[88].mxu0  ;;  %v3265_v19 = vpop.f32.mrb[88].mxu1 }
 0x1ca   : > { %v2006_v45 = vadd.f32 %v3265_v19, %v1589_v37  ;;  %v1598_v35 = vpop.f32.mrb[89].mxu0  ;;  %v1997_v41 = vpop.f32.mrb[89].mxu1  ;;  %v1597_v46 = vadd.f32 %v3994_v57, %v1596_v59 }
 0x1cb   : > { %v1998_v23 = vadd.f32 %v1997_v41, %v1581_v0  ;;  %v1599_v25 = vpop.f32.mrb[90].mxu0  ;;  %v3266_v39 = vpop.f32.mrb[90].mxu1 }
 0x1cc   : > { %v3115_v13 = vpack.c.bf16 %v2006_v45, %v2006_v45  ;;  %v2009_v10 = vadd.f32 %v3266_v39, %v1592_v36  ;;  %v1601_v53 = vpop.f32.mrb[91].mxu0  ;;  %v2000_v54 = vpop.f32.mrb[91].mxu1  ;;  %v1600_v17 = vadd.f32 %v3994_v57, %v1599_v25 }
 0x1cd   : > { %v3113_v21 = vpack.c.bf16 %v1998_v23, %v1998_v23  ;;  %v2001_v55 = vadd.f32 %v2000_v54, %v1584_v7 }
 0x1ce   : > { %2647 = vst.msk [vmem:[%s4010_s8 + $0xa8] sm:$0xf] %vm2604_vm1, %v3115_v13  ;;  %v3116_v43 = vpack.c.bf16 %v2009_v10, %v2009_v10 }
 0x1cf   : > { %2645 = vst.msk [vmem:[%s4010_s8 + $0xa0] sm:$0xf] %vm2604_vm1, %v3113_v21  ;;  %v3114_v51 = vpack.c.bf16 %v2001_v55, %v2001_v55 }
 0x1d0   : > { %2648 = vst.msk [vmem:[%s4010_s8 + $0xac] sm:$0xf] %vm2604_vm1, %v3116_v43 }
 0x1d1   : > { %2646 = vst.msk [vmem:[%s4010_s8 + $0xa4] sm:$0xf] %vm2604_vm1, %v3114_v51  ;;  %v1604_v31 = vpop.f32.mrb[92].mxu0  ;;  %v3269_v3 = vpop.f32.mrb[92].mxu1 }
 0x1d2   : > { %v1605_v58 = vadd.f32 %v3994_v57, %v1604_v31  ;;  %v1606_v9 = vpop.f32.mrb[93].mxu0  ;;  %v2013_v63 = vpop.f32.mrb[93].mxu1 }
 0x1d3   : > { %v2014_v5 = vadd.f32 %v2013_v63, %v1597_v46  ;;  %v1607_v29 = vpop.f32.mrb[94].mxu0  ;;  %v3270_v18 = vpop.f32.mrb[94].mxu1 }
 0x1d4   : > { %v2022_v33 = vadd.f32 %v3269_v3, %v1605_v58  ;;  %v1608_v27 = vadd.f32 %v3994_v57, %v1607_v29  ;;  %v1609_v28 = vpop.f32.mrb[95].mxu0  ;;  %v2016_v1 = vpop.f32.mrb[95].mxu1 }
 0x1d5   : > { %v3117_v15 = vpack.c.bf16 %v2014_v5, %v2014_v5  ;;  %v2017_v61 = vadd.f32 %v2016_v1, %v1600_v17 }
 0x1d6   : > { %v3119_v11 = vpack.c.bf16 %v2022_v33, %v2022_v33  ;;  %v2025_v47 = vadd.f32 %v3270_v18, %v1608_v27 }
 0x1d7   : > { %2649 = vst.msk [vmem:[%s4010_s8 + $0xb0] sm:$0xf] %vm2604_vm1, %v3117_v15  ;;  %v3118_v49 = vpack.c.bf16 %v2017_v61, %v2017_v61 }
 0x1d8   : > { %2651 = vst.msk [vmem:[%s4010_s8 + $0xb8] sm:$0xf] %vm2604_vm1, %v3119_v11  ;;  %v3120_v37 = vpack.c.bf16 %v2025_v47, %v2025_v47 }
 0x1d9   : > { %2650 = vst.msk [vmem:[%s4010_s8 + $0xb4] sm:$0xf] %vm2604_vm1, %v3118_v49  ;;  %v1612_v0 = vpop.f32.mrb[96].mxu0  ;;  %v3273_v59 = vpop.f32.mrb[96].mxu1 }
 0x1da   : > { %2652 = vst.msk [vmem:[%s4010_s8 + $0xbc] sm:$0xf] %vm2604_vm1, %v3120_v37  ;;  %v1613_v19 = vadd.f32 %v3994_v57, %v1612_v0  ;;  %v1614_v36 = vpop.f32.mrb[97].mxu0  ;;  %v2029_v45 = vpop.f32.mrb[97].mxu1 }
 0x1db   : > { %v1615_v35 = vpop.f32.mrb[98].mxu0  ;;  %v3274_v41 = vpop.f32.mrb[98].mxu1 }
 0x1dc   : > { %v2030_v7 = vadd.f32 %v2029_v45, %v1613_v19  ;;  %v1616_v23 = vadd.f32 %v3994_v57, %v1615_v35  ;;  %v1617_v25 = vpop.f32.mrb[99].mxu0  ;;  %v2032_v39 = vpop.f32.mrb[99].mxu1 }
 0x1de   : > { %v3121_v13 = vpack.c.bf16 %v2030_v7, %v2030_v7  ;;  %v2033_v10 = vadd.f32 %v2032_v39, %v1616_v23 }
 0x1e0   : > { %2653 = vst.msk [vmem:[%s4010_s8 + $0xc0] sm:$0xf] %vm2604_vm1, %v3121_v13  ;;  %v3122_v53 = vpack.c.bf16 %v2033_v10, %v2033_v10 }
 0x1e1   : > { %v1620_v54 = vpop.f32.mrb[100].mxu0  ;;  %v3277_v21 = vpop.f32.mrb[100].mxu1 }
 0x1e2   : > { %2654 = vst.msk [vmem:[%s4010_s8 + $0xc4] sm:$0xf] %vm2604_vm1, %v3122_v53  ;;  %v1621_v55 = vadd.f32 %v3994_v57, %v1620_v54  ;;  %v1622_v43 = vpop.f32.mrb[101].mxu0  ;;  %v2045_v51 = vpop.f32.mrb[101].mxu1 }
 0x1e3   : > { %v1623_v46 = vpop.f32.mrb[102].mxu0  ;;  %v3278_v31 = vpop.f32.mrb[102].mxu1 }
 0x1e4   : > { %v2038_v3 = vadd.f32 %v3273_v59, %v1621_v55  ;;  %v1624_v58 = vadd.f32 %v3994_v57, %v1623_v46  ;;  %v1625_v9 = vpop.f32.mrb[103].mxu0  ;;  %v2048_v63 = vpop.f32.mrb[103].mxu1 }
 0x1e6   : > { %v3123_v17 = vpack.c.bf16 %v2038_v3, %v2038_v3  ;;  %v2041_v5 = vadd.f32 %v3274_v41, %v1624_v58 }
 0x1e8   : > { %2655 = vst.msk [vmem:[%s4010_s8 + $0xc8] sm:$0xf] %vm2604_vm1, %v3123_v17  ;;  %v3124_v29 = vpack.c.bf16 %v2041_v5, %v2041_v5 }
 0x1e9   : > { %v1628_v18 = vpop.f32.mrb[104].mxu0  ;;  %v3281_v33 = vpop.f32.mrb[104].mxu1 }
 0x1ea   : > { %2656 = vst.msk [vmem:[%s4010_s8 + $0xcc] sm:$0xf] %vm2604_vm1, %v3124_v29  ;;  %v1629_v27 = vadd.f32 %v3994_v57, %v1628_v18  ;;  %v1630_v28 = vpop.f32.mrb[105].mxu0  ;;  %v2061_v1 = vpop.f32.mrb[105].mxu1 }
 0x1eb   : > { %v1631_v15 = vpop.f32.mrb[106].mxu0  ;;  %v3282_v61 = vpop.f32.mrb[106].mxu1 }
 0x1ec   : > { %v2046_v11 = vadd.f32 %v2045_v51, %v1629_v27  ;;  %v1632_v47 = vadd.f32 %v3994_v57, %v1631_v15  ;;  %v1633_v49 = vpop.f32.mrb[107].mxu0  ;;  %v2064_v37 = vpop.f32.mrb[107].mxu1 }
 0x1ee   : > { %v3125_v0 = vpack.c.bf16 %v2046_v11, %v2046_v11  ;;  %v2049_v59 = vadd.f32 %v2048_v63, %v1632_v47 }
 0x1f0   : > { %2657 = vst.msk [vmem:[%s4010_s8 + $0xd0] sm:$0xf] %vm2604_vm1, %v3125_v0  ;;  %v3126_v19 = vpack.c.bf16 %v2049_v59, %v2049_v59 }
 0x1f1   : > { %v1636_v36 = vpop.f32.mrb[108].mxu0  ;;  %v4228_v45 = vpop.f32.mrb[108].mxu1 }
 0x1f2   : > { %2658 = vst.msk [vmem:[%s4010_s8 + $0xd4] sm:$0xf] %vm2604_vm1, %v3126_v19  ;;  %v1637_v35 = vadd.f32 %v3994_v57, %v1636_v36  ;;  %v1638_v41 = vpop.f32.mrb[109].mxu0  ;;  %v2077_v7 = vpop.f32.mrb[109].mxu1 }
 0x1f3   : > { %v1639_v23 = vpop.f32.mrb[110].mxu0  ;;  %v4233_v25 = vpop.f32.mrb[110].mxu1 }
 0x1f4   : > { %v2054_v39 = vadd.f32 %v3277_v21, %v1637_v35  ;;  %v1640_v13 = vadd.f32 %v3994_v57, %v1639_v23  ;;  %v1641_v10 = vpop.f32.mrb[111].mxu0  ;;  %v2080_v53 = vpop.f32.mrb[111].mxu1 }
 0x1f5   : > { %v1709_v10 = vadd.f32 %v3994_v57, %v3846_v2 }
 0x1f6   : > { %v3127_v54 = vpack.c.bf16 %v2054_v39, %v2054_v39  ;;  %v2057_v55 = vadd.f32 %v3278_v31, %v1640_v13  ;;  %v1717_v39 = vadd.f32 %v3994_v57, %v3860_v14  ;;  %v1712_v14 = vadd.f32 %v3994_v57, %v3852_v8 }
 0x1f8   : > { %2659 = vst.msk [vmem:[%s4010_s8 + $0xd8] sm:$0xf] %vm2604_vm1, %v3127_v54  ;;  %v3128_v43 = vpack.c.bf16 %v2057_v55, %v2057_v55 }
 0x1f9   : > { %v1644_v51 = vpop.f32.mrb[112].mxu0  ;;  %v4238_v46 = vpop.f32.mrb[112].mxu1 }
 0x1fa   : > { %2660 = vst.msk [vmem:[%s4010_s8 + $0xdc] sm:$0xf] %vm2604_vm1, %v3128_v43  ;;  %v1645_v3 = vadd.f32 %v3994_v57, %v1644_v51  ;;  %v1646_v58 = vpop.f32.mrb[113].mxu0  ;;  %v4243_v21 = vpop.f32.mrb[113].mxu1 }
 0x1fb   : > { %v1647_v9 = vpop.f32.mrb[114].mxu0  ;;  %v4245_v63 = vpop.f32.mrb[114].mxu1 }
 0x1fc   : > { %v2062_v17 = vadd.f32 %v2061_v1, %v1645_v3  ;;  %v1648_v31 = vadd.f32 %v3994_v57, %v1647_v9  ;;  %v1649_v5 = vpop.f32.mrb[115].mxu0  ;;  %v4248_v29 = vpop.f32.mrb[115].mxu1 }
 0x1fe   : > { %v3129_v18 = vpack.c.bf16 %v2062_v17, %v2062_v17  ;;  %v2065_v27 = vadd.f32 %v2064_v37, %v1648_v31 }
 0x200   : > { %2661 = vst.msk [vmem:[%s4010_s8 + $0xe0] sm:$0xf] %vm2604_vm1, %v3129_v18  ;;  %v3130_v28 = vpack.c.bf16 %v2065_v27, %v2065_v27 }
 0x201   : > { %v1652_v15 = vpop.f32.mrb[116].mxu0  ;;  %v4252_v11 = vpop.f32.mrb[116].mxu1 }
 0x202   : > { %2662 = vst.msk [vmem:[%s4010_s8 + $0xe4] sm:$0xf] %vm2604_vm1, %v3130_v28  ;;  %v1653_v47 = vadd.f32 %v3994_v57, %v1652_v15  ;;  %v1654_v49 = vpop.f32.mrb[117].mxu0  ;;  %v4257_v1 = vpop.f32.mrb[117].mxu1 }
 0x203   : > { %v1655_v0 = vpop.f32.mrb[118].mxu0  ;;  %v4259_v59 = vpop.f32.mrb[118].mxu1 }
 0x204   : > { %v2070_v19 = vadd.f32 %v3281_v33, %v1653_v47  ;;  %v1656_v37 = vadd.f32 %v3994_v57, %v1655_v0  ;;  %v1657_v36 = vpop.f32.mrb[119].mxu0  ;;  %v4262_v35 = vpop.f32.mrb[119].mxu1  ;;  %v1720_v33 = vadd.f32 %v3994_v57, %v3866_v20 }
 0x206   : > { %v3131_v41 = vpack.c.bf16 %v2070_v19, %v2070_v19  ;;  %v2073_v23 = vadd.f32 %v3282_v61, %v1656_v37  ;;  %v1725_v37 = vadd.f32 %v3994_v57, %v3874_v26 }
 0x208   : > { %2663 = vst.msk [vmem:[%s4010_s8 + $0xe8] sm:$0xf] %vm2604_vm1, %v3131_v41  ;;  %v3132_v13 = vpack.c.bf16 %v2073_v23, %v2073_v23 }
 0x209   : > { %v1660_v54 = vpop.f32.mrb[120].mxu0  ;;  %v3297_v55 = vpop.f32.mrb[120].mxu1 }
 0x20a   : > { %2664 = vst.msk [vmem:[%s4010_s8 + $0xec] sm:$0xf] %vm2604_vm1, %v3132_v13  ;;  %v1661_v43 = vadd.f32 %v3994_v57, %v1660_v54  ;;  %v2134_v51 = vadd.f32 %v3297_v55, %v1717_v39  ;;  %v1662_v61 = vpop.f32.mrb[121].mxu0  ;;  %v2125_v3 = vpop.f32.mrb[121].mxu1 }
 0x20b   : > { %v2126_v58 = vadd.f32 %v2125_v3, %v1709_v10  ;;  %v1663_v9 = vpop.f32.mrb[122].mxu0  ;;  %v3298_v2 = vpop.f32.mrb[122].mxu1  ;;  %v1728_v10 = vadd.f32 %v3994_v57, %v3880_v32 }
 0x20c   : > { %v2078_v17 = vadd.f32 %v2077_v7, %v1661_v43  ;;  %v3147_v31 = vpack.c.bf16 %v2134_v51, %v2134_v51  ;;  %v1664_v20 = vadd.f32 %v3994_v57, %v1663_v9  ;;  %v2137_v5 = vadd.f32 %v3298_v2, %v1720_v33  ;;  %v1665_v18 = vpop.f32.mrb[123].mxu0  ;;  %v2128_v27 = vpop.f32.mrb[123].mxu1 }
 0x20d   : > { %v3145_v28 = vpack.c.bf16 %v2126_v58, %v2126_v58  ;;  %v2129_v15 = vadd.f32 %v2128_v27, %v1712_v14  ;;  %v1733_v7 = vadd.f32 %v3994_v57, %v3888_v38 }
 0x20e   : > { %v3133_v47 = vpack.c.bf16 %v2078_v17, %v2078_v17  ;;  %2679 = vst.msk [vmem:[%s4010_s8 + $0x128] sm:$0xf] %vm2604_vm1, %v3147_v31  ;;  %v2081_v8 = vadd.f32 %v2080_v53, %v1664_v20  ;;  %v3148_v49 = vpack.c.bf16 %v2137_v5, %v2137_v5  ;;  %v1736_v53 = vadd.f32 %v3994_v57, %v3894_v44 }
 0x20f   : > { %2677 = vst.msk [vmem:[%s4010_s8 + $0x120] sm:$0xf] %vm2604_vm1, %v3145_v28  ;;  %v3146_v0 = vpack.c.bf16 %v2129_v15, %v2129_v15  ;;  %v1749_v17 = vadd.f32 %v3994_v57, %v3916_v62  ;;  %v1741_v20 = vadd.f32 %v3994_v57, %v3902_v50 }
 0x210   : > { %2665 = vst.msk [vmem:[%s4010_s8 + $0xf0] sm:$0xf] %vm2604_vm1, %v3133_v47  ;;  %v3134_v19 = vpack.c.bf16 %v2081_v8, %v2081_v8  ;;  %2680 = vst.msk [vmem:[%s4010_s8 + $0x12c] sm:$0xf] %vm2604_vm1, %v3148_v49  ;;  %v1744_v47 = vadd.f32 %v3994_v57, %v3908_v56 }
 0x211   : > { %2678 = vst.msk [vmem:[%s4010_s8 + $0x124] sm:$0xf] %vm2604_vm1, %v3146_v0  ;;  %v1668_v36 = vpop.f32.mrb[124].mxu0  ;;  %v3301_v41 = vpop.f32.mrb[124].mxu1 }
 0x212   : > { %2666 = vst.msk [vmem:[%s4010_s8 + $0xf4] sm:$0xf] %vm2604_vm1, %v3134_v19  ;;  %v1669_v23 = vadd.f32 %v3994_v57, %v1668_v36  ;;  %v2150_v38 = vadd.f32 %v3301_v41, %v1733_v7  ;;  %v1670_v39 = vpop.f32.mrb[125].mxu0  ;;  %v2141_v13 = vpop.f32.mrb[125].mxu1 }
 0x213   : > { %v2142_v26 = vadd.f32 %v2141_v13, %v1725_v37  ;;  %v1671_v54 = vpop.f32.mrb[126].mxu0  ;;  %v3302_v55 = vpop.f32.mrb[126].mxu1  ;;  %v1765_v39 = vadd.f32 %v3994_v57, %v3944_v34 }
 0x214   : > { %v2086_v33 = vadd.f32 %v4228_v45, %v1669_v23  ;;  %v3151_v43 = vpack.c.bf16 %v2150_v38, %v2150_v38  ;;  %v1672_v44 = vadd.f32 %v3994_v57, %v1671_v54  ;;  %v2153_v51 = vadd.f32 %v3302_v55, %v1736_v53  ;;  %v1673_v61 = vpop.f32.mrb[127].mxu0  ;;  %v2144_v3 = vpop.f32.mrb[127].mxu1 }
 0x215   : > { %v3149_v14 = vpack.c.bf16 %v2142_v26, %v2142_v26  ;;  %v2145_v58 = vadd.f32 %v2144_v3, %v1728_v10  ;;  %v1757_v10 = vadd.f32 %v3994_v57, %v3930_v16 }
 0x216   : > { %v3135_v9 = vpack.c.bf16 %v2086_v33, %v2086_v33  ;;  %2683 = vst.msk [vmem:[%s4010_s8 + $0x138] sm:$0xf] %vm2604_vm1, %v3151_v43  ;;  %v2089_v32 = vadd.f32 %v4233_v25, %v1672_v44  ;;  %v3152_v2 = vpack.c.bf16 %v2153_v51, %v2153_v51  ;;  %v1752_v25 = vadd.f32 %v3994_v57, %v3922_v6 }
 0x217   : > { %2681 = vst.msk [vmem:[%s4010_s8 + $0x130] sm:$0xf] %vm2604_vm1, %v3149_v14  ;;  %v3150_v45 = vpack.c.bf16 %v2145_v58, %v2145_v58  ;;  %v1760_v44 = vadd.f32 %v3994_v57, %v3936_v24 }
 0x218   : > { %2667 = vst.msk [vmem:[%s4010_s8 + $0xf8] sm:$0xf] %vm2604_vm1, %v3135_v9  ;;  %v3136_v31 = vpack.c.bf16 %v2089_v32, %v2089_v32  ;;  %2684 = vst.msk [vmem:[%s4010_s8 + $0x13c] sm:$0xf] %vm2604_vm1, %v3152_v2 }
 0x219   : > { %2682 = vst.msk [vmem:[%s4010_s8 + $0x134] sm:$0xf] %vm2604_vm1, %v3150_v45  ;;  %v1676_v5 = vpop.f32.mrb[128].mxu0  ;;  %v3305_v18 = vpop.f32.mrb[128].mxu1 }
 0x21a   : > { %2668 = vst.msk [vmem:[%s4010_s8 + $0xfc] sm:$0xf] %vm2604_vm1, %v3136_v31  ;;  %v1677_v27 = vadd.f32 %v3994_v57, %v1676_v5  ;;  %v2166_v62 = vadd.f32 %v3305_v18, %v1749_v17  ;;  %v1678_v28 = vpop.f32.mrb[129].mxu0  ;;  %v2157_v15 = vpop.f32.mrb[129].mxu1  ;;  %v3571_v18 = vld [vmem:[%s4407_s2] ss:$0 sm:$0xff] }
 0x21b   : > { %v2158_v50 = vadd.f32 %v2157_v15, %v1741_v20  ;;  %v1679_v8 = vpop.f32.mrb[130].mxu0  ;;  %v3306_v49 = vpop.f32.mrb[130].mxu1  ;;  %v1781_v20 = vadd.f32 %v3994_v57, %v3969_v4 }
 0x21c   : > { %v2094_v0 = vadd.f32 %v4243_v21, %v1677_v27  ;;  %v3155_v7 = vpack.c.bf16 %v2166_v62, %v2166_v62  ;;  %v1680_v6 = vadd.f32 %v3994_v57, %v1679_v8  ;;  %v2169_v19 = vadd.f32 %v3306_v49, %v1752_v25  ;;  %v1681_v37 = vpop.f32.mrb[131].mxu0  ;;  %v2160_v36 = vpop.f32.mrb[131].mxu1 }
 0x21d   : > { %v3153_v41 = vpack.c.bf16 %v2158_v50, %v2158_v50  ;;  %v2161_v53 = vadd.f32 %v2160_v36, %v1744_v47  ;;  %v1773_v25 = vadd.f32 %v3571_v18, %v3958_v52  ;;  %v1784_v62 = vadd.f32 %v3571_v18, %v3973_v12 }
 0x21e   : > { %v3137_v23 = vpack.c.bf16 %v2094_v0, %v2094_v0  ;;  %2687 = vst.msk [vmem:[%s4010_s8 + $0x148] sm:$0xf] %vm2604_vm1, %v3155_v7  ;;  %v2097_v56 = vadd.f32 %v4248_v29, %v1680_v6  ;;  %v3156_v38 = vpack.c.bf16 %v2169_v19, %v2169_v19  ;;  %v1768_v29 = vadd.f32 %v3994_v57, %v3950_v42 }
 0x21f   : > { %2685 = vst.msk [vmem:[%s4010_s8 + $0x140] sm:$0xf] %vm2604_vm1, %v3153_v41  ;;  %v3154_v21 = vpack.c.bf16 %v2161_v53, %v2161_v53  ;;  %v1776_v47 = vadd.f32 %v3571_v18, %v3964_v60 }
 0x220   : > { %2669 = vst.msk [vmem:[%s4010_s8 + $0x100] sm:$0xf] %vm2604_vm1, %v3137_v23  ;;  %v3138_v13 = vpack.c.bf16 %v2097_v56, %v2097_v56  ;;  %2688 = vst.msk [vmem:[%s4010_s8 + $0x14c] sm:$0xf] %vm2604_vm1, %v3156_v38  ;;  %v1789_v38 = vadd.f32 %v3571_v18, %v3977_v22 }
 0x221   : > { %2686 = vst.msk [vmem:[%s4010_s8 + $0x144] sm:$0xf] %vm2604_vm1, %v3154_v21  ;;  %v1684_v26 = vpop.f32.mrb[132].mxu0  ;;  %v3309_v54 = vpop.f32.mrb[132].mxu1 }
 0x222   : > { %2670 = vst.msk [vmem:[%s4010_s8 + $0x104] sm:$0xf] %vm2604_vm1, %v3138_v13  ;;  %v1685_v55 = vadd.f32 %v3994_v57, %v1684_v26  ;;  %v2182_v34 = vadd.f32 %v3309_v54, %v1765_v39  ;;  %v1686_v33 = vpop.f32.mrb[133].mxu0  ;;  %v2173_v43 = vpop.f32.mrb[133].mxu1  ;;  %v1800_v13 = vadd.f32 %v3571_v18, %v3989_v48  ;;  %v1792_v54 = vadd.f32 %v3571_v18, %v3981_v30 }
 0x223   : > { %v2174_v16 = vadd.f32 %v2173_v43, %v1757_v10  ;;  %v1687_v51 = vpop.f32.mrb[134].mxu0  ;;  %v3310_v61 = vpop.f32.mrb[134].mxu1 }
 0x224   : > { %v2102_v3 = vadd.f32 %v4238_v46, %v1685_v55  ;;  %v3159_v14 = vpack.c.bf16 %v2182_v34, %v2182_v34  ;;  %v1688_v42 = vadd.f32 %v3994_v57, %v1687_v51  ;;  %v2185_v58 = vadd.f32 %v3310_v61, %v1768_v29  ;;  %v1689_v9 = vpop.f32.mrb[135].mxu0  ;;  %v2176_v32 = vpop.f32.mrb[135].mxu1 }
 0x225   : > { %v3157_v2 = vpack.c.bf16 %v2174_v16, %v2174_v16  ;;  %v2177_v45 = vadd.f32 %v2176_v32, %v1760_v44 }
 0x226   : > { %v3139_v17 = vpack.c.bf16 %v2102_v3, %v2102_v3  ;;  %2691 = vst.msk [vmem:[%s4010_s8 + $0x158] sm:$0xf] %vm2604_vm1, %v3159_v14  ;;  %v2105_v24 = vadd.f32 %v4245_v63, %v1688_v42  ;;  %v3160_v31 = vpack.c.bf16 %v2185_v58, %v2185_v58 }
 0x227   : > { %2689 = vst.msk [vmem:[%s4010_s8 + $0x150] sm:$0xf] %vm2604_vm1, %v3157_v2  ;;  %v3158_v46 = vpack.c.bf16 %v2177_v45, %v2177_v45 }
 0x228   : > { %2671 = vst.msk [vmem:[%s4010_s8 + $0x108] sm:$0xf] %vm2604_vm1, %v3139_v17  ;;  %v3140_v5 = vpack.c.bf16 %v2105_v24, %v2105_v24  ;;  %2692 = vst.msk [vmem:[%s4010_s8 + $0x15c] sm:$0xf] %vm2604_vm1, %v3160_v31 }
 0x229   : > { %2690 = vst.msk [vmem:[%s4010_s8 + $0x154] sm:$0xf] %vm2604_vm1, %v3158_v46  ;;  %v1692_v63 = vpop.f32.mrb[136].mxu0  ;;  %v3313_v27 = vpop.f32.mrb[136].mxu1 }
 0x22a   : > { %2672 = vst.msk [vmem:[%s4010_s8 + $0x10c] sm:$0xf] %vm2604_vm1, %v3140_v5  ;;  %v1693_v4 = vadd.f32 %v3571_v18, %v1692_v63  ;;  %v2198_v57 = vadd.f32 %v3313_v27, %v1781_v20  ;;  %v1694_v28 = vpop.f32.mrb[137].mxu0  ;;  %v2189_v15 = vpop.f32.mrb[137].mxu1 }
 0x22b   : > { %v2190_v50 = vadd.f32 %v2189_v15, %v1773_v25  ;;  %v1695_v8 = vpop.f32.mrb[138].mxu0  ;;  %v3314_v49 = vpop.f32.mrb[138].mxu1 }
 0x22c   : > { %v2110_v52 = vadd.f32 %v4257_v1, %v1693_v4  ;;  %v3163_v0 = vpack.c.bf16 %v2198_v57, %v2198_v57  ;;  %v1696_v7 = vadd.f32 %v3571_v18, %v1695_v8  ;;  %v2201_v12 = vadd.f32 %v3314_v49, %v1784_v62  ;;  %v1697_v6 = vpop.f32.mrb[139].mxu0  ;;  %v2192_v19 = vpop.f32.mrb[139].mxu1 }
 0x22d   : > { %v3161_v37 = vpack.c.bf16 %v2190_v50, %v2190_v50  ;;  %v2193_v36 = vadd.f32 %v2192_v19, %v1776_v47  ;;  %v1797_v1 = vadd.f32 %v3571_v18, %v3985_v40 }
 0x22e   : > { %v3141_v41 = vpack.c.bf16 %v2110_v52, %v2110_v52  ;;  %2695 = vst.msk [vmem:[%s4010_s8 + $0x168] sm:$0xf] %vm2604_vm1, %v3163_v0  ;;  %v2113_v60 = vadd.f32 %v4262_v35, %v1696_v7  ;;  %v3164_v53 = vpack.c.bf16 %v2201_v12, %v2201_v12 }
 0x22f   : > { %2693 = vst.msk [vmem:[%s4010_s8 + $0x160] sm:$0xf] %vm2604_vm1, %v3161_v37  ;;  %v3162_v23 = vpack.c.bf16 %v2193_v36, %v2193_v36 }
 0x230   : > { %2673 = vst.msk [vmem:[%s4010_s8 + $0x110] sm:$0xf] %vm2604_vm1, %v3141_v41  ;;  %v3142_v56 = vpack.c.bf16 %v2113_v60, %v2113_v60  ;;  %2696 = vst.msk [vmem:[%s4010_s8 + $0x16c] sm:$0xf] %vm2604_vm1, %v3164_v53 }
 0x231   : > { %2694 = vst.msk [vmem:[%s4010_s8 + $0x164] sm:$0xf] %vm2604_vm1, %v3162_v23  ;;  %v1700_v21 = vpop.f32.mrb[140].mxu0  ;;  %v3317_v39 = vpop.f32.mrb[140].mxu1 }
 0x232   : > { %2674 = vst.msk [vmem:[%s4010_s8 + $0x114] sm:$0xf] %vm2604_vm1, %v3142_v56  ;;  %v1701_v35 = vadd.f32 %v3571_v18, %v1700_v21  ;;  %v2214_v10 = vadd.f32 %v3317_v39, %v1797_v1  ;;  %v1702_v26 = vpop.f32.mrb[141].mxu0  ;;  %v2205_v40 = vpop.f32.mrb[141].mxu1 }
 0x233   : > { %v2206_v29 = vadd.f32 %v2205_v40, %v1789_v38  ;;  %v1703_v55 = vpop.f32.mrb[142].mxu0  ;;  %v3318_v22 = vpop.f32.mrb[142].mxu1 }
 0x234   : > { %v2118_v34 = vadd.f32 %v4252_v11, %v1701_v35  ;;  %v3167_v33 = vpack.c.bf16 %v2214_v10, %v2214_v10  ;;  %v1704_v48 = vadd.f32 %v3571_v18, %v1703_v55  ;;  %v2217_v43 = vadd.f32 %v3318_v22, %v1800_v13  ;;  %v1705_v44 = vpop.f32.mrb[143].mxu0  ;;  %v2208_v16 = vpop.f32.mrb[143].mxu1 }
 0x235   : > { %v3165_v51 = vpack.c.bf16 %v2206_v29, %v2206_v29  ;;  %v2209_v61 = vadd.f32 %v2208_v16, %v1792_v54 }
 0x236   : > { %v3143_v3 = vpack.c.bf16 %v2118_v34, %v2118_v34  ;;  %2699 = vst.msk [vmem:[%s4010_s8 + $0x178] sm:$0xf] %vm2604_vm1, %v3167_v33  ;;  %v2121_v30 = vadd.f32 %v4259_v59, %v1704_v48  ;;  %v3168_v14 = vpack.c.bf16 %v2217_v43, %v2217_v43 }
 0x237   : > { %2697 = vst.msk [vmem:[%s4010_s8 + $0x170] sm:$0xf] %vm2604_vm1, %v3165_v51  ;;  %v3166_v42 = vpack.c.bf16 %v2209_v61, %v2209_v61 }
 0x238   : > { %2675 = vst.msk [vmem:[%s4010_s8 + $0x118] sm:$0xf] %vm2604_vm1, %v3143_v3  ;;  %v3144_v11 = vpack.c.bf16 %v2121_v30, %v2121_v30  ;;  %2700 = vst.msk [vmem:[%s4010_s8 + $0x17c] sm:$0xf] %vm2604_vm1, %v3168_v14 }
 0x239   : > { %2698 = vst.msk [vmem:[%s4010_s8 + $0x174] sm:$0xf] %vm2604_vm1, %v3166_v42 }
 0x23a   : > { %2676 = vst.msk [vmem:[%s4010_s8 + $0x11c] sm:$0xf] %vm2604_vm1, %v3144_v11 }
 0x23b PF: > { %s13_s12 = sadd.s32 1, %s3578_s12  }
 0x23c   : > { %p10_p4 = scmp.ge.s32.totalorder %s13_s12, 5  }
 0x23e   :  { %12 = sbr.rel (!%p10_p4) target bundleno = 1 (0x1), region = 62 }

// kernel: conv_gru_forward.7
= control target key start
LH: loop header
LB: loop body
LE: loop exit
PB: predicated region body
PF: predicated region fallthrough
CT: control target
= control target key end

     0   :  { %s4225_s15 = smov 0   ;;  %s4227_s16 = smov 0   ;;  %s5673_s0 = inlined_call_operand.vmem [shape: bf16[8,400,96], index: 0, kind: input, shape index: {}]   ;;  %s5674_s1 = inlined_call_operand.vmem [shape: bf16[288,96], index: 1, kind: input, shape index: {}]   ;;  %s5675_s2 = inlined_call_operand.vmem [shape: f32[1,96], index: 2, kind: input, shape index: {}]   ;;  %s5676_s3 = inlined_call_operand.vmem [shape: f32[400,1], index: 3, kind: input, shape index: {}]   ;;  %s5677_s4 = inlined_call_operand.vmem [shape: bf16[8,400,32], index: 4, kind: output, shape index: {}]  }
   0x1   :  { %s4229_s17 = smov 0   ;;  %s4231_s18 = smov 0  }
   0x2   :  { %s4233_s19 = smov 0  }
   0x3 LB: > { %s23_s20 = sadd.s32 1, %s4183_s17  ;;  %s26_s21 = sadd.s32 1, %s4187_s18  ;;  %s4191_s19 = sphi %s4233_s19, %s14_s19   ;;  %s4187_s18 = sphi %s4231_s18, %s5794_s18   ;;  %s4183_s17 = sphi %s4229_s17, %s5793_s17   ;;  %s4179_s16 = sphi %s4227_s16, %s5792_s16   ;;  %s4175_s15 = sphi %s4225_s15, %s5791_s15  }
   0x4   : > { %p24_p0 = scmp.ge.s32.totalorder %s23_s20, 8  ;;  %p3185_p1 = scmp.ge.s32.totalorder %s4191_s19, 1 }
   0x5   : > { %p194_p2 = scmp.lt.s32.totalorder %s4191_s19, 17 }
   0x6   : > { %s5796_s20 = smov (%p24_p0, %s23_s20), 0  ;;  %s5798_s21 = smov (!%p24_p0, %s26_s21), %s4187_s18 }
   0x7   : > { %p195_p3 = pnand %p3185_p1, %p194_p2  ;;  %p28_p4 = scmp.ge.s32.totalorder %s5798_s21, 2 }
   0x9   : > { %s5800_s21 = smov (%p28_p4, %s5798_s21), 0  ;;  %198 = sbr.rel (%p195_p3) target bundleno = 1252 (0x4e4), region = 36 }
  0x10   : > { %s233_s22 = smul.u32 25, %s4179_s16  ;;  %p234_p5 = scmp.lt.s32.totalorder %s4175_s15, 7 }
  0x11   : > { %p3189_p7 = scmp.ne.s32.totalorder %s4175_s15, 0 }
  0x12   : > { %s235_s23 = scalar_select %p234_p5, %s4175_s15, 7 }
  0x13   : > { %p236_p6 = scmp.lt.s32.totalorder %s233_s22, 49  ;;  %263 = sbr.rel (%p3189_p7) target bundleno = 35 (0x23), region = 40  ;;  %vm264_vm0 = vcmask (!%p3189_p7), 261120   ;;  %v4193_v0 = vmov (!%p3189_p7), 0.0  }
  0x14   : > { %s3523_s24 = smul.u32 50, %s235_s23  ;;  %265 = vst.msk [vmem:[#allocation2] sm:$0xff] (!%p3189_p7), %vm264_vm0, %v4193_v0  ;;  %266 = vst.msk [vmem:[#allocation2 + $0x8] sm:$0xff] (!%p3189_p7), %vm264_vm0, %v4193_v0 }
  0x15   : > { %s5802_s22 = smov (!%p236_p6, %s233_s22), 49  ;;  %267 = vst.msk [vmem:[#allocation2 + $0x10] sm:$0xff] (!%p3189_p7), %vm264_vm0, %v4193_v0  ;;  %268 = vst.msk [vmem:[#allocation2 + $0x18] sm:$0xff] (!%p3189_p7), %vm264_vm0, %v4193_v0 }
  0x16   : > { %s239_s25 = sadd.s32 %s3523_s24, %s5802_s22  ;;  %s3187_s26 = sshll.u32 %s5802_s22, 3  ;;  %269 = vst.msk [vmem:[#allocation2 + $0x20] sm:$0xff] (!%p3189_p7), %vm264_vm0, %v4193_v0  ;;  %270 = vst.msk [vmem:[#allocation2 + $0x28] sm:$0xff] (!%p3189_p7), %vm264_vm0, %v4193_v0 }
  0x17   : > { %s3186_s27 = sshll.u32 %s239_s25, 2  ;;  %s4258_s30 = scalar_lea.vmem %s5676_s3, %s3187_s26  ;;  %271 = vst.msk [vmem:[#allocation2 + $0x30] sm:$0xff] (!%p3189_p7), %vm264_vm0, %v4193_v0  ;;  %272 = vst.msk [vmem:[#allocation2 + $0x38] sm:$0xff] (!%p3189_p7), %vm264_vm0, %v4193_v0 }
  0x18   : > { %s4263_s7 = scalar_lea.vmem %s5673_s0, %s3186_s27  ;;  %s4268_s10 = scalar_lea.vmem %s5677_s4, %s3186_s27  ;;  %273 = vst.msk [vmem:[#allocation2 + $0x40] sm:$0xff] (!%p3189_p7), %vm264_vm0, %v4193_v0  ;;  %274 = vst.msk [vmem:[#allocation2 + $0x48] sm:$0xff] (!%p3189_p7), %vm264_vm0, %v4193_v0 }
  0x19   : > { %275 = vst.msk [vmem:[#allocation2 + $0x50] sm:$0xff] (!%p3189_p7), %vm264_vm0, %v4193_v0  ;;  %276 = vst.msk [vmem:[#allocation2 + $0x58] sm:$0xff] (!%p3189_p7), %vm264_vm0, %v4193_v0 }
  0x1a   : > { %277 = vst.msk [vmem:[#allocation2 + $0x60] sm:$0xff] %vm264_vm0, %v4193_v0  ;;  %278 = vst.msk [vmem:[#allocation2 + $0x68] sm:$0xff] %vm264_vm0, %v4193_v0 }
  0x1b   : > { %279 = vst.msk [vmem:[#allocation2 + $0x70] sm:$0xff] %vm264_vm0, %v4193_v0  ;;  %280 = vst.msk [vmem:[#allocation2 + $0x78] sm:$0xff] %vm264_vm0, %v4193_v0 }
  0x1c   : > { %281 = vst.msk [vmem:[#allocation2 + $0x80] sm:$0xff] %vm264_vm0, %v4193_v0  ;;  %282 = vst.msk [vmem:[#allocation2 + $0x88] sm:$0xff] %vm264_vm0, %v4193_v0 }
  0x1d   : > { %283 = vst.msk [vmem:[#allocation2 + $0x90] sm:$0xff] %vm264_vm0, %v4193_v0  ;;  %284 = vst.msk [vmem:[#allocation2 + $0x98] sm:$0xff] %vm264_vm0, %v4193_v0 }
  0x1e   : > { %285 = vst.msk [vmem:[#allocation2 + $0xa0] sm:$0xff] %vm264_vm0, %v4193_v0  ;;  %286 = vst.msk [vmem:[#allocation2 + $0xa8] sm:$0xff] %vm264_vm0, %v4193_v0 }
  0x1f   : > { %287 = vst.msk [vmem:[#allocation2 + $0xb0] sm:$0xff] %vm264_vm0, %v4193_v0  ;;  %288 = vst.msk [vmem:[#allocation2 + $0xb8] sm:$0xff] %vm264_vm0, %v4193_v0 }
  0x20   : > { %289 = vst.msk [vmem:[#allocation2 + $0xc0] sm:$0xff] %vm264_vm0, %v4193_v0  ;;  %290 = vst.msk [vmem:[#allocation2 + $0xc8] sm:$0xff] %vm264_vm0, %v4193_v0 }
  0x21   : > { %291 = vst.msk [vmem:[#allocation2 + $0xd0] sm:$0xff] %vm264_vm0, %v4193_v0  ;;  %292 = vst.msk [vmem:[#allocation2 + $0xd8] sm:$0xff] %vm264_vm0, %v4193_v0 }
  0x22   : > { %293 = vst.msk [vmem:[#allocation2 + $0xe0] sm:$0xff] %vm264_vm0, %v4193_v0 }
  0x23 PF: > { %v4194_v11 = vmov 0.0   ;;  %s4195_s11 = smov 64   ;;  %s4196_s12 = smov 32   ;;  %vm4197_vm1 = vmmov 0   ;;  %v3948_v60 = vld [vmem:[%s5674_s1 + $0x40] sm:$0xff]   ;;  %vm1073_vm2 = vcmask 261120  }
  0x24   : > { %v344_v6 = vld [vmem:[#allocation2 + $0x3] sm:$0xff]  ;;  %3467 = vmatprep.subr.bf16.mxu1 %v4194_v11  ;;  %3471 = vmatprep.mubr.msk.bf16.mxu1 %vm4197_vm1, %v4194_v11  ;;  %s4198_s13 = smov 96   ;;  %vm1099_vm3 = vcmask 523264   ;;  %vm1125_vm4 = vcmask 785408   ;;  %vm3053_vm5 = vcmask 257024  }
  0x25   : > { %v4299_v3 = vld [vmem:[#allocation2 + $0x11] sm:$0xff]  ;;  %v319_v9 = vld [vmem:[#allocation2 + $0x2] sm:$0xff]  ;;  %3358 = vmatprep.subr.bf16.mxu0 %v3948_v60 }
  0x26   : > { %v421_v1 = vld [vmem:[#allocation2 + $0x1d] sm:$0xff]  ;;  %v422_v2 = vld [vmem:[#allocation2 + $0x25] sm:$0xff]  ;;  %v369_v14 = vld [vmem:[#allocation2 + $0xf] sm:$0xff] }
  0x27   : > { %v3581_v4 = vpack.i.bf16 %v422_v2, %v421_v1  ;;  %v4301_v5 = vld [vmem:[#allocation2 + $0x19] sm:$0xff]  ;;  %v345_v7 = vld [vmem:[#allocation2 + $0xb] sm:$0xff]  ;;  %v4310_v22 = vld [vmem:[#allocation2 + $0x21] sm:$0xff] }
  0x28   : > { %v3571_v8 = vpack.i.bf16 %v4301_v5, %v4299_v3  ;;  %v320_v10 = vld [vmem:[#allocation2 + $0xa] sm:$0xff]  ;;  %v3586_v12 = vpack.i.bf16 %v345_v7, %v344_v6  ;;  %v370_v15 = vld [vmem:[#allocation2 + $0x17] sm:$0xff]  ;;  %v4322_v32 = vld [vmem:[#allocation2 + $0x1f] sm:$0xff] }
  0x29   : > { %3582 = vrot.lane.b32.xlu1 %v3581_v4, %s4195_s11  ;;  %v3576_v13 = vpack.i.bf16 %v320_v10, %v319_v9  ;;  %v446_v16 = vld [vmem:[#allocation2 + $0x1e] sm:$0xff]  ;;  %v447_v17 = vld [vmem:[#allocation2 + $0x26] sm:$0xff]  ;;  %v3596_v18 = vpack.i.bf16 %v370_v15, %v369_v14  ;;  %v321_v20 = vld [vmem:[#allocation2 + $0x12] sm:$0xff] }
  0x2a   : > { %3572 = vrot.lane.b32.xlu0 %v3571_v8, %s4196_s12  ;;  %v3591_v19 = vpack.i.bf16 %v447_v17, %v446_v16  ;;  %v322_v21 = vld [vmem:[#allocation2 + $0x1a] sm:$0xff]  ;;  %v4312_v23 = vld [vmem:[#allocation2 + $0x29] sm:$0xff]  ;;  %v4330_v40 = vld [vmem:[#allocation2 + $0x31] sm:$0xff] }
  0x2b   : > { %v3606_v24 = vpack.i.bf16 %v322_v21, %v321_v20  ;;  %v3601_v25 = vpack.i.bf16 %v4312_v23, %v4310_v22  ;;  %v346_v26 = vld [vmem:[#allocation2 + $0x13] sm:$0xff]  ;;  %v347_v27 = vld [vmem:[#allocation2 + $0x1b] sm:$0xff]  ;;  %v4324_v33 = vld [vmem:[#allocation2 + $0x27] sm:$0xff] }
  0x2c   : > { %v423_v28 = vld [vmem:[#allocation2 + $0x2d] sm:$0xff]  ;;  %v424_v29 = vld [vmem:[#allocation2 + $0x35] sm:$0xff]  ;;  %v3616_v30 = vpack.i.bf16 %v347_v27, %v346_v26  ;;  %v3626_v36 = vpack.i.bf16 %v4324_v33, %v4322_v32  ;;  %v323_v38 = vld [vmem:[#allocation2 + $0x22] sm:$0xff] }
  0x2d   : > { %3587 = vrot.lane.b32.xlu1 %v3586_v12, %s4195_s11  ;;  %v3611_v31 = vpack.i.bf16 %v424_v29, %v423_v28  ;;  %v448_v34 = vld [vmem:[#allocation2 + $0x2e] sm:$0xff]  ;;  %v449_v35 = vld [vmem:[#allocation2 + $0x36] sm:$0xff]  ;;  %v348_v44 = vld [vmem:[#allocation2 + $0x23] sm:$0xff] }
  0x2e   : > { %3577 = vrot.lane.b32.xlu0 %v3576_v13, %s4196_s12  ;;  %v3621_v37 = vpack.i.bf16 %v449_v35, %v448_v34  ;;  %v324_v39 = vld [vmem:[#allocation2 + $0x2a] sm:$0xff]  ;;  %v4332_v41 = vld [vmem:[#allocation2 + $0x39] sm:$0xff]  ;;  %v302_v58 = vld [vmem:[#allocation2 + $0x41] sm:$0xff] }
  0x2f   : > { %v3636_v42 = vpack.i.bf16 %v324_v39, %v323_v38  ;;  %v3631_v43 = vpack.i.bf16 %v4332_v41, %v4330_v40  ;;  %v349_v45 = vld [vmem:[#allocation2 + $0x2b] sm:$0xff]  ;;  %v425_v46 = vld [vmem:[#allocation2 + $0x3d] sm:$0xff]  ;;  %v350_v62 = vld [vmem:[#allocation2 + $0x33] sm:$0xff] }
  0x30   : > { %v426_v47 = vld [vmem:[#allocation2 + $0x45] sm:$0xff]  ;;  %v3646_v48 = vpack.i.bf16 %v349_v45, %v348_v44  ;;  %v4340_v50 = vld [vmem:[#allocation2 + $0x2f] sm:$0xff]  ;;  %v4342_v51 = vld [vmem:[#allocation2 + $0x37] sm:$0xff] }
  0x31   : > { %3597 = vrot.lane.b32.xlu1 %v3596_v18, %s4198_s13  ;;  %v3641_v49 = vpack.i.bf16 %v426_v47, %v425_v46  ;;  %v450_v52 = vld [vmem:[#allocation2 + $0x3e] sm:$0xff]  ;;  %v451_v53 = vld [vmem:[#allocation2 + $0x46] sm:$0xff]  ;;  %v3656_v54 = vpack.i.bf16 %v4342_v51, %v4340_v50  ;;  %v325_v56 = vld [vmem:[#allocation2 + $0x32] sm:$0xff] }
  0x32   : > { %3592 = vrot.lane.b32.xlu0 %v3591_v19, %s4198_s13  ;;  %v3651_v55 = vpack.i.bf16 %v451_v53, %v450_v52  ;;  %v326_v57 = vld [vmem:[#allocation2 + $0x3a] sm:$0xff]  ;;  %v303_v59 = vld [vmem:[#allocation2 + $0x49] sm:$0xff] }
  0x33   : > { %v3666_v61 = vpack.i.bf16 %v326_v57, %v325_v56  ;;  %v351_v63 = vld [vmem:[#allocation2 + $0x3b] sm:$0xff]  ;;  %v3661_v1 = vpack.i.bf16 %v303_v59, %v302_v58  ;;  %v427_v2 = vld [vmem:[#allocation2 + $0x4d] sm:$0xff]  ;;  %v430_v35 = vld [vmem:[#allocation2 + $0x65] sm:$0xff] }
  0x34   : > { %v3949_v0 = vld [vmem:[%s5674_s1] sm:$0xff]   ;;  %v428_v4 = vld [vmem:[#allocation2 + $0x55] sm:$0xff]  ;;  %v3950_v6 = vld [vmem:[%s5674_s1 + $0x48] sm:$0xff]   ;;  %v3676_v9 = vpack.i.bf16 %v351_v63, %v350_v62 }
  0x35   : > { %3607 = vrot.lane.b32.xlu1 %v3606_v24, %s4196_s12  ;;  %3359 = vmatpush3.bf16.msra.mxu0 %v3949_v0  ;;  %v4359_v7 = vld [vmem:[#allocation2 + $0x3f] sm:$0xff]  ;;  %v3951_v8 = vld [vmem:[%s5674_s1 + $0x8] sm:$0xff]   ;;  %v453_v13 = vld [vmem:[#allocation2 + $0x56] sm:$0xff]  ;;  %v3671_v14 = vpack.i.bf16 %v428_v4, %v427_v2 }
  0x36   : > { %3602 = vrot.lane.b32.xlu0 %v3601_v25, %s4196_s12  ;;  %v4365_v10 = vld [vmem:[#allocation2 + $0x47] sm:$0xff]  ;;  %3360 = vmatprep.subr.bf16.mxu0 %v3950_v6  ;;  %v3952_v15 = vld [vmem:[%s5674_s1 + $0x50] sm:$0xff]   ;;  %v3954_v21 = vld [vmem:[%s5674_s1 + $0x58] sm:$0xff]  }
  0x37   : > { %v452_v12 = vld [vmem:[#allocation2 + $0x4e] sm:$0xff]  ;;  %v327_v17 = vld [vmem:[#allocation2 + $0x42] sm:$0xff]  ;;  %v3686_v18 = vpack.i.bf16 %v4365_v10, %v4359_v7  ;;  %v305_v25 = vld [vmem:[#allocation2 + $0x59] sm:$0xff] }
  0x38   : > { %v3953_v16 = vld [vmem:[%s5674_s1 + $0x10] sm:$0xff]   ;;  %v3681_v20 = vpack.i.bf16 %v453_v13, %v452_v12  ;;  %v3955_v26 = vld [vmem:[%s5674_s1 + $0x18] sm:$0xff]   ;;  %v3956_v28 = vld [vmem:[%s5674_s1 + $0x60] sm:$0xff]  }
  0x39   : > { %3617 = vrot.lane.b32.xlu1 %v3616_v30, %s4195_s11  ;;  %3361 = vmatpush3.bf16.msra.mxu0 %v3951_v8  ;;  %v328_v19 = vld [vmem:[#allocation2 + $0x4a] sm:$0xff]  ;;  %v429_v34 = vld [vmem:[#allocation2 + $0x5d] sm:$0xff]  ;;  %v354_v59 = vld [vmem:[#allocation2 + $0x53] sm:$0xff] }
  0x3a   : > { %3612 = vrot.lane.b32.xlu0 %v3611_v31, %s4195_s11  ;;  %3362 = vmatprep.subr.bf16.mxu0 %v3952_v15  ;;  %v304_v24 = vld [vmem:[#allocation2 + $0x51] sm:$0xff]  ;;  %v3696_v27 = vpack.i.bf16 %v328_v19, %v327_v17  ;;  %v352_v30 = vld [vmem:[#allocation2 + $0x43] sm:$0xff]  ;;  %v3701_v39 = vpack.i.bf16 %v430_v35, %v429_v34  ;;  %v330_v53 = vld [vmem:[#allocation2 + $0x5a] sm:$0xff] }
  0x3b   : > { %v3691_v29 = vpack.i.bf16 %v305_v25, %v304_v24  ;;  %v353_v31 = vld [vmem:[#allocation2 + $0x4b] sm:$0xff]  ;;  %v454_v44 = vld [vmem:[#allocation2 + $0x5e] sm:$0xff]  ;;  %v432_v0 = vld [vmem:[#allocation2 + $0x75] sm:$0xff] }
  0x3c   : > { %v3706_v38 = vpack.i.bf16 %v353_v31, %v352_v30  ;;  %v455_v45 = vld [vmem:[#allocation2 + $0x66] sm:$0xff]  ;;  %v3960_v47 = vld [vmem:[%s5674_s1 + $0x70] sm:$0xff]   ;;  %v3962_v57 = vld [vmem:[%s5674_s1 + $0x78] sm:$0xff]  }
  0x3d   : > { %3627 = vrot.lane.b32.xlu1 %v3626_v36, %s4198_s13  ;;  %3363 = vmatpush3.bf16.msra.mxu0 %v3953_v16  ;;  %v3957_v36 = vld [vmem:[%s5674_s1 + $0x20] sm:$0xff]   ;;  %v3959_v46 = vld [vmem:[%s5674_s1 + $0x28] sm:$0xff]   ;;  %v3711_v52 = vpack.i.bf16 %v455_v45, %v454_v44  ;;  %v3961_v56 = vld [vmem:[%s5674_s1 + $0x30] sm:$0xff]   ;;  %v1234_v44 = vpack.c.bf16 %v4365_v10, %v4359_v7 }
  0x3e   : > { %3622 = vrot.lane.b32.xlu0 %v3621_v37, %s4198_s13  ;;  %3364 = vmatprep.subr.bf16.mxu0 %v3954_v21  ;;  %v3958_v37 = vld [vmem:[%s5674_s1 + $0x68] sm:$0xff]   ;;  %v355_v60 = vld [vmem:[#allocation2 + $0x5b] sm:$0xff]  ;;  %v4441_v19 = vld [vmem:[#allocation2 + $0x71] sm:$0xff] }
  0x3f   : > { %v3964_v62 = vld [vmem:[%s5674_s1 + $0x80] sm:$0xff]   ;;  %v431_v63 = vld [vmem:[#allocation2 + $0x6d] sm:$0xff]  ;;  %v3736_v2 = vpack.i.bf16 %v355_v60, %v354_v59  ;;  %v457_v13 = vld [vmem:[#allocation2 + $0x76] sm:$0xff] }
  0x40   : > { %3468 = vmatpush3.bf16.msra.mxu1 %v3964_v62  ;;  %v3965_v4 = vld [vmem:[%s5674_s1 + $0x88] sm:$0xff]   ;;  %v3731_v6 = vpack.i.bf16 %v432_v0, %v431_v63  ;;  %v4431_v8 = vld [vmem:[#allocation2 + $0x5f] sm:$0xff]  ;;  %v4458_v31 = vld [vmem:[#allocation2 + $0x77] sm:$0xff] }
  0x41   : > { %3637 = vrot.lane.b32.xlu1 %v3636_v42, %s4196_s12  ;;  %3365 = vmatpush3.bf16.msra.mxu0 %v3955_v26  ;;  %v4397_v42 = vld [vmem:[#allocation2 + $0x4f] sm:$0xff]  ;;  %v331_v17 = vld [vmem:[#allocation2 + $0x62] sm:$0xff]  ;;  %v313_v63 = vld [vmem:[#allocation2 + $0x99] sm:$0xff] }
  0x42   : > { %3632 = vrot.lane.b32.xlu0 %v3631_v43, %s4196_s12  ;;  %3366 = vmatprep.subr.bf16.mxu0 %v3956_v28  ;;  %v4399_v43 = vld [vmem:[#allocation2 + $0x57] sm:$0xff]  ;;  %v456_v12 = vld [vmem:[#allocation2 + $0x6e] sm:$0xff]  ;;  %v356_v21 = vld [vmem:[#allocation2 + $0x63] sm:$0xff] }
  0x43   : > { %3469 = vmatprep.subr.bf16.mxu1 %v4194_v11  ;;  %v3741_v16 = vpack.i.bf16 %v457_v13, %v456_v12  ;;  %v357_v24 = vld [vmem:[#allocation2 + $0x6b] sm:$0xff]  ;;  %v433_v25 = vld [vmem:[#allocation2 + $0x7d] sm:$0xff] }
  0x44   : > { %3470 = vmatpush3.bf16.msra.mxu1 %v3965_v4  ;;  %v434_v26 = vld [vmem:[#allocation2 + $0x85] sm:$0xff]  ;;  %v3766_v28 = vpack.i.bf16 %v357_v24, %v356_v21  ;;  %v4456_v30 = vld [vmem:[#allocation2 + $0x6f] sm:$0xff] }
  0x45   : > { %3647 = vrot.lane.b32.xlu1 %v3646_v48, %s4195_s11  ;;  %3367 = vmatpush3.bf16.msra.mxu0 %v3957_v36  ;;  %v3716_v48 = vpack.i.bf16 %v4399_v43, %v4397_v42  ;;  %v458_v34 = vld [vmem:[#allocation2 + $0x7e] sm:$0xff]  ;;  %v459_v35 = vld [vmem:[#allocation2 + $0x86] sm:$0xff]  ;;  %v333_v36 = vld [vmem:[#allocation2 + $0x72] sm:$0xff]  ;;  %v1243_v24 = vpack.c.bf16 %v4458_v31, %v4456_v30 }
  0x46   : > { %3642 = vrot.lane.b32.xlu0 %v3641_v49, %s4195_s11  ;;  %3368 = vmatprep.subr.bf16.mxu0 %v3958_v37  ;;  %v329_v49 = vld [vmem:[#allocation2 + $0x52] sm:$0xff]  ;;  %v334_v37 = vld [vmem:[#allocation2 + $0x7a] sm:$0xff]  ;;  %v335_v60 = vld [vmem:[#allocation2 + $0x82] sm:$0xff] }
  0x47   : > { %v3726_v58 = vpack.i.bf16 %v330_v53, %v329_v49  ;;  %v3786_v45 = vpack.i.bf16 %v334_v37, %v333_v36  ;;  %v435_v49 = vld [vmem:[#allocation2 + $0x8d] sm:$0xff]  ;;  %v4482_v53 = vld [vmem:[#allocation2 + $0x7f] sm:$0xff]  ;;  %v465_v36 = vld [vmem:[#allocation2 + $0xb6] sm:$0xff] }
  0x48   : > { %v312_v62 = vld [vmem:[#allocation2 + $0x91] sm:$0xff]  ;;  %v360_v0 = vld [vmem:[#allocation2 + $0x83] sm:$0xff] }
  0x49   : > { %3657 = vrot.lane.b32.xlu1 %v3656_v54, %s4198_s13  ;;  %v306_v54 = vld [vmem:[#allocation2 + $0x61] sm:$0xff]  ;;  %3369 = vmatpush3.bf16.msra.mxu0 %v3959_v46  ;;  %v315_v21 = vld [vmem:[#allocation2 + $0xa9] sm:$0xff] }
  0x4a   : > { %3652 = vrot.lane.b32.xlu0 %v3651_v55, %s4198_s13  ;;  %v307_v55 = vld [vmem:[#allocation2 + $0x69] sm:$0xff]  ;;  %3370 = vmatprep.subr.bf16.mxu0 %v3960_v47  ;;  %v358_v47 = vld [vmem:[#allocation2 + $0x73] sm:$0xff] }
  0x4b   : > { %v438_v4 = vld [vmem:[#allocation2 + $0xa5] sm:$0xff] }
  0x4d   : > { %3667 = vrot.lane.b32.xlu1 %v3666_v61, %s4196_s12  ;;  %v3721_v61 = vpack.i.bf16 %v307_v55, %v306_v54  ;;  %3371 = vmatpush3.bf16.msra.mxu0 %v3961_v56  ;;  %v4484_v54 = vld [vmem:[#allocation2 + $0x87] sm:$0xff]  ;;  %v461_v56 = vld [vmem:[#allocation2 + $0x96] sm:$0xff] }
  0x4e   : > { %3662 = vrot.lane.b32.xlu0 %v3661_v1, %s4196_s12  ;;  %v3963_v1 = vld [vmem:[%s5674_s1 + $0x38] sm:$0xff]   ;;  %3372 = vmatprep.subr.bf16.mxu0 %v3962_v57  ;;  %v460_v55 = vld [vmem:[#allocation2 + $0x8e] sm:$0xff]  ;;  %v1237_v57 = vpack.c.bf16 %v4399_v43, %v4397_v42  ;;  %v3811_v43 = vpack.i.bf16 %v313_v63, %v312_v62  ;;  %v1246_v37 = vpack.c.bf16 %v4484_v54, %v4482_v53  ;;  %v442_v62 = vld [vmem:[#allocation2 + $0xc5] sm:$0xff] }
  0x4f   : > { %v3801_v59 = vpack.i.bf16 %v461_v56, %v460_v55  ;;  %v294_v55 = vld [vmem:[#allocation2 + $0x1] sm:$0xff] }
  0x51   : > { %3677 = vrot.lane.b32.xlu1 %v3676_v9, %s4195_s11  ;;  %v4433_v9 = vld [vmem:[#allocation2 + $0x67] sm:$0xff]  ;;  %3373 = vmatpush3.bf16.msra.mxu0 %v3963_v1 }
  0x52   : > { %3672 = vrot.lane.b32.xlu0 %v3671_v14, %s4195_s11  ;;  %v1228_v14 = vpack.c.bf16 %v4324_v33, %v4322_v32  ;;  %v3746_v15 = vpack.i.bf16 %v4433_v9, %v4431_v8  ;;  %v361_v1 = vld [vmem:[#allocation2 + $0x8b] sm:$0xff] }
  0x53   : > { %v3826_v12 = vpack.i.bf16 %v361_v1, %v360_v0  ;;  %v4538_v0 = vld [vmem:[#allocation2 + $0xaf] sm:$0xff] }
  0x54   : > { %3472 = vmatmul.mubr.msk.bf16.vlgmr.msra.gmra.mrb[0].mxu1 %vm1073_vm2, %v1228_v14  ;;  %v4501_v14 = vld [vmem:[#allocation2 + $0x8f] sm:$0xff] }
  0x55   : > { %3687 = vrot.lane.b32.xlu1 %v3686_v18, %s4198_s13  ;;  %v332_v18 = vld [vmem:[#allocation2 + $0x6a] sm:$0xff]  ;;  %3475 = vmatprep.mubr.msk.bf16.mxu1 %vm4197_vm1, %v4194_v11 }
  0x56   : > { %3682 = vrot.lane.b32.xlu0 %v3681_v20, %s4198_s13  ;;  %v4443_v20 = vld [vmem:[#allocation2 + $0x79] sm:$0xff]  ;;  %v3756_v32 = vpack.i.bf16 %v332_v18, %v331_v17  ;;  %v463_v17 = vld [vmem:[#allocation2 + $0xa6] sm:$0xff]  ;;  %v394_v1 = vld [vmem:[#allocation2 + $0x10] sm:$0xff] }
  0x57   : > { %v3751_v33 = vpack.i.bf16 %v4443_v20, %v4441_v19  ;;  %v337_v18 = vld [vmem:[#allocation2 + $0x92] sm:$0xff] }
  0x59   : > { %3697 = vrot.lane.b32.xlu1 %v3696_v27, %s4196_s12  ;;  %v1231_v27 = vpack.c.bf16 %v4342_v51, %v4340_v50  ;;  %v3776_v50 = vpack.i.bf16 %v4458_v31, %v4456_v30  ;;  %v3771_v51 = vpack.i.bf16 %v459_v35, %v458_v34  ;;  %v440_v34 = vld [vmem:[#allocation2 + $0xb5] sm:$0xff]  ;;  %v4521_v31 = vld [vmem:[#allocation2 + $0x9f] sm:$0xff] }
  0x5a   : > { %3692 = vrot.lane.b32.xlu0 %v3691_v29, %s4196_s12  ;;  %v3761_v29 = vpack.i.bf16 %v434_v26, %v433_v25 }
  0x5c   : > { %3476 = vmatmul.mubr.msk.bf16.gmra.mrb[4].mxu1 %vm1073_vm2, %v1231_v27  ;;  %v362_v27 = vld [vmem:[#allocation2 + $0x93] sm:$0xff] }
  0x5d   : > { %3707 = vrot.lane.b32.xlu1 %v3706_v38, %s4195_s11  ;;  %3479 = vmatprep.mubr.msk.bf16.mxu1 %vm4197_vm1, %v4194_v11  ;;  %v4467_v38 = vld [vmem:[#allocation2 + $0x81] sm:$0xff] }
  0x5e   : > { %3702 = vrot.lane.b32.xlu0 %v3701_v39, %s4195_s11  ;;  %v4469_v39 = vld [vmem:[#allocation2 + $0x89] sm:$0xff] }
  0x5f   : > { %v3781_v46 = vpack.i.bf16 %v4469_v39, %v4467_v38 }
  0x61   : > { %3717 = vrot.lane.b32.xlu1 %v3716_v48, %s4198_s13  ;;  %v359_v48 = vld [vmem:[#allocation2 + $0x7b] sm:$0xff] }
  0x62   : > { %3712 = vrot.lane.b32.xlu0 %v3711_v52, %s4198_s13  ;;  %v436_v52 = vld [vmem:[#allocation2 + $0x95] sm:$0xff]  ;;  %v3796_v7 = vpack.i.bf16 %v359_v48, %v358_v47  ;;  %v340_v47 = vld [vmem:[#allocation2 + $0xaa] sm:$0xff] }
  0x63   : > { %v3791_v10 = vpack.i.bf16 %v436_v52, %v435_v49  ;;  %v316_v49 = vld [vmem:[#allocation2 + $0xb1] sm:$0xff]  ;;  %v317_v52 = vld [vmem:[#allocation2 + $0xb9] sm:$0xff] }
  0x64   : > { %3480 = vmatmul.mubr.msk.bf16.gmra.mrb[8].mxu1 %vm1073_vm2, %v1234_v44  ;;  %v3871_v56 = vpack.i.bf16 %v317_v52, %v316_v49 }
  0x65   : > { %3727 = vrot.lane.b32.xlu1 %v3726_v58, %s4196_s12  ;;  %3483 = vmatprep.mubr.msk.bf16.mxu1 %vm4197_vm1, %v4194_v11  ;;  %v3806_v58 = vpack.i.bf16 %v4484_v54, %v4482_v53  ;;  %v364_v53 = vld [vmem:[#allocation2 + $0xa3] sm:$0xff]  ;;  %v365_v54 = vld [vmem:[#allocation2 + $0xab] sm:$0xff] }
  0x66   : > { %3722 = vrot.lane.b32.xlu0 %v3721_v61, %s4196_s12  ;;  %v336_v61 = vld [vmem:[#allocation2 + $0x8a] sm:$0xff] }
  0x67   : > { %v3816_v42 = vpack.i.bf16 %v336_v61, %v335_v60  ;;  %v295_v60 = vld [vmem:[#allocation2 + $0x9] sm:$0xff]  ;;  %v441_v61 = vld [vmem:[#allocation2 + $0xbd] sm:$0xff] }
  0x69   : > { %3737 = vrot.lane.b32.xlu1 %v3736_v2, %s4195_s11  ;;  %v437_v2 = vld [vmem:[#allocation2 + $0x9d] sm:$0xff] }
  0x6a   : > { %3732 = vrot.lane.b32.xlu0 %v3731_v6, %s4195_s11  ;;  %v1240_v6 = vpack.c.bf16 %v4433_v9, %v4431_v8  ;;  %v3821_v13 = vpack.i.bf16 %v438_v4, %v437_v2  ;;  %v395_v2 = vld [vmem:[#allocation2 + $0x18] sm:$0xff] }
  0x6c   : > { %3484 = vmatmul.mubr.msk.bf16.gmra.mrb[12].mxu1 %vm1073_vm2, %v1237_v57 }
  0x6d   : > { %3747 = vrot.lane.b32.xlu1 %v3746_v15, %s4198_s13  ;;  %3487 = vmatprep.mubr.msk.bf16.mxu1 %vm4197_vm1, %v4194_v11  ;;  %v4503_v15 = vld [vmem:[#allocation2 + $0x97] sm:$0xff] }
  0x6e   : > { %3742 = vrot.lane.b32.xlu0 %v3741_v16, %s4198_s13  ;;  %v462_v16 = vld [vmem:[#allocation2 + $0x9e] sm:$0xff]  ;;  %v3836_v8 = vpack.i.bf16 %v4503_v15, %v4501_v14  ;;  %v1249_v63 = vpack.c.bf16 %v4503_v15, %v4501_v14  ;;  %v3881_v14 = vpack.i.bf16 %v442_v62, %v441_v61  ;;  %v443_v61 = vld [vmem:[#allocation2 + $0xcd] sm:$0xff] }
  0x6f   : > { %v3831_v9 = vpack.i.bf16 %v463_v17, %v462_v16  ;;  %v4541_v16 = vld [vmem:[#allocation2 + $0xb7] sm:$0xff] }
  0x70   : > { %v466_v17 = vld [vmem:[#allocation2 + $0xbe] sm:$0xff] }
  0x71   : > { %3757 = vrot.lane.b32.xlu1 %v3756_v32, %s4196_s12  ;;  %v338_v32 = vld [vmem:[#allocation2 + $0x9a] sm:$0xff] }
  0x72   : > { %3752 = vrot.lane.b32.xlu0 %v3751_v33, %s4196_s12  ;;  %v314_v33 = vld [vmem:[#allocation2 + $0xa1] sm:$0xff]  ;;  %v3846_v25 = vpack.i.bf16 %v338_v32, %v337_v18 }
  0x73   : > { %v3841_v26 = vpack.i.bf16 %v315_v21, %v314_v33 }
  0x74   : > { %3488 = vmatmul.mubr.msk.bf16.gmra.mrb[16].mxu1 %vm1073_vm2, %v1240_v6 }
  0x75   : > { %3767 = vrot.lane.b32.xlu1 %v3766_v28, %s4195_s11  ;;  %3491 = vmatprep.mubr.msk.bf16.mxu1 %vm4197_vm1, %v4194_v11  ;;  %v363_v28 = vld [vmem:[#allocation2 + $0x9b] sm:$0xff] }
  0x76   : > { %3762 = vrot.lane.b32.xlu0 %v3761_v29, %s4195_s11  ;;  %v439_v29 = vld [vmem:[#allocation2 + $0xad] sm:$0xff]  ;;  %v3856_v35 = vpack.i.bf16 %v363_v28, %v362_v27  ;;  %v3896_v28 = vpack.i.bf16 %v4541_v16, %v4538_v0 }
  0x77   : > { %v3851_v30 = vpack.i.bf16 %v440_v34, %v439_v29 }
  0x79   : > { %3777 = vrot.lane.b32.xlu1 %v3776_v50, %s4198_s13  ;;  %v4523_v50 = vld [vmem:[#allocation2 + $0xa7] sm:$0xff] }
  0x7a   : > { %3772 = vrot.lane.b32.xlu0 %v3771_v51, %s4198_s13  ;;  %v464_v51 = vld [vmem:[#allocation2 + $0xae] sm:$0xff]  ;;  %v3866_v44 = vpack.i.bf16 %v4523_v50, %v4521_v31 }
  0x7c   : > { %3492 = vmatmul.mubr.msk.bf16.gmra.mrb[20].mxu1 %vm1073_vm2, %v1243_v24 }
  0x7d   : > { %3787 = vrot.lane.b32.xlu1 %v3786_v45, %s4196_s12  ;;  %3495 = vmatprep.mubr.msk.bf16.mxu1 %vm4197_vm1, %v4194_v11  ;;  %v3861_v45 = vpack.i.bf16 %v465_v36, %v464_v51 }
  0x7e   : > { %3782 = vrot.lane.b32.xlu0 %v3781_v46, %s4196_s12  ;;  %v339_v46 = vld [vmem:[#allocation2 + $0xa2] sm:$0xff] }
  0x81   : > { %3797 = vrot.lane.b32.xlu1 %v3796_v7, %s4195_s11 }
  0x82   : > { %3792 = vrot.lane.b32.xlu0 %v3791_v10, %s4195_s11  ;;  %v3876_v10 = vpack.i.bf16 %v340_v47, %v339_v46  ;;  %v341_v46 = vld [vmem:[#allocation2 + $0xb2] sm:$0xff]  ;;  %v342_v47 = vld [vmem:[#allocation2 + $0xba] sm:$0xff] }
  0x84   : > { %3496 = vmatmul.mubr.msk.bf16.gmra.mrb[24].mxu1 %vm1073_vm2, %v1246_v37 }
  0x85   : > { %3807 = vrot.lane.b32.xlu1 %v3806_v58, %s4198_s13  ;;  %3499 = vmatprep.mubr.msk.bf16.mxu1 %vm4197_vm1, %v4194_v11 }
  0x86   : > { %3802 = vrot.lane.b32.xlu0 %v3801_v59, %s4198_s13 }
  0x89   : > { %3817 = vrot.lane.b32.xlu1 %v3816_v42, %s4196_s12 }
  0x8a   : > { %3812 = vrot.lane.b32.xlu0 %v3811_v43, %s4196_s12  ;;  %v3886_v43 = vpack.i.bf16 %v365_v54, %v364_v53  ;;  %v419_v53 = vld [vmem:[#allocation2 + $0xc9] sm:$0xff]  ;;  %v1252_v54 = vpack.c.bf16 %v4523_v50, %v4521_v31 }
  0x8b   : > { %v4572_v31 = vld [vmem:[#allocation2 + $0xc7] sm:$0xff] }
  0x8c   : > { %3500 = vmatmul.mubr.msk.bf16.gmra.mrb[28].mxu1 %vm1073_vm2, %v1249_v63 }
  0x8d   : > { %3827 = vrot.lane.b32.xlu1 %v3826_v12, %s4195_s11  ;;  %3503 = vmatprep.mubr.msk.bf16.mxu1 %vm4197_vm1, %v4194_v11 }
  0x8e   : > { %3822 = vrot.lane.b32.xlu0 %v3821_v13, %s4195_s11 }
  0x91   : > { %3837 = vrot.lane.b32.xlu1 %v3836_v8, %s4198_s13  ;;  %v467_v8 = vld [vmem:[#allocation2 + $0xc6] sm:$0xff] }
  0x92   : > { %3832 = vrot.lane.b32.xlu0 %v3831_v9, %s4198_s13  ;;  %v3891_v29 = vpack.i.bf16 %v467_v8, %v466_v17  ;;  %v397_v17 = vld [vmem:[#allocation2 + $0x28] sm:$0xff] }
  0x94   : > { %3504 = vmatmul.mubr.msk.bf16.gmra.mrb[32].mxu1 %vm1073_vm2, %v1252_v54 }
  0x95   : > { %3847 = vrot.lane.b32.xlu1 %v3846_v25, %s4196_s12  ;;  %3507 = vmatprep.mubr.msk.bf16.mxu1 %vm4197_vm1, %v4194_v11 }
  0x96   : > { %3842 = vrot.lane.b32.xlu0 %v3841_v26, %s4196_s12 }
  0x99   : > { %3857 = vrot.lane.b32.xlu1 %v3856_v35, %s4195_s11 }
  0x9a   : > { %3852 = vrot.lane.b32.xlu0 %v3851_v30, %s4195_s11 }
  0x9b   : > { %v3583_v48 = vpop.permute.xlu1 %3582 }
  0x9c   : > { %v3573_v7 = vpop.permute.xlu0 %3572  ;;  %v3585_v9 = vunpack.i.h.bf16 %v3583_v48  ;;  %v3584_v18 = vunpack.i.l.bf16 %v3583_v48 }
  0x9d   : > { %3867 = vrot.lane.b32.xlu1 %v3866_v44, %s4198_s13  ;;  %v3575_v57 = vunpack.i.h.bf16 %v3573_v7  ;;  %v3574_v58 = vunpack.i.l.bf16 %v3573_v7 }
  0x9e   : > { %3862 = vrot.lane.b32.xlu0 %v3861_v45, %s4198_s13 }
  0x9f   : > { %v3588_v59 = vpop.permute.xlu1 %3587  ;;  %v1151_v21 = vsel %vm1073_vm2, %v394_v1, %v3574_v58  ;;  %v1152_v24 = vsel %vm1073_vm2, %v395_v2, %v3575_v57  ;;  %v3906_v57 = vpack.i.bf16 %v342_v47, %v341_v46  ;;  %v4570_v1 = vld [vmem:[#allocation2 + $0xbf] sm:$0xff] }
  0xa0   : > { %v3578_v42 = vpop.permute.xlu0 %3577  ;;  %v3590_v4 = vunpack.i.h.bf16 %v3588_v59  ;;  %v3589_v6 = vunpack.i.l.bf16 %v3588_v59  ;;  %v1176_v36 = vsel %vm1099_vm3, %v1151_v21, %v3584_v18  ;;  %v1177_v37 = vsel %vm1099_vm3, %v1152_v24, %v3585_v9  ;;  %v366_v59 = vld [vmem:[#allocation2 + $0xb3] sm:$0xff]  ;;  %v445_v46 = vld [vmem:[#allocation2 + $0xdd] sm:$0xff] }
  0xa1   : > { %v3580_v12 = vunpack.i.h.bf16 %v3578_v42  ;;  %v3579_v13 = vunpack.i.l.bf16 %v3578_v42  ;;  %3877 = vrot.lane.b32.xlu1 %v3876_v10, %s4196_s12  ;;  %v4563_v10 = vld [vmem:[#allocation2 + $0xc1] sm:$0xff] }
  0xa2   : > { %3872 = vrot.lane.b32.xlu0 %v3871_v56, %s4196_s12  ;;  %v3901_v58 = vpack.i.bf16 %v419_v53, %v4563_v10  ;;  %v420_v53 = vld [vmem:[#allocation2 + $0xd1] sm:$0xff] }
  0xa3   : > { %v1074_v15 = vsel %vm1073_vm2, %v294_v55, %v3579_v13  ;;  %v1075_v32 = vsel %vm1073_vm2, %v295_v60, %v3580_v12  ;;  %v3598_v33 = vpop.permute.xlu1 %3597  ;;  %v367_v60 = vld [vmem:[#allocation2 + $0xbb] sm:$0xff] }
  0xa4   : > { %v3600_v25 = vunpack.i.h.bf16 %v3598_v33  ;;  %v3599_v26 = vunpack.i.l.bf16 %v3598_v33  ;;  %v3593_v27 = vpop.permute.xlu0 %3592  ;;  %v1100_v30 = vsel %vm1099_vm3, %v1074_v15, %v3589_v6  ;;  %v1101_v51 = vsel %vm1099_vm3, %v1075_v32, %v3590_v4  ;;  %v468_v6 = vld [vmem:[#allocation2 + $0xce] sm:$0xff]  ;;  %v469_v12 = vld [vmem:[#allocation2 + $0xd6] sm:$0xff]  ;;  %v396_v13 = vld [vmem:[#allocation2 + $0x20] sm:$0xff] }
  0xa5   : > { %v3595_v34 = vunpack.i.h.bf16 %v3593_v27  ;;  %v3594_v35 = vunpack.i.l.bf16 %v3593_v27  ;;  %3887 = vrot.lane.b32.xlu1 %v3886_v43, %s4195_s11  ;;  %v444_v43 = vld [vmem:[#allocation2 + $0xd5] sm:$0xff]  ;;  %v3916_v18 = vpack.i.bf16 %v367_v60, %v366_v59  ;;  %v3926_v33 = vpack.i.bf16 %v4572_v31, %v4570_v1 }
  0xa6   : > { %3882 = vrot.lane.b32.xlu0 %v3881_v14, %s4195_s11  ;;  %v1126_v44 = vsel %vm1125_vm4, %v1100_v30, %v3599_v26  ;;  %v1127_v45 = vsel %vm1125_vm4, %v1101_v51, %v3600_v25  ;;  %v3911_v32 = vpack.i.bf16 %v444_v43, %v443_v61  ;;  %v3921_v26 = vpack.i.bf16 %v469_v12, %v468_v6  ;;  %v393_v61 = vld [vmem:[#allocation2 + $0xcf] sm:$0xff]  ;;  %v399_v6 = vld [vmem:[#allocation2 + $0x38] sm:$0xff] }
  0xa7   : > { %v3608_v48 = vpop.permute.xlu1 %3607  ;;  %v1201_v49 = vsel %vm1125_vm4, %v1176_v36, %v3594_v35  ;;  %v1202_v52 = vsel %vm1125_vm4, %v1177_v37, %v3595_v34  ;;  %v1226_v7 = vpack.c.bf16 %v1127_v45, %v1126_v44  ;;  %v1255_v27 = vpack.c.bf16 %v4541_v16, %v4538_v0  ;;  %v368_v45 = vld [vmem:[#allocation2 + $0xc3] sm:$0xff] }
  0xa8   : > { %v3603_v55 = vpop.permute.xlu0 %3602  ;;  %v1227_v56 = vpack.c.bf16 %v1202_v52, %v1201_v49  ;;  %v3610_v62 = vunpack.i.h.bf16 %v3608_v48  ;;  %v3609_v63 = vunpack.i.l.bf16 %v3608_v48 }
  0xa9   : > { %3897 = vrot.lane.b32.xlu1 %v3896_v28, %s4198_s13  ;;  %v3605_v50 = vunpack.i.h.bf16 %v3603_v55  ;;  %v3604_v2 = vunpack.i.l.bf16 %v3603_v55  ;;  %3508 = vmatmul.mubr.msk.bf16.gmra.mrb[36].mxu1 %vm1073_vm2, %v1255_v27 }
  0xaa   : > { %3892 = vrot.lane.b32.xlu0 %v3891_v29, %s4198_s13  ;;  %1487 = vmatprep.mubr.bf16.mxu0 %v1227_v56  ;;  %v1076_v21 = vsel %vm1073_vm2, %v4299_v3, %v3609_v63  ;;  %v1077_v24 = vsel %vm1073_vm2, %v4301_v5, %v3610_v62  ;;  %v3936_v56 = vpack.i.bf16 %v368_v45, %v445_v46  ;;  %v470_v62 = vld [vmem:[#allocation2 + $0xde] sm:$0xff] }
  0xab   : > { %1488 = vmatmul.mubr.bf16.vlgmr.msra.gmra.mrb[0].mxu0 %v1226_v7  ;;  %v3618_v42 = vpop.permute.xlu1 %3617  ;;  %v1154_v28 = vsel %vm1073_vm2, %v397_v17, %v3605_v50  ;;  %v1153_v29 = vsel %vm1073_vm2, %v396_v13, %v3604_v2  ;;  %v343_v7 = vld [vmem:[#allocation2 + $0xc2] sm:$0xff]  ;;  %3511 = vmatprep.mubr.msk.bf16.mxu1 %vm4197_vm1, %v4194_v11  ;;  %v1258_v63 = vpack.c.bf16 %v4572_v31, %v4570_v1  ;;  %v4199_v2 = vmov 0  }
  0xac   : > { %v3613_v4 = vpop.permute.xlu0 %3612  ;;  %v3620_v8 = vunpack.i.h.bf16 %v3618_v42  ;;  %v3619_v9 = vunpack.i.l.bf16 %v3618_v42  ;;  %3947 = vset.pattern.permute.xlu1 %v4199_v2  ;;  %3946 = vset.pattern.permute.xlu0 %v4199_v2  ;;  %v2606_v45 = vld [vmem:[%s4258_s30 + $0x20] sm:$0xff] }
  0xad   : > { %3907 = vrot.lane.b32.xlu1 %v3906_v57, %s4196_s12  ;;  %v3615_v14 = vunpack.i.h.bf16 %v3613_v4  ;;  %v3614_v15 = vunpack.i.l.bf16 %v3613_v4  ;;  %v3931_v57 = vpack.i.bf16 %v343_v7, %v420_v53  ;;  %v398_v4 = vld [vmem:[#allocation2 + $0x30] sm:$0xff] }
  0xae   : > { %3902 = vrot.lane.b32.xlu0 %v3901_v58, %s4196_s12  ;;  %v1102_v3 = vsel %vm1099_vm3, %v1076_v21, %v3619_v9  ;;  %v1103_v5 = vsel %vm1099_vm3, %v1077_v24, %v3620_v8  ;;  %v3941_v9 = vpack.i.bf16 %v393_v61, %v470_v62 }
  0xaf   : > { %v3628_v25 = vpop.permute.xlu1 %3627  ;;  %v1178_v37 = vsel %vm1099_vm3, %v1153_v29, %v3614_v15  ;;  %v1179_v0 = vsel %vm1099_vm3, %v1154_v28, %v3615_v14 }
  0xb0   : > { %v3630_v34 = vunpack.i.h.bf16 %v3628_v25  ;;  %v3629_v35 = vunpack.i.l.bf16 %v3628_v25  ;;  %v3623_v30 = vpop.permute.xlu0 %3622  ;;  %v471_v25 = vld [vmem:[#allocation2 + $0xd7] sm:$0xff] }
  0xb1   : > { %v3625_v51 = vunpack.i.h.bf16 %v3623_v30  ;;  %v3624_v36 = vunpack.i.l.bf16 %v3623_v30  ;;  %3917 = vrot.lane.b32.xlu1 %v3916_v18, %s4195_s11  ;;  %v2603_v18 = vld [vmem:[%s4258_s30 + $0x8] sm:$0xff]  ;;  %3512 = vmatmul.mubr.msk.bf16.gmra.mrb[40].mxu1 %vm1073_vm2, %v1258_v63  ;;  %v2604_v30 = vld [vmem:[%s4258_s30 + $0x10] sm:$0xff] }
  0xb2   : > { %3912 = vrot.lane.b32.xlu0 %v3911_v32, %s4195_s11  ;;  %v1128_v16 = vsel %vm1125_vm4, %v1102_v3, %v3629_v35  ;;  %v1129_v44 = vsel %vm1125_vm4, %v1103_v5, %v3630_v34  ;;  %3515 = vmatprep.mubr.msk.bf16.mxu1 %vm4197_vm1, %v4194_v11 }
  0xb3   : > { %v3638_v47 = vpop.permute.xlu1 %3637  ;;  %v1203_v48 = vsel %vm1125_vm4, %v1178_v37, %v3624_v36  ;;  %v1204_v49 = vsel %vm1125_vm4, %v1179_v0, %v3625_v51  ;;  %v1229_v52 = vpack.c.bf16 %v1129_v44, %v1128_v16  ;;  %v1261_v37 = vpack.c.bf16 %v471_v25, %v393_v61  ;;  %v2602_v0 = vld [vmem:[%s4258_s30] sm:$0xff]  ;;  %v2608_v61 = vld [vmem:[%s4258_s30 + $0x30] sm:$0xff] }
  0xb4   : > { %v3633_v54 = vpop.permute.xlu0 %3632  ;;  %v1230_v55 = vpack.c.bf16 %v1204_v49, %v1203_v48  ;;  %v3640_v58 = vunpack.i.h.bf16 %v3638_v47  ;;  %v3639_v59 = vunpack.i.l.bf16 %v3638_v47  ;;  %v2605_v49 = vld [vmem:[%s4258_s30 + $0x18] sm:$0xff] }
  0xb5   : > { %3927 = vrot.lane.b32.xlu1 %v3926_v33, %s4198_s13  ;;  %v3635_v42 = vunpack.i.h.bf16 %v3633_v54  ;;  %v3634_v43 = vunpack.i.l.bf16 %v3633_v54  ;;  %v472_v54 = vld [vmem:[#allocation2 + $0xdf] sm:$0xff] }
  0xb6   : > { %3922 = vrot.lane.b32.xlu0 %v3921_v26, %s4198_s13  ;;  %1495 = vmatprep.mubr.bf16.mxu0 %v1230_v55  ;;  %v1078_v1 = vsel %vm1073_vm2, %v4310_v22, %v3639_v59  ;;  %v1079_v31 = vsel %vm1073_vm2, %v4312_v23, %v3640_v58  ;;  %v400_v55 = vld [vmem:[#allocation2 + $0x40] sm:$0xff] }
  0xb7   : > { %1496 = vmatmul.mubr.bf16.gmra.mrb[4].mxu0 %v1229_v52  ;;  %v3648_v60 = vpop.permute.xlu1 %3647  ;;  %v1156_v15 = vsel %vm1073_vm2, %v399_v6, %v3635_v42  ;;  %v1155_v32 = vsel %vm1073_vm2, %v398_v4, %v3634_v43  ;;  %v1264_v43 = vpack.c.bf16 %v472_v54, %v472_v54 }
  0xb8   : > { %v3643_v50 = vpop.permute.xlu0 %3642  ;;  %v3650_v12 = vunpack.i.h.bf16 %v3648_v60  ;;  %v3649_v13 = vunpack.i.l.bf16 %v3648_v60 }
  0xb9   : > { %3937 = vrot.lane.b32.xlu1 %v3936_v56, %s4195_s11  ;;  %v3645_v17 = vunpack.i.h.bf16 %v3643_v50  ;;  %v3644_v8 = vunpack.i.l.bf16 %v3643_v50  ;;  %3516 = vmatmul.mubr.msk.bf16.gmra.mrb[44].mxu1 %vm1073_vm2, %v1261_v37  ;;  %v401_v56 = vld [vmem:[#allocation2 + $0x48] sm:$0xff] }
  0xba   : > { %3932 = vrot.lane.b32.xlu0 %v3931_v57, %s4196_s12  ;;  %v1104_v23 = vsel %vm1099_vm3, %v1078_v1, %v3649_v13  ;;  %v1105_v27 = vsel %vm1099_vm3, %v1079_v31, %v3650_v12  ;;  %3519 = vmatprep.mubr.msk.bf16.mxu1 %vm4197_vm1, %v4194_v11  ;;  %v2607_v50 = vld [vmem:[%s4258_s30 + $0x28] sm:$0xff]  ;;  %v2610_v31 = vld [vmem:[%s4258_s30 + $0x40] sm:$0xff] }
  0xbb   : > { %v3658_v14 = vpop.permute.xlu1 %3657  ;;  %v1180_v28 = vsel %vm1099_vm3, %v1155_v32, %v3644_v8  ;;  %v1181_v29 = vsel %vm1099_vm3, %v1156_v15, %v3645_v17 }
  0xbc   : > { %v3660_v33 = vunpack.i.h.bf16 %v3658_v14  ;;  %v3659_v21 = vunpack.i.l.bf16 %v3658_v14  ;;  %v3653_v24 = vpop.permute.xlu0 %3652 }
  0xbd   : > { %v3655_v26 = vunpack.i.h.bf16 %v3653_v24  ;;  %v3654_v22 = vunpack.i.l.bf16 %v3653_v24  ;;  %2634 = vperm.xlu1 %3947, %v2603_v18  }
  0xbe   : > { %3942 = vrot.lane.b32.xlu0 %v3941_v9, %s4198_s13  ;;  %v1130_v34 = vsel %vm1125_vm4, %v1104_v23, %v3659_v21  ;;  %v1131_v35 = vsel %vm1125_vm4, %v1105_v27, %v3660_v33  ;;  %v2609_v21 = vld [vmem:[%s4258_s30 + $0x38] sm:$0xff] }
  0xbf   : > { %v3668_v51 = vpop.permute.xlu1 %3667  ;;  %v1205_v36 = vsel %vm1125_vm4, %v1180_v28, %v3654_v22  ;;  %v1206_v3 = vsel %vm1125_vm4, %v1181_v29, %v3655_v26  ;;  %v1232_v5 = vpack.c.bf16 %v1131_v35, %v1130_v34  ;;  %v2612_v26 = vld [vmem:[%s4258_s30 + $0x50] sm:$0xff]  ;;  %v2611_v28 = vld [vmem:[%s4258_s30 + $0x48] sm:$0xff] }
  0xc0   : > { %v3663_v16 = vpop.permute.xlu0 %3662  ;;  %v1233_v44 = vpack.c.bf16 %v1206_v3, %v1205_v36  ;;  %v3670_v46 = vunpack.i.h.bf16 %v3668_v51  ;;  %v3669_v47 = vunpack.i.l.bf16 %v3668_v51  ;;  %v403_v51 = vld [vmem:[#allocation2 + $0x58] sm:$0xff] }
  0xc1   : > { %2639 = vperm.xlu1 %3947, %v2604_v30   ;;  %v3665_v52 = vunpack.i.h.bf16 %v3663_v16  ;;  %v3664_v7 = vunpack.i.l.bf16 %v3663_v16  ;;  %3520 = vmatmul.mubr.msk.bf16.gmra.mrb[48].mxu1 %vm1073_vm2, %v1264_v43  ;;  %v402_v30 = vld [vmem:[#allocation2 + $0x50] sm:$0xff]  ;;  %v4116_v16 = vld [vmem:[#allocation2 + $0x41] sm:$0xff] }
  0xc2   : > { %1503 = vmatprep.mubr.bf16.mxu0 %v1233_v44  ;;  %2629 = vperm.xlu0 %3946, %v2602_v0   ;;  %v1080_v62 = vsel %vm1073_vm2, %v4330_v40, %v3669_v47  ;;  %v1081_v63 = vsel %vm1073_vm2, %v4332_v41, %v3670_v46  ;;  %v2614_v0 = vld [vmem:[%s4258_s30 + $0x60] sm:$0xff] }
  0xc3   : > { %1504 = vmatmul.mubr.bf16.gmra.mrb[8].mxu0 %v1232_v5  ;;  %v3678_v48 = vpop.permute.xlu1 %3677  ;;  %v1158_v11 = vsel %vm1073_vm2, %v401_v56, %v3665_v52  ;;  %v1157_v2 = vsel %vm1073_vm2, %v400_v55, %v3664_v7 }
  0xc4   : > { %v3673_v53 = vpop.permute.xlu0 %3672  ;;  %v3680_v57 = vunpack.i.h.bf16 %v3678_v48  ;;  %v3679_v58 = vunpack.i.l.bf16 %v3678_v48  ;;  %v2613_v48 = vld [vmem:[%s4258_s30 + $0x58] sm:$0xff] }
  0xc5   : > { %2649 = vperm.xlu1 %3947, %v2606_v45   ;;  %v3675_v59 = vunpack.i.h.bf16 %v3673_v53  ;;  %v3674_v60 = vunpack.i.l.bf16 %v3673_v53  ;;  %v4117_v45 = vld [vmem:[#allocation2 + $0x49] sm:$0xff] }
  0xc6   : > { %2644 = vperm.xlu0 %3946, %v2605_v49   ;;  %v1106_v8 = vsel %vm1099_vm3, %v1080_v62, %v3679_v58  ;;  %v1107_v40 = vsel %vm1099_vm3, %v1081_v63, %v3680_v57  ;;  %v2616_v63 = vld [vmem:[%s4258_s30 + $0x70] sm:$0xff] }
  0xc7   : > { %v3688_v42 = vpop.permute.xlu1 %3687  ;;  %v1182_v41 = vsel %vm1099_vm3, %v1157_v2, %v3674_v60  ;;  %v1183_v9 = vsel %vm1099_vm3, %v1158_v11, %v3675_v59  ;;  %v2615_v2 = vld [vmem:[%s4258_s30 + $0x68] sm:$0xff] }
  0xc8   : > { %v3690_v4 = vunpack.i.h.bf16 %v3688_v42  ;;  %v3689_v6 = vunpack.i.l.bf16 %v3688_v42  ;;  %v3683_v12 = vpop.permute.xlu0 %3682 }
  0xc9   : > { %v3685_v13 = vunpack.i.h.bf16 %v3683_v12  ;;  %v3684_v17 = vunpack.i.l.bf16 %v3683_v12  ;;  %2659 = vperm.xlu1 %3947, %v2608_v61   ;;  %v2618_v12 = vld [vmem:[%s4258_s30 + $0x80] sm:$0xff] }
  0xca   : > { %v1132_v18 = vsel %vm1125_vm4, %v1106_v8, %v3689_v6  ;;  %v1133_v1 = vsel %vm1125_vm4, %v1107_v40, %v3690_v4  ;;  %2654 = vperm.xlu0 %3946, %v2607_v50   ;;  %v2617_v40 = vld [vmem:[%s4258_s30 + $0x78] sm:$0xff] }
  0xcb   : > { %v3698_v14 = vpop.permute.xlu1 %3697  ;;  %v1207_v15 = vsel %vm1125_vm4, %v1182_v41, %v3684_v17  ;;  %v1208_v32 = vsel %vm1125_vm4, %v1183_v9, %v3685_v13  ;;  %v1235_v33 = vpack.c.bf16 %v1133_v1, %v1132_v18  ;;  %v404_v1 = vld [vmem:[#allocation2 + $0x60] sm:$0xff] }
  0xcc   : > { %v3693_v24 = vpop.permute.xlu0 %3692  ;;  %v1236_v25 = vpack.c.bf16 %v1208_v32, %v1207_v15  ;;  %v3700_v22 = vunpack.i.h.bf16 %v3698_v14  ;;  %v3699_v23 = vunpack.i.l.bf16 %v3698_v14 }
  0xcd   : > { %2669 = vperm.xlu1 %3947, %v2610_v31   ;;  %v3695_v29 = vunpack.i.h.bf16 %v3693_v24  ;;  %v3694_v34 = vunpack.i.l.bf16 %v3693_v24  ;;  %v405_v31 = vld [vmem:[#allocation2 + $0x68] sm:$0xff] }
  0xce   : > { %1511 = vmatprep.mubr.bf16.mxu0 %v1236_v25  ;;  %2664 = vperm.xlu0 %3946, %v2609_v21   ;;  %v1082_v44 = vsel %vm1073_vm2, %v4116_v16, %v3699_v23  ;;  %v1083_v46 = vsel %vm1073_vm2, %v4117_v45, %v3700_v22  ;;  %v4118_v21 = vld [vmem:[#allocation2 + $0x51] sm:$0xff]  ;;  %v4119_v25 = vld [vmem:[#allocation2 + $0x59] sm:$0xff]  ;;  %v2619_v23 = vld [vmem:[%s4258_s30 + $0x88] sm:$0xff] }
  0xcf   : > { %1512 = vmatmul.mubr.bf16.gmra.mrb[12].mxu0 %v1235_v33  ;;  %v3708_v27 = vpop.permute.xlu1 %3707  ;;  %v1160_v49 = vsel %vm1073_vm2, %v403_v51, %v3695_v29  ;;  %v1159_v52 = vsel %vm1073_vm2, %v402_v30, %v3694_v34 }
  0xd0   : > { %v3703_v35 = vpop.permute.xlu0 %3702  ;;  %v3710_v36 = vunpack.i.h.bf16 %v3708_v27  ;;  %v3709_v3 = vunpack.i.l.bf16 %v3708_v27 }
  0xd1   : > { %2679 = vperm.xlu1 %3947, %v2612_v26   ;;  %v3705_v5 = vunpack.i.h.bf16 %v3703_v35  ;;  %v3704_v37 = vunpack.i.l.bf16 %v3703_v35 }
  0xd2   : > { %2674 = vperm.xlu0 %3946, %v2611_v28   ;;  %v1108_v57 = vsel %vm1099_vm3, %v1082_v44, %v3709_v3  ;;  %v1109_v58 = vsel %vm1099_vm3, %v1083_v46, %v3710_v36 }
  0xd3   : > { %v3718_v47 = vpop.permute.xlu1 %3717  ;;  %v1184_v59 = vsel %vm1099_vm3, %v1159_v52, %v3704_v37  ;;  %v1185_v60 = vsel %vm1099_vm3, %v1160_v49, %v3705_v5 }
  0xd4   : > { %v3720_v7 = vunpack.i.h.bf16 %v3718_v47  ;;  %v3719_v53 = vunpack.i.l.bf16 %v3718_v47  ;;  %v3713_v54 = vpop.permute.xlu0 %3712 }
  0xd5   : > { %v3715_v55 = vunpack.i.h.bf16 %v3713_v54  ;;  %v3714_v56 = vunpack.i.l.bf16 %v3713_v54  ;;  %2689 = vperm.xlu1 %3947, %v2614_v0  }
  0xd6   : > { %v1134_v61 = vsel %vm1125_vm4, %v1108_v57, %v3719_v53  ;;  %v1135_v62 = vsel %vm1125_vm4, %v1109_v58, %v3720_v7  ;;  %2684 = vperm.xlu0 %3946, %v2613_v48   ;;  %v406_v57 = vld [vmem:[#allocation2 + $0x70] sm:$0xff]  ;;  %v407_v58 = vld [vmem:[#allocation2 + $0x78] sm:$0xff] }
  0xd7   : > { %v3728_v42 = vpop.permute.xlu1 %3727  ;;  %v1209_v43 = vsel %vm1125_vm4, %v1184_v59, %v3714_v56  ;;  %v1210_v50 = vsel %vm1125_vm4, %v1185_v60, %v3715_v55  ;;  %v1238_v11 = vpack.c.bf16 %v1135_v62, %v1134_v61 }
  0xd8   : > { %v3723_v4 = vpop.permute.xlu0 %3722  ;;  %v1239_v6 = vpack.c.bf16 %v1210_v50, %v1209_v43  ;;  %v3730_v13 = vunpack.i.h.bf16 %v3728_v42  ;;  %v3729_v17 = vunpack.i.l.bf16 %v3728_v42  ;;  %v4121_v43 = vld [vmem:[#allocation2 + $0x69] sm:$0xff] }
  0xd9   : > { %2699 = vperm.xlu1 %3947, %v2616_v63   ;;  %v3725_v41 = vunpack.i.h.bf16 %v3723_v4  ;;  %v3724_v9 = vunpack.i.l.bf16 %v3723_v4  ;;  %v4120_v63 = vld [vmem:[#allocation2 + $0x61] sm:$0xff] }
  0xda   : > { %1519 = vmatprep.mubr.bf16.mxu0 %v1239_v6  ;;  %2694 = vperm.xlu0 %3946, %v2615_v2   ;;  %v1084_v24 = vsel %vm1073_vm2, %v4118_v21, %v3729_v17  ;;  %v1085_v26 = vsel %vm1073_vm2, %v4119_v25, %v3730_v13 }
  0xdb   : > { %1520 = vmatmul.mubr.bf16.gmra.mrb[16].mxu0 %v1238_v11  ;;  %v3738_v8 = vpop.permute.xlu1 %3737  ;;  %v1162_v27 = vsel %vm1073_vm2, %v405_v31, %v3725_v41  ;;  %v1161_v28 = vsel %vm1073_vm2, %v404_v1, %v3724_v9 }
  0xdc   : > { %v3733_v18 = vpop.permute.xlu0 %3732  ;;  %v3740_v14 = vunpack.i.h.bf16 %v3738_v8  ;;  %v3739_v15 = vunpack.i.l.bf16 %v3738_v8 }
  0xdd   : > { %2709 = vperm.xlu1 %3947, %v2618_v12   ;;  %v3735_v32 = vunpack.i.h.bf16 %v3733_v18  ;;  %v3734_v33 = vunpack.i.l.bf16 %v3733_v18 }
  0xde   : > { %2704 = vperm.xlu0 %3946, %v2617_v40   ;;  %v1110_v36 = vsel %vm1099_vm3, %v1084_v24, %v3739_v15  ;;  %v1111_v3 = vsel %vm1099_vm3, %v1085_v26, %v3740_v14 }
  0xdf   : > { %v3748_v22 = vpop.permute.xlu1 %3747  ;;  %v1186_v5 = vsel %vm1099_vm3, %v1161_v28, %v3734_v33  ;;  %v1187_v37 = vsel %vm1099_vm3, %v1162_v27, %v3735_v32 }
  0xe0   : > { %v3750_v29 = vunpack.i.h.bf16 %v3748_v22  ;;  %v3749_v34 = vunpack.i.l.bf16 %v3748_v22  ;;  %v3743_v35 = vpop.permute.xlu0 %3742 }
  0xe1   : > { %v3745_v30 = vunpack.i.h.bf16 %v3743_v35  ;;  %v3744_v51 = vunpack.i.l.bf16 %v3743_v35 }
  0xe2   : > { %v1136_v0 = vsel %vm1125_vm4, %v1110_v36, %v3749_v34  ;;  %v1137_v16 = vsel %vm1125_vm4, %v1111_v3, %v3750_v29  ;;  %2714 = vperm.xlu0 %3946, %v2619_v23   ;;  %v408_v29 = vld [vmem:[#allocation2 + $0x80] sm:$0xff]  ;;  %v409_v34 = vld [vmem:[#allocation2 + $0x88] sm:$0xff] }
  0xe3   : > { %v3758_v44 = vpop.permute.xlu1 %3757  ;;  %v1211_v45 = vsel %vm1125_vm4, %v1186_v5, %v3744_v51  ;;  %v1212_v46 = vsel %vm1125_vm4, %v1187_v37, %v3745_v30  ;;  %v1241_v47 = vpack.c.bf16 %v1137_v16, %v1136_v0 }
  0xe4   : > { %v3753_v48 = vpop.permute.xlu0 %3752  ;;  %v1242_v49 = vpack.c.bf16 %v1212_v46, %v1211_v45  ;;  %v3760_v52 = vunpack.i.h.bf16 %v3758_v44  ;;  %v3759_v7 = vunpack.i.l.bf16 %v3758_v44 }
  0xe5   : > { %v3755_v54 = vunpack.i.h.bf16 %v3753_v48  ;;  %v3754_v55 = vunpack.i.l.bf16 %v3753_v48 }
  0xe6   : > { %1527 = vmatprep.mubr.bf16.mxu0 %v1242_v49  ;;  %v1086_v42 = vsel %vm1073_vm2, %v4120_v63, %v3759_v7  ;;  %v1087_v50 = vsel %vm1073_vm2, %v4121_v43, %v3760_v52 }
  0xe7   : > { %1528 = vmatmul.mubr.bf16.gmra.mrb[20].mxu0 %v1241_v47  ;;  %v3768_v53 = vpop.permute.xlu1 %3767  ;;  %v1164_v2 = vsel %vm1073_vm2, %v407_v58, %v3755_v54  ;;  %v1163_v4 = vsel %vm1073_vm2, %v406_v57, %v3754_v55 }
  0xe8   : > { %v3763_v56 = vpop.permute.xlu0 %3762  ;;  %v3770_v59 = vunpack.i.h.bf16 %v3768_v53  ;;  %v3769_v60 = vunpack.i.l.bf16 %v3768_v53 }
  0xe9   : > { %v3765_v61 = vunpack.i.h.bf16 %v3763_v56  ;;  %v3764_v62 = vunpack.i.l.bf16 %v3763_v56 }
  0xea   : > { %v1112_v40 = vsel %vm1099_vm3, %v1086_v42, %v3769_v60  ;;  %v1113_v41 = vsel %vm1099_vm3, %v1087_v50, %v3770_v59  ;;  %v410_v50 = vld [vmem:[#allocation2 + $0x90] sm:$0xff] }
  0xeb   : > { %v3778_v11 = vpop.permute.xlu1 %3777  ;;  %v1188_v9 = vsel %vm1099_vm3, %v1163_v4, %v3764_v62  ;;  %v1189_v18 = vsel %vm1099_vm3, %v1164_v2, %v3765_v61 }
  0xec   : > { %v3780_v6 = vunpack.i.h.bf16 %v3778_v11  ;;  %v3779_v12 = vunpack.i.l.bf16 %v3778_v11  ;;  %v3773_v13 = vpop.permute.xlu0 %3772  ;;  %v411_v11 = vld [vmem:[#allocation2 + $0x98] sm:$0xff] }
  0xed   : > { %v3775_v17 = vunpack.i.h.bf16 %v3773_v13  ;;  %v3774_v8 = vunpack.i.l.bf16 %v3773_v13 }
  0xee   : > { %v1138_v1 = vsel %vm1125_vm4, %v1112_v40, %v3779_v12  ;;  %v1139_v31 = vsel %vm1125_vm4, %v1113_v41, %v3780_v6 }
  0xef   : > { %v3788_v14 = vpop.permute.xlu1 %3787  ;;  %v1213_v15 = vsel %vm1125_vm4, %v1188_v9, %v3774_v8  ;;  %v1214_v32 = vsel %vm1125_vm4, %v1189_v18, %v3775_v17  ;;  %v1244_v33 = vpack.c.bf16 %v1139_v31, %v1138_v1 }
  0xf0   : > { %v3783_v21 = vpop.permute.xlu0 %3782  ;;  %v1245_v24 = vpack.c.bf16 %v1214_v32, %v1213_v15  ;;  %v3790_v25 = vunpack.i.h.bf16 %v3788_v14  ;;  %v3789_v26 = vunpack.i.l.bf16 %v3788_v14 }
  0xf1   : > { %v3785_v23 = vunpack.i.h.bf16 %v3783_v21  ;;  %v3784_v27 = vunpack.i.l.bf16 %v3783_v21 }
  0xf2   : > { %1535 = vmatprep.mubr.bf16.mxu0 %v1245_v24  ;;  %v1088_v3 = vsel %vm1073_vm2, %v4441_v19, %v3789_v26  ;;  %v1089_v5 = vsel %vm1073_vm2, %v4443_v20, %v3790_v25 }
  0xf3   : > { %1536 = vmatmul.mubr.bf16.gmra.mrb[24].mxu0 %v1244_v33  ;;  %v3798_v22 = vpop.permute.xlu1 %3797  ;;  %v1166_v0 = vsel %vm1073_vm2, %v409_v34, %v3785_v23  ;;  %v1165_v16 = vsel %vm1073_vm2, %v408_v29, %v3784_v27 }
  0xf4   : > { %v3793_v28 = vpop.permute.xlu0 %3792  ;;  %v3800_v35 = vunpack.i.h.bf16 %v3798_v22  ;;  %v3799_v30 = vunpack.i.l.bf16 %v3798_v22 }
  0xf5   : > { %v3795_v51 = vunpack.i.h.bf16 %v3793_v28  ;;  %v3794_v36 = vunpack.i.l.bf16 %v3793_v28 }
  0xf6   : > { %v1114_v49 = vsel %vm1099_vm3, %v1088_v3, %v3799_v30  ;;  %v1115_v52 = vsel %vm1099_vm3, %v1089_v5, %v3800_v35  ;;  %v413_v3 = vld [vmem:[#allocation2 + $0xa8] sm:$0xff] }
  0xf7   : > { %v3808_v37 = vpop.permute.xlu1 %3807  ;;  %v1190_v7 = vsel %vm1099_vm3, %v1165_v16, %v3794_v36  ;;  %v1191_v19 = vsel %vm1099_vm3, %v1166_v0, %v3795_v51  ;;  %v412_v36 = vld [vmem:[#allocation2 + $0xa0] sm:$0xff] }
  0xf8   : > { %v3810_v44 = vunpack.i.h.bf16 %v3808_v37  ;;  %v3809_v45 = vunpack.i.l.bf16 %v3808_v37  ;;  %v3803_v46 = vpop.permute.xlu0 %3802 }
  0xf9   : > { %v3805_v47 = vunpack.i.h.bf16 %v3803_v46  ;;  %v3804_v48 = vunpack.i.l.bf16 %v3803_v46  ;;  %v4123_v46 = vld [vmem:[#allocation2 + $0x99] sm:$0xff] }
  0xfa   : > { %v1140_v20 = vsel %vm1125_vm4, %v1114_v49, %v3809_v45  ;;  %v1141_v53 = vsel %vm1125_vm4, %v1115_v52, %v3810_v44  ;;  %v4122_v44 = vld [vmem:[#allocation2 + $0x91] sm:$0xff] }
  0xfb   : > { %v3818_v54 = vpop.permute.xlu1 %3817  ;;  %v1215_v55 = vsel %vm1125_vm4, %v1190_v7, %v3804_v48  ;;  %v1216_v56 = vsel %vm1125_vm4, %v1191_v19, %v3805_v47  ;;  %v1247_v57 = vpack.c.bf16 %v1141_v53, %v1140_v20 }
  0xfc   : > { %v3813_v58 = vpop.permute.xlu0 %3812  ;;  %v1248_v59 = vpack.c.bf16 %v1216_v56, %v1215_v55  ;;  %v3820_v60 = vunpack.i.h.bf16 %v3818_v54  ;;  %v3819_v61 = vunpack.i.l.bf16 %v3818_v54 }
  0xfd   : > { %v3815_v63 = vunpack.i.h.bf16 %v3813_v58  ;;  %v3814_v42 = vunpack.i.l.bf16 %v3813_v58 }
  0xfe   : > { %1543 = vmatprep.mubr.bf16.mxu0 %v1248_v59  ;;  %v1090_v13 = vsel %vm1073_vm2, %v4467_v38, %v3819_v61  ;;  %v1091_v17 = vsel %vm1073_vm2, %v4469_v39, %v3820_v60 }
  0xff   : > { %1544 = vmatmul.mubr.bf16.gmra.mrb[28].mxu0 %v1247_v57  ;;  %v3828_v62 = vpop.permute.xlu1 %3827  ;;  %v1168_v40 = vsel %vm1073_vm2, %v411_v11, %v3815_v63  ;;  %v1167_v41 = vsel %vm1073_vm2, %v410_v50, %v3814_v42 }
 0x100   : > { %v3823_v43 = vpop.permute.xlu0 %3822  ;;  %v3830_v2 = vunpack.i.h.bf16 %v3828_v62  ;;  %v3829_v4 = vunpack.i.l.bf16 %v3828_v62 }
 0x101   : > { %v3825_v6 = vunpack.i.h.bf16 %v3823_v43  ;;  %v3824_v12 = vunpack.i.l.bf16 %v3823_v43 }
 0x102   : > { %v1116_v15 = vsel %vm1099_vm3, %v1090_v13, %v3829_v4  ;;  %v1117_v32 = vsel %vm1099_vm3, %v1091_v17, %v3830_v2  ;;  %v414_v17 = vld [vmem:[#allocation2 + $0xb0] sm:$0xff] }
 0x103   : > { %v3838_v8 = vpop.permute.xlu1 %3837  ;;  %v1192_v33 = vsel %vm1099_vm3, %v1167_v41, %v3824_v12  ;;  %v1193_v38 = vsel %vm1099_vm3, %v1168_v40, %v3825_v6 }
 0x104   : > { %v3840_v9 = vunpack.i.h.bf16 %v3838_v8  ;;  %v3839_v18 = vunpack.i.l.bf16 %v3838_v8  ;;  %v3833_v1 = vpop.permute.xlu0 %3832  ;;  %v415_v8 = vld [vmem:[#allocation2 + $0xb8] sm:$0xff] }
 0x105   : > { %v3835_v31 = vunpack.i.h.bf16 %v3833_v1  ;;  %v3834_v14 = vunpack.i.l.bf16 %v3833_v1  ;;  %v4124_v1 = vld [vmem:[#allocation2 + $0xa1] sm:$0xff] }
 0x106   : > { %v1142_v39 = vsel %vm1125_vm4, %v1116_v15, %v3839_v18  ;;  %v1143_v21 = vsel %vm1125_vm4, %v1117_v32, %v3840_v9 }
 0x107   : > { %v3848_v24 = vpop.permute.xlu1 %3847  ;;  %v1217_v25 = vsel %vm1125_vm4, %v1192_v33, %v3834_v14  ;;  %v1218_v26 = vsel %vm1125_vm4, %v1193_v38, %v3835_v31  ;;  %v1250_v22 = vpack.c.bf16 %v1143_v21, %v1142_v39  ;;  %v4125_v14 = vld [vmem:[#allocation2 + $0xa9] sm:$0xff] }
 0x108   : > { %v3843_v23 = vpop.permute.xlu0 %3842  ;;  %v1251_v27 = vpack.c.bf16 %v1218_v26, %v1217_v25  ;;  %v3850_v28 = vunpack.i.h.bf16 %v3848_v24  ;;  %v3849_v29 = vunpack.i.l.bf16 %v3848_v24 }
 0x109   : > { %v3845_v35 = vunpack.i.h.bf16 %v3843_v23  ;;  %v3844_v30 = vunpack.i.l.bf16 %v3843_v23 }
 0x10a   : > { %1551 = vmatprep.mubr.bf16.mxu0 %v1251_v27  ;;  %v1092_v45 = vsel %vm1073_vm2, %v4122_v44, %v3849_v29  ;;  %v1093_v47 = vsel %vm1073_vm2, %v4123_v46, %v3850_v28 }
 0x10b   : > { %1552 = vmatmul.mubr.bf16.gmra.mrb[32].mxu0 %v1250_v22  ;;  %v3858_v34 = vpop.permute.xlu1 %3857  ;;  %v1170_v49 = vsel %vm1073_vm2, %v413_v3, %v3845_v35  ;;  %v1169_v52 = vsel %vm1073_vm2, %v412_v36, %v3844_v30 }
 0x10c   : > { %v3853_v51 = vpop.permute.xlu0 %3852  ;;  %v3860_v5 = vunpack.i.h.bf16 %v3858_v34  ;;  %v3859_v37 = vunpack.i.l.bf16 %v3858_v34 }
 0x10d   : > { %v3855_v0 = vunpack.i.h.bf16 %v3853_v51  ;;  %v3854_v16 = vunpack.i.l.bf16 %v3853_v51 }
 0x10e   : > { %v1118_v55 = vsel %vm1099_vm3, %v1092_v45, %v3859_v37  ;;  %v1119_v56 = vsel %vm1099_vm3, %v1093_v47, %v3860_v5  ;;  %v416_v47 = vld [vmem:[#allocation2 + $0xc0] sm:$0xff] }
 0x10f   : > { %v3868_v48 = vpop.permute.xlu1 %3867  ;;  %v1194_v57 = vsel %vm1099_vm3, %v1169_v52, %v3854_v16  ;;  %v1195_v58 = vsel %vm1099_vm3, %v1170_v49, %v3855_v0 }
 0x110   : > { %v3870_v7 = vunpack.i.h.bf16 %v3868_v48  ;;  %v3869_v19 = vunpack.i.l.bf16 %v3868_v48  ;;  %v3863_v20 = vpop.permute.xlu0 %3862  ;;  %v417_v48 = vld [vmem:[#allocation2 + $0xc8] sm:$0xff] }
 0x111   : > { %v3865_v53 = vunpack.i.h.bf16 %v3863_v20  ;;  %v3864_v54 = vunpack.i.l.bf16 %v3863_v20  ;;  %v4126_v20 = vld [vmem:[#allocation2 + $0xb1] sm:$0xff] }
 0x112   : > { %v1144_v59 = vsel %vm1125_vm4, %v1118_v55, %v3869_v19  ;;  %v1145_v60 = vsel %vm1125_vm4, %v1119_v56, %v3870_v7 }
 0x113   : > { %v3878_v61 = vpop.permute.xlu1 %3877  ;;  %v1219_v62 = vsel %vm1125_vm4, %v1194_v57, %v3864_v54  ;;  %v1220_v63 = vsel %vm1125_vm4, %v1195_v58, %v3865_v53  ;;  %v1253_v42 = vpack.c.bf16 %v1145_v60, %v1144_v59  ;;  %v4127_v54 = vld [vmem:[#allocation2 + $0xb9] sm:$0xff] }
 0x114   : > { %v3873_v43 = vpop.permute.xlu0 %3872  ;;  %v1254_v50 = vpack.c.bf16 %v1220_v63, %v1219_v62  ;;  %v3880_v11 = vunpack.i.h.bf16 %v3878_v61  ;;  %v3879_v2 = vunpack.i.l.bf16 %v3878_v61 }
 0x115   : > { %v3875_v6 = vunpack.i.h.bf16 %v3873_v43  ;;  %v3874_v12 = vunpack.i.l.bf16 %v3873_v43 }
 0x116   : > { %1559 = vmatprep.mubr.bf16.mxu0 %v1254_v50  ;;  %v1094_v31 = vsel %vm1073_vm2, %v4124_v1, %v3879_v2  ;;  %v1095_v15 = vsel %vm1073_vm2, %v4125_v14, %v3880_v11 }
 0x117   : > { %1560 = vmatmul.mubr.bf16.gmra.mrb[36].mxu0 %v1253_v42  ;;  %v3888_v4 = vpop.permute.xlu1 %3887  ;;  %v1172_v33 = vsel %vm1073_vm2, %v415_v8, %v3875_v6  ;;  %v1171_v38 = vsel %vm1073_vm2, %v414_v17, %v3874_v12  ;;  %v418_v8 = vld [vmem:[#allocation2 + $0xd0] sm:$0xff] }
 0x118   : > { %v3883_v13 = vpop.permute.xlu0 %3882  ;;  %v3890_v40 = vunpack.i.h.bf16 %v3888_v4  ;;  %v3889_v41 = vunpack.i.l.bf16 %v3888_v4 }
 0x119   : > { %v3885_v9 = vunpack.i.h.bf16 %v3883_v13  ;;  %v3884_v18 = vunpack.i.l.bf16 %v3883_v13 }
 0x11a   : > { %v1120_v22 = vsel %vm1099_vm3, %v1094_v31, %v3889_v41  ;;  %v1121_v23 = vsel %vm1099_vm3, %v1095_v15, %v3890_v40 }
 0x11b   : > { %v3898_v32 = vpop.permute.xlu1 %3897  ;;  %v1196_v27 = vsel %vm1099_vm3, %v1171_v38, %v3884_v18  ;;  %v1197_v28 = vsel %vm1099_vm3, %v1172_v33, %v3885_v9 }
 0x11c   : > { %v3900_v39 = vunpack.i.h.bf16 %v3898_v32  ;;  %v3899_v21 = vunpack.i.l.bf16 %v3898_v32  ;;  %v3893_v24 = vpop.permute.xlu0 %3892 }
 0x11d   : > { %v3895_v25 = vunpack.i.h.bf16 %v3893_v24  ;;  %v3894_v26 = vunpack.i.l.bf16 %v3893_v24 }
 0x11e   : > { %v1146_v29 = vsel %vm1125_vm4, %v1120_v22, %v3899_v21  ;;  %v1147_v34 = vsel %vm1125_vm4, %v1121_v23, %v3900_v39 }
 0x11f   : > { %v3908_v35 = vpop.permute.xlu1 %3907  ;;  %v1221_v30 = vsel %vm1125_vm4, %v1196_v27, %v3894_v26  ;;  %v1222_v51 = vsel %vm1125_vm4, %v1197_v28, %v3895_v25  ;;  %v1256_v36 = vpack.c.bf16 %v1147_v34, %v1146_v29 }
 0x120   : > { %v3903_v3 = vpop.permute.xlu0 %3902  ;;  %v1257_v5 = vpack.c.bf16 %v1222_v51, %v1221_v30  ;;  %v3910_v37 = vunpack.i.h.bf16 %v3908_v35  ;;  %v3909_v0 = vunpack.i.l.bf16 %v3908_v35 }
 0x121   : > { %v3905_v44 = vunpack.i.h.bf16 %v3903_v3  ;;  %v3904_v45 = vunpack.i.l.bf16 %v3903_v3 }
 0x122   : > { %1567 = vmatprep.mubr.bf16.mxu0 %v1257_v5  ;;  %v1096_v53 = vsel %vm1073_vm2, %v4126_v20, %v3909_v0  ;;  %v1097_v55 = vsel %vm1073_vm2, %v4127_v54, %v3910_v37 }
 0x123   : > { %1568 = vmatmul.mubr.bf16.gmra.mrb[40].mxu0 %v1256_v36  ;;  %v3918_v16 = vpop.permute.xlu1 %3917  ;;  %v1174_v57 = vsel %vm1073_vm2, %v417_v48, %v3905_v44  ;;  %v1173_v58 = vsel %vm1073_vm2, %v416_v47, %v3904_v45 }
 0x124   : > { %v3913_v46 = vpop.permute.xlu0 %3912  ;;  %v3920_v49 = vunpack.i.h.bf16 %v3918_v16  ;;  %v3919_v52 = vunpack.i.l.bf16 %v3918_v16 }
 0x125   : > { %v3915_v7 = vunpack.i.h.bf16 %v3913_v46  ;;  %v3914_v19 = vunpack.i.l.bf16 %v3913_v46 }
 0x126   : > { %v1122_v42 = vsel %vm1099_vm3, %v1096_v53, %v3919_v52  ;;  %v1123_v43 = vsel %vm1099_vm3, %v1097_v55, %v3920_v49 }
 0x127   : > { %v3928_v56 = vpop.permute.xlu1 %3927  ;;  %v1198_v50 = vsel %vm1099_vm3, %v1173_v58, %v3914_v19  ;;  %v1199_v11 = vsel %vm1099_vm3, %v1174_v57, %v3915_v7  ;;  %v1625_v23 = vpop.f32.mrb[0].mxu1 }
 0x128   : > { %v3930_v59 = vunpack.i.h.bf16 %v3928_v56  ;;  %v3929_v60 = vunpack.i.l.bf16 %v3928_v56  ;;  %v3923_v61 = vpop.permute.xlu0 %3922 }
 0x129   : > { %v3925_v62 = vunpack.i.h.bf16 %v3923_v61  ;;  %v3924_v63 = vunpack.i.l.bf16 %v3923_v61 }
 0x12a   : > { %v1148_v2 = vsel %vm1125_vm4, %v1122_v42, %v3929_v60  ;;  %v1149_v4 = vsel %vm1125_vm4, %v1123_v43, %v3930_v59 }
 0x12b   : > { %v3938_v6 = vpop.permute.xlu1 %3937  ;;  %v1223_v12 = vsel %vm1125_vm4, %v1198_v50, %v3924_v63  ;;  %v1224_v13 = vsel %vm1125_vm4, %v1199_v11, %v3925_v62  ;;  %v1259_v17 = vpack.c.bf16 %v1149_v4, %v1148_v2  ;;  %v4798_v63 = vld [vmem:[%s5675_s2] ss:$0 sm:$0xff] }
 0x12c   : > { %v3933_v40 = vpop.permute.xlu0 %3932  ;;  %v1260_v41 = vpack.c.bf16 %v1224_v13, %v1223_v12  ;;  %v3940_v1 = vunpack.i.h.bf16 %v3938_v6  ;;  %v3939_v31 = vunpack.i.l.bf16 %v3938_v6 }
 0x12d   : > { %v3935_v9 = vunpack.i.h.bf16 %v3933_v40  ;;  %v3934_v18 = vunpack.i.l.bf16 %v3933_v40 }
 0x12e   : > { %1575 = vmatprep.mubr.bf16.mxu0 %v1260_v41 }
 0x12f   : > { %v1098_v14 = vsel %vm1073_vm2, %v4563_v10, %v3935_v9  ;;  %v1175_v15 = vsel %vm1073_vm2, %v418_v8, %v3934_v18  ;;  %1576 = vmatmul.mubr.bf16.gmra.mrb[44].mxu0 %v1259_v17  ;;  %v3473_v10 = vpop.f32.mrb[1].mxu1 }
 0x130   : > { %v3943_v32 = vpop.permute.xlu0 %3942  ;;  %v1200_v39 = vsel %vm1099_vm3, %v1175_v15, %v3939_v31  ;;  %v1124_v21 = vsel %vm1099_vm3, %v1098_v14, %v3940_v1  ;;  %v1628_v27 = vpop.f32.mrb[2].mxu1 }
 0x131   : > { %v3945_v33 = vunpack.i.h.bf16 %v3943_v32  ;;  %v3944_v38 = vunpack.i.l.bf16 %v3943_v32  ;;  %v3474_v28 = vpop.f32.mrb[3].mxu1 }
 0x132   : > { %v1633_v29 = vpop.f32.mrb[4].mxu1 }
 0x133   : > { %v1225_v24 = vsel %vm1125_vm4, %v1200_v39, %v3944_v38  ;;  %v1150_v25 = vsel %vm1125_vm4, %v1124_v21, %v3945_v33  ;;  %v3477_v34 = vpop.f32.mrb[5].mxu1 }
 0x134   : > { %v1263_v26 = vpack.c.bf16 %v1225_v24, %v1225_v24  ;;  %v1262_v22 = vpack.c.bf16 %v1150_v25, %v1150_v25  ;;  %v1636_v35 = vpop.f32.mrb[6].mxu1 }
 0x135   : > { %v3478_v30 = vpop.f32.mrb[7].mxu1 }
 0x136   : > { %1583 = vmatprep.mubr.bf16.mxu0 %v1263_v26 }
 0x137   : > { %1584 = vmatmul.mubr.bf16.gmra.mrb[48].mxu0 %v1262_v22  ;;  %v4769_v51 = vpop.f32.mrb[8].mxu1 }
 0x138   : > { %v3481_v36 = vpop.f32.mrb[9].mxu1 }
 0x139   : > { %v4771_v3 = vpop.f32.mrb[10].mxu1 }
 0x13a   : > { %v3482_v5 = vpop.f32.mrb[11].mxu1 }
 0x13f   : > { %v4773_v37 = vpop.f32.mrb[12].mxu1 }
 0x140   : > { %v3485_v0 = vpop.f32.mrb[13].mxu1 }
 0x141   : > { %v4775_v16 = vpop.f32.mrb[14].mxu1 }
 0x142   : > { %v3486_v44 = vpop.f32.mrb[15].mxu1 }
 0x147   : > { %v4777_v45 = vpop.f32.mrb[16].mxu1 }
 0x148   : > { %v3489_v46 = vpop.f32.mrb[17].mxu1 }
 0x149   : > { %v4779_v47 = vpop.f32.mrb[18].mxu1 }
 0x14a   : > { %v3490_v48 = vpop.f32.mrb[19].mxu1 }
 0x14f   : > { %v4781_v49 = vpop.f32.mrb[20].mxu1 }
 0x150   : > { %v3493_v52 = vpop.f32.mrb[21].mxu1 }
 0x151   : > { %v4783_v7 = vpop.f32.mrb[22].mxu1 }
 0x152   : > { %v3494_v19 = vpop.f32.mrb[23].mxu1 }
 0x157   : > { %v4785_v20 = vpop.f32.mrb[24].mxu1 }
 0x158   : > { %v3497_v53 = vpop.f32.mrb[25].mxu1 }
 0x159   : > { %v4787_v54 = vpop.f32.mrb[26].mxu1 }
 0x15a   : > { %v3498_v55 = vpop.f32.mrb[27].mxu1 }
 0x15f   : > { %v4789_v56 = vpop.f32.mrb[28].mxu1 }
 0x160   : > { %v3501_v57 = vpop.f32.mrb[29].mxu1 }
 0x161   : > { %v4791_v58 = vpop.f32.mrb[30].mxu1 }
 0x162   : > { %v3502_v59 = vpop.f32.mrb[31].mxu1 }
 0x167   : > { %v4793_v61 = vpop.f32.mrb[32].mxu1 }
 0x168   : > { %v3505_v42 = vpop.f32.mrb[33].mxu1 }
 0x169   : > { %v4800_v11 = vpop.f32.mrb[34].mxu1 }
 0x16a   : > { %v3506_v4 = vpop.f32.mrb[35].mxu1 }
 0x17c   : > { %v4810_v40 = vpop.f32.mrb[36].mxu1 }
 0x17d   : > { %v3509_v41 = vpop.f32.mrb[37].mxu1 }
 0x17e   : > { %v3374_v60 = vpop.f32.mrb[0].mxu0  ;;  %v4814_v9 = vpop.f32.mrb[38].mxu1 }
 0x17f   : > { %v3375_v62 = vpop.f32.mrb[1].mxu0  ;;  %v3510_v18 = vpop.f32.mrb[39].mxu1 }
 0x180   : > { %v3376_v43 = vadd.f32 %v3375_v62, %v3374_v60  ;;  %v3377_v50 = vpop.f32.mrb[2].mxu0 }
 0x181   : > { %v3378_v2 = vpop.f32.mrb[3].mxu0 }
 0x182   : > { %v3379_v6 = vadd.f32 %v3378_v2, %v3377_v50  ;;  %v1490_v12 = vadd.f32 %v3376_v43, %v4798_v63 }
 0x184   : > { %v4803_v13 = vadd.f32 %v1625_v23, %v1490_v12  ;;  %v1493_v17 = vadd.f32 %v3379_v6, %v4798_v63  ;;  %v4817_v39 = vpop.f32.mrb[40].mxu1 }
 0x185   : > { %v3513_v21 = vpop.f32.mrb[41].mxu1 }
 0x186   : > { %v4806_v8 = vadd.f32 %v1628_v27, %v1493_v17  ;;  %1977 = vrot.lane.b32.xlu1 %v4803_v13, %s4195_s11  ;;  %v4822_v26 = vpop.f32.mrb[42].mxu1 }
 0x187   : > { %v3514_v22 = vpop.f32.mrb[43].mxu1 }
 0x188   : > { %1979 = vrot.lane.b32.xlu0 %v4806_v8, %s4195_s11 }
 0x18a   : > { %v3380_v1 = vpop.f32.mrb[4].mxu0 }
 0x18b   : > { %v3381_v31 = vpop.f32.mrb[5].mxu0 }
 0x18c   : > { %v3382_v14 = vadd.f32 %v3381_v31, %v3380_v1  ;;  %v3383_v15 = vpop.f32.mrb[6].mxu0  ;;  %v4830_v27 = vpop.f32.mrb[44].mxu1 }
 0x18d   : > { %v3384_v32 = vpop.f32.mrb[7].mxu0  ;;  %v3517_v34 = vpop.f32.mrb[45].mxu1 }
 0x18e   : > { %v3385_v33 = vadd.f32 %v3384_v32, %v3383_v15  ;;  %v1498_v38 = vadd.f32 %v3382_v14, %v4798_v63  ;;  %v4832_v36 = vpop.f32.mrb[46].mxu1 }
 0x18f   : > { %v3518_v0 = vpop.f32.mrb[47].mxu1 }
 0x190   : > { %v4819_v24 = vadd.f32 %v1633_v29, %v1498_v38  ;;  %v1501_v25 = vadd.f32 %v3385_v33, %v4798_v63 }
 0x192   : > { %v4824_v23 = vadd.f32 %v1636_v35, %v1501_v25  ;;  %1981 = vrot.lane.b32.xlu1 %v4819_v24, %s4195_s11 }
 0x194   : > { %1983 = vrot.lane.b32.xlu0 %v4824_v23, %s4195_s11  ;;  %v4844_v19 = vpop.f32.mrb[48].mxu1 }
 0x195   : > { %v3521_v53 = vpop.f32.mrb[49].mxu1 }
 0x196   : > { %v3386_v10 = vpop.f32.mrb[8].mxu0  ;;  %v1724_v55 = vpop.f32.mrb[50].mxu1 }
 0x197   : > { %v3387_v28 = vpop.f32.mrb[9].mxu0  ;;  %v3522_v57 = vpop.f32.mrb[51].mxu1 }
 0x198   : > { %v3388_v29 = vadd.f32 %v3387_v28, %v3386_v10  ;;  %v3389_v30 = vpop.f32.mrb[10].mxu0 }
 0x199   : > { %v3390_v5 = vpop.f32.mrb[11].mxu0 }
 0x19a   : > { %v3391_v44 = vadd.f32 %v3390_v5, %v3389_v30  ;;  %v1506_v35 = vadd.f32 %v3388_v29, %v4798_v63 }
 0x19c   : > { %v4836_v46 = vadd.f32 %v4769_v51, %v1506_v35  ;;  %v1509_v48 = vadd.f32 %v3391_v44, %v4798_v63 }
 0x19e   : > { %v4840_v52 = vadd.f32 %v4771_v3, %v1509_v48  ;;  %1985 = vrot.lane.b32.xlu1 %v4836_v46, %s4195_s11 }
 0x1a0   : > { %1987 = vrot.lane.b32.xlu0 %v4840_v52, %s4195_s11 }
 0x1a2   : > { %v3392_v59 = vpop.f32.mrb[12].mxu0 }
 0x1a3   : > { %v3393_v60 = vpop.f32.mrb[13].mxu0 }
 0x1a4   : > { %v3394_v51 = vadd.f32 %v3393_v60, %v3392_v59  ;;  %v3395_v62 = vpop.f32.mrb[14].mxu0 }
 0x1a5   : > { %v3396_v42 = vpop.f32.mrb[15].mxu0 }
 0x1a6   : > { %v3397_v43 = vadd.f32 %v3396_v42, %v3395_v62  ;;  %v1514_v3 = vadd.f32 %v3394_v51, %v4798_v63  ;;  %v4908_v42 = vpop.permute.xlu1 %2634 }
 0x1a8   : > { %v4850_v50 = vadd.f32 %v4773_v37, %v1514_v3  ;;  %v1517_v2 = vadd.f32 %v3397_v43, %v4798_v63 }
 0x1aa   : > { %v4854_v4 = vadd.f32 %v4775_v16, %v1517_v2  ;;  %1989 = vrot.lane.b32.xlu1 %v4850_v50, %s4195_s11 }
 0x1ac   : > { %1991 = vrot.lane.b32.xlu0 %v4854_v4, %s4195_s11 }
 0x1ae   : > { %v3398_v6 = vpop.f32.mrb[16].mxu0 }
 0x1af   : > { %v3399_v12 = vpop.f32.mrb[17].mxu0 }
 0x1b0   : > { %v3400_v17 = vadd.f32 %v3399_v12, %v3398_v6  ;;  %v3401_v41 = vpop.f32.mrb[18].mxu0 }
 0x1b1   : > { %v3402_v18 = vpop.f32.mrb[19].mxu0 }
 0x1b2   : > { %v3403_v1 = vadd.f32 %v3402_v18, %v3401_v41  ;;  %v1522_v37 = vadd.f32 %v3400_v17, %v4798_v63  ;;  %v4911_v41 = vpop.permute.xlu1 %2639 }
 0x1b4   : > { %v4862_v31 = vadd.f32 %v4777_v45, %v1522_v37  ;;  %v1525_v16 = vadd.f32 %v3403_v1, %v4798_v63  ;;  %v4922_v37 = vpop.permute.xlu0 %2629 }
 0x1b6   : > { %v4866_v14 = vadd.f32 %v4779_v47, %v1525_v16  ;;  %1993 = vrot.lane.b32.xlu1 %v4862_v31, %s4195_s11  ;;  %v4926_v16 = vpop.permute.xlu1 %2649 }
 0x1b8   : > { %1995 = vrot.lane.b32.xlu0 %v4866_v14, %s4195_s11 }
 0x1ba   : > { %v3404_v15 = vpop.f32.mrb[20].mxu0 }
 0x1bb   : > { %v3405_v32 = vpop.f32.mrb[21].mxu0 }
 0x1bc   : > { %v3406_v33 = vadd.f32 %v3405_v32, %v3404_v15  ;;  %v3407_v38 = vpop.f32.mrb[22].mxu0 }
 0x1bd   : > { %v3408_v21 = vpop.f32.mrb[23].mxu0 }
 0x1be   : > { %v3409_v25 = vadd.f32 %v3408_v21, %v3407_v38  ;;  %v1530_v45 = vadd.f32 %v3406_v33, %v4798_v63  ;;  %v4931_v21 = vpop.permute.xlu0 %2644 }
 0x1c0   : > { %v4874_v22 = vadd.f32 %v4781_v49, %v1530_v45  ;;  %v1533_v47 = vadd.f32 %v3409_v25, %v4798_v63 }
 0x1c2   : > { %v4878_v10 = vadd.f32 %v4783_v7, %v1533_v47  ;;  %1997 = vrot.lane.b32.xlu1 %v4874_v22, %s4195_s11 }
 0x1c4   : > { %1999 = vrot.lane.b32.xlu0 %v4878_v10, %s4195_s11 }
 0x1c6   : > { %v3410_v28 = vpop.f32.mrb[24].mxu0 }
 0x1c7   : > { %v3411_v34 = vpop.f32.mrb[25].mxu0 }
 0x1c8   : > { %v3412_v29 = vadd.f32 %v3411_v34, %v3410_v28  ;;  %v3413_v30 = vpop.f32.mrb[26].mxu0  ;;  %v4936_v28 = vld [vmem:[%s4263_s7 + $0x8] sm:$0xff]   ;;  %v4938_v34 = vpop.permute.xlu1 %2659 }
 0x1c9   : > { %v3414_v5 = vpop.f32.mrb[27].mxu0 }
 0x1ca   : > { %v3415_v0 = vadd.f32 %v3414_v5, %v3413_v30  ;;  %v1538_v49 = vadd.f32 %v3412_v29, %v4798_v63 }
 0x1cc   : > { %v4886_v44 = vadd.f32 %v4785_v20, %v1538_v49  ;;  %v1541_v7 = vadd.f32 %v3415_v0, %v4798_v63  ;;  %v5697_v0 = vunpack.c.l.bf16 %v4936_v28  ;;  %v4949_v49 = vld [vmem:[%s4263_s7 + $0x10] sm:$0xff]  }
 0x1ce   : > { %v4890_v35 = vadd.f32 %v4787_v54, %v1541_v7  ;;  %2001 = vrot.lane.b32.xlu1 %v4886_v44, %s4195_s11 }
 0x1d0   : > { %2003 = vrot.lane.b32.xlu0 %v4890_v35, %s4195_s11 }
 0x1d2   : > { %v3416_v48 = vpop.f32.mrb[28].mxu0 }
 0x1d3   : > { %v3417_v53 = vpop.f32.mrb[29].mxu0 }
 0x1d4   : > { %v3418_v55 = vadd.f32 %v3417_v53, %v3416_v48  ;;  %v3419_v57 = vpop.f32.mrb[30].mxu0  ;;  %v4956_v48 = vpop.permute.xlu0 %2654 }
 0x1d5   : > { %v3420_v59 = vpop.f32.mrb[31].mxu0  ;;  %v4961_v53 = vpop.permute.xlu1 %2669 }
 0x1d6   : > { %v3421_v60 = vadd.f32 %v3420_v59, %v3419_v57  ;;  %v1546_v20 = vadd.f32 %v3418_v55, %v4798_v63  ;;  %v1779_v55 = vadd.f32 %v5697_v0, %v4819_v24  ;;  %v4967_v57 = vld [vmem:[%s4263_s7 + $0x18] sm:$0xff]  }
 0x1d8   : > { %v4898_v51 = vadd.f32 %v4789_v56, %v1546_v20  ;;  %v1549_v54 = vadd.f32 %v3421_v60, %v4798_v63  ;;  %v3224_v24 = vmul.f32 -1.442695, %v1779_v55 }
 0x1da   : > { %v4902_v62 = vadd.f32 %v4791_v58, %v1549_v54  ;;  %2005 = vrot.lane.b32.xlu1 %v4898_v51, %s4195_s11 }
 0x1dc   : > { %2007 = vrot.lane.b32.xlu0 %v4902_v62, %s4195_s11 }
 0x1de   : > { %v3422_v43 = vpop.f32.mrb[32].mxu0 }
 0x1df   : > { %v3423_v3 = vpop.f32.mrb[33].mxu0 }
 0x1e0   : > { %v3424_v2 = vadd.f32 %v3423_v3, %v3422_v43  ;;  %v3425_v6 = vpop.f32.mrb[34].mxu0  ;;  %v5688_v3 = vunpack.c.l.bf16 %v4967_v57 }
 0x1e1   : > { %v3426_v56 = vpop.f32.mrb[35].mxu0 }
 0x1e2   : > { %v3427_v12 = vadd.f32 %v3426_v56, %v3425_v6  ;;  %v1554_v17 = vadd.f32 %v3424_v2, %v4798_v63  ;;  %v4974_v2 = vpop.permute.xlu0 %2664 }
 0x1e4   : > { %v4914_v58 = vadd.f32 %v4793_v61, %v1554_v17  ;;  %v1557_v18 = vadd.f32 %v3427_v12, %v4798_v63  ;;  %v4929_v61 = vld [vmem:[%s4263_s7] sm:$0xff]   ;;  %v5686_v17 = vunpack.c.h.bf16 %v4936_v28 }
 0x1e5   : > { %v5700_v25 = vunpack.c.l.bf16 %v4929_v61  ;;  %v5691_v60 = vunpack.c.h.bf16 %v4929_v61 }
 0x1e6   : > { %v4918_v1 = vadd.f32 %v4800_v11, %v1557_v18  ;;  %2009 = vrot.lane.b32.xlu1 %v4914_v58, %s4195_s11  ;;  %v4978_v18 = vpop.permute.xlu1 %2679 }
 0x1e7   : > { %v1777_v5 = vadd.f32 %v5700_v25, %v4803_v13  ;;  %5714 = vst [vmem:[#allocation3_spill] sm:$0xff] %v4978_v18 }
 0x1e8   : > { %2011 = vrot.lane.b32.xlu0 %v4918_v1, %s4195_s11 }
 0x1e9   : > { %v3222_v13 = vmul.f32 -1.442695, %v1777_v5 }
 0x1ea   : > { %v3428_v15 = vpop.f32.mrb[36].mxu0 }
 0x1eb   : > { %v3429_v32 = vpop.f32.mrb[37].mxu0  ;;  %3966 = vpow2.f32 %v3222_v13 }
 0x1ec   : > { %v3430_v33 = vadd.f32 %v3429_v32, %v3428_v15  ;;  %v3431_v38 = vpop.f32.mrb[38].mxu0  ;;  %v1778_v15 = vadd.f32 %v5691_v60, %v4806_v8  ;;  %3968 = vpow2.f32 %v3224_v24  ;;  %v1780_v8 = vadd.f32 %v5686_v17, %v4824_v23 }
 0x1ed   : > { %v3432_v11 = vpop.f32.mrb[39].mxu0 }
 0x1ee   : > { %v3433_v45 = vadd.f32 %v3432_v11, %v3431_v38  ;;  %v1562_v47 = vadd.f32 %v3430_v33, %v4798_v63  ;;  %v1783_v38 = vadd.f32 %v5688_v3, %v4850_v50  ;;  %v4991_v11 = vld [vmem:[%s4263_s7 + $0x20] sm:$0xff]   ;;  %v3225_v55 = vmul.f32 -1.442695, %v1780_v8 }
 0x1ef   : > { %v5685_v50 = vunpack.c.l.bf16 %v4991_v11 }
 0x1f0   : > { %v4941_v29 = vadd.f32 %v4810_v40, %v1562_v47  ;;  %v1565_v30 = vadd.f32 %v3433_v45, %v4798_v63  ;;  %v5694_v40 = vunpack.c.l.bf16 %v4949_v49  ;;  %v3223_v47 = vmul.f32 -1.442695, %v1778_v15 }
 0x1f1   : > { %v3228_v5 = vmul.f32 -1.442695, %v1783_v38 }
 0x1f2   : > { %v4952_v7 = vadd.f32 %v4814_v9, %v1565_v30  ;;  %2013 = vrot.lane.b32.xlu1 %v4941_v29, %s4195_s11  ;;  %v1781_v43 = vadd.f32 %v5694_v40, %v4836_v46  ;;  %v5682_v30 = vunpack.c.h.bf16 %v4949_v49 }
 0x1f4   : > { %2015 = vrot.lane.b32.xlu0 %v4952_v7, %s4195_s11  ;;  %v3226_v33 = vmul.f32 -1.442695, %v1781_v43  ;;  %v1782_v23 = vadd.f32 %v5682_v30, %v4840_v52  ;;  %v5678_v52 = vunpack.c.h.bf16 %v4991_v11 }
 0x1f6   : > { %v3434_v9 = vpop.f32.mrb[40].mxu0  ;;  %3970 = vpow2.f32 %v3226_v33  ;;  %v3227_v8 = vmul.f32 -1.442695, %v1782_v23 }
 0x1f7   : > { %v3435_v59 = vpop.f32.mrb[41].mxu0  ;;  %3972 = vpow2.f32 %v3223_v47 }
 0x1f8   : > { %v3436_v20 = vadd.f32 %v3435_v59, %v3434_v9  ;;  %v3437_v54 = vpop.f32.mrb[42].mxu0  ;;  %v3967_v59 = vpop.eup %3966  ;;  %3974 = vpow2.f32 %v3228_v5 }
 0x1f9   : > { %v3438_v6 = vpop.f32.mrb[43].mxu0  ;;  %3976 = vpow2.f32 %v3225_v55  ;;  %v3969_v38 = vpop.eup %3968 }
 0x1fa   : > { %v3439_v56 = vadd.f32 %v3438_v6, %v3437_v54  ;;  %v1570_v12 = vadd.f32 %v3436_v20, %v4798_v63  ;;  %v5679_v20 = vunpack.c.h.bf16 %v4967_v57  ;;  %v1785_v6 = vadd.f32 %v5685_v50, %v4862_v31 }
 0x1fc   : > { %v4984_v46 = vadd.f32 %v4817_v39, %v1570_v12  ;;  %v1573_v32 = vadd.f32 %v3439_v56, %v4798_v63  ;;  %v5001_v39 = vpop.permute.xlu0 %2674  ;;  %v1784_v31 = vadd.f32 %v5679_v20, %v4854_v4 }
 0x1fe   : > { %v4994_v45 = vadd.f32 %v4822_v26, %v1573_v32  ;;  %2017 = vrot.lane.b32.xlu1 %v4984_v46, %s4195_s11  ;;  %v5007_v26 = vpop.permute.xlu1 %2689  ;;  %v1877_v32 = vadd.f32 1.0, %v3967_v59 }
 0x1ff   : > { %5715 = vst [vmem:[#allocation4_spill] sm:$0xff] %v5007_v26 }
 0x200   : > { %2019 = vrot.lane.b32.xlu0 %v4994_v45, %s4195_s11  ;;  %v5016_v24 = vpop.permute.xlu0 %2684  ;;  %v3971_v23 = vpop.eup %3970  ;;  %3978 = vrcp.f32 %v1877_v32 }
 0x201   : > { %5716 = vst [vmem:[#allocation5_spill] sm:$0xff] %v5016_v24  ;;  %3980 = vpow2.f32 %v3227_v8 }
 0x202   : > { %v3440_v13 = vpop.f32.mrb[44].mxu0  ;;  %v5020_v33 = vpop.permute.xlu1 %2699 }
 0x203   : > { %v3441_v9 = vpop.f32.mrb[45].mxu0  ;;  %5717 = vst [vmem:[#allocation6_spill] sm:$0xff] %v5020_v33 }
 0x204   : > { %v3442_v54 = vadd.f32 %v3441_v9, %v3440_v13  ;;  %v3443_v43 = vpop.f32.mrb[46].mxu0  ;;  %v3230_v13 = vmul.f32 -1.442695, %v1785_v6  ;;  %v5030_v9 = vld [vmem:[%s4263_s7 + $0x28] sm:$0xff]   ;;  %v5040_v4 = vpop.permute.xlu0 %2694  ;;  %v3229_v6 = vmul.f32 -1.442695, %v1784_v31 }
 0x205   : > { %v3444_v56 = vpop.f32.mrb[47].mxu0  ;;  %5718 = vst [vmem:[#allocation7_spill] sm:$0xff] %v5040_v4  ;;  %v5680_v31 = vunpack.c.h.bf16 %v5030_v9 }
 0x206   : > { %v1578_v12 = vadd.f32 %v3442_v54, %v4798_v63  ;;  %v3445_v15 = vadd.f32 %v3444_v56, %v3443_v43  ;;  %v1879_v54 = vadd.f32 1.0, %v3969_v38  ;;  %3982 = vpow2.f32 %v3230_v13  ;;  %v2621_v38 = vld [vmem:[%s4258_s30 + $0x98] sm:$0xff] }
 0x208   : > { %v5026_v47 = vadd.f32 %v4830_v27, %v1578_v12  ;;  %v1581_v5 = vadd.f32 %v3445_v15, %v4798_v63  ;;  %v1786_v27 = vadd.f32 %v5678_v52, %v4866_v14  ;;  %v5681_v12 = vunpack.c.l.bf16 %v5030_v9  ;;  %v5045_v15 = vpop.permute.xlu1 %2709 }
 0x209   : > { %5719 = vst [vmem:[#allocation8_spill] sm:$0xff] %v5045_v15  ;;  %v1881_v14 = vadd.f32 1.0, %v3971_v23  ;;  %3984 = vrcp.f32 %v1879_v54  ;;  %v5056_v23 = vpop.permute.xlu0 %2704 }
 0x20a   : > { %v5033_v55 = vadd.f32 %v4832_v36, %v1581_v5  ;;  %v3446_v59 = vpop.f32.mrb[48].mxu0  ;;  %2021 = vrot.lane.b32.xlu1 %v5026_v47, %s4195_s11  ;;  %v3973_v5 = vpop.eup %3972  ;;  %v3231_v8 = vmul.f32 -1.442695, %v1786_v27  ;;  %3986 = vpow2.f32 %v3229_v6  ;;  %5720 = vst [vmem:[#allocation9_spill] sm:$0xff] %v5056_v23  ;;  %v2620_v27 = vld [vmem:[%s4258_s30 + $0x90] sm:$0xff] }
 0x20b   : > { %v3447_v43 = vpop.f32.mrb[49].mxu0  ;;  %3988 = vrcp.f32 %v1881_v14 }
 0x20c   : > { %v3448_v56 = vadd.f32 %v3447_v43, %v3446_v59  ;;  %v3449_v36 = vpop.f32.mrb[50].mxu0  ;;  %2023 = vrot.lane.b32.xlu0 %v5033_v55, %s4195_s11  ;;  %v3975_v59 = vpop.eup %3974  ;;  %3990 = vpow2.f32 %v3231_v8 }
 0x20d   : > { %v3450_v32 = vpop.f32.mrb[51].mxu0  ;;  %v3977_v43 = vpop.eup %3976  ;;  %v1878_v36 = vadd.f32 1.0, %v3973_v5  ;;  %v1883_v54 = vadd.f32 1.0, %v3975_v59  ;;  %v5068_v5 = vld [vmem:[%s4263_s7 + $0x30] sm:$0xff]  }
 0x20e   : > { %v1586_v52 = vadd.f32 %v3448_v56, %v4798_v63  ;;  %v1787_v32 = vadd.f32 %v5681_v12, %v4874_v22  ;;  %v2623_v63 = vld [vmem:[%s4258_s30 + $0xa8] sm:$0xff]  ;;  %v1880_v6 = vadd.f32 1.0, %v3977_v43  ;;  %v5065_v22 = vpop.eup %3978  ;;  %v5071_v20 = vpop.permute.xlu0 %2714  ;;  %v2624_v12 = vld [vmem:[%s4258_s30 + $0xb0] sm:$0xff] }
 0x20f   : > { %3992 = vrcp.f32 %v1878_v36  ;;  %5721 = vst [vmem:[#allocation10_spill] sm:$0xff] %v5071_v20 }
 0x210   : > { %v5051_v13 = vadd.f32 %v4844_v19, %v1586_v52  ;;  %2724 = vperm.xlu0 %3946, %v2621_v38   ;;  %v1788_v19 = vadd.f32 %v5680_v31, %v4878_v10  ;;  %v1978_v52 = vpop.permute.xlu1 %1977  ;;  %v3232_v56 = vmul.f32 -1.442695, %v1787_v32  ;;  %v3981_v38 = vpop.eup %3980  ;;  %3994 = vrcp.f32 %v1883_v54  ;;  %v2622_v31 = vld [vmem:[%s4258_s30 + $0xa0] sm:$0xff] }
 0x211   : > { %v2052_v14 = vmul.f32 %v5065_v22, %v1978_v52  ;;  %v3983_v8 = vpop.eup %3982  ;;  %3996 = vrcp.f32 %v1880_v6  ;;  %v1882_v36 = vadd.f32 1.0, %v3981_v38  ;;  %v5683_v32 = vunpack.c.l.bf16 %v5068_v5 }
 0x212   : > { %2025 = vrot.lane.b32.xlu1 %v5051_v13, %s4195_s11  ;;  %v3233_v59 = vmul.f32 -1.442695, %v1788_v19  ;;  %3998 = vpow2.f32 %v3232_v56  ;;  %v1885_v52 = vadd.f32 1.0, %v3983_v8  ;;  %v5684_v54 = vunpack.c.h.bf16 %v5068_v5 }
 0x213   : > { %v5075_v43 = vpop.eup %3984  ;;  %v1789_v56 = vadd.f32 %v5683_v32, %v4886_v44 }
 0x214   : > { %2734 = vperm.xlu0 %3946, %v2623_v63   ;;  %v1982_v10 = vpop.permute.xlu1 %1981  ;;  %v3987_v63 = vpop.eup %3986  ;;  %4000 = vpow2.f32 %v3233_v59  ;;  %v1790_v59 = vadd.f32 %v5684_v54, %v4890_v35 }
 0x215   : > { %v5081_v30 = vpop.eup %3988  ;;  %4002 = vrcp.f32 %v1882_v36  ;;  %v1884_v38 = vadd.f32 1.0, %v3987_v63  ;;  %v3234_v44 = vmul.f32 -1.442695, %v1789_v56 }
 0x216   : > { %2719 = vperm.xlu1 %3947, %v2620_v27   ;;  %v2054_v27 = vmul.f32 %v5075_v43, %v1982_v10  ;;  %v3991_v6 = vpop.eup %3990  ;;  %4004 = vrcp.f32 %v1885_v52  ;;  %v3235_v54 = vmul.f32 -1.442695, %v1790_v59 }
 0x217   : > { %4006 = vrcp.f32 %v1884_v38 }
 0x218   : > { %2102 = vrot.lane.b32.xlu0 %v2052_v14, %s4195_s11  ;;  %v1986_v19 = vpop.permute.xlu1 %1985  ;;  %v1980_v14 = vpop.permute.xlu0 %1979 }
 0x219   : > { %v5088_v8 = vpop.eup %3992 }
 0x21a   : > { %2729 = vperm.xlu1 %3947, %v2622_v31   ;;  %v2056_v31 = vmul.f32 %v5081_v30, %v1986_v19  ;;  %v2053_v36 = vmul.f32 %v5088_v8, %v1980_v14  ;;  %v5095_v63 = vpop.eup %3994 }
 0x21b   : > { %v5097_v32 = vpop.eup %3996 }
 0x21c   : > { %2106 = vrot.lane.b32.xlu0 %v2054_v27, %s4195_s11  ;;  %v1990_v10 = vpop.permute.xlu1 %1989  ;;  %v1886_v27 = vadd.f32 1.0, %v3991_v6  ;;  %v1984_v52 = vpop.permute.xlu0 %1983 }
 0x21d   : > { %v2058_v19 = vmul.f32 %v5095_v63, %v1990_v10  ;;  %v3999_v35 = vpop.eup %3998  ;;  %v2055_v6 = vmul.f32 %v5097_v32, %v1984_v52 }
 0x21e   : > { %2739 = vperm.xlu1 %3947, %v2624_v12   ;;  %v5100_v12 = vld [vmem:[%s4263_s7 + $0x38] sm:$0xff]   ;;  %4008 = vrcp.f32 %v1886_v27  ;;  %v4001_v14 = vpop.eup %4000 }
 0x21f   : > { %4010 = vpow2.f32 %v3234_v44  ;;  %v5687_v38 = vunpack.c.l.bf16 %v5100_v12  ;;  %v5108_v50 = vpop.eup %4002  ;;  %v5689_v10 = vunpack.c.h.bf16 %v5100_v12  ;;  %v1888_v59 = vadd.f32 1.0, %v4001_v14 }
 0x220   : > { %2110 = vrot.lane.b32.xlu0 %v2056_v31, %s4195_s11  ;;  %v1988_v56 = vpop.permute.xlu0 %1987  ;;  %v1887_v31 = vadd.f32 1.0, %v3999_v35  ;;  %4012 = vpow2.f32 %v3235_v54 }
 0x221   : > { %v2057_v27 = vmul.f32 %v5108_v50, %v1988_v56  ;;  %v1791_v44 = vadd.f32 %v5687_v38, %v4898_v51  ;;  %v5129_v38 = vld [vmem:[%s4263_s7 + $0x40] sm:$0xff]  }
 0x222   : > { %2104 = vrot.lane.b32.xlu1 %v2053_v36, %s4195_s11  ;;  %v5111_v36 = vpop.eup %4004  ;;  %4014 = vrcp.f32 %v1887_v31 }
 0x223   : > { %v5119_v54 = vpop.eup %4006  ;;  %4016 = vrcp.f32 %v1888_v59  ;;  %v3236_v56 = vmul.f32 -1.442695, %v1791_v44  ;;  %v5692_v59 = vunpack.c.h.bf16 %v5129_v38 }
 0x224   : > { %2114 = vrot.lane.b32.xlu0 %v2058_v19, %s4195_s11  ;;  %v1992_v19 = vpop.permute.xlu0 %1991 }
 0x225   : > { %v2059_v14 = vmul.f32 %v5119_v54, %v1992_v19  ;;  %4018 = vpow2.f32 %v3236_v56 }
 0x226   : > { %2108 = vrot.lane.b32.xlu1 %v2055_v6, %s4195_s11  ;;  %v1792_v6 = vadd.f32 %v5689_v10, %v4902_v62  ;;  %v5690_v62 = vunpack.c.l.bf16 %v5129_v38 }
 0x228   : > { %v1994_v52 = vpop.permute.xlu1 %1993  ;;  %v5126_v51 = vpop.eup %4008 }
 0x229   : > { %v2060_v35 = vmul.f32 %v5111_v36, %v1994_v52  ;;  %v4011_v31 = vpop.eup %4010 }
 0x22a   : > { %2112 = vrot.lane.b32.xlu1 %v2057_v27, %s4195_s11  ;;  %v1996_v17 = vpop.permute.xlu0 %1995  ;;  %v3237_v27 = vmul.f32 -1.442695, %v1792_v6  ;;  %v4013_v3 = vpop.eup %4012  ;;  %v1793_v6 = vadd.f32 %v5690_v62, %v4914_v58 }
 0x22b   : > { %2118 = vrot.lane.b32.xlu0 %v2060_v35, %s4195_s11  ;;  %v2061_v52 = vmul.f32 %v5126_v51, %v1996_v17  ;;  %v1889_v35 = vadd.f32 1.0, %v4011_v31  ;;  %v1890_v19 = vadd.f32 1.0, %v4013_v3  ;;  %v1794_v31 = vadd.f32 %v5692_v59, %v4918_v1  ;;  %v5170_v59 = vld [vmem:[%s4263_s7 + $0x50] sm:$0xff]  }
 0x22c   : > { %4020 = vpow2.f32 %v3237_v27  ;;  %v5136_v44 = vpop.eup %4014  ;;  %v3238_v3 = vmul.f32 -1.442695, %v1793_v6 }
 0x22d   : > { %4022 = vrcp.f32 %v1889_v35 }
 0x22e   : > { %2116 = vrot.lane.b32.xlu1 %v2059_v14, %s4195_s11  ;;  %v5142_v14 = vpop.eup %4016  ;;  %4024 = vrcp.f32 %v1890_v19 }
 0x22f   : > { %v4019_v58 = vpop.eup %4018  ;;  %4026 = vpow2.f32 %v3238_v3 }
 0x230   : > { %v1891_v60 = vadd.f32 1.0, %v4019_v58 }
 0x232   : > { %2120 = vrot.lane.b32.xlu1 %v2061_v52, %s4195_s11  ;;  %v5151_v52 = vld [vmem:[%s4263_s7 + $0x48] sm:$0xff]  }
 0x233   : > { %v5693_v35 = vunpack.c.l.bf16 %v5151_v52  ;;  %v5695_v1 = vunpack.c.h.bf16 %v5151_v52 }
 0x234   : > { %v1998_v10 = vpop.permute.xlu1 %1997 }
 0x235   : > { %v2062_v17 = vmul.f32 %v5136_v44, %v1998_v10  ;;  %v3239_v10 = vmul.f32 -1.442695, %v1794_v31  ;;  %v1795_v6 = vadd.f32 %v5693_v35, %v4941_v29  ;;  %v1796_v58 = vadd.f32 %v5695_v1, %v4952_v7  ;;  %v5189_v1 = vld [vmem:[%s4263_s7 + $0x58] sm:$0xff]  }
 0x236   : > { %v2000_v56 = vpop.permute.xlu0 %1999  ;;  %v4021_v62 = vpop.eup %4020  ;;  %v5698_v7 = vunpack.c.h.bf16 %v5170_v59 }
 0x237   : > { %v2063_v27 = vmul.f32 %v5142_v14, %v2000_v56  ;;  %2122 = vrot.lane.b32.xlu0 %v2062_v17, %s4195_s11  ;;  %4028 = vpow2.f32 %v3239_v10  ;;  %v5155_v56 = vpop.eup %4022  ;;  %v1892_v17 = vadd.f32 1.0, %v4021_v62  ;;  %v3240_v62 = vmul.f32 -1.442695, %v1795_v6 }
 0x238   : > { %v5161_v31 = vpop.eup %4024  ;;  %4030 = vrcp.f32 %v1891_v60  ;;  %v5696_v60 = vunpack.c.l.bf16 %v5170_v59 }
 0x239   : > { %2124 = vrot.lane.b32.xlu1 %v2063_v27, %s4195_s11  ;;  %4032 = vrcp.f32 %v1892_v17  ;;  %v4027_v29 = vpop.eup %4026 }
 0x23a   : > { %4034 = vpow2.f32 %v3240_v62  ;;  %v1893_v40 = vadd.f32 1.0, %v4027_v29  ;;  %v1797_v6 = vadd.f32 %v5696_v60, %v4984_v46  ;;  %v1798_v29 = vadd.f32 %v5698_v7, %v4994_v45 }
 0x23b   : > { %v5701_v45 = vunpack.c.h.bf16 %v5189_v1 }
 0x240   : > { %v2002_v19 = vpop.permute.xlu1 %2001 }
 0x241   : > { %v2064_v27 = vmul.f32 %v5155_v56, %v2002_v19  ;;  %v3241_v19 = vmul.f32 -1.442695, %v1796_v58  ;;  %v4029_v35 = vpop.eup %4028 }
 0x242   : > { %v2004_v3 = vpop.permute.xlu0 %2003 }
 0x243   : > { %v2065_v10 = vmul.f32 %v5161_v31, %v2004_v3  ;;  %2126 = vrot.lane.b32.xlu0 %v2064_v27, %s4195_s11  ;;  %4036 = vpow2.f32 %v3241_v19  ;;  %v5174_v3 = vpop.eup %4030  ;;  %v1894_v27 = vadd.f32 1.0, %v4029_v35  ;;  %v3242_v35 = vmul.f32 -1.442695, %v1797_v6 }
 0x244   : > { %v5180_v58 = vpop.eup %4032  ;;  %4038 = vrcp.f32 %v1893_v40  ;;  %v5699_v40 = vunpack.c.l.bf16 %v5189_v1 }
 0x245   : > { %2128 = vrot.lane.b32.xlu1 %v2065_v10, %s4195_s11  ;;  %4040 = vrcp.f32 %v1894_v27  ;;  %v4035_v46 = vpop.eup %4034 }
 0x246   : > { %4042 = vpow2.f32 %v3242_v35  ;;  %v1895_v0 = vadd.f32 1.0, %v4035_v46  ;;  %v1799_v6 = vadd.f32 %v5699_v40, %v5026_v47  ;;  %v1800_v46 = vadd.f32 %v5701_v45, %v5033_v55 }
 0x248   : > { %v3245_v40 = vmul.f32 -1.442695, %v1800_v46 }
 0x24c   : > { %v2006_v17 = vpop.permute.xlu1 %2005 }
 0x24d   : > { %v2066_v10 = vmul.f32 %v5174_v3, %v2006_v17  ;;  %v3243_v17 = vmul.f32 -1.442695, %v1798_v29  ;;  %v4037_v60 = vpop.eup %4036  ;;  %v5202_v29 = vld [vmem:[%s4263_s7 + $0x60] sm:$0xf] }
 0x24e   : > { %v2008_v62 = vpop.permute.xlu0 %2007  ;;  %v5702_v47 = vunpack.c.l.bf16 %v5202_v29 }
 0x24f   : > { %v2067_v19 = vmul.f32 %v5180_v58, %v2008_v62  ;;  %2130 = vrot.lane.b32.xlu0 %v2066_v10, %s4195_s11  ;;  %4044 = vpow2.f32 %v3243_v17  ;;  %v5193_v62 = vpop.eup %4038  ;;  %v1896_v10 = vadd.f32 1.0, %v4037_v60  ;;  %v3244_v60 = vmul.f32 -1.442695, %v1799_v6 }
 0x250   : > { %v5199_v7 = vpop.eup %4040  ;;  %4046 = vrcp.f32 %v1895_v0  ;;  %v1801_v25 = vadd.f32 %v5702_v47, %v5051_v13 }
 0x251   : > { %2132 = vrot.lane.b32.xlu1 %v2067_v19, %s4195_s11  ;;  %4048 = vrcp.f32 %v1896_v10 }
 0x252   : > { %4050 = vpow2.f32 %v3244_v60  ;;  %v3246_v10 = vmul.f32 -1.442695, %v1801_v25 }
 0x253   : > { %4052 = vpow2.f32 %v3245_v40 }
 0x258   : > { %v2010_v27 = vpop.permute.xlu1 %2009 }
 0x259   : > { %v2068_v19 = vmul.f32 %v5193_v62, %v2010_v27  ;;  %v4043_v27 = vpop.eup %4042 }
 0x25a   : > { %v2012_v35 = vpop.permute.xlu0 %2011  ;;  %v4045_v0 = vpop.eup %4044  ;;  %v1897_v20 = vadd.f32 1.0, %v4043_v27 }
 0x25b   : > { %v2069_v17 = vmul.f32 %v5199_v7, %v2012_v35  ;;  %2134 = vrot.lane.b32.xlu0 %v2068_v19, %s4195_s11  ;;  %v5214_v55 = vpop.eup %4046  ;;  %v1898_v35 = vadd.f32 1.0, %v4045_v0 }
 0x25c   : > { %v5217_v45 = vpop.eup %4048  ;;  %4054 = vrcp.f32 %v1897_v20 }
 0x25d   : > { %2136 = vrot.lane.b32.xlu1 %v2069_v17, %s4195_s11  ;;  %4056 = vrcp.f32 %v1898_v35  ;;  %v4051_v13 = vpop.eup %4050 }
 0x25e   : > { %4058 = vpow2.f32 %v3246_v10  ;;  %v4053_v40 = vpop.eup %4052  ;;  %v1899_v60 = vadd.f32 1.0, %v4051_v13 }
 0x25f   : > { %v1900_v25 = vadd.f32 1.0, %v4053_v40 }
 0x260   : > { %4060 = vrcp.f32 %v1899_v60 }
 0x261   : > { %4062 = vrcp.f32 %v1900_v25  ;;  %v2626_v25 = vld [vmem:[%s4258_s30 + $0xc0] sm:$0xff] }
 0x264   : > { %v2014_v19 = vpop.permute.xlu1 %2013 }
 0x265   : > { %v2070_v6 = vmul.f32 %v5214_v55, %v2014_v19 }
 0x266   : > { %v2016_v17 = vpop.permute.xlu0 %2015  ;;  %v5222_v27 = vpop.eup %4054 }
 0x267   : > { %v2071_v46 = vmul.f32 %v5217_v45, %v2016_v17  ;;  %2138 = vrot.lane.b32.xlu0 %v2070_v6, %s4195_s11  ;;  %v5225_v47 = vpop.eup %4056 }
 0x268   : > { %v4059_v17 = vpop.eup %4058 }
 0x269   : > { %2140 = vrot.lane.b32.xlu1 %v2071_v46, %s4195_s11  ;;  %v1901_v10 = vadd.f32 1.0, %v4059_v17 }
 0x26a   : > { %v5230_v6 = vpop.eup %4060 }
 0x26b   : > { %4064 = vrcp.f32 %v1901_v10  ;;  %v5233_v40 = vpop.eup %4062 }
 0x270   : > { %v2018_v0 = vpop.permute.xlu1 %2017 }
 0x271   : > { %v2072_v19 = vmul.f32 %v5222_v27, %v2018_v0 }
 0x272   : > { %v2020_v20 = vpop.permute.xlu0 %2019 }
 0x273   : > { %v2073_v35 = vmul.f32 %v5225_v47, %v2020_v20  ;;  %2142 = vrot.lane.b32.xlu0 %v2072_v19, %s4195_s11 }
 0x275   : > { %2144 = vrot.lane.b32.xlu1 %v2073_v35, %s4195_s11  ;;  %v5239_v19 = vpop.eup %4064  ;;  %v2625_v35 = vld [vmem:[%s4258_s30 + $0xb8] sm:$0xff] }
 0x27c   : > { %v2022_v46 = vpop.permute.xlu1 %2021 }
 0x27d   : > { %v2074_v13 = vmul.f32 %v5230_v6, %v2022_v46 }
 0x27e   : > { %v2024_v60 = vpop.permute.xlu0 %2023 }
 0x27f   : > { %v2075_v0 = vmul.f32 %v5233_v40, %v2024_v60  ;;  %2146 = vrot.lane.b32.xlu0 %v2074_v13, %s4195_s11 }
 0x281   : > { %2148 = vrot.lane.b32.xlu1 %v2075_v0, %s4195_s11  ;;  %v5725_v0 = vunpack.c.l.bf16 %v4929_v61 }
 0x284   : > { %v2026_v20 = vpop.permute.xlu1 %2025 }
 0x285   : > { %v2076_v17 = vmul.f32 %v5239_v19, %v2026_v20  ;;  %2749 = vperm.xlu1 %3947, %v2626_v25   ;;  %v5727_v25 = vunpack.c.l.bf16 %v4936_v28 }
 0x287   : > { %2150 = vrot.lane.b32.xlu0 %v2076_v17, %s4195_s11 }
 0x28b   : > { %2744 = vperm.xlu0 %3946, %v2625_v35  }
 0x28f   : > { %v5244_v10 = vpop.permute.xlu0 %2724 }
 0x290   : > { %5722 = vst [vmem:[#allocation11_spill] sm:$0xff] %v5244_v10  ;;  %v5729_v10 = vunpack.c.l.bf16 %v4949_v49 }
 0x293   : > { %v5246_v46 = vpop.permute.xlu0 %2734 }
 0x294   : > { %5723 = vst [vmem:[#allocation12_spill] sm:$0xff] %v5246_v46 }
 0x295   : > { %v5248_v60 = vpop.permute.xlu1 %2719 }
 0x296   : > { %5724 = vst [vmem:[#allocation13_spill] sm:$0xff] %v5248_v60  ;;  %v5730_v60 = vunpack.c.h.bf16 %v4929_v61  ;;  %v5733_v61 = vunpack.c.l.bf16 %v4991_v11 }
 0x297   : > { %v2103_v13 = vpop.permute.xlu0 %2102 }
 0x298   : > { %v2177_v15 = vadd.f32 %v5725_v0, %v2103_v13 }
 0x299   : > { %v5252_v23 = vpop.permute.xlu1 %2729 }
 0x29a   : > { %5726 = vst [vmem:[#allocation14_spill] sm:$0xff] %v5252_v23  ;;  %4066 = vtanh.f32 %v2177_v15  ;;  %v5731_v15 = vunpack.c.l.bf16 %v4967_v57 }
 0x29b   : > { %v2107_v33 = vpop.permute.xlu0 %2106 }
 0x29c   : > { %v2179_v20 = vadd.f32 %v5727_v25, %v2107_v33  ;;  %v5732_v25 = vunpack.c.h.bf16 %v4936_v28  ;;  %v5735_v28 = vunpack.c.l.bf16 %v5030_v9 }
 0x29d   : > { %v5256_v17 = vpop.permute.xlu1 %2739 }
 0x29e   : > { %5728 = vst [vmem:[#allocation15_spill] sm:$0xff] %v5256_v17  ;;  %4068 = vtanh.f32 %v2179_v20 }
 0x29f   : > { %v2111_v35 = vpop.permute.xlu0 %2110 }
 0x2a0   : > { %v2181_v46 = vadd.f32 %v5729_v10, %v2111_v35 }
 0x2a1   : > { %v2105_v4 = vpop.permute.xlu1 %2104 }
 0x2a2   : > { %4070 = vtanh.f32 %v2181_v46  ;;  %v2178_v26 = vadd.f32 %v5730_v60, %v2105_v4 }
 0x2a3   : > { %v2115_v13 = vpop.permute.xlu0 %2114 }
 0x2a4   : > { %v5262_v0 = vpop.eup %4066  ;;  %4072 = vtanh.f32 %v2178_v26  ;;  %v2183_v23 = vadd.f32 %v5731_v15, %v2115_v13  ;;  %v5734_v26 = vunpack.c.h.bf16 %v4949_v49 }
 0x2a5   : > { %v2109_v33 = vpop.permute.xlu1 %2108  ;;  %2252 = vrot.lane.b32.xlu1 %v5262_v0, %s4195_s11 }
 0x2a6   : > { %4074 = vtanh.f32 %v2183_v23  ;;  %v2180_v10 = vadd.f32 %v5732_v25, %v2109_v33 }
 0x2a7   : > { %v2119_v20 = vpop.permute.xlu0 %2118 }
 0x2a8   : > { %v5270_v46 = vpop.eup %4068  ;;  %4076 = vtanh.f32 %v2180_v10  ;;  %v2185_v4 = vadd.f32 %v5733_v61, %v2119_v20  ;;  %v5736_v10 = vunpack.c.h.bf16 %v4967_v57 }
 0x2a9   : > { %v2113_v60 = vpop.permute.xlu1 %2112  ;;  %2256 = vrot.lane.b32.xlu1 %v5270_v46, %s4195_s11 }
 0x2aa   : > { %4078 = vtanh.f32 %v2185_v4  ;;  %v2182_v35 = vadd.f32 %v5734_v26, %v2113_v60  ;;  %v5737_v60 = vunpack.c.h.bf16 %v4991_v11 }
 0x2ab   : > { %v2123_v13 = vpop.permute.xlu0 %2122 }
 0x2ac   : > { %v5278_v23 = vpop.eup %4070  ;;  %4080 = vtanh.f32 %v2182_v35  ;;  %v2187_v15 = vadd.f32 %v5735_v28, %v2123_v13 }
 0x2ad   : > { %v2117_v33 = vpop.permute.xlu1 %2116  ;;  %2260 = vrot.lane.b32.xlu1 %v5278_v23, %s4195_s11 }
 0x2ae   : > { %v5284_v25 = vpop.eup %4072  ;;  %4082 = vtanh.f32 %v2187_v15  ;;  %v2184_v20 = vadd.f32 %v5736_v10, %v2117_v33  ;;  %v5738_v15 = vunpack.c.h.bf16 %v5030_v9  ;;  %v5739_v10 = vunpack.c.l.bf16 %v5068_v5 }
 0x2af   : > { %2254 = vrot.lane.b32.xlu0 %v5284_v25, %s4195_s11 }
 0x2b0   : > { %v5290_v49 = vpop.eup %4074  ;;  %4084 = vtanh.f32 %v2184_v20 }
 0x2b1   : > { %v2121_v61 = vpop.permute.xlu1 %2120  ;;  %2264 = vrot.lane.b32.xlu1 %v5290_v49, %s4195_s11 }
 0x2b2   : > { %v5294_v4 = vpop.eup %4076  ;;  %v2186_v26 = vadd.f32 %v5737_v60, %v2121_v61 }
 0x2b3   : > { %2258 = vrot.lane.b32.xlu0 %v5294_v4, %s4195_s11 }
 0x2b4   : > { %v5300_v57 = vpop.eup %4078  ;;  %4086 = vtanh.f32 %v2186_v26  ;;  %v5740_v26 = vunpack.c.h.bf16 %v5068_v5  ;;  %v5742_v5 = vunpack.c.h.bf16 %v5100_v12 }
 0x2b5   : > { %v2125_v35 = vpop.permute.xlu1 %2124  ;;  %2268 = vrot.lane.b32.xlu1 %v5300_v57, %s4195_s11  ;;  %v2127_v13 = vpop.permute.xlu0 %2126 }
 0x2b6   : > { %v5304_v28 = vpop.eup %4080  ;;  %v2188_v33 = vadd.f32 %v5738_v15, %v2125_v35  ;;  %v2189_v11 = vadd.f32 %v5739_v10, %v2127_v13 }
 0x2b7   : > { %2262 = vrot.lane.b32.xlu0 %v5304_v28, %s4195_s11 }
 0x2b8   : > { %v5312_v20 = vpop.eup %4082  ;;  %4088 = vtanh.f32 %v2188_v33  ;;  %v5741_v33 = vunpack.c.l.bf16 %v5100_v12 }
 0x2b9   : > { %4090 = vtanh.f32 %v2189_v11  ;;  %v2129_v61 = vpop.permute.xlu1 %2128  ;;  %2272 = vrot.lane.b32.xlu1 %v5312_v20, %s4195_s11 }
 0x2ba   : > { %v5316_v60 = vpop.eup %4084  ;;  %v2190_v9 = vadd.f32 %v5740_v26, %v2129_v61 }
 0x2bb   : > { %2266 = vrot.lane.b32.xlu0 %v5316_v60, %s4195_s11 }
 0x2bc   : > { %4092 = vtanh.f32 %v2190_v9 }
 0x2be   : > { %v5322_v35 = vpop.eup %4086 }
 0x2bf   : > { %2270 = vrot.lane.b32.xlu0 %v5322_v35, %s4195_s11 }
 0x2c1   : > { %v2131_v13 = vpop.permute.xlu0 %2130 }
 0x2c2   : > { %v5326_v15 = vpop.eup %4088  ;;  %v2191_v10 = vadd.f32 %v5741_v33, %v2131_v13  ;;  %v5745_v33 = vunpack.c.l.bf16 %v5129_v38 }
 0x2c3   : > { %v5330_v11 = vpop.eup %4090  ;;  %v2133_v17 = vpop.permute.xlu1 %2132  ;;  %2274 = vrot.lane.b32.xlu0 %v5326_v15, %s4195_s11 }
 0x2c4   : > { %4094 = vtanh.f32 %v2191_v10  ;;  %v2192_v61 = vadd.f32 %v5742_v5, %v2133_v17  ;;  %2276 = vrot.lane.b32.xlu1 %v5330_v11, %s4195_s11  ;;  %v5746_v17 = vunpack.c.h.bf16 %v5129_v38 }
 0x2c6   : > { %v5338_v26 = vpop.eup %4092  ;;  %4096 = vtanh.f32 %v2192_v61 }
 0x2c7   : > { %5743 = vst [vmem:[#allocation16_spill] sm:$0xff] %v5338_v26  ;;  %2278 = vrot.lane.b32.xlu0 %v5338_v26, %s4195_s11  ;;  %v5748_v26 = vunpack.c.l.bf16 %v5151_v52 }
 0x2cd   : > { %v2135_v9 = vpop.permute.xlu0 %2134 }
 0x2ce   : > { %v5342_v13 = vpop.eup %4094  ;;  %v2193_v24 = vadd.f32 %v5745_v33, %v2135_v9 }
 0x2cf   : > { %5744 = vst [vmem:[#allocation17_spill] sm:$0xff] %v5342_v13  ;;  %v2137_v18 = vpop.permute.xlu1 %2136  ;;  %2280 = vrot.lane.b32.xlu1 %v5342_v13, %s4195_s11 }
 0x2d0   : > { %v5348_v12 = vpop.eup %4096  ;;  %4098 = vtanh.f32 %v2193_v24  ;;  %v2194_v10 = vadd.f32 %v5746_v17, %v2137_v18  ;;  %v5750_v24 = vunpack.c.h.bf16 %v5151_v52  ;;  %v5754_v52 = vunpack.c.h.bf16 %v5170_v59 }
 0x2d1   : > { %2282 = vrot.lane.b32.xlu0 %v5348_v12, %s4195_s11 }
 0x2d2   : > { %4100 = vtanh.f32 %v2194_v10  ;;  %v5752_v10 = vunpack.c.l.bf16 %v5170_v59  ;;  %v5758_v59 = vunpack.c.h.bf16 %v5189_v1 }
 0x2d9   : > { %v2139_v5 = vpop.permute.xlu0 %2138 }
 0x2da   : > { %v5354_v61 = vpop.eup %4098  ;;  %v2195_v9 = vadd.f32 %v5748_v26, %v2139_v5 }
 0x2db   : > { %5747 = vst [vmem:[#allocation18_spill] sm:$0xff] %v5354_v61  ;;  %v2141_v33 = vpop.permute.xlu1 %2140  ;;  %2284 = vrot.lane.b32.xlu1 %v5354_v61, %s4195_s11 }
 0x2dc   : > { %v5360_v13 = vpop.eup %4100  ;;  %4102 = vtanh.f32 %v2195_v9  ;;  %v2196_v18 = vadd.f32 %v5750_v24, %v2141_v33 }
 0x2dd   : > { %5749 = vst [vmem:[#allocation19_spill] sm:$0xff] %v5360_v13  ;;  %2286 = vrot.lane.b32.xlu0 %v5360_v13, %s4195_s11  ;;  %v4132_v13 = vld [vmem:[#allocation2 + $0x40] sm:$0xff] }
 0x2de   : > { %4104 = vtanh.f32 %v2196_v18  ;;  %v5756_v18 = vunpack.c.l.bf16 %v5189_v1 }
 0x2e5   : > { %v2143_v38 = vpop.permute.xlu0 %2142 }
 0x2e6   : > { %v5366_v17 = vpop.eup %4102  ;;  %v2197_v26 = vadd.f32 %v5752_v10, %v2143_v38 }
 0x2e7   : > { %5751 = vst [vmem:[#allocation20_spill] sm:$0xff] %v5366_v17  ;;  %v2145_v5 = vpop.permute.xlu1 %2144  ;;  %2288 = vrot.lane.b32.xlu1 %v5366_v17, %s4195_s11 }
 0x2e8   : > { %v5372_v61 = vpop.eup %4104  ;;  %4106 = vtanh.f32 %v2197_v26  ;;  %v2198_v9 = vadd.f32 %v5754_v52, %v2145_v5  ;;  %v5759_v52 = vunpack.c.l.bf16 %v5202_v29 }
 0x2e9   : > { %5753 = vst [vmem:[#allocation21_spill] sm:$0xff] %v5372_v61  ;;  %2290 = vrot.lane.b32.xlu0 %v5372_v61, %s4195_s11  ;;  %v4131_v61 = vld [vmem:[#allocation2 + $0x18] sm:$0xff] }
 0x2ea   : > { %4108 = vtanh.f32 %v2198_v9 }
 0x2f1   : > { %v2147_v33 = vpop.permute.xlu0 %2146 }
 0x2f2   : > { %v5378_v24 = vpop.eup %4106  ;;  %v2199_v38 = vadd.f32 %v5756_v18, %v2147_v33 }
 0x2f3   : > { %5755 = vst [vmem:[#allocation22_spill] sm:$0xff] %v5378_v24  ;;  %v2149_v10 = vpop.permute.xlu1 %2148  ;;  %2292 = vrot.lane.b32.xlu1 %v5378_v24, %s4195_s11 }
 0x2f4   : > { %v5384_v17 = vpop.eup %4108  ;;  %4110 = vtanh.f32 %v2199_v38  ;;  %v2200_v26 = vadd.f32 %v5758_v59, %v2149_v10  ;;  %v4128_v10 = vld [vmem:[#allocation2 + $0x10] sm:$0xff] }
 0x2f5   : > { %5757 = vst [vmem:[#allocation23_spill] sm:$0xff] %v5384_v17  ;;  %2294 = vrot.lane.b32.xlu0 %v5384_v17, %s4195_s11 }
 0x2f6   : > { %4112 = vtanh.f32 %v2200_v26 }
 0x2f9   : > { %v2151_v5 = vpop.permute.xlu0 %2150 }
 0x2fa   : > { %v2201_v9 = vadd.f32 %v2151_v5, %v5759_v52  ;;  %v4129_v5 = vld [vmem:[#allocation2 + $0x20] sm:$0xff] }
 0x2fc   : > { %4114 = vtanh.f32 %v2201_v9 }
 0x2fe   : > { %v5392_v33 = vpop.eup %4110 }
 0x2ff   : > { %5760 = vst [vmem:[#allocation24_spill] sm:$0xff] %v5392_v33  ;;  %2296 = vrot.lane.b32.xlu1 %v5392_v33, %s4195_s11  ;;  %v4130_v33 = vld [vmem:[#allocation2 + $0x30] sm:$0xff] }
 0x300   : > { %v5396_v18 = vpop.eup %4112 }
 0x301   : > { %5761 = vst [vmem:[#allocation25_spill] sm:$0xff] %v5396_v18  ;;  %2298 = vrot.lane.b32.xlu0 %v5396_v18, %s4195_s11 }
 0x304   : > { %v5404_v38 = vpop.permute.xlu1 %2749 }
 0x305   : > { %5763 = vst [vmem:[#allocation27_spill] sm:$0xff] %v5404_v38 }
 0x306   : > { %v5400_v1 = vpop.eup %4114 }
 0x307   : > { %5762 = vst [vmem:[#allocation26_spill] sm:$0xff] %v5400_v1  ;;  %2300 = vrot.lane.b32.xlu1 %v5400_v1, %s4195_s11 }
 0x30a   : > { %v5407_v9 = vpop.permute.xlu0 %2744 }
 0x30b   : > { %5764 = vst [vmem:[#allocation28_spill] sm:$0xff] %v5407_v9 }
 0x317   : > { %v2253_v29 = vpop.permute.xlu1 %2252 }
 0x318   : > { %v2327_v59 = vsub.f32 %v4128_v10, %v2253_v29 }
 0x31a   : > { %2377 = vrot.lane.b32.xlu0 %v2327_v59, %s4196_s12  ;;  %v4133_v59 = vld [vmem:[#allocation2 + $0x28] sm:$0xff] }
 0x31b   : > { %v2257_v26 = vpop.permute.xlu1 %2256 }
 0x31c   : > { %v2329_v52 = vsub.f32 %v4129_v5, %v2257_v26 }
 0x31e   : > { %2381 = vrot.lane.b32.xlu0 %v2329_v52, %s4196_s12  ;;  %v4134_v52 = vld [vmem:[#allocation2 + $0x50] sm:$0xff] }
 0x31f   : > { %v2261_v18 = vpop.permute.xlu1 %2260 }
 0x320   : > { %v2331_v17 = vsub.f32 %v4130_v33, %v2261_v18  ;;  %v4135_v18 = vld [vmem:[#allocation2 + $0x38] sm:$0xff] }
 0x321   : > { %v2255_v24 = vpop.permute.xlu0 %2254 }
 0x322   : > { %v2328_v1 = vsub.f32 %v4131_v61, %v2255_v24  ;;  %2385 = vrot.lane.b32.xlu0 %v2331_v17, %s4196_s12  ;;  %v4136_v24 = vld [vmem:[#allocation2 + $0x60] sm:$0xff] }
 0x323   : > { %v2265_v38 = vpop.permute.xlu1 %2264 }
 0x324   : > { %v2333_v29 = vsub.f32 %v4132_v13, %v2265_v38  ;;  %2379 = vrot.lane.b32.xlu1 %v2328_v1, %s4196_s12  ;;  %v4137_v38 = vld [vmem:[#allocation2 + $0x48] sm:$0xff] }
 0x325   : > { %v2259_v10 = vpop.permute.xlu0 %2258 }
 0x326   : > { %v2330_v26 = vsub.f32 %v4133_v59, %v2259_v10  ;;  %2389 = vrot.lane.b32.xlu0 %v2333_v29, %s4196_s12  ;;  %v4138_v59 = vld [vmem:[#allocation2 + $0x58] sm:$0xff] }
 0x327   : > { %v2269_v5 = vpop.permute.xlu1 %2268 }
 0x328   : > { %v2335_v9 = vsub.f32 %v4134_v52, %v2269_v5  ;;  %2383 = vrot.lane.b32.xlu1 %v2330_v26, %s4196_s12 }
 0x329   : > { %v2263_v33 = vpop.permute.xlu0 %2262 }
 0x32a   : > { %v2332_v61 = vsub.f32 %v4135_v18, %v2263_v33  ;;  %2393 = vrot.lane.b32.xlu0 %v2335_v9, %s4196_s12  ;;  %v4139_v9 = vld [vmem:[#allocation2 + $0x68] sm:$0xff]  ;;  %v4140_v18 = vld [vmem:[#allocation2 + $0x70] sm:$0xff] }
 0x32b   : > { %v2273_v17 = vpop.permute.xlu1 %2272 }
 0x32c   : > { %v2337_v13 = vsub.f32 %v4136_v24, %v2273_v17  ;;  %2387 = vrot.lane.b32.xlu1 %v2332_v61, %s4196_s12  ;;  %v4141_v24 = vld [vmem:[#allocation2 + $0x78] sm:$0xff] }
 0x32d   : > { %v2267_v1 = vpop.permute.xlu0 %2266 }
 0x32e   : > { %v2334_v10 = vsub.f32 %v4137_v38, %v2267_v1  ;;  %2397 = vrot.lane.b32.xlu0 %v2337_v13, %s4196_s12  ;;  %v4142_v38 = vld [vmem:[#allocation2 + $0x80] sm:$0xff] }
 0x330   : > { %2391 = vrot.lane.b32.xlu1 %v2334_v10, %s4196_s12 }
 0x331   : > { %v2271_v29 = vpop.permute.xlu0 %2270 }
 0x332   : > { %v2336_v26 = vsub.f32 %v4138_v59, %v2271_v29  ;;  %v4143_v59 = vld [vmem:[#allocation2 + $0x88] sm:$0xff] }
 0x334   : > { %2395 = vrot.lane.b32.xlu1 %v2336_v26, %s4196_s12 }
 0x335   : > { %v2275_v5 = vpop.permute.xlu0 %2274 }
 0x336   : > { %v2277_v52 = vpop.permute.xlu1 %2276  ;;  %v2338_v33 = vsub.f32 %v4139_v9, %v2275_v5 }
 0x337   : > { %v2339_v17 = vsub.f32 %v4140_v18, %v2277_v52  ;;  %v4144_v52 = vld [vmem:[#allocation2 + $0x90] sm:$0xff]  ;;  %v4145_v18 = vld [vmem:[#allocation2 + $0x98] sm:$0xff] }
 0x338   : > { %2399 = vrot.lane.b32.xlu1 %v2338_v33, %s4196_s12 }
 0x339   : > { %2401 = vrot.lane.b32.xlu0 %v2339_v17, %s4196_s12  ;;  %v2279_v61 = vpop.permute.xlu0 %2278 }
 0x33a   : > { %v2340_v13 = vsub.f32 %v4141_v24, %v2279_v61  ;;  %v4146_v24 = vld [vmem:[#allocation2 + $0xa0] sm:$0xff] }
 0x33c   : > { %2403 = vrot.lane.b32.xlu1 %v2340_v13, %s4196_s12 }
 0x341   : > { %v2281_v1 = vpop.permute.xlu1 %2280 }
 0x342   : > { %v2341_v10 = vsub.f32 %v4142_v38, %v2281_v1  ;;  %v4147_v38 = vld [vmem:[#allocation2 + $0xa8] sm:$0xff] }
 0x343   : > { %v2283_v29 = vpop.permute.xlu0 %2282 }
 0x344   : > { %v2342_v26 = vsub.f32 %v4143_v59, %v2283_v29  ;;  %2405 = vrot.lane.b32.xlu0 %v2341_v10, %s4196_s12  ;;  %v4148_v59 = vld [vmem:[#allocation2 + $0xb0] sm:$0xff] }
 0x346   : > { %2407 = vrot.lane.b32.xlu1 %v2342_v26, %s4196_s12 }
 0x34d   : > { %v2285_v5 = vpop.permute.xlu1 %2284 }
 0x34e   : > { %v2343_v9 = vsub.f32 %v4144_v52, %v2285_v5  ;;  %v4149_v52 = vld [vmem:[#allocation2 + $0xb8] sm:$0xff] }
 0x34f   : > { %v2287_v33 = vpop.permute.xlu0 %2286 }
 0x350   : > { %v2344_v17 = vsub.f32 %v4145_v18, %v2287_v33  ;;  %2409 = vrot.lane.b32.xlu0 %v2343_v9, %s4196_s12  ;;  %v4150_v18 = vld [vmem:[#allocation2 + $0xc0] sm:$0xff] }
 0x352   : > { %2411 = vrot.lane.b32.xlu1 %v2344_v17, %s4196_s12 }
 0x359   : > { %v2289_v61 = vpop.permute.xlu1 %2288 }
 0x35a   : > { %v2345_v13 = vsub.f32 %v4146_v24, %v2289_v61  ;;  %v4151_v24 = vld [vmem:[#allocation2 + $0xc8] sm:$0xff] }
 0x35b   : > { %v2291_v1 = vpop.permute.xlu0 %2290 }
 0x35c   : > { %v2346_v29 = vsub.f32 %v4147_v38, %v2291_v1  ;;  %2413 = vrot.lane.b32.xlu0 %v2345_v13, %s4196_s12  ;;  %v4152_v38 = vld [vmem:[#allocation2 + $0xd0] sm:$0xff] }
 0x35e   : > { %2415 = vrot.lane.b32.xlu1 %v2346_v29, %s4196_s12 }
 0x365   : > { %v2293_v10 = vpop.permute.xlu1 %2292 }
 0x366   : > { %v2347_v26 = vsub.f32 %v4148_v59, %v2293_v10 }
 0x367   : > { %v2295_v5 = vpop.permute.xlu0 %2294 }
 0x368   : > { %v2348_v33 = vsub.f32 %v4149_v52, %v2295_v5  ;;  %2417 = vrot.lane.b32.xlu0 %v2347_v26, %s4196_s12 }
 0x36a   : > { %2419 = vrot.lane.b32.xlu1 %v2348_v33, %s4196_s12 }
 0x371   : > { %v2297_v9 = vpop.permute.xlu1 %2296 }
 0x372   : > { %v2349_v17 = vsub.f32 %v4150_v18, %v2297_v9 }
 0x373   : > { %v2299_v61 = vpop.permute.xlu0 %2298 }
 0x374   : > { %v2350_v1 = vsub.f32 %v4151_v24, %v2299_v61  ;;  %2421 = vrot.lane.b32.xlu0 %v2349_v17, %s4196_s12 }
 0x376   : > { %2423 = vrot.lane.b32.xlu1 %v2350_v1, %s4196_s12 }
 0x379   : > { %v2301_v13 = vpop.permute.xlu1 %2300 }
 0x37a   : > { %v2351_v29 = vsub.f32 %v4152_v38, %v2301_v13 }
 0x37c   : > { %2425 = vrot.lane.b32.xlu0 %v2351_v29, %s4196_s12 }
 0x38c   : > { %v2378_v10 = vpop.permute.xlu0 %2377 }
 0x38d   : > { %v2452_v59 = vmul.f32 %v5065_v22, %v2378_v10 }
 0x38f   : > { %2502 = vrot.lane.b32.xlu1 %v2452_v59, %s4196_s12 }
 0x390   : > { %v2382_v26 = vpop.permute.xlu0 %2381 }
 0x391   : > { %v2454_v5 = vmul.f32 %v5075_v43, %v2382_v26 }
 0x393   : > { %2506 = vrot.lane.b32.xlu1 %v2454_v5, %s4196_s12 }
 0x394   : > { %v2386_v52 = vpop.permute.xlu0 %2385 }
 0x395   : > { %v2456_v33 = vmul.f32 %v5081_v30, %v2386_v52 }
 0x396   : > { %v2380_v9 = vpop.permute.xlu1 %2379 }
 0x397   : > { %v2453_v18 = vmul.f32 %v5088_v8, %v2380_v9  ;;  %2510 = vrot.lane.b32.xlu1 %v2456_v33, %s4196_s12 }
 0x398   : > { %v2390_v17 = vpop.permute.xlu0 %2389 }
 0x399   : > { %v2458_v61 = vmul.f32 %v5095_v63, %v2390_v17  ;;  %2504 = vrot.lane.b32.xlu0 %v2453_v18, %s4196_s12 }
 0x39a   : > { %v2384_v22 = vpop.permute.xlu1 %2383 }
 0x39b   : > { %v2455_v24 = vmul.f32 %v5097_v32, %v2384_v22  ;;  %2514 = vrot.lane.b32.xlu1 %v2458_v61, %s4196_s12 }
 0x39c   : > { %v2394_v43 = vpop.permute.xlu0 %2393 }
 0x39d   : > { %v2460_v1 = vmul.f32 %v5111_v36, %v2394_v43  ;;  %2508 = vrot.lane.b32.xlu0 %v2455_v24, %s4196_s12 }
 0x39e   : > { %v2388_v30 = vpop.permute.xlu1 %2387 }
 0x39f   : > { %v2457_v8 = vmul.f32 %v5108_v50, %v2388_v30  ;;  %2518 = vrot.lane.b32.xlu1 %v2460_v1, %s4196_s12 }
 0x3a0   : > { %v2398_v13 = vpop.permute.xlu0 %2397 }
 0x3a1   : > { %v2462_v63 = vmul.f32 %v5136_v44, %v2398_v13  ;;  %2512 = vrot.lane.b32.xlu0 %v2457_v8, %s4196_s12 }
 0x3a2   : > { %v2392_v38 = vpop.permute.xlu1 %2391 }
 0x3a3   : > { %v2459_v32 = vmul.f32 %v5119_v54, %v2392_v38  ;;  %2522 = vrot.lane.b32.xlu1 %v2462_v63, %s4196_s12 }
 0x3a5   : > { %2516 = vrot.lane.b32.xlu0 %v2459_v32, %s4196_s12 }
 0x3a6   : > { %v2396_v36 = vpop.permute.xlu1 %2395 }
 0x3a7   : > { %v2461_v29 = vmul.f32 %v5126_v51, %v2396_v36 }
 0x3a9   : > { %2520 = vrot.lane.b32.xlu0 %v2461_v29, %s4196_s12 }
 0x3aa   : > { %v2400_v50 = vpop.permute.xlu1 %2399 }
 0x3ab   : > { %v2463_v10 = vmul.f32 %v5142_v14, %v2400_v50  ;;  %v2402_v59 = vpop.permute.xlu0 %2401 }
 0x3ac   : > { %v2464_v44 = vmul.f32 %v5155_v56, %v2402_v59 }
 0x3ad   : > { %2524 = vrot.lane.b32.xlu0 %v2463_v10, %s4196_s12 }
 0x3ae   : > { %2526 = vrot.lane.b32.xlu1 %v2464_v44, %s4196_s12  ;;  %v2404_v54 = vpop.permute.xlu1 %2403 }
 0x3af   : > { %v2465_v26 = vmul.f32 %v5161_v31, %v2404_v54 }
 0x3b1   : > { %2528 = vrot.lane.b32.xlu0 %v2465_v26, %s4196_s12 }
 0x3b6   : > { %v2406_v5 = vpop.permute.xlu0 %2405 }
 0x3b7   : > { %v2466_v51 = vmul.f32 %v5174_v3, %v2406_v5 }
 0x3b8   : > { %v2408_v52 = vpop.permute.xlu1 %2407 }
 0x3b9   : > { %v2467_v33 = vmul.f32 %v5180_v58, %v2408_v52  ;;  %2530 = vrot.lane.b32.xlu1 %v2466_v51, %s4196_s12 }
 0x3bb   : > { %2532 = vrot.lane.b32.xlu0 %v2467_v33, %s4196_s12 }
 0x3c2   : > { %v2410_v14 = vpop.permute.xlu0 %2409 }
 0x3c3   : > { %v2468_v56 = vmul.f32 %v5193_v62, %v2410_v14 }
 0x3c4   : > { %v2412_v9 = vpop.permute.xlu1 %2411 }
 0x3c5   : > { %v2469_v18 = vmul.f32 %v5199_v7, %v2412_v9  ;;  %2534 = vrot.lane.b32.xlu1 %v2468_v56, %s4196_s12 }
 0x3c7   : > { %2536 = vrot.lane.b32.xlu0 %v2469_v18, %s4196_s12 }
 0x3ce   : > { %v2414_v31 = vpop.permute.xlu0 %2413 }
 0x3cf   : > { %v2470_v3 = vmul.f32 %v5214_v55, %v2414_v31  ;;  %v5765_v31 = vld [vmem:[#allocation3_spill] sm:$0xff] }
 0x3d0   : > { %v2416_v17 = vpop.permute.xlu1 %2415 }
 0x3d1   : > { %v2471_v58 = vmul.f32 %v5217_v45, %v2416_v17  ;;  %2538 = vrot.lane.b32.xlu1 %v2470_v3, %s4196_s12  ;;  %v5766_v3 = vld [vmem:[#allocation5_spill] sm:$0xff] }
 0x3d3   : > { %2540 = vrot.lane.b32.xlu0 %v2471_v58, %s4196_s12 }
 0x3da   : > { %v2418_v61 = vpop.permute.xlu0 %2417 }
 0x3db   : > { %v2472_v62 = vmul.f32 %v5222_v27, %v2418_v61 }
 0x3dc   : > { %v2420_v22 = vpop.permute.xlu1 %2419 }
 0x3dd   : > { %v2473_v7 = vmul.f32 %v5225_v47, %v2420_v22  ;;  %2542 = vrot.lane.b32.xlu1 %v2472_v62, %s4196_s12  ;;  %v5767_v62 = vld [vmem:[#allocation16_spill] sm:$0xff] }
 0x3df   : > { %2544 = vrot.lane.b32.xlu0 %v2473_v7, %s4196_s12  ;;  %v5768_v7 = vld [vmem:[#allocation4_spill] sm:$0xff] }
 0x3e6   : > { %v2422_v24 = vpop.permute.xlu0 %2421 }
 0x3e7   : > { %v2474_v55 = vmul.f32 %v5230_v6, %v2422_v24 }
 0x3e8   : > { %v2424_v43 = vpop.permute.xlu1 %2423 }
 0x3e9   : > { %v2475_v45 = vmul.f32 %v5233_v40, %v2424_v43  ;;  %2546 = vrot.lane.b32.xlu1 %v2474_v55, %s4196_s12  ;;  %v5769_v55 = vld [vmem:[#allocation7_spill] sm:$0xff] }
 0x3eb   : > { %2548 = vrot.lane.b32.xlu0 %v2475_v45, %s4196_s12 }
 0x3ee   : > { %v2426_v1 = vpop.permute.xlu0 %2425 }
 0x3ef   : > { %v2476_v27 = vmul.f32 %v5239_v19, %v2426_v1 }
 0x3f1   : > { %2550 = vrot.lane.b32.xlu1 %v2476_v27, %s4196_s12 }
 0x401   : > { %v2503_v47 = vpop.permute.xlu1 %2502 }
 0x402   : > { %v2577_v30 = vadd.f32 %v5262_v0, %v2503_v47 }
 0x404   : > { %v2752_v8 = vmul.f32 %v4922_v37, %v2577_v30 }
 0x405   : > { %v2507_v40 = vpop.permute.xlu1 %2506 }
 0x406   : > { %2802 = vrot.lane.b32.xlu0 %v2752_v8, %s4195_s11  ;;  %v2579_v32 = vadd.f32 %v5270_v46, %v2507_v40  ;;  %v3274_v29 = vpack.c.bf16 %v2752_v8, %v2752_v8  ;;  %v5772_v40 = vld [vmem:[#allocation9_spill] sm:$0xff] }
 0x408   : > { %v2754_v37 = vmul.f32 %v4911_v41, %v2579_v32 }
 0x40a   : > { %v3276_v10 = vpack.c.bf16 %v2754_v37, %v2754_v37 }
 0x40b   : > { %v2505_v6 = vpop.permute.xlu0 %2504 }
 0x40c   : > { %v2578_v13 = vadd.f32 %v5284_v25, %v2505_v6  ;;  %v2511_v25 = vpop.permute.xlu1 %2510  ;;  %v5771_v6 = vld [vmem:[#allocation6_spill] sm:$0xff] }
 0x40e   : > { %v2753_v63 = vmul.f32 %v4908_v42, %v2578_v13  ;;  %v2581_v42 = vadd.f32 %v5278_v23, %v2511_v25  ;;  %v5775_v25 = vld [vmem:[#allocation8_spill] sm:$0xff] }
 0x40f   : > { %v2509_v38 = vpop.permute.xlu0 %2508 }
 0x410   : > { %v3275_v36 = vpack.c.bf16 %v2753_v63, %v2753_v63  ;;  %v2580_v19 = vadd.f32 %v5294_v4, %v2509_v38  ;;  %2804 = vrot.lane.b32.xlu1 %v2753_v63, %s4195_s11  ;;  %v2756_v41 = vmul.f32 %v4926_v16, %v2581_v42  ;;  %v2515_v59 = vpop.permute.xlu1 %2514  ;;  %v5776_v42 = vld [vmem:[#allocation10_spill] sm:$0xff] }
 0x411   : > { %v2583_v23 = vadd.f32 %v5290_v49, %v2515_v59 }
 0x412   : > { %2980 = vrot.lane.b32.xlu0 %v3275_v36, %s4195_s11  ;;  %v2755_v0 = vmul.f32 %v4931_v21, %v2580_v19  ;;  %v3278_v26 = vpack.c.bf16 %v2756_v41, %v2756_v41  ;;  %v5773_v19 = vld [vmem:[#allocation18_spill] sm:$0xff] }
 0x413   : > { %v2513_v50 = vpop.permute.xlu0 %2512  ;;  %v2758_v16 = vmul.f32 %v4938_v34, %v2583_v23 }
 0x414   : > { %2978 = vrot.lane.b32.xlu1 %v3274_v29, %s4195_s11  ;;  %v3277_v46 = vpack.c.bf16 %v2755_v0, %v2755_v0  ;;  %v2582_v4 = vadd.f32 %v5304_v28, %v2513_v50  ;;  %v2519_v5 = vpop.permute.xlu1 %2518 }
 0x415   : > { %v2585_v49 = vadd.f32 %v5300_v57, %v2519_v5  ;;  %v3280_v33 = vpack.c.bf16 %v2758_v16, %v2758_v16 }
 0x416   : > { %2806 = vrot.lane.b32.xlu0 %v2754_v37, %s4195_s11  ;;  %v2757_v21 = vmul.f32 %v4956_v48, %v2582_v4  ;;  %v5774_v37 = vld [vmem:[#allocation19_spill] sm:$0xff] }
 0x417   : > { %v2517_v44 = vpop.permute.xlu0 %2516  ;;  %v2760_v34 = vmul.f32 %v4961_v53, %v2585_v49 }
 0x418   : > { %2808 = vrot.lane.b32.xlu1 %v2755_v0, %s4195_s11  ;;  %v3279_v54 = vpack.c.bf16 %v2757_v21, %v2757_v21  ;;  %v2584_v28 = vadd.f32 %v5316_v60, %v2517_v44  ;;  %v2523_v14 = vpop.permute.xlu1 %2522  ;;  %v5778_v44 = vld [vmem:[#allocation21_spill] sm:$0xff] }
 0x419   : > { %v2587_v57 = vadd.f32 %v5312_v20, %v2523_v14  ;;  %v3282_v18 = vpack.c.bf16 %v2760_v34, %v2760_v34  ;;  %v5783_v14 = vld [vmem:[#allocation14_spill] sm:$0xff] }
 0x41a   : > { %2984 = vrot.lane.b32.xlu0 %v3277_v46, %s4195_s11  ;;  %v2759_v48 = vmul.f32 %v4974_v2, %v2584_v28  ;;  %v5779_v28 = vld [vmem:[#allocation13_spill] sm:$0xff] }
 0x41b   : > { %v2521_v51 = vpop.permute.xlu0 %2520  ;;  %v2762_v53 = vmul.f32 %v5765_v31, %v2587_v57  ;;  %v5784_v57 = vld [vmem:[#allocation12_spill] sm:$0xff] }
 0x41c   : > { %2982 = vrot.lane.b32.xlu1 %v3276_v10, %s4195_s11  ;;  %v3281_v52 = vpack.c.bf16 %v2759_v48, %v2759_v48  ;;  %v2586_v60 = vadd.f32 %v5322_v35, %v2521_v51 }
 0x41d   : > { %v3284_v22 = vpack.c.bf16 %v2762_v53, %v2762_v53 }
 0x41e   : > { %2810 = vrot.lane.b32.xlu0 %v2756_v41, %s4195_s11  ;;  %v2761_v2 = vmul.f32 %v5001_v39, %v2586_v60 }
 0x41f   : > { %v2525_v56 = vpop.permute.xlu0 %2524 }
 0x420   : > { %2812 = vrot.lane.b32.xlu1 %v2757_v21, %s4195_s11  ;;  %v3283_v9 = vpack.c.bf16 %v2761_v2, %v2761_v2  ;;  %v2588_v35 = vadd.f32 %v5326_v15, %v2525_v56  ;;  %v2527_v17 = vpop.permute.xlu1 %2526  ;;  %v5777_v21 = vld [vmem:[#allocation20_spill] sm:$0xff] }
 0x421   : > { %v2589_v20 = vadd.f32 %v5330_v11, %v2527_v17  ;;  %v5770_v11 = vld [vmem:[#allocation17_spill] sm:$0xff] }
 0x422   : > { %2988 = vrot.lane.b32.xlu0 %v3279_v54, %s4195_s11  ;;  %v2763_v39 = vmul.f32 %v5766_v3, %v2588_v35  ;;  %v5786_v17 = vld [vmem:[#allocation25_spill] sm:$0xff] }
 0x423   : > { %v2529_v58 = vpop.permute.xlu0 %2528  ;;  %v2764_v24 = vmul.f32 %v5768_v7, %v2589_v20  ;;  %v5789_v7 = vld [vmem:[#allocation28_spill] sm:$0xff] }
 0x424   : > { %2986 = vrot.lane.b32.xlu1 %v3278_v26, %s4195_s11  ;;  %v3285_v61 = vpack.c.bf16 %v2763_v39, %v2763_v39  ;;  %v2590_v15 = vadd.f32 %v5767_v62, %v2529_v58 }
 0x425   : > { %v3286_v8 = vpack.c.bf16 %v2764_v24, %v2764_v24 }
 0x426   : > { %2814 = vrot.lane.b32.xlu0 %v2758_v16, %s4195_s11  ;;  %v2765_v43 = vmul.f32 %v5769_v55, %v2590_v15  ;;  %v5780_v16 = vld [vmem:[#allocation11_spill] sm:$0xff]  ;;  %v5788_v15 = vld [vmem:[#allocation26_spill] sm:$0xff] }
 0x427   : > { %v5790_v55 = vld [vmem:[#allocation27_spill] sm:$0xff] }
 0x428   : > { %2816 = vrot.lane.b32.xlu1 %v2759_v48, %s4195_s11  ;;  %v3287_v27 = vpack.c.bf16 %v2765_v43, %v2765_v43 }
 0x42a   : > { %2992 = vrot.lane.b32.xlu0 %v3281_v52, %s4195_s11  ;;  %v5781_v52 = vld [vmem:[#allocation22_spill] sm:$0xff] }
 0x42b   : > { %v2531_v45 = vpop.permute.xlu1 %2530 }
 0x42c   : > { %2990 = vrot.lane.b32.xlu1 %v3280_v33, %s4195_s11  ;;  %v2591_v47 = vadd.f32 %v5770_v11, %v2531_v45  ;;  %v5782_v33 = vld [vmem:[#allocation23_spill] sm:$0xff] }
 0x42d   : > { %v2533_v1 = vpop.permute.xlu0 %2532 }
 0x42e   : > { %2818 = vrot.lane.b32.xlu0 %v2760_v34, %s4195_s11  ;;  %v2592_v30 = vadd.f32 %v5348_v12, %v2533_v1  ;;  %v2766_v13 = vmul.f32 %v5771_v6, %v2591_v47 }
 0x430   : > { %2820 = vrot.lane.b32.xlu1 %v2761_v2, %s4195_s11  ;;  %v2767_v63 = vmul.f32 %v5772_v40, %v2592_v30  ;;  %v3288_v0 = vpack.c.bf16 %v2766_v13, %v2766_v13 }
 0x432   : > { %2996 = vrot.lane.b32.xlu0 %v3283_v9, %s4195_s11  ;;  %v3289_v36 = vpack.c.bf16 %v2767_v63, %v2767_v63 }
 0x434   : > { %2994 = vrot.lane.b32.xlu1 %v3282_v18, %s4195_s11 }
 0x436   : > { %2822 = vrot.lane.b32.xlu0 %v2762_v53, %s4195_s11  ;;  %v5785_v53 = vld [vmem:[#allocation24_spill] sm:$0xff] }
 0x437   : > { %v2535_v38 = vpop.permute.xlu1 %2534 }
 0x438   : > { %2824 = vrot.lane.b32.xlu1 %v2763_v39, %s4195_s11  ;;  %v2593_v29 = vadd.f32 %v5773_v19, %v2535_v38 }
 0x439   : > { %v2537_v32 = vpop.permute.xlu0 %2536 }
 0x43a   : > { %3000 = vrot.lane.b32.xlu0 %v3285_v61, %s4195_s11  ;;  %v2594_v12 = vadd.f32 %v5774_v37, %v2537_v32  ;;  %v2768_v50 = vmul.f32 %v5775_v25, %v2593_v29  ;;  %v5787_v61 = vld [vmem:[#allocation15_spill] sm:$0xff] }
 0x43c   : > { %2998 = vrot.lane.b32.xlu1 %v3284_v22, %s4195_s11  ;;  %v2769_v46 = vmul.f32 %v5776_v42, %v2594_v12  ;;  %v3290_v54 = vpack.c.bf16 %v2768_v50, %v2768_v50 }
 0x43e   : > { %2826 = vrot.lane.b32.xlu0 %v2764_v24, %s4195_s11  ;;  %v3291_v41 = vpack.c.bf16 %v2769_v46, %v2769_v46 }
 0x440   : > { %2828 = vrot.lane.b32.xlu1 %v2765_v43, %s4195_s11 }
 0x442   : > { %3004 = vrot.lane.b32.xlu0 %v3287_v27, %s4195_s11 }
 0x443   : > { %v2539_v4 = vpop.permute.xlu1 %2538 }
 0x444   : > { %3002 = vrot.lane.b32.xlu1 %v3286_v8, %s4195_s11  ;;  %v2595_v59 = vadd.f32 %v5777_v21, %v2539_v4 }
 0x445   : > { %v2541_v10 = vpop.permute.xlu0 %2540 }
 0x446   : > { %2830 = vrot.lane.b32.xlu0 %v2766_v13, %s4195_s11  ;;  %v2596_v23 = vadd.f32 %v5778_v44, %v2541_v10  ;;  %v2770_v26 = vmul.f32 %v5779_v28, %v2595_v59 }
 0x448   : > { %2832 = vrot.lane.b32.xlu1 %v2767_v63, %s4195_s11  ;;  %v2771_v48 = vmul.f32 %v5780_v16, %v2596_v23  ;;  %v3292_v2 = vpack.c.bf16 %v2770_v26, %v2770_v26 }
 0x44a   : > { %3008 = vrot.lane.b32.xlu0 %v3289_v36, %s4195_s11  ;;  %v3293_v49 = vpack.c.bf16 %v2771_v48, %v2771_v48 }
 0x44c   : > { %3006 = vrot.lane.b32.xlu1 %v3288_v0, %s4195_s11 }
 0x44e   : > { %2834 = vrot.lane.b32.xlu0 %v2768_v50, %s4195_s11 }
 0x44f   : > { %v2543_v5 = vpop.permute.xlu1 %2542 }
 0x450   : > { %2836 = vrot.lane.b32.xlu1 %v2769_v46, %s4195_s11  ;;  %v2597_v60 = vadd.f32 %v5781_v52, %v2543_v5 }
 0x451   : > { %v2545_v51 = vpop.permute.xlu0 %2544 }
 0x452   : > { %3012 = vrot.lane.b32.xlu0 %v3291_v41, %s4195_s11  ;;  %v2598_v34 = vadd.f32 %v5782_v33, %v2545_v51  ;;  %v2772_v56 = vmul.f32 %v5783_v14, %v2597_v60 }
 0x454   : > { %3010 = vrot.lane.b32.xlu1 %v3290_v54, %s4195_s11  ;;  %v2773_v9 = vmul.f32 %v5784_v57, %v2598_v34  ;;  %v3294_v39 = vpack.c.bf16 %v2772_v56, %v2772_v56 }
 0x456   : > { %2838 = vrot.lane.b32.xlu0 %v2770_v26, %s4195_s11  ;;  %v3295_v31 = vpack.c.bf16 %v2773_v9, %v2773_v9 }
 0x458   : > { %2840 = vrot.lane.b32.xlu1 %v2771_v48, %s4195_s11 }
 0x45a   : > { %3016 = vrot.lane.b32.xlu0 %v3293_v49, %s4195_s11 }
 0x45b   : > { %v2547_v35 = vpop.permute.xlu1 %2546 }
 0x45c   : > { %3014 = vrot.lane.b32.xlu1 %v3292_v2, %s4195_s11  ;;  %v2599_v3 = vadd.f32 %v5785_v53, %v2547_v35 }
 0x45d   : > { %v2549_v18 = vpop.permute.xlu0 %2548 }
 0x45e   : > { %2842 = vrot.lane.b32.xlu0 %v2772_v56, %s4195_s11  ;;  %v2600_v58 = vadd.f32 %v5786_v17, %v2549_v18  ;;  %v2774_v62 = vmul.f32 %v5787_v61, %v2599_v3 }
 0x460   : > { %2844 = vrot.lane.b32.xlu1 %v2773_v9, %s4195_s11  ;;  %v2775_v24 = vmul.f32 %v5789_v7, %v2600_v58  ;;  %v3296_v45 = vpack.c.bf16 %v2774_v62, %v2774_v62 }
 0x462   : > { %3020 = vrot.lane.b32.xlu0 %v3295_v31, %s4195_s11  ;;  %v3297_v1 = vpack.c.bf16 %v2775_v24, %v2775_v24 }
 0x463   : > { %v2551_v20 = vpop.permute.xlu1 %2550 }
 0x464   : > { %v2601_v22 = vadd.f32 %v5788_v15, %v2551_v20  ;;  %3018 = vrot.lane.b32.xlu1 %v3294_v39, %s4195_s11 }
 0x466   : > { %2846 = vrot.lane.b32.xlu0 %v2774_v62, %s4195_s11  ;;  %v2776_v43 = vmul.f32 %v5790_v55, %v2601_v22 }
 0x468   : > { %2848 = vrot.lane.b32.xlu1 %v2775_v24, %s4195_s11  ;;  %v3298_v27 = vpack.c.bf16 %v2776_v43, %v2776_v43 }
 0x46a   : > { %2850 = vrot.lane.b32.xlu0 %v2776_v43, %s4195_s11 }
 0x46c   : > { %3022 = vrot.lane.b32.xlu1 %v3296_v45, %s4195_s11 }
 0x46e   : > { %3024 = vrot.lane.b32.xlu0 %v3297_v1, %s4195_s11 }
 0x470   : > { %3026 = vrot.lane.b32.xlu1 %v3298_v27, %s4195_s11 }
 0x478   : > { %v2803_v11 = vpop.permute.xlu0 %2802 }
 0x479   : > { %2877 = vst.msk [vmem:[#allocation2 + $0x10] sm:$0xff] %vm1073_vm2, %v2803_v11 }
 0x482   : > { %v2805_v47 = vpop.permute.xlu1 %2804 }
 0x483   : > { %2878 = vst.msk [vmem:[#allocation2 + $0x18] sm:$0xff] %vm1073_vm2, %v2805_v47 }
 0x484   : > { %v2981_v30 = vpop.permute.xlu0 %2980 }
 0x485   : > { %3055 = vst.msk [vmem:[%s4268_s10 + $0x4] sm:$0xf] %vm3053_vm5, %v2981_v30 }
 0x486   : > { %v2979_v8 = vpop.permute.xlu1 %2978 }
 0x487   : > { %3054 = vst.msk [vmem:[%s4268_s10] sm:$0xf] %vm3053_vm5, %v2979_v8 }
 0x488   : > { %v2807_v6 = vpop.permute.xlu0 %2806 }
 0x489   : > { %2879 = vst.msk [vmem:[#allocation2 + $0x20] sm:$0xff] %vm1073_vm2, %v2807_v6 }
 0x48a   : > { %v2809_v13 = vpop.permute.xlu1 %2808 }
 0x48b   : > { %2880 = vst.msk [vmem:[#allocation2 + $0x28] sm:$0xff] %vm1073_vm2, %v2809_v13 }
 0x48c   : > { %v2985_v40 = vpop.permute.xlu0 %2984 }
 0x48d   : > { %3057 = vst.msk [vmem:[%s4268_s10 + $0xc] sm:$0xf] %vm3053_vm5, %v2985_v40 }
 0x48e   : > { %v2983_v63 = vpop.permute.xlu1 %2982 }
 0x48f   : > { %3056 = vst.msk [vmem:[%s4268_s10 + $0x8] sm:$0xf] %vm3053_vm5, %v2983_v63 }
 0x490   : > { %v2811_v38 = vpop.permute.xlu0 %2810 }
 0x491   : > { %2881 = vst.msk [vmem:[#allocation2 + $0x30] sm:$0xff] %vm1073_vm2, %v2811_v38 }
 0x492   : > { %v2813_v32 = vpop.permute.xlu1 %2812 }
 0x493   : > { %2882 = vst.msk [vmem:[#allocation2 + $0x38] sm:$0xff] %vm1073_vm2, %v2813_v32 }
 0x494   : > { %v2989_v36 = vpop.permute.xlu0 %2988 }
 0x495   : > { %3059 = vst.msk [vmem:[%s4268_s10 + $0x14] sm:$0xf] %vm3053_vm5, %v2989_v36 }
 0x496   : > { %v2987_v19 = vpop.permute.xlu1 %2986 }
 0x497   : > { %3058 = vst.msk [vmem:[%s4268_s10 + $0x10] sm:$0xf] %vm3053_vm5, %v2987_v19 }
 0x498   : > { %v2815_v29 = vpop.permute.xlu0 %2814 }
 0x499   : > { %2883 = vst.msk [vmem:[#allocation2 + $0x40] sm:$0xff] %vm1073_vm2, %v2815_v29 }
 0x49a   : > { %v2817_v37 = vpop.permute.xlu1 %2816 }
 0x49b   : > { %2884 = vst.msk [vmem:[#allocation2 + $0x48] sm:$0xff] %vm1073_vm2, %v2817_v37 }
 0x49c   : > { %v2993_v12 = vpop.permute.xlu0 %2992 }
 0x49d   : > { %3061 = vst.msk [vmem:[%s4268_s10 + $0x1c] sm:$0xf] %vm3053_vm5, %v2993_v12 }
 0x49e   : > { %v2991_v0 = vpop.permute.xlu1 %2990 }
 0x49f   : > { %3060 = vst.msk [vmem:[%s4268_s10 + $0x18] sm:$0xf] %vm3053_vm5, %v2991_v0 }
 0x4a0   : > { %v2819_v25 = vpop.permute.xlu0 %2818 }
 0x4a1   : > { %2885 = vst.msk [vmem:[#allocation2 + $0x50] sm:$0xff] %vm1073_vm2, %v2819_v25 }
 0x4a2   : > { %v2821_v50 = vpop.permute.xlu1 %2820 }
 0x4a3   : > { %2886 = vst.msk [vmem:[#allocation2 + $0x58] sm:$0xff] %vm1073_vm2, %v2821_v50 }
 0x4a4   : > { %v2997_v42 = vpop.permute.xlu0 %2996 }
 0x4a5   : > { %3063 = vst.msk [vmem:[%s4268_s10 + $0x24] sm:$0xf] %vm3053_vm5, %v2997_v42 }
 0x4a6   : > { %v2995_v46 = vpop.permute.xlu1 %2994 }
 0x4a7   : > { %3062 = vst.msk [vmem:[%s4268_s10 + $0x20] sm:$0xf] %vm3053_vm5, %v2995_v46 }
 0x4a8   : > { %v2823_v4 = vpop.permute.xlu0 %2822 }
 0x4a9   : > { %2887 = vst.msk [vmem:[#allocation2 + $0x60] sm:$0xff] %vm1073_vm2, %v2823_v4 }
 0x4aa   : > { %v2825_v10 = vpop.permute.xlu1 %2824 }
 0x4ab   : > { %2888 = vst.msk [vmem:[#allocation2 + $0x68] sm:$0xff] %vm1073_vm2, %v2825_v10 }
 0x4ac   : > { %v3001_v41 = vpop.permute.xlu0 %3000 }
 0x4ad   : > { %3065 = vst.msk [vmem:[%s4268_s10 + $0x2c] sm:$0xf] %vm3053_vm5, %v3001_v41 }
 0x4ae   : > { %v2999_v21 = vpop.permute.xlu1 %2998 }
 0x4af   : > { %3064 = vst.msk [vmem:[%s4268_s10 + $0x28] sm:$0xf] %vm3053_vm5, %v2999_v21 }
 0x4b0   : > { %v2827_v59 = vpop.permute.xlu0 %2826 }
 0x4b1   : > { %2889 = vst.msk [vmem:[#allocation2 + $0x70] sm:$0xff] %vm1073_vm2, %v2827_v59 }
 0x4b2   : > { %v2829_v44 = vpop.permute.xlu1 %2828 }
 0x4b3   : > { %2890 = vst.msk [vmem:[#allocation2 + $0x78] sm:$0xff] %vm1073_vm2, %v2829_v44 }
 0x4b4   : > { %v3005_v23 = vpop.permute.xlu0 %3004 }
 0x4b5   : > { %3067 = vst.msk [vmem:[%s4268_s10 + $0x34] sm:$0xf] %vm3053_vm5, %v3005_v23 }
 0x4b6   : > { %v3003_v54 = vpop.permute.xlu1 %3002 }
 0x4b7   : > { %3066 = vst.msk [vmem:[%s4268_s10 + $0x30] sm:$0xf] %vm3053_vm5, %v3003_v54 }
 0x4b8   : > { %v2831_v28 = vpop.permute.xlu0 %2830 }
 0x4b9   : > { %2891 = vst.msk [vmem:[#allocation2 + $0x80] sm:$0xff] %vm1073_vm2, %v2831_v28 }
 0x4ba   : > { %v2833_v26 = vpop.permute.xlu1 %2832 }
 0x4bb   : > { %2892 = vst.msk [vmem:[#allocation2 + $0x88] sm:$0xff] %vm1073_vm2, %v2833_v26 }
 0x4bc   : > { %v3009_v16 = vpop.permute.xlu0 %3008 }
 0x4bd   : > { %3069 = vst.msk [vmem:[%s4268_s10 + $0x3c] sm:$0xf] %vm3053_vm5, %v3009_v16 }
 0x4be   : > { %v3007_v48 = vpop.permute.xlu1 %3006 }
 0x4bf   : > { %3068 = vst.msk [vmem:[%s4268_s10 + $0x38] sm:$0xf] %vm3053_vm5, %v3007_v48 }
 0x4c0   : > { %v2835_v5 = vpop.permute.xlu0 %2834 }
 0x4c1   : > { %2893 = vst.msk [vmem:[#allocation2 + $0x90] sm:$0xff] %vm1073_vm2, %v2835_v5 }
 0x4c2   : > { %v2837_v51 = vpop.permute.xlu1 %2836 }
 0x4c3   : > { %2894 = vst.msk [vmem:[#allocation2 + $0x98] sm:$0xff] %vm1073_vm2, %v2837_v51 }
 0x4c4   : > { %v3013_v49 = vpop.permute.xlu0 %3012 }
 0x4c5   : > { %3071 = vst.msk [vmem:[%s4268_s10 + $0x44] sm:$0xf] %vm3053_vm5, %v3013_v49 }
 0x4c6   : > { %v3011_v52 = vpop.permute.xlu1 %3010 }
 0x4c7   : > { %3070 = vst.msk [vmem:[%s4268_s10 + $0x40] sm:$0xf] %vm3053_vm5, %v3011_v52 }
 0x4c8   : > { %v2839_v60 = vpop.permute.xlu0 %2838 }
 0x4c9   : > { %2895 = vst.msk [vmem:[#allocation2 + $0xa0] sm:$0xff] %vm1073_vm2, %v2839_v60 }
 0x4ca   : > { %v2841_v33 = vpop.permute.xlu1 %2840 }
 0x4cb   : > { %2896 = vst.msk [vmem:[#allocation2 + $0xa8] sm:$0xff] %vm1073_vm2, %v2841_v33 }
 0x4cc   : > { %v3017_v34 = vpop.permute.xlu0 %3016 }
 0x4cd   : > { %3073 = vst.msk [vmem:[%s4268_s10 + $0x4c] sm:$0xf] %vm3053_vm5, %v3017_v34 }
 0x4ce   : > { %v3015_v2 = vpop.permute.xlu1 %3014 }
 0x4cf   : > { %3072 = vst.msk [vmem:[%s4268_s10 + $0x48] sm:$0xf] %vm3053_vm5, %v3015_v2 }
 0x4d0   : > { %v2843_v14 = vpop.permute.xlu0 %2842 }
 0x4d1   : > { %2897 = vst.msk [vmem:[#allocation2 + $0xb0] sm:$0xff] %vm1073_vm2, %v2843_v14 }
 0x4d2   : > { %v2845_v56 = vpop.permute.xlu1 %2844 }
 0x4d3   : > { %2898 = vst.msk [vmem:[#allocation2 + $0xb8] sm:$0xff] %vm1073_vm2, %v2845_v56 }
 0x4d4   : > { %v3021_v57 = vpop.permute.xlu0 %3020 }
 0x4d5   : > { %3075 = vst.msk [vmem:[%s4268_s10 + $0x54] sm:$0xf] %vm3053_vm5, %v3021_v57 }
 0x4d6   : > { %v3019_v9 = vpop.permute.xlu1 %3018 }
 0x4d7   : > { %3074 = vst.msk [vmem:[%s4268_s10 + $0x50] sm:$0xf] %vm3053_vm5, %v3019_v9 }
 0x4d8   : > { %v2847_v35 = vpop.permute.xlu0 %2846 }
 0x4d9   : > { %2899 = vst.msk [vmem:[#allocation2 + $0xc0] sm:$0xff] %vm1073_vm2, %v2847_v35 }
 0x4da   : > { %v2849_v18 = vpop.permute.xlu1 %2848 }
 0x4db   : > { %2900 = vst.msk [vmem:[#allocation2 + $0xc8] sm:$0xff] %vm1073_vm2, %v2849_v18 }
 0x4dc   : > { %v2851_v31 = vpop.permute.xlu0 %2850 }
 0x4dd   : > { %2901 = vst.msk [vmem:[#allocation2 + $0xd0] sm:$0xff] %vm1073_vm2, %v2851_v31 }
 0x4de   : > { %v3023_v53 = vpop.permute.xlu1 %3022 }
 0x4df   : > { %3076 = vst.msk [vmem:[%s4268_s10 + $0x58] sm:$0xf] %vm3053_vm5, %v3023_v53 }
 0x4e0   : > { %v3025_v3 = vpop.permute.xlu0 %3024 }
 0x4e1   : > { %3077 = vst.msk [vmem:[%s4268_s10 + $0x5c] sm:$0xf] %vm3053_vm5, %v3025_v3 }
 0x4e2   : > { %v3027_v39 = vpop.permute.xlu1 %3026 }
 0x4e3   : > { %3078 = vst.msk [vmem:[%s4268_s10 + $0x60] sm:$0xf] %vm3053_vm5, %v3027_v39 }
 0x4e4 PF: > { %s14_s19 = sadd.s32 1, %s4191_s19   ;;  %s5791_s15 = smov %s4183_s17 }
 0x4e5   : > { %p11_p8 = scmp.ge.s32.totalorder %s14_s19, 18   ;;  %s5792_s16 = smov %s4187_s18 }
 0x4e6   : > { %s5793_s17 = smov %s5796_s20  ;;  %s5794_s18 = smov %s5800_s21 }
 0x4e7   :  { %13 = sbr.rel (!%p11_p8) target bundleno = 3 (0x3), region = 73 }

</bundles_post_ra>
